<compile_context>
chip_gen: v6e
topology: v6e:2x2x1
jax: 0.10.0
libtpu: 0.0.40
codegen_flags: <defaults>
</compile_context>

<pallas_src>
import functools

import jax
import jax.numpy as jnp
from jax import lax
from jax.experimental import pallas as pl
from jax.experimental.pallas import tpu as pltpu

HIDDEN = 200  # fixed by the module definition


def _round_up(n, m):
    return ((n + m - 1) // m) * m


def _lstm_kernel(T, Bt, x_ref, w_ih_ref, w_hh_ref, b_ref, w_out_ref, b_out_ref,
                 out_ref, gx_ref, hs_ref, h_ref, c_ref):
    """One (batch-tile, time-chunk) grid step.

    x_ref:     (T, Bt, F)     time-major input chunk (double-buffered by Pallas)
    w_ih_ref:  (F, 4*Hp)      input->gate weights (gate-blocked, hidden-padded)
    w_hh_ref:  (Hp, 4*Hp)     hidden->gate weights (gate-blocked, hidden-padded)
    b_ref:     (1, 4*Hp)      b_ih + b_hh (padded lanes are 0)
    w_out_ref: (Hp, 1)        Linear weight column (padded lanes are 0)
    b_out_ref: (1, 1)         Linear bias
    out_ref:   (T, Bt, 1)     per-(t, b) scalar output chunk
    gx_ref:    (T*Bt, 4*Hp)   scratch: hoisted input projection for this chunk
    hs_ref:    (T*Bt, Hp)     scratch: relu(h_t) for every step of this chunk
    h_ref:     (Bt, Hp)       persistent hidden-state carry across time chunks
    c_ref:     (Bt, Hp)       persistent cell-state carry across time chunks
    """
    Hp = w_hh_ref.shape[0]
    F = x_ref.shape[-1]

    # Reset the recurrence carry at the first time chunk of each batch tile.
    @pl.when(pl.program_id(1) == 0)
    def _():
        h_ref[...] = jnp.zeros_like(h_ref)
        c_ref[...] = jnp.zeros_like(c_ref)

    # ---- 1) Hoisted input projection for the whole chunk: one MXU matmul, bias fused.
    #         (T, Bt, F) -> (T*Bt, F) is layout-free because Bt is a multiple of 8.
    x2d = x_ref[...].reshape(T * Bt, F)
    gx_ref[...] = (
        jnp.dot(x2d, w_ih_ref[...], preferred_element_type=jnp.float32) + b_ref[...]
    )

    # ---- 2) Serial recurrence: per step only (Bt,Hp)@(Hp,4Hp) + gate nonlinearities.
    def step(t, carry):
        h, c = carry
        row = pl.multiple_of(t * Bt, Bt)          # tile-aligned leading-dim slab
        gates = gx_ref[pl.ds(row, Bt), :] + jnp.dot(
            h, w_hh_ref[...], preferred_element_type=jnp.float32)
        # 128-aligned gate slices (Hp = 256): free view-style slicing, no relayout.
        i_g = jax.nn.sigmoid(gates[:, 0:Hp])
        f_g = jax.nn.sigmoid(gates[:, Hp:2 * Hp])
        g_g = jnp.tanh(gates[:, 2 * Hp:3 * Hp])
        o_g = jax.nn.sigmoid(gates[:, 3 * Hp:4 * Hp])
        c_new = f_g * c + i_g * g_g
        h_new = o_g * jnp.tanh(c_new)
        # ReLU fused into the loop; the un-clamped h stays in the carry.
        hs_ref[pl.ds(row, Bt), :] = jnp.maximum(h_new, 0.0)
        return h_new, c_new

    h_fin, c_fin = lax.fori_loop(0, T, step, (h_ref[...], c_ref[...]),
                                 unroll=min(8, T))
    h_ref[...] = h_fin
    c_ref[...] = c_fin

    # ---- 3) Post-loop Linear(Hp -> 1): one matmul per chunk, dense block store.
    y = jnp.dot(hs_ref[...], w_out_ref[...], preferred_element_type=jnp.float32)
    out_ref[...] = (y + b_out_ref[...]).reshape(T, Bt, 1)


def _prep_params(params, H, Hp):
    """Re-layout PyTorch LSTM/Linear params: gate-blocked, zero-padded to Hp lanes."""
    F = params["w_ih"].shape[1]
    pad_h = Hp - H

    # weight_ih_l0: (4H, F), gate order i,f,g,o  ->  (F, 4*Hp), columns gate-blocked.
    w_ih = params["w_ih"].astype(jnp.float32).reshape(4, H, F)
    w_ih = jnp.transpose(w_ih, (2, 0, 1))                       # (F, 4, H)
    w_ih = jnp.pad(w_ih, ((0, 0), (0, 0), (0, pad_h)))          # (F, 4, Hp)
    w_ih = w_ih.reshape(F, 4 * Hp)

    # weight_hh_l0: (4H, H)  ->  (Hp, 4*Hp)
    w_hh = params["w_hh"].astype(jnp.float32).reshape(4, H, H)
    w_hh = jnp.transpose(w_hh, (2, 0, 1))                       # (H_in, 4, H_out)
    w_hh = jnp.pad(w_hh, ((0, pad_h), (0, 0), (0, pad_h)))      # (Hp, 4, Hp)
    w_hh = w_hh.reshape(Hp, 4 * Hp)

    # bias: zero-pad per gate block (zero pad keeps padded c/h lanes exactly 0).
    b = (params["b_ih"] + params["b_hh"]).astype(jnp.float32).reshape(4, H)
    b = jnp.pad(b, ((0, 0), (0, pad_h))).reshape(1, 4 * Hp)

    # Linear(200 -> 1): weight as a padded column, bias as (1, 1).
    w_out = jnp.pad(params["w_lin"].astype(jnp.float32), ((0, 0), (0, pad_h)))  # (1, Hp)
    w_out = w_out.reshape(Hp, 1)
    b_out = params["b_lin"].astype(jnp.float32).reshape(1, 1)
    return w_ih, w_hh, b, w_out, b_out


def _vmem_limit_bytes(F, Hp, T, Bt):
    """Generous estimate of resident VMEM for the chosen chunk size."""
    lane = lambda n: _round_up(n, 128)
    rows = T * Bt
    weights = 2 * (F * 4 * Hp + Hp * 4 * Hp + 4 * Hp + Hp * lane(1) + lane(1))
    scratch = rows * 4 * Hp + rows * Hp + 2 * Bt * Hp          # gx, hs, h, c
    io = 2 * rows * lane(F) + 2 * rows * lane(1)               # double-buffered x / out
    est = 4 * (weights + scratch + io) + (8 << 20)
    return int(min(max(est, 32 << 20), 64 << 20))


@functools.partial(jax.jit, static_argnames=("hidden", "batch_tiles"))
def lstm_model_forward(x, params, hidden=HIDDEN, batch_tiles=1):
    """x: (B, S, F) float32 -> (B, S) float32, matching LSTM_model.forward.

    batch_tiles=2 splits the batch across two "parallel" grid rows (use on v7x's two
    TensorCores when the padded batch is a multiple of 16); leave at 1 on v5e/v6e.
    """
    B, S, F = x.shape
    Hp = _round_up(hidden, 128)                      # 200 -> 256
    Bp = _round_up(B, 8)                             # pad batch to full sublanes

    n_bt = batch_tiles if (batch_tiles > 1 and Bp % (8 * batch_tiles) == 0) else 1
    Bt = Bp // n_bt
    # Time chunk: ~2K (t, b) rows per chunk bounds VMEM independent of S.
    T = min(S, max(8, 2048 // Bt))
    Sp = _round_up(S, T)
    n_chunks = Sp // T

    w_ih_p, w_hh_p, b_p, w_out_p, b_out_p = _prep_params(params, hidden, Hp)

    # Time-major, batch/time zero-padded (single transpose+pad pass; see header TODO).
    x_tm = jnp.pad(jnp.transpose(x, (1, 0, 2)),
                   ((0, Sp - S), (0, Bp - B), (0, 0)))          # (Sp, Bp, F)

    kernel = functools.partial(_lstm_kernel, T, Bt)
    out = pl.pallas_call(
        kernel,
        out_shape=jax.ShapeDtypeStruct((Sp, Bp, 1), jnp.float32),
        grid=(n_bt, n_chunks),
        in_specs=[
            pl.BlockSpec((T, Bt, F), lambda bt, c: (c, bt, 0)),      # x chunk
            pl.BlockSpec((F, 4 * Hp), lambda bt, c: (0, 0)),         # W_ih (resident)
            pl.BlockSpec((Hp, 4 * Hp), lambda bt, c: (0, 0)),        # W_hh (resident)
            pl.BlockSpec((1, 4 * Hp), lambda bt, c: (0, 0)),         # bias
            pl.BlockSpec((Hp, 1), lambda bt, c: (0, 0)),             # W_out
            pl.BlockSpec((1, 1), lambda bt, c: (0, 0)),              # b_out
        ],
        out_specs=pl.BlockSpec((T, Bt, 1), lambda bt, c: (c, bt, 0)),
        scratch_shapes=[
            pltpu.VMEM((T * Bt, 4 * Hp), jnp.float32),   # gx: hoisted input projections
            pltpu.VMEM((T * Bt, Hp), jnp.float32),       # hs: relu(h_t) of the chunk
            pltpu.VMEM((Bt, Hp), jnp.float32),           # h carry (persistent)
            pltpu.VMEM((Bt, Hp), jnp.float32),           # c carry (persistent)
        ],
        compiler_params=pltpu.CompilerParams(
            dimension_semantics=("parallel", "arbitrary"),
            vmem_limit_bytes=_vmem_limit_bytes(F, Hp, T, Bt),
        ),
    )(x_tm, w_ih_p, w_hh_p, b_p, w_out_p, b_out_p)

    # (Sp, Bp, 1) -> (Sp, Bp) -> drop time/batch padding -> (B, S)
    return out.reshape(Sp, Bp)[:S, :B].T


def lstm_model_ref(x, params):
    """Pure-JAX reference of the PyTorch forward."""
    B, S, F = x.shape
    H = HIDDEN
    w_ih, w_hh = params["w_ih"], params["w_hh"]
    b = params["b_ih"] + params["b_hh"]

    def step(carry, x_t):
        h, c = carry
        gates = x_t @ w_ih.T + h @ w_hh.T + b
        i = jax.nn.sigmoid(gates[:, 0:H])
        f = jax.nn.sigmoid(gates[:, H:2 * H])
        g = jnp.tanh(gates[:, 2 * H:3 * H])
        o = jax.nn.sigmoid(gates[:, 3 * H:4 * H])
        c = f * c + i * g
        h = o * jnp.tanh(c)
        return (h, c), h

    init = (jnp.zeros((B, H), jnp.float32), jnp.zeros((B, H), jnp.float32))
    _, hs = lax.scan(step, init, jnp.swapaxes(x, 0, 1))
    hs = jnp.swapaxes(hs, 0, 1)                            # (B, S, H)
    y = jnp.maximum(hs, 0.0)
    out = y @ params["w_lin"].T + params["b_lin"]          # (B, S, 1)
    return out.reshape(B, S)


if __name__ == "__main__":
    B, S, F = 2, 8, 8
    H = HIDDEN
    key = jax.random.PRNGKey(0)
    ks = jax.random.split(key, 7)
    k = 1.0 / jnp.sqrt(float(H))  # PyTorch default init range

    params = {
        "w_ih": jax.random.uniform(ks[0], (4 * H, F), jnp.float32, -k, k),
        "w_hh": jax.random.uniform(ks[1], (4 * H, H), jnp.float32, -k, k),
        "b_ih": jax.random.uniform(ks[2], (4 * H,), jnp.float32, -k, k),
        "b_hh": jax.random.uniform(ks[3], (4 * H,), jnp.float32, -k, k),
        "w_lin": jax.random.uniform(ks[4], (1, H), jnp.float32, -k, k),
        "b_lin": jax.random.uniform(ks[5], (1,), jnp.float32, -k, k),
    }
    x = jax.random.normal(ks[6], (B, S, F), jnp.float32)

    out = jax.block_until_ready(lstm_model_forward(x, params))
    ref = jax.block_until_ready(lstm_model_ref(x, params))

    assert out.shape == (B, S), out.shape
    max_err = jnp.max(jnp.abs(out - ref))
    assert jnp.allclose(out, ref, rtol=1e-4, atol=1e-4), f"max abs err {max_err}"
    print("KERNEL_OK")
</pallas_src>

<mosaic_0001>
module attributes {stable_mosaic.version = 11 : i64} {
  func.func @_lstm_kernel(%arg0: i32, %arg1: i32, %arg2: memref<8x8x8xf32, #tpu.memory_space<vmem>>, %arg3: memref<8x1024xf32, #tpu.memory_space<vmem>>, %arg4: memref<256x1024xf32, #tpu.memory_space<vmem>>, %arg5: memref<1x1024xf32, #tpu.memory_space<vmem>>, %arg6: memref<256x1xf32, #tpu.memory_space<vmem>>, %arg7: memref<1x1xf32, #tpu.memory_space<vmem>>, %arg8: memref<8x8x1xf32, #tpu.memory_space<vmem>>, %arg9: memref<64x1024xf32, #tpu.memory_space<vmem>>, %arg10: memref<64x256xf32, #tpu.memory_space<vmem>>, %arg11: memref<8x256xf32, #tpu.memory_space<vmem>>, %arg12: memref<8x256xf32, #tpu.memory_space<vmem>>) attributes {dimension_semantics = [#tpu.dimension_semantics<parallel>, #tpu.dimension_semantics<arbitrary>], iteration_bounds = array<i64: 1, 1>, scalar_prefetch = 0 : i64, scratch_operands = 4 : i64, tpu.core_type = #tpu.core_type<tc>, window_params = [{transform_indices = @transform_0, window_bounds = array<i64: 8, 8, 8>}, {pipeline_mode = #tpu.pipeline_mode<synchronous>, transform_indices = @transform_1, window_bounds = array<i64: 8, 1024>}, {pipeline_mode = #tpu.pipeline_mode<synchronous>, transform_indices = @transform_2, window_bounds = array<i64: 256, 1024>}, {pipeline_mode = #tpu.pipeline_mode<synchronous>, transform_indices = @transform_3, window_bounds = array<i64: 1, 1024>}, {pipeline_mode = #tpu.pipeline_mode<synchronous>, transform_indices = @transform_4, window_bounds = array<i64: 256, 1>}, {pipeline_mode = #tpu.pipeline_mode<synchronous>, transform_indices = @transform_5, window_bounds = array<i64: 1, 1>}, {transform_indices = @transform_6, window_bounds = array<i64: 8, 8, 1>}]} {
    %c0_i32 = arith.constant 0 : i32
    %0 = arith.cmpi eq, %arg1, %c0_i32 : i32
    %1 = arith.extui %0 : i1 to i32
    %c0_i32_0 = arith.constant 0 : i32
    %2 = arith.cmpi ne, %1, %c0_i32_0 : i32
    scf.if %2 {
      %cst_108 = arith.constant 0.000000e+00 : f32
      %311 = vector.broadcast %cst_108 : f32 to vector<8x256xf32>
      %c0_109 = arith.constant 0 : index
      %c0_110 = arith.constant 0 : index
      %312 = vector.load %arg11[%c0_109, %c0_110] : memref<8x256xf32, #tpu.memory_space<vmem>>, vector<8x256xf32>
      tpu.vector_store %arg11[%c0_109, %c0_110], %311 {strides = array<i32>} : memref<8x256xf32, #tpu.memory_space<vmem>>, vector<8x256xf32>,
      %cst_111 = arith.constant 0.000000e+00 : f32
      %313 = vector.broadcast %cst_111 : f32 to vector<8x256xf32>
      %c0_112 = arith.constant 0 : index
      %c0_113 = arith.constant 0 : index
      %314 = vector.load %arg12[%c0_112, %c0_113] : memref<8x256xf32, #tpu.memory_space<vmem>>, vector<8x256xf32>
      tpu.vector_store %arg12[%c0_112, %c0_113], %313 {strides = array<i32>} : memref<8x256xf32, #tpu.memory_space<vmem>>, vector<8x256xf32>,
    } else {
    }
    %c0 = arith.constant 0 : index
    %c0_1 = arith.constant 0 : index
    %c0_2 = arith.constant 0 : index
    %3 = vector.load %arg2[%c0, %c0_1, %c0_2] : memref<8x8x8xf32, #tpu.memory_space<vmem>>, vector<8x8x8xf32>
    %4 = vector.shape_cast %3 : vector<8x8x8xf32> to vector<64x8xf32>
    %c0_3 = arith.constant 0 : index
    %c0_4 = arith.constant 0 : index
    %5 = vector.load %arg3[%c0_3, %c0_4] : memref<8x1024xf32, #tpu.memory_space<vmem>>, vector<8x1024xf32>
    %cst = arith.constant dense<0.000000e+00> : vector<64x1024xf32>
    %6 = tpu.matmul %4, %5, %cst {dimension_numbers = #tpu.dot_dimension_numbers<[1], [0], [0], [1], [0, 0, 1, 1], [], []>} : vector<64x8xf32>, vector<8x1024xf32>, vector<64x1024xf32> -> vector<64x1024xf32>
    %c0_5 = arith.constant 0 : index
    %c0_6 = arith.constant 0 : index
    %7 = vector.load %arg5[%c0_5, %c0_6] : memref<1x1024xf32, #tpu.memory_space<vmem>>, vector<1x1024xf32>
    %8 = vector.broadcast %7 : vector<1x1024xf32> to vector<64x1024xf32>
    %9 = arith.addf %6, %8 : vector<64x1024xf32>
    %c0_7 = arith.constant 0 : index
    %c0_8 = arith.constant 0 : index
    %10 = vector.load %arg9[%c0_7, %c0_8] : memref<64x1024xf32, #tpu.memory_space<vmem>>, vector<64x1024xf32>
    tpu.vector_store %arg9[%c0_7, %c0_8], %9 {strides = array<i32>} : memref<64x1024xf32, #tpu.memory_space<vmem>>, vector<64x1024xf32>,
    %c0_9 = arith.constant 0 : index
    %c0_10 = arith.constant 0 : index
    %11 = vector.load %arg11[%c0_9, %c0_10] : memref<8x256xf32, #tpu.memory_space<vmem>>, vector<8x256xf32>
    %c0_11 = arith.constant 0 : index
    %c0_12 = arith.constant 0 : index
    %12 = vector.load %arg12[%c0_11, %c0_12] : memref<8x256xf32, #tpu.memory_space<vmem>>, vector<8x256xf32>
    %c0_i32_13 = arith.constant 0 : i32
    %c8_i32 = arith.constant 8 : i32
    %13 = arith.muli %c0_i32_13, %c8_i32 : i32
    %14 = tpu.assume_multiple %13, 8 : i32
    %15 = arith.index_cast %14 : i32 to index
    %c0_14 = arith.constant 0 : index
    %16 = vector.load %arg9[%15, %c0_14] : memref<64x1024xf32, #tpu.memory_space<vmem>>, vector<8x1024xf32>
    %c0_15 = arith.constant 0 : index
    %c0_16 = arith.constant 0 : index
    %17 = vector.load %arg4[%c0_15, %c0_16] : memref<256x1024xf32, #tpu.memory_space<vmem>>, vector<256x1024xf32>
    %cst_17 = arith.constant dense<0.000000e+00> : vector<8x1024xf32>
    %18 = tpu.matmul %11, %17, %cst_17 {dimension_numbers = #tpu.dot_dimension_numbers<[1], [0], [0], [1], [0, 0, 1, 1], [], []>} : vector<8x256xf32>, vector<256x1024xf32>, vector<8x1024xf32> -> vector<8x1024xf32>
    %19 = arith.addf %16, %18 : vector<8x1024xf32>
    %20 = vector.extract_strided_slice %19 {offsets = [0, 0], sizes = [8, 256], strides = [1, 1]} : vector<8x1024xf32> to vector<8x256xf32>
    %21 = arith.negf %20 : vector<8x256xf32>
    %22 = math.exp %21 : vector<8x256xf32>
    %cst_18 = arith.constant 1.000000e+00 : f32
    %23 = vector.broadcast %cst_18 : f32 to vector<8x256xf32>
    %24 = arith.addf %23, %22 : vector<8x256xf32>
    %25 = arith.divf %23, %24 : vector<8x256xf32>
    %26 = vector.extract_strided_slice %19 {offsets = [0, 256], sizes = [8, 256], strides = [1, 1]} : vector<8x1024xf32> to vector<8x256xf32>
    %27 = arith.negf %26 : vector<8x256xf32>
    %28 = math.exp %27 : vector<8x256xf32>
    %cst_19 = arith.constant 1.000000e+00 : f32
    %29 = vector.broadcast %cst_19 : f32 to vector<8x256xf32>
    %30 = arith.addf %29, %28 : vector<8x256xf32>
    %31 = arith.divf %29, %30 : vector<8x256xf32>
    %32 = vector.extract_strided_slice %19 {offsets = [0, 512], sizes = [8, 256], strides = [1, 1]} : vector<8x1024xf32> to vector<8x256xf32>
    %33 = math.tanh %32 : vector<8x256xf32>
    %34 = vector.extract_strided_slice %19 {offsets = [0, 768], sizes = [8, 256], strides = [1, 1]} : vector<8x1024xf32> to vector<8x256xf32>
    %35 = arith.negf %34 : vector<8x256xf32>
    %36 = math.exp %35 : vector<8x256xf32>
    %cst_20 = arith.constant 1.000000e+00 : f32
    %37 = vector.broadcast %cst_20 : f32 to vector<8x256xf32>
    %38 = arith.addf %37, %36 : vector<8x256xf32>
    %39 = arith.divf %37, %38 : vector<8x256xf32>
    %40 = arith.mulf %31, %12 : vector<8x256xf32>
    %41 = arith.mulf %25, %33 : vector<8x256xf32>
    %42 = arith.addf %40, %41 : vector<8x256xf32>
    %43 = math.tanh %42 : vector<8x256xf32>
    %44 = arith.mulf %39, %43 : vector<8x256xf32>
    %cst_21 = arith.constant 0.000000e+00 : f32
    %45 = vector.broadcast %cst_21 : f32 to vector<8x256xf32>
    %46 = arith.maximumf %44, %45 : vector<8x256xf32>
    %47 = arith.index_cast %14 : i32 to index
    %c0_22 = arith.constant 0 : index
    %48 = vector.load %arg10[%47, %c0_22] : memref<64x256xf32, #tpu.memory_space<vmem>>, vector<8x256xf32>
    tpu.vector_store %arg10[%47, %c0_22], %46 {strides = array<i32>} : memref<64x256xf32, #tpu.memory_space<vmem>>, vector<8x256xf32>,
    %c1_i32 = arith.constant 1 : i32
    %c8_i32_23 = arith.constant 8 : i32
    %49 = arith.muli %c1_i32, %c8_i32_23 : i32
    %50 = tpu.assume_multiple %49, 8 : i32
    %51 = arith.index_cast %50 : i32 to index
    %c0_24 = arith.constant 0 : index
    %52 = vector.load %arg9[%51, %c0_24] : memref<64x1024xf32, #tpu.memory_space<vmem>>, vector<8x1024xf32>
    %c0_25 = arith.constant 0 : index
    %c0_26 = arith.constant 0 : index
    %53 = vector.load %arg4[%c0_25, %c0_26] : memref<256x1024xf32, #tpu.memory_space<vmem>>, vector<256x1024xf32>
    %cst_27 = arith.constant dense<0.000000e+00> : vector<8x1024xf32>
    %54 = tpu.matmul %44, %53, %cst_27 {dimension_numbers = #tpu.dot_dimension_numbers<[1], [0], [0], [1], [0, 0, 1, 1], [], []>} : vector<8x256xf32>, vector<256x1024xf32>, vector<8x1024xf32> -> vector<8x1024xf32>
    %55 = arith.addf %52, %54 : vector<8x1024xf32>
    %56 = vector.extract_strided_slice %55 {offsets = [0, 0], sizes = [8, 256], strides = [1, 1]} : vector<8x1024xf32> to vector<8x256xf32>
    %57 = arith.negf %56 : vector<8x256xf32>
    %58 = math.exp %57 : vector<8x256xf32>
    %cst_28 = arith.constant 1.000000e+00 : f32
    %59 = vector.broadcast %cst_28 : f32 to vector<8x256xf32>
    %60 = arith.addf %59, %58 : vector<8x256xf32>
    %61 = arith.divf %59, %60 : vector<8x256xf32>
    %62 = vector.extract_strided_slice %55 {offsets = [0, 256], sizes = [8, 256], strides = [1, 1]} : vector<8x1024xf32> to vector<8x256xf32>
    %63 = arith.negf %62 : vector<8x256xf32>
    %64 = math.exp %63 : vector<8x256xf32>
    %cst_29 = arith.constant 1.000000e+00 : f32
    %65 = vector.broadcast %cst_29 : f32 to vector<8x256xf32>
    %66 = arith.addf %65, %64 : vector<8x256xf32>
    %67 = arith.divf %65, %66 : vector<8x256xf32>
    %68 = vector.extract_strided_slice %55 {offsets = [0, 512], sizes = [8, 256], strides = [1, 1]} : vector<8x1024xf32> to vector<8x256xf32>
    %69 = math.tanh %68 : vector<8x256xf32>
    %70 = vector.extract_strided_slice %55 {offsets = [0, 768], sizes = [8, 256], strides = [1, 1]} : vector<8x1024xf32> to vector<8x256xf32>
    %71 = arith.negf %70 : vector<8x256xf32>
    %72 = math.exp %71 : vector<8x256xf32>
    %cst_30 = arith.constant 1.000000e+00 : f32
    %73 = vector.broadcast %cst_30 : f32 to vector<8x256xf32>
    %74 = arith.addf %73, %72 : vector<8x256xf32>
    %75 = arith.divf %73, %74 : vector<8x256xf32>
    %76 = arith.mulf %67, %42 : vector<8x256xf32>
    %77 = arith.mulf %61, %69 : vector<8x256xf32>
    %78 = arith.addf %76, %77 : vector<8x256xf32>
    %79 = math.tanh %78 : vector<8x256xf32>
    %80 = arith.mulf %75, %79 : vector<8x256xf32>
    %cst_31 = arith.constant 0.000000e+00 : f32
    %81 = vector.broadcast %cst_31 : f32 to vector<8x256xf32>
    %82 = arith.maximumf %80, %81 : vector<8x256xf32>
    %83 = arith.index_cast %50 : i32 to index
    %c0_32 = arith.constant 0 : index
    %84 = vector.load %arg10[%83, %c0_32] : memref<64x256xf32, #tpu.memory_space<vmem>>, vector<8x256xf32>
    tpu.vector_store %arg10[%83, %c0_32], %82 {strides = array<i32>} : memref<64x256xf32, #tpu.memory_space<vmem>>, vector<8x256xf32>,
    %c2_i32 = arith.constant 2 : i32
    %c8_i32_33 = arith.constant 8 : i32
    %85 = arith.muli %c2_i32, %c8_i32_33 : i32
    %86 = tpu.assume_multiple %85, 8 : i32
    %87 = arith.index_cast %86 : i32 to index
    %c0_34 = arith.constant 0 : index
    %88 = vector.load %arg9[%87, %c0_34] : memref<64x1024xf32, #tpu.memory_space<vmem>>, vector<8x1024xf32>
    %c0_35 = arith.constant 0 : index
    %c0_36 = arith.constant 0 : index
    %89 = vector.load %arg4[%c0_35, %c0_36] : memref<256x1024xf32, #tpu.memory_space<vmem>>, vector<256x1024xf32>
    %cst_37 = arith.constant dense<0.000000e+00> : vector<8x1024xf32>
    %90 = tpu.matmul %80, %89, %cst_37 {dimension_numbers = #tpu.dot_dimension_numbers<[1], [0], [0], [1], [0, 0, 1, 1], [], []>} : vector<8x256xf32>, vector<256x1024xf32>, vector<8x1024xf32> -> vector<8x1024xf32>
    %91 = arith.addf %88, %90 : vector<8x1024xf32>
    %92 = vector.extract_strided_slice %91 {offsets = [0, 0], sizes = [8, 256], strides = [1, 1]} : vector<8x1024xf32> to vector<8x256xf32>
    %93 = arith.negf %92 : vector<8x256xf32>
    %94 = math.exp %93 : vector<8x256xf32>
    %cst_38 = arith.constant 1.000000e+00 : f32
    %95 = vector.broadcast %cst_38 : f32 to vector<8x256xf32>
    %96 = arith.addf %95, %94 : vector<8x256xf32>
    %97 = arith.divf %95, %96 : vector<8x256xf32>
    %98 = vector.extract_strided_slice %91 {offsets = [0, 256], sizes = [8, 256], strides = [1, 1]} : vector<8x1024xf32> to vector<8x256xf32>
    %99 = arith.negf %98 : vector<8x256xf32>
    %100 = math.exp %99 : vector<8x256xf32>
    %cst_39 = arith.constant 1.000000e+00 : f32
    %101 = vector.broadcast %cst_39 : f32 to vector<8x256xf32>
    %102 = arith.addf %101, %100 : vector<8x256xf32>
    %103 = arith.divf %101, %102 : vector<8x256xf32>
    %104 = vector.extract_strided_slice %91 {offsets = [0, 512], sizes = [8, 256], strides = [1, 1]} : vector<8x1024xf32> to vector<8x256xf32>
    %105 = math.tanh %104 : vector<8x256xf32>
    %106 = vector.extract_strided_slice %91 {offsets = [0, 768], sizes = [8, 256], strides = [1, 1]} : vector<8x1024xf32> to vector<8x256xf32>
    %107 = arith.negf %106 : vector<8x256xf32>
    %108 = math.exp %107 : vector<8x256xf32>
    %cst_40 = arith.constant 1.000000e+00 : f32
    %109 = vector.broadcast %cst_40 : f32 to vector<8x256xf32>
    %110 = arith.addf %109, %108 : vector<8x256xf32>
    %111 = arith.divf %109, %110 : vector<8x256xf32>
    %112 = arith.mulf %103, %78 : vector<8x256xf32>
    %113 = arith.mulf %97, %105 : vector<8x256xf32>
    %114 = arith.addf %112, %113 : vector<8x256xf32>
    %115 = math.tanh %114 : vector<8x256xf32>
    %116 = arith.mulf %111, %115 : vector<8x256xf32>
    %cst_41 = arith.constant 0.000000e+00 : f32
    %117 = vector.broadcast %cst_41 : f32 to vector<8x256xf32>
    %118 = arith.maximumf %116, %117 : vector<8x256xf32>
    %119 = arith.index_cast %86 : i32 to index
    %c0_42 = arith.constant 0 : index
    %120 = vector.load %arg10[%119, %c0_42] : memref<64x256xf32, #tpu.memory_space<vmem>>, vector<8x256xf32>
    tpu.vector_store %arg10[%119, %c0_42], %118 {strides = array<i32>} : memref<64x256xf32, #tpu.memory_space<vmem>>, vector<8x256xf32>,
    %c3_i32 = arith.constant 3 : i32
    %c8_i32_43 = arith.constant 8 : i32
    %121 = arith.muli %c3_i32, %c8_i32_43 : i32
    %122 = tpu.assume_multiple %121, 8 : i32
    %123 = arith.index_cast %122 : i32 to index
    %c0_44 = arith.constant 0 : index
    %124 = vector.load %arg9[%123, %c0_44] : memref<64x1024xf32, #tpu.memory_space<vmem>>, vector<8x1024xf32>
    %c0_45 = arith.constant 0 : index
    %c0_46 = arith.constant 0 : index
    %125 = vector.load %arg4[%c0_45, %c0_46] : memref<256x1024xf32, #tpu.memory_space<vmem>>, vector<256x1024xf32>
    %cst_47 = arith.constant dense<0.000000e+00> : vector<8x1024xf32>
    %126 = tpu.matmul %116, %125, %cst_47 {dimension_numbers = #tpu.dot_dimension_numbers<[1], [0], [0], [1], [0, 0, 1, 1], [], []>} : vector<8x256xf32>, vector<256x1024xf32>, vector<8x1024xf32> -> vector<8x1024xf32>
    %127 = arith.addf %124, %126 : vector<8x1024xf32>
    %128 = vector.extract_strided_slice %127 {offsets = [0, 0], sizes = [8, 256], strides = [1, 1]} : vector<8x1024xf32> to vector<8x256xf32>
    %129 = arith.negf %128 : vector<8x256xf32>
    %130 = math.exp %129 : vector<8x256xf32>
    %cst_48 = arith.constant 1.000000e+00 : f32
    %131 = vector.broadcast %cst_48 : f32 to vector<8x256xf32>
    %132 = arith.addf %131, %130 : vector<8x256xf32>
    %133 = arith.divf %131, %132 : vector<8x256xf32>
    %134 = vector.extract_strided_slice %127 {offsets = [0, 256], sizes = [8, 256], strides = [1, 1]} : vector<8x1024xf32> to vector<8x256xf32>
    %135 = arith.negf %134 : vector<8x256xf32>
    %136 = math.exp %135 : vector<8x256xf32>
    %cst_49 = arith.constant 1.000000e+00 : f32
    %137 = vector.broadcast %cst_49 : f32 to vector<8x256xf32>
    %138 = arith.addf %137, %136 : vector<8x256xf32>
    %139 = arith.divf %137, %138 : vector<8x256xf32>
    %140 = vector.extract_strided_slice %127 {offsets = [0, 512], sizes = [8, 256], strides = [1, 1]} : vector<8x1024xf32> to vector<8x256xf32>
    %141 = math.tanh %140 : vector<8x256xf32>
    %142 = vector.extract_strided_slice %127 {offsets = [0, 768], sizes = [8, 256], strides = [1, 1]} : vector<8x1024xf32> to vector<8x256xf32>
    %143 = arith.negf %142 : vector<8x256xf32>
    %144 = math.exp %143 : vector<8x256xf32>
    %cst_50 = arith.constant 1.000000e+00 : f32
    %145 = vector.broadcast %cst_50 : f32 to vector<8x256xf32>
    %146 = arith.addf %145, %144 : vector<8x256xf32>
    %147 = arith.divf %145, %146 : vector<8x256xf32>
    %148 = arith.mulf %139, %114 : vector<8x256xf32>
    %149 = arith.mulf %133, %141 : vector<8x256xf32>
    %150 = arith.addf %148, %149 : vector<8x256xf32>
    %151 = math.tanh %150 : vector<8x256xf32>
    %152 = arith.mulf %147, %151 : vector<8x256xf32>
    %cst_51 = arith.constant 0.000000e+00 : f32
    %153 = vector.broadcast %cst_51 : f32 to vector<8x256xf32>
    %154 = arith.maximumf %152, %153 : vector<8x256xf32>
    %155 = arith.index_cast %122 : i32 to index
    %c0_52 = arith.constant 0 : index
    %156 = vector.load %arg10[%155, %c0_52] : memref<64x256xf32, #tpu.memory_space<vmem>>, vector<8x256xf32>
    tpu.vector_store %arg10[%155, %c0_52], %154 {strides = array<i32>} : memref<64x256xf32, #tpu.memory_space<vmem>>, vector<8x256xf32>,
    %c4_i32 = arith.constant 4 : i32
    %c8_i32_53 = arith.constant 8 : i32
    %157 = arith.muli %c4_i32, %c8_i32_53 : i32
    %158 = tpu.assume_multiple %157, 8 : i32
    %159 = arith.index_cast %158 : i32 to index
    %c0_54 = arith.constant 0 : index
    %160 = vector.load %arg9[%159, %c0_54] : memref<64x1024xf32, #tpu.memory_space<vmem>>, vector<8x1024xf32>
    %c0_55 = arith.constant 0 : index
    %c0_56 = arith.constant 0 : index
    %161 = vector.load %arg4[%c0_55, %c0_56] : memref<256x1024xf32, #tpu.memory_space<vmem>>, vector<256x1024xf32>
    %cst_57 = arith.constant dense<0.000000e+00> : vector<8x1024xf32>
    %162 = tpu.matmul %152, %161, %cst_57 {dimension_numbers = #tpu.dot_dimension_numbers<[1], [0], [0], [1], [0, 0, 1, 1], [], []>} : vector<8x256xf32>, vector<256x1024xf32>, vector<8x1024xf32> -> vector<8x1024xf32>
    %163 = arith.addf %160, %162 : vector<8x1024xf32>
    %164 = vector.extract_strided_slice %163 {offsets = [0, 0], sizes = [8, 256], strides = [1, 1]} : vector<8x1024xf32> to vector<8x256xf32>
    %165 = arith.negf %164 : vector<8x256xf32>
    %166 = math.exp %165 : vector<8x256xf32>
    %cst_58 = arith.constant 1.000000e+00 : f32
    %167 = vector.broadcast %cst_58 : f32 to vector<8x256xf32>
    %168 = arith.addf %167, %166 : vector<8x256xf32>
    %169 = arith.divf %167, %168 : vector<8x256xf32>
    %170 = vector.extract_strided_slice %163 {offsets = [0, 256], sizes = [8, 256], strides = [1, 1]} : vector<8x1024xf32> to vector<8x256xf32>
    %171 = arith.negf %170 : vector<8x256xf32>
    %172 = math.exp %171 : vector<8x256xf32>
    %cst_59 = arith.constant 1.000000e+00 : f32
    %173 = vector.broadcast %cst_59 : f32 to vector<8x256xf32>
    %174 = arith.addf %173, %172 : vector<8x256xf32>
    %175 = arith.divf %173, %174 : vector<8x256xf32>
    %176 = vector.extract_strided_slice %163 {offsets = [0, 512], sizes = [8, 256], strides = [1, 1]} : vector<8x1024xf32> to vector<8x256xf32>
    %177 = math.tanh %176 : vector<8x256xf32>
    %178 = vector.extract_strided_slice %163 {offsets = [0, 768], sizes = [8, 256], strides = [1, 1]} : vector<8x1024xf32> to vector<8x256xf32>
    %179 = arith.negf %178 : vector<8x256xf32>
    %180 = math.exp %179 : vector<8x256xf32>
    %cst_60 = arith.constant 1.000000e+00 : f32
    %181 = vector.broadcast %cst_60 : f32 to vector<8x256xf32>
    %182 = arith.addf %181, %180 : vector<8x256xf32>
    %183 = arith.divf %181, %182 : vector<8x256xf32>
    %184 = arith.mulf %175, %150 : vector<8x256xf32>
    %185 = arith.mulf %169, %177 : vector<8x256xf32>
    %186 = arith.addf %184, %185 : vector<8x256xf32>
    %187 = math.tanh %186 : vector<8x256xf32>
    %188 = arith.mulf %183, %187 : vector<8x256xf32>
    %cst_61 = arith.constant 0.000000e+00 : f32
    %189 = vector.broadcast %cst_61 : f32 to vector<8x256xf32>
    %190 = arith.maximumf %188, %189 : vector<8x256xf32>
    %191 = arith.index_cast %158 : i32 to index
    %c0_62 = arith.constant 0 : index
    %192 = vector.load %arg10[%191, %c0_62] : memref<64x256xf32, #tpu.memory_space<vmem>>, vector<8x256xf32>
    tpu.vector_store %arg10[%191, %c0_62], %190 {strides = array<i32>} : memref<64x256xf32, #tpu.memory_space<vmem>>, vector<8x256xf32>,
    %c5_i32 = arith.constant 5 : i32
    %c8_i32_63 = arith.constant 8 : i32
    %193 = arith.muli %c5_i32, %c8_i32_63 : i32
    %194 = tpu.assume_multiple %193, 8 : i32
    %195 = arith.index_cast %194 : i32 to index
    %c0_64 = arith.constant 0 : index
    %196 = vector.load %arg9[%195, %c0_64] : memref<64x1024xf32, #tpu.memory_space<vmem>>, vector<8x1024xf32>
    %c0_65 = arith.constant 0 : index
    %c0_66 = arith.constant 0 : index
    %197 = vector.load %arg4[%c0_65, %c0_66] : memref<256x1024xf32, #tpu.memory_space<vmem>>, vector<256x1024xf32>
    %cst_67 = arith.constant dense<0.000000e+00> : vector<8x1024xf32>
    %198 = tpu.matmul %188, %197, %cst_67 {dimension_numbers = #tpu.dot_dimension_numbers<[1], [0], [0], [1], [0, 0, 1, 1], [], []>} : vector<8x256xf32>, vector<256x1024xf32>, vector<8x1024xf32> -> vector<8x1024xf32>
    %199 = arith.addf %196, %198 : vector<8x1024xf32>
    %200 = vector.extract_strided_slice %199 {offsets = [0, 0], sizes = [8, 256], strides = [1, 1]} : vector<8x1024xf32> to vector<8x256xf32>
    %201 = arith.negf %200 : vector<8x256xf32>
    %202 = math.exp %201 : vector<8x256xf32>
    %cst_68 = arith.constant 1.000000e+00 : f32
    %203 = vector.broadcast %cst_68 : f32 to vector<8x256xf32>
    %204 = arith.addf %203, %202 : vector<8x256xf32>
    %205 = arith.divf %203, %204 : vector<8x256xf32>
    %206 = vector.extract_strided_slice %199 {offsets = [0, 256], sizes = [8, 256], strides = [1, 1]} : vector<8x1024xf32> to vector<8x256xf32>
    %207 = arith.negf %206 : vector<8x256xf32>
    %208 = math.exp %207 : vector<8x256xf32>
    %cst_69 = arith.constant 1.000000e+00 : f32
    %209 = vector.broadcast %cst_69 : f32 to vector<8x256xf32>
    %210 = arith.addf %209, %208 : vector<8x256xf32>
    %211 = arith.divf %209, %210 : vector<8x256xf32>
    %212 = vector.extract_strided_slice %199 {offsets = [0, 512], sizes = [8, 256], strides = [1, 1]} : vector<8x1024xf32> to vector<8x256xf32>
    %213 = math.tanh %212 : vector<8x256xf32>
    %214 = vector.extract_strided_slice %199 {offsets = [0, 768], sizes = [8, 256], strides = [1, 1]} : vector<8x1024xf32> to vector<8x256xf32>
    %215 = arith.negf %214 : vector<8x256xf32>
    %216 = math.exp %215 : vector<8x256xf32>
    %cst_70 = arith.constant 1.000000e+00 : f32
    %217 = vector.broadcast %cst_70 : f32 to vector<8x256xf32>
    %218 = arith.addf %217, %216 : vector<8x256xf32>
    %219 = arith.divf %217, %218 : vector<8x256xf32>
    %220 = arith.mulf %211, %186 : vector<8x256xf32>
    %221 = arith.mulf %205, %213 : vector<8x256xf32>
    %222 = arith.addf %220, %221 : vector<8x256xf32>
    %223 = math.tanh %222 : vector<8x256xf32>
    %224 = arith.mulf %219, %223 : vector<8x256xf32>
    %cst_71 = arith.constant 0.000000e+00 : f32
    %225 = vector.broadcast %cst_71 : f32 to vector<8x256xf32>
    %226 = arith.maximumf %224, %225 : vector<8x256xf32>
    %227 = arith.index_cast %194 : i32 to index
    %c0_72 = arith.constant 0 : index
    %228 = vector.load %arg10[%227, %c0_72] : memref<64x256xf32, #tpu.memory_space<vmem>>, vector<8x256xf32>
    tpu.vector_store %arg10[%227, %c0_72], %226 {strides = array<i32>} : memref<64x256xf32, #tpu.memory_space<vmem>>, vector<8x256xf32>,
    %c6_i32 = arith.constant 6 : i32
    %c8_i32_73 = arith.constant 8 : i32
    %229 = arith.muli %c6_i32, %c8_i32_73 : i32
    %230 = tpu.assume_multiple %229, 8 : i32
    %231 = arith.index_cast %230 : i32 to index
    %c0_74 = arith.constant 0 : index
    %232 = vector.load %arg9[%231, %c0_74] : memref<64x1024xf32, #tpu.memory_space<vmem>>, vector<8x1024xf32>
    %c0_75 = arith.constant 0 : index
    %c0_76 = arith.constant 0 : index
    %233 = vector.load %arg4[%c0_75, %c0_76] : memref<256x1024xf32, #tpu.memory_space<vmem>>, vector<256x1024xf32>
    %cst_77 = arith.constant dense<0.000000e+00> : vector<8x1024xf32>
    %234 = tpu.matmul %224, %233, %cst_77 {dimension_numbers = #tpu.dot_dimension_numbers<[1], [0], [0], [1], [0, 0, 1, 1], [], []>} : vector<8x256xf32>, vector<256x1024xf32>, vector<8x1024xf32> -> vector<8x1024xf32>
    %235 = arith.addf %232, %234 : vector<8x1024xf32>
    %236 = vector.extract_strided_slice %235 {offsets = [0, 0], sizes = [8, 256], strides = [1, 1]} : vector<8x1024xf32> to vector<8x256xf32>
    %237 = arith.negf %236 : vector<8x256xf32>
    %238 = math.exp %237 : vector<8x256xf32>
    %cst_78 = arith.constant 1.000000e+00 : f32
    %239 = vector.broadcast %cst_78 : f32 to vector<8x256xf32>
    %240 = arith.addf %239, %238 : vector<8x256xf32>
    %241 = arith.divf %239, %240 : vector<8x256xf32>
    %242 = vector.extract_strided_slice %235 {offsets = [0, 256], sizes = [8, 256], strides = [1, 1]} : vector<8x1024xf32> to vector<8x256xf32>
    %243 = arith.negf %242 : vector<8x256xf32>
    %244 = math.exp %243 : vector<8x256xf32>
    %cst_79 = arith.constant 1.000000e+00 : f32
    %245 = vector.broadcast %cst_79 : f32 to vector<8x256xf32>
    %246 = arith.addf %245, %244 : vector<8x256xf32>
    %247 = arith.divf %245, %246 : vector<8x256xf32>
    %248 = vector.extract_strided_slice %235 {offsets = [0, 512], sizes = [8, 256], strides = [1, 1]} : vector<8x1024xf32> to vector<8x256xf32>
    %249 = math.tanh %248 : vector<8x256xf32>
    %250 = vector.extract_strided_slice %235 {offsets = [0, 768], sizes = [8, 256], strides = [1, 1]} : vector<8x1024xf32> to vector<8x256xf32>
    %251 = arith.negf %250 : vector<8x256xf32>
    %252 = math.exp %251 : vector<8x256xf32>
    %cst_80 = arith.constant 1.000000e+00 : f32
    %253 = vector.broadcast %cst_80 : f32 to vector<8x256xf32>
    %254 = arith.addf %253, %252 : vector<8x256xf32>
    %255 = arith.divf %253, %254 : vector<8x256xf32>
    %256 = arith.mulf %247, %222 : vector<8x256xf32>
    %257 = arith.mulf %241, %249 : vector<8x256xf32>
    %258 = arith.addf %256, %257 : vector<8x256xf32>
    %259 = math.tanh %258 : vector<8x256xf32>
    %260 = arith.mulf %255, %259 : vector<8x256xf32>
    %cst_81 = arith.constant 0.000000e+00 : f32
    %261 = vector.broadcast %cst_81 : f32 to vector<8x256xf32>
    %262 = arith.maximumf %260, %261 : vector<8x256xf32>
    %263 = arith.index_cast %230 : i32 to index
    %c0_82 = arith.constant 0 : index
    %264 = vector.load %arg10[%263, %c0_82] : memref<64x256xf32, #tpu.memory_space<vmem>>, vector<8x256xf32>
    tpu.vector_store %arg10[%263, %c0_82], %262 {strides = array<i32>} : memref<64x256xf32, #tpu.memory_space<vmem>>, vector<8x256xf32>,
    %c7_i32 = arith.constant 7 : i32
    %c8_i32_83 = arith.constant 8 : i32
    %265 = arith.muli %c7_i32, %c8_i32_83 : i32
    %266 = tpu.assume_multiple %265, 8 : i32
    %267 = arith.index_cast %266 : i32 to index
    %c0_84 = arith.constant 0 : index
    %268 = vector.load %arg9[%267, %c0_84] : memref<64x1024xf32, #tpu.memory_space<vmem>>, vector<8x1024xf32>
    %c0_85 = arith.constant 0 : index
    %c0_86 = arith.constant 0 : index
    %269 = vector.load %arg4[%c0_85, %c0_86] : memref<256x1024xf32, #tpu.memory_space<vmem>>, vector<256x1024xf32>
    %cst_87 = arith.constant dense<0.000000e+00> : vector<8x1024xf32>
    %270 = tpu.matmul %260, %269, %cst_87 {dimension_numbers = #tpu.dot_dimension_numbers<[1], [0], [0], [1], [0, 0, 1, 1], [], []>} : vector<8x256xf32>, vector<256x1024xf32>, vector<8x1024xf32> -> vector<8x1024xf32>
    %271 = arith.addf %268, %270 : vector<8x1024xf32>
    %272 = vector.extract_strided_slice %271 {offsets = [0, 0], sizes = [8, 256], strides = [1, 1]} : vector<8x1024xf32> to vector<8x256xf32>
    %273 = arith.negf %272 : vector<8x256xf32>
    %274 = math.exp %273 : vector<8x256xf32>
    %cst_88 = arith.constant 1.000000e+00 : f32
    %275 = vector.broadcast %cst_88 : f32 to vector<8x256xf32>
    %276 = arith.addf %275, %274 : vector<8x256xf32>
    %277 = arith.divf %275, %276 : vector<8x256xf32>
    %278 = vector.extract_strided_slice %271 {offsets = [0, 256], sizes = [8, 256], strides = [1, 1]} : vector<8x1024xf32> to vector<8x256xf32>
    %279 = arith.negf %278 : vector<8x256xf32>
    %280 = math.exp %279 : vector<8x256xf32>
    %cst_89 = arith.constant 1.000000e+00 : f32
    %281 = vector.broadcast %cst_89 : f32 to vector<8x256xf32>
    %282 = arith.addf %281, %280 : vector<8x256xf32>
    %283 = arith.divf %281, %282 : vector<8x256xf32>
    %284 = vector.extract_strided_slice %271 {offsets = [0, 512], sizes = [8, 256], strides = [1, 1]} : vector<8x1024xf32> to vector<8x256xf32>
    %285 = math.tanh %284 : vector<8x256xf32>
    %286 = vector.extract_strided_slice %271 {offsets = [0, 768], sizes = [8, 256], strides = [1, 1]} : vector<8x1024xf32> to vector<8x256xf32>
    %287 = arith.negf %286 : vector<8x256xf32>
    %288 = math.exp %287 : vector<8x256xf32>
    %cst_90 = arith.constant 1.000000e+00 : f32
    %289 = vector.broadcast %cst_90 : f32 to vector<8x256xf32>
    %290 = arith.addf %289, %288 : vector<8x256xf32>
    %291 = arith.divf %289, %290 : vector<8x256xf32>
    %292 = arith.mulf %283, %258 : vector<8x256xf32>
    %293 = arith.mulf %277, %285 : vector<8x256xf32>
    %294 = arith.addf %292, %293 : vector<8x256xf32>
    %295 = math.tanh %294 : vector<8x256xf32>
    %296 = arith.mulf %291, %295 : vector<8x256xf32>
    %cst_91 = arith.constant 0.000000e+00 : f32
    %297 = vector.broadcast %cst_91 : f32 to vector<8x256xf32>
    %298 = arith.maximumf %296, %297 : vector<8x256xf32>
    %299 = arith.index_cast %266 : i32 to index
    %c0_92 = arith.constant 0 : index
    %300 = vector.load %arg10[%299, %c0_92] : memref<64x256xf32, #tpu.memory_space<vmem>>, vector<8x256xf32>
    tpu.vector_store %arg10[%299, %c0_92], %298 {strides = array<i32>} : memref<64x256xf32, #tpu.memory_space<vmem>>, vector<8x256xf32>,
    %c8_i32_93 = arith.constant 8 : i32
    %c0_94 = arith.constant 0 : index
    %c0_95 = arith.constant 0 : index
    %301 = vector.load %arg11[%c0_94, %c0_95] : memref<8x256xf32, #tpu.memory_space<vmem>>, vector<8x256xf32>
    tpu.vector_store %arg11[%c0_94, %c0_95], %296 {strides = array<i32>} : memref<8x256xf32, #tpu.memory_space<vmem>>, vector<8x256xf32>,
    %c0_96 = arith.constant 0 : index
    %c0_97 = arith.constant 0 : index
    %302 = vector.load %arg12[%c0_96, %c0_97] : memref<8x256xf32, #tpu.memory_space<vmem>>, vector<8x256xf32>
    tpu.vector_store %arg12[%c0_96, %c0_97], %294 {strides = array<i32>} : memref<8x256xf32, #tpu.memory_space<vmem>>, vector<8x256xf32>,
    %c0_98 = arith.constant 0 : index
    %c0_99 = arith.constant 0 : index
    %303 = vector.load %arg10[%c0_98, %c0_99] : memref<64x256xf32, #tpu.memory_space<vmem>>, vector<64x256xf32>
    %c0_100 = arith.constant 0 : index
    %c0_101 = arith.constant 0 : index
    %304 = vector.load %arg6[%c0_100, %c0_101] : memref<256x1xf32, #tpu.memory_space<vmem>>, vector<256x1xf32>
    %cst_102 = arith.constant dense<0.000000e+00> : vector<64x1xf32>
    %305 = tpu.matmul %303, %304, %cst_102 {dimension_numbers = #tpu.dot_dimension_numbers<[1], [0], [0], [1], [0, 0, 1, 1], [], []>} : vector<64x256xf32>, vector<256x1xf32>, vector<64x1xf32> -> vector<64x1xf32>
    %c0_103 = arith.constant 0 : index
    %c0_104 = arith.constant 0 : index
    %306 = vector.load %arg7[%c0_103, %c0_104] : memref<1x1xf32, #tpu.memory_space<vmem>>, vector<1x1xf32>
    %307 = vector.broadcast %306 : vector<1x1xf32> to vector<64x1xf32>
    %308 = arith.addf %305, %307 : vector<64x1xf32>
    %309 = vector.shape_cast %308 : vector<64x1xf32> to vector<8x8x1xf32>
    %c0_105 = arith.constant 0 : index
    %c0_106 = arith.constant 0 : index
    %c0_107 = arith.constant 0 : index
    %310 = vector.load %arg8[%c0_105, %c0_106, %c0_107] : memref<8x8x1xf32, #tpu.memory_space<vmem>>, vector<8x8x1xf32>
    tpu.vector_store %arg8[%c0_105, %c0_106, %c0_107], %309 {strides = array<i32>} : memref<8x8x1xf32, #tpu.memory_space<vmem>>, vector<8x8x1xf32>,
    return
  }
  func.func @transform_0(%arg0: i32, %arg1: i32) -> (i32, i32, i32) {
    %c0_i32 = arith.constant 0 : i32
    %c0_i32_0 = arith.constant 0 : i32
    return %arg1, %arg0, %c0_i32 : i32, i32, i32
  }
  func.func @transform_1(%arg0: i32, %arg1: i32) -> (i32, i32) {
    %c0_i32 = arith.constant 0 : i32
    %c0_i32_0 = arith.constant 0 : i32
    %c0_i32_1 = arith.constant 0 : i32
    return %c0_i32, %c0_i32_0 : i32, i32
  }
  func.func @transform_2(%arg0: i32, %arg1: i32) -> (i32, i32) {
    %c0_i32 = arith.constant 0 : i32
    %c0_i32_0 = arith.constant 0 : i32
    %c0_i32_1 = arith.constant 0 : i32
    return %c0_i32, %c0_i32_0 : i32, i32
  }
  func.func @transform_3(%arg0: i32, %arg1: i32) -> (i32, i32) {
    %c0_i32 = arith.constant 0 : i32
    %c0_i32_0 = arith.constant 0 : i32
    %c0_i32_1 = arith.constant 0 : i32
    return %c0_i32, %c0_i32_0 : i32, i32
  }
  func.func @transform_4(%arg0: i32, %arg1: i32) -> (i32, i32) {
    %c0_i32 = arith.constant 0 : i32
    %c0_i32_0 = arith.constant 0 : i32
    %c0_i32_1 = arith.constant 0 : i32
    return %c0_i32, %c0_i32_0 : i32, i32
  }
  func.func @transform_5(%arg0: i32, %arg1: i32) -> (i32, i32) {
    %c0_i32 = arith.constant 0 : i32
    %c0_i32_0 = arith.constant 0 : i32
    %c0_i32_1 = arith.constant 0 : i32
    return %c0_i32, %c0_i32_0 : i32, i32
  }
  func.func @transform_6(%arg0: i32, %arg1: i32) -> (i32, i32, i32) {
    %c0_i32 = arith.constant 0 : i32
    %c0_i32_0 = arith.constant 0 : i32
    return %arg1, %arg0, %c0_i32 : i32, i32, i32
  }
}

</mosaic_0001>

<bundles_post_ra>
// kernel: lstm_model_forward.1
= control target key start
LH: loop header
LB: loop body
LE: loop exit
PB: predicated region body
PF: predicated region fallthrough
CT: control target
= control target key end

     0   :  { %v6133_v3 = vmov 0.0   ;;  %vm91_vm0 = vcmask 64512   ;;  %vm5712_vm1 = vcmask 7168   ;;  %s13061_s1 = inlined_call_operand.vmem [shape: f32[8,1024], index: 1, kind: input, shape index: {}]   ;;  %s13062_s0 = inlined_call_operand.vmem [shape: f32[8,8,8], index: 0, kind: input, shape index: {}]   ;;  %s13063_s2 = inlined_call_operand.vmem [shape: f32[256,1024], index: 2, kind: input, shape index: {}]   ;;  %s13064_s3 = inlined_call_operand.vmem [shape: f32[1,1024], index: 3, kind: input, shape index: {}]   ;;  %s13065_s4 = inlined_call_operand.vmem [shape: f32[256,1], index: 4, kind: input, shape index: {}]   ;;  %s13066_s5 = inlined_call_operand.<no memory space> [shape: f32[1,1], index: 5, kind: input, shape index: {}]   ;;  %s13067_s6 = inlined_call_operand.vmem [shape: f32[8,8,1], index: 6, kind: output, shape index: {}]  }
   0x1   :  { %v42_v0 = vld [vmem:[%s13061_s1 + $0x8] sm:$0xff]  ;;  %v41_v2 = vld [vmem:[%s13061_s1] sm:$0xff]  ;;  %180 = vmatprep.mubr.f32.mxu1 %v6133_v3  ;;  %406 = vmatprep.mubr.f32.mxu0 %v6133_v3  ;;  %v44_v6 = vld [vmem:[%s13061_s1 + $0x18] sm:$0xff] }
   0x2   :  { %v46_v1 = vld [vmem:[%s13061_s1 + $0x28] sm:$0xff]  ;;  %146 = vmatprep.subr.mxu1 %v42_v0  ;;  %v45_v4 = vld [vmem:[%s13061_s1 + $0x20] sm:$0xff]  ;;  %v43_v8 = vld [vmem:[%s13061_s1 + $0x10] sm:$0xff] }
   0x3   :  { %372 = vmatprep.subr.mxu0 %v46_v1  ;;  %v6186_v5 = vld [vmem:[%s13062_s0] sm:$0xff]  ;;  %147 = vmatpush1.msra.mxu1 %v41_v2  ;;  %v768_v7 = vld [vmem:[%s13063_s2 + $0x3c8] sm:$0xff]  ;;  %v6232_v16 = vld [vmem:[%s13062_s0 + $0x10] sm:$0xff] }
   0x4   :  { %373 = vmatpush1.msra.mxu0 %v45_v4  ;;  %5739 = vmatmul.mubr.msk.f32.vlgmr.msra.gmra.mxu1 %vm91_vm0, %v6186_v5  ;;  %v767_v9 = vld [vmem:[%s13063_s2 + $0x3c0] sm:$0xff]  ;;  %v760_v10 = vld [vmem:[%s13063_s2 + $0x388] sm:$0xff]  ;;  %v6255_v21 = vld [vmem:[%s13062_s0 + $0x18] sm:$0xff] }
   0x5   :  { %259 = vmatprep.subr.mxu1 %v44_v6  ;;  %903 = vmatprep.subr.mxu0 %v768_v7  ;;  %v6208_v11 = vld [vmem:[%s13062_s0 + $0x8] sm:$0xff]  ;;  %v759_v12 = vld [vmem:[%s13063_s2 + $0x380] sm:$0xff]  ;;  %v48_v25 = vld [vmem:[%s13061_s1 + $0x38] sm:$0xff] }
   0x6   :  { %260 = vmatpush1.msra.mxu1 %v43_v8  ;;  %5755 = vmatmul.mubr.msk.f32.vlgmr.msra.gmra.mxu0 %vm91_vm0, %v6186_v5  ;;  %v752_v13 = vld [vmem:[%s13063_s2 + $0x348] sm:$0xff]  ;;  %v751_v14 = vld [vmem:[%s13063_s2 + $0x340] sm:$0xff]  ;;  %v6324_v37 = vld [vmem:[%s13062_s0 + $0x30] sm:$0xff] }
   0x7   :  { %186 = vmatprep.mubr.f32.mxu1 %v6133_v3  ;;  %904 = vmatpush1.msra.mxu0 %v767_v9  ;;  %v744_v15 = vld [vmem:[%s13063_s2 + $0x308] sm:$0xff]  ;;  %v743_v17 = vld [vmem:[%s13063_s2 + $0x300] sm:$0xff]  ;;  %v6347_v42 = vld [vmem:[%s13062_s0 + $0x38] sm:$0xff] }
   0x8   :  { %412 = vmatprep.mubr.f32.mxu0 %v6133_v3  ;;  %905 = vmatprep.subr.mxu0 %v760_v10  ;;  %v736_v18 = vld [vmem:[%s13063_s2 + $0x2c8] sm:$0xff]  ;;  %v735_v19 = vld [vmem:[%s13063_s2 + $0x2c0] sm:$0xff]  ;;  %v47_v48 = vld [vmem:[%s13061_s1 + $0x30] sm:$0xff] }
   0x9   :  { %5740 = vmatmul.mubr.msk.f32.gmra.mxu1 %vm91_vm0, %v6208_v11  ;;  %906 = vmatpush1.msra.mxu0 %v759_v12  ;;  %v728_v20 = vld [vmem:[%s13063_s2 + $0x288] sm:$0xff]  ;;  %v727_v22 = vld [vmem:[%s13063_s2 + $0x280] sm:$0xff]  ;;  %v770_v51 = vld [vmem:[%s13063_s2 + $0x3d8] sm:$0xff] }
   0xa   :  { %192 = vmatprep.mubr.f32.mxu1 %v6133_v3  ;;  %907 = vmatprep.subr.mxu0 %v752_v13  ;;  %v720_v23 = vld [vmem:[%s13063_s2 + $0x248] sm:$0xff]  ;;  %v719_v24 = vld [vmem:[%s13063_s2 + $0x240] sm:$0xff] }
   0xb   :  { %5756 = vmatmul.mubr.msk.f32.gmra.mxu0 %vm91_vm0, %v6208_v11  ;;  %v712_v26 = vld [vmem:[%s13063_s2 + $0x208] sm:$0xff]  ;;  %v6281_v27 = vld [vmem:[%s13062_s0 + $0x20] sm:$0xff]  ;;  %485 = vmatprep.subr.mxu1 %v48_v25  ;;  %v762_v25 = vld [vmem:[%s13063_s2 + $0x398] sm:$0xff] }
   0xc   :  { %908 = vmatpush1.msra.mxu0 %v751_v14  ;;  %418 = vmatprep.mubr.f32.mxu0 %v6133_v3  ;;  %v711_v28 = vld [vmem:[%s13063_s2 + $0x200] sm:$0xff]  ;;  %v704_v29 = vld [vmem:[%s13063_s2 + $0x1c8] sm:$0xff] }
   0xd   :  { %909 = vmatprep.subr.mxu0 %v744_v15  ;;  %5741 = vmatmul.mubr.msk.f32.gmra.mxu1 %vm91_vm0, %v6232_v16  ;;  %v703_v30 = vld [vmem:[%s13063_s2 + $0x1c0] sm:$0xff]  ;;  %v696_v31 = vld [vmem:[%s13063_s2 + $0x188] sm:$0xff] }
   0xe   :  { %910 = vmatpush1.msra.mxu0 %v743_v17  ;;  %198 = vmatprep.mubr.f32.mxu1 %v6133_v3  ;;  %v6301_v32 = vld [vmem:[%s13062_s0 + $0x28] sm:$0xff]  ;;  %v695_v33 = vld [vmem:[%s13063_s2 + $0x180] sm:$0xff] }
   0xf   :  { %911 = vmatprep.subr.mxu0 %v736_v18  ;;  %5757 = vmatmul.mubr.msk.f32.gmra.mxu0 %vm91_vm0, %v6232_v16  ;;  %v688_v34 = vld [vmem:[%s13063_s2 + $0x148] sm:$0xff]  ;;  %v687_v35 = vld [vmem:[%s13063_s2 + $0x140] sm:$0xff] }
  0x10   :  { %912 = vmatpush1.msra.mxu0 %v735_v19  ;;  %424 = vmatprep.mubr.f32.mxu0 %v6133_v3  ;;  %v680_v36 = vld [vmem:[%s13063_s2 + $0x108] sm:$0xff]  ;;  %v679_v38 = vld [vmem:[%s13063_s2 + $0x100] sm:$0xff] }
  0x11   :  { %913 = vmatprep.subr.mxu0 %v728_v20  ;;  %5742 = vmatmul.mubr.msk.f32.gmra.mxu1 %vm91_vm0, %v6255_v21  ;;  %v672_v39 = vld [vmem:[%s13063_s2 + $0xc8] sm:$0xff]  ;;  %v671_v40 = vld [vmem:[%s13063_s2 + $0xc0] sm:$0xff] }
  0x12   :  { %914 = vmatpush1.msra.mxu0 %v727_v22  ;;  %204 = vmatprep.mubr.f32.mxu1 %v6133_v3  ;;  %v664_v41 = vld [vmem:[%s13063_s2 + $0x88] sm:$0xff]  ;;  %v663_v43 = vld [vmem:[%s13063_s2 + $0x80] sm:$0xff] }
  0x13   :  { %915 = vmatprep.subr.mxu0 %v720_v23  ;;  %5758 = vmatmul.mubr.msk.f32.gmra.mxu0 %vm91_vm0, %v6255_v21  ;;  %v656_v44 = vld [vmem:[%s13063_s2 + $0x48] sm:$0xff]  ;;  %v655_v45 = vld [vmem:[%s13063_s2 + $0x40] sm:$0xff]  ;;  %v769_v23 = vld [vmem:[%s13063_s2 + $0x3d0] sm:$0xff] }
  0x14   :  { %916 = vmatpush1.msra.mxu0 %v719_v24  ;;  %430 = vmatprep.mubr.f32.mxu0 %v6133_v3  ;;  %v648_v46 = vld [vmem:[%s13063_s2 + $0x8] sm:$0xff]  ;;  %v647_v47 = vld [vmem:[%s13063_s2] sm:$0xff] }
  0x15   :  { %917 = vmatprep.subr.mxu0 %v712_v26  ;;  %5743 = vmatmul.mubr.msk.f32.gmra.mxu1 %vm91_vm0, %v6281_v27  ;;  %v896_v49 = vld [vmem:[%s13063_s2 + $0x7c8] sm:$0xff]  ;;  %v895_v50 = vld [vmem:[%s13063_s2 + $0x7c0] sm:$0xff] }
  0x16   :  { %918 = vmatpush1.msra.mxu0 %v711_v28  ;;  %210 = vmatprep.mubr.f32.mxu1 %v6133_v3  ;;  %v888_v52 = vld [vmem:[%s13063_s2 + $0x788] sm:$0xff]  ;;  %v887_v53 = vld [vmem:[%s13063_s2 + $0x780] sm:$0xff]  ;;  %v761_v28 = vld [vmem:[%s13063_s2 + $0x390] sm:$0xff] }
  0x17   :  { %919 = vmatprep.subr.mxu0 %v704_v29  ;;  %5759 = vmatmul.mubr.msk.f32.gmra.mxu0 %vm91_vm0, %v6281_v27  ;;  %v880_v54 = vld [vmem:[%s13063_s2 + $0x748] sm:$0xff]  ;;  %v879_v55 = vld [vmem:[%s13063_s2 + $0x740] sm:$0xff] }
  0x18   :  { %920 = vmatpush1.msra.mxu0 %v703_v30  ;;  %436 = vmatprep.mubr.f32.mxu0 %v6133_v3  ;;  %v872_v56 = vld [vmem:[%s13063_s2 + $0x708] sm:$0xff]  ;;  %v871_v57 = vld [vmem:[%s13063_s2 + $0x700] sm:$0xff] }
  0x19   :  { %921 = vmatprep.subr.mxu0 %v696_v31  ;;  %5744 = vmatmul.mubr.msk.f32.gmra.mxu1 %vm91_vm0, %v6301_v32  ;;  %v864_v58 = vld [vmem:[%s13063_s2 + $0x6c8] sm:$0xff]  ;;  %v863_v59 = vld [vmem:[%s13063_s2 + $0x6c0] sm:$0xff]  ;;  %v753_v31 = vld [vmem:[%s13063_s2 + $0x350] sm:$0xff] }
  0x1a   :  { %922 = vmatpush1.msra.mxu0 %v695_v33  ;;  %216 = vmatprep.mubr.f32.mxu1 %v6133_v3  ;;  %v856_v60 = vld [vmem:[%s13063_s2 + $0x688] sm:$0xff]  ;;  %v855_v61 = vld [vmem:[%s13063_s2 + $0x680] sm:$0xff] }
  0x1b   :  { %923 = vmatprep.subr.mxu0 %v688_v34  ;;  %5760 = vmatmul.mubr.msk.f32.gmra.mxu0 %vm91_vm0, %v6301_v32  ;;  %v848_v62 = vld [vmem:[%s13063_s2 + $0x648] sm:$0xff]  ;;  %v847_v63 = vld [vmem:[%s13063_s2 + $0x640] sm:$0xff]  ;;  %v746_v34 = vld [vmem:[%s13063_s2 + $0x318] sm:$0xff] }
  0x1c   :  { %924 = vmatpush1.msra.mxu0 %v687_v35  ;;  %442 = vmatprep.mubr.f32.mxu0 %v6133_v3  ;;  %v840_v0 = vld [vmem:[%s13063_s2 + $0x608] sm:$0xff]  ;;  %v839_v1 = vld [vmem:[%s13063_s2 + $0x600] sm:$0xff] }
  0x1d   :  { %925 = vmatprep.subr.mxu0 %v680_v36  ;;  %5745 = vmatmul.mubr.msk.f32.gmra.mxu1 %vm91_vm0, %v6324_v37  ;;  %v832_v2 = vld [vmem:[%s13063_s2 + $0x5c8] sm:$0xff]  ;;  %v831_v4 = vld [vmem:[%s13063_s2 + $0x5c0] sm:$0xff]  ;;  %v745_v36 = vld [vmem:[%s13063_s2 + $0x310] sm:$0xff] }
  0x1e   :  { %926 = vmatpush1.msra.mxu0 %v679_v38  ;;  %222 = vmatprep.mubr.f32.mxu1 %v6133_v3  ;;  %v824_v6 = vld [vmem:[%s13063_s2 + $0x588] sm:$0xff]  ;;  %v823_v7 = vld [vmem:[%s13063_s2 + $0x580] sm:$0xff] }
  0x1f   :  { %927 = vmatprep.subr.mxu0 %v672_v39  ;;  %5761 = vmatmul.mubr.msk.f32.gmra.mxu0 %vm91_vm0, %v6324_v37  ;;  %v816_v8 = vld [vmem:[%s13063_s2 + $0x548] sm:$0xff]  ;;  %v815_v9 = vld [vmem:[%s13063_s2 + $0x540] sm:$0xff]  ;;  %v738_v39 = vld [vmem:[%s13063_s2 + $0x2d8] sm:$0xff] }
  0x20   :  { %928 = vmatpush1.msra.mxu0 %v671_v40  ;;  %448 = vmatprep.mubr.f32.mxu0 %v6133_v3  ;;  %v808_v10 = vld [vmem:[%s13063_s2 + $0x508] sm:$0xff]  ;;  %v807_v12 = vld [vmem:[%s13063_s2 + $0x500] sm:$0xff] }
  0x21   :  { %929 = vmatprep.subr.mxu0 %v664_v41  ;;  %5746 = vmatmul.mubr.msk.f32.gmra.mxu1 %vm91_vm0, %v6347_v42  ;;  %v800_v13 = vld [vmem:[%s13063_s2 + $0x4c8] sm:$0xff]  ;;  %v799_v14 = vld [vmem:[%s13063_s2 + $0x4c0] sm:$0xff]  ;;  %v737_v41 = vld [vmem:[%s13063_s2 + $0x2d0] sm:$0xff] }
  0x22   :  { %930 = vmatpush1.msra.mxu0 %v663_v43  ;;  %293 = vmatprep.mubr.f32.mxu1 %v6133_v3  ;;  %v792_v15 = vld [vmem:[%s13063_s2 + $0x488] sm:$0xff]  ;;  %v791_v17 = vld [vmem:[%s13063_s2 + $0x480] sm:$0xff] }
  0x23   :  { %931 = vmatprep.subr.mxu0 %v656_v44  ;;  %5762 = vmatmul.mubr.msk.f32.gmra.mxu0 %vm91_vm0, %v6347_v42  ;;  %v784_v18 = vld [vmem:[%s13063_s2 + $0x448] sm:$0xff]  ;;  %v783_v19 = vld [vmem:[%s13063_s2 + $0x440] sm:$0xff]  ;;  %v730_v44 = vld [vmem:[%s13063_s2 + $0x298] sm:$0xff] }
  0x24   :  { %932 = vmatpush1.msra.mxu0 %v655_v45  ;;  %967 = vmatprep.mubr.f32.mxu0 %v6133_v3  ;;  %v776_v20 = vld [vmem:[%s13063_s2 + $0x408] sm:$0xff]  ;;  %v775_v22 = vld [vmem:[%s13063_s2 + $0x400] sm:$0xff] }
  0x25   :  { %933 = vmatprep.subr.mxu0 %v648_v46  ;;  %5747 = vmatmul.mubr.msk.f32.vlgmr.msra.gmra.mxu1 %vm91_vm0, %v6186_v5  ;;  %v772_v24 = vld [vmem:[%s13063_s2 + $0x3e8] sm:$0xff]  ;;  %v771_v26 = vld [vmem:[%s13063_s2 + $0x3e0] sm:$0xff]  ;;  %v729_v46 = vld [vmem:[%s13063_s2 + $0x290] sm:$0xff] }
  0x26   :  { %934 = vmatpush1.msra.mxu0 %v647_v47  ;;  %486 = vmatpush1.msra.mxu1 %v47_v48  ;;  %v764_v29 = vld [vmem:[%s13063_s2 + $0x3a8] sm:$0xff]  ;;  %v763_v30 = vld [vmem:[%s13063_s2 + $0x3a0] sm:$0xff]  ;;  %v722_v48 = vld [vmem:[%s13063_s2 + $0x258] sm:$0xff] }
  0x27   :  { %935 = vmatprep.subr.mxu0 %v896_v49  ;;  %299 = vmatprep.mubr.f32.mxu1 %v6133_v3  ;;  %v756_v33 = vld [vmem:[%s13063_s2 + $0x368] sm:$0xff]  ;;  %v755_v35 = vld [vmem:[%s13063_s2 + $0x360] sm:$0xff] }
  0x28   :  { %936 = vmatpush2.msra.mxu0 %v895_v50  ;;  %974 = vmatprep.subr.mxu1 %v770_v51  ;;  %v748_v38 = vld [vmem:[%s13063_s2 + $0x328] sm:$0xff]  ;;  %v747_v40 = vld [vmem:[%s13063_s2 + $0x320] sm:$0xff]  ;;  %v721_v50 = vld [vmem:[%s13063_s2 + $0x250] sm:$0xff] }
  0x29   :  { %937 = vmatprep.subr.mxu0 %v888_v52  ;;  %5748 = vmatmul.mubr.msk.f32.gmra.mxu1 %vm91_vm0, %v6208_v11  ;;  %v740_v43 = vld [vmem:[%s13063_s2 + $0x2e8] sm:$0xff]  ;;  %v739_v45 = vld [vmem:[%s13063_s2 + $0x2e0] sm:$0xff]  ;;  %v714_v52 = vld [vmem:[%s13063_s2 + $0x218] sm:$0xff] }
  0x2a   :  { %938 = vmatpush2.msra.mxu0 %v887_v53  ;;  %305 = vmatprep.mubr.f32.mxu1 %v6133_v3  ;;  %v732_v47 = vld [vmem:[%s13063_s2 + $0x2a8] sm:$0xff]  ;;  %v731_v49 = vld [vmem:[%s13063_s2 + $0x2a0] sm:$0xff] }
  0x2b   :  { %939 = vmatprep.subr.mxu0 %v880_v54  ;;  %v724_v51 = vld [vmem:[%s13063_s2 + $0x268] sm:$0xff]  ;;  %v723_v53 = vld [vmem:[%s13063_s2 + $0x260] sm:$0xff]  ;;  %v713_v54 = vld [vmem:[%s13063_s2 + $0x210] sm:$0xff] }
  0x2c   :  { %940 = vmatpush2.msra.mxu0 %v879_v55  ;;  %v716_v55 = vld [vmem:[%s13063_s2 + $0x228] sm:$0xff] }
  0x2d   :  { %941 = vmatprep.subr.mxu0 %v872_v56  ;;  %5749 = vmatmul.mubr.msk.f32.gmra.mxu1 %vm91_vm0, %v6232_v16  ;;  %v706_v56 = vld [vmem:[%s13063_s2 + $0x1d8] sm:$0xff] }
  0x2e   :  { %942 = vmatpush2.msra.mxu0 %v871_v57  ;;  %311 = vmatprep.mubr.f32.mxu1 %v6133_v3  ;;  %v715_v57 = vld [vmem:[%s13063_s2 + $0x220] sm:$0xff] }
  0x2f   :  { %943 = vmatprep.subr.mxu0 %v864_v58  ;;  %v705_v58 = vld [vmem:[%s13063_s2 + $0x1d0] sm:$0xff] }
  0x30   :  { %944 = vmatpush2.msra.mxu0 %v863_v59  ;;  %v708_v59 = vld [vmem:[%s13063_s2 + $0x1e8] sm:$0xff] }
  0x31   :  { %945 = vmatprep.subr.mxu0 %v856_v60  ;;  %5750 = vmatmul.mubr.msk.f32.gmra.mxu1 %vm91_vm0, %v6255_v21  ;;  %v698_v60 = vld [vmem:[%s13063_s2 + $0x198] sm:$0xff] }
  0x32   :  { %946 = vmatpush2.msra.mxu0 %v855_v61  ;;  %317 = vmatprep.mubr.f32.mxu1 %v6133_v3  ;;  %v707_v61 = vld [vmem:[%s13063_s2 + $0x1e0] sm:$0xff] }
  0x33   :  { %947 = vmatprep.subr.mxu0 %v848_v62  ;;  %v697_v62 = vld [vmem:[%s13063_s2 + $0x190] sm:$0xff] }
  0x34   :  { %948 = vmatpush2.msra.mxu0 %v847_v63  ;;  %v700_v63 = vld [vmem:[%s13063_s2 + $0x1a8] sm:$0xff] }
  0x35   :  { %949 = vmatprep.subr.mxu0 %v840_v0  ;;  %5751 = vmatmul.mubr.msk.f32.gmra.mxu1 %vm91_vm0, %v6281_v27  ;;  %v690_v0 = vld [vmem:[%s13063_s2 + $0x158] sm:$0xff] }
  0x36   :  { %950 = vmatpush2.msra.mxu0 %v839_v1  ;;  %323 = vmatprep.mubr.f32.mxu1 %v6133_v3  ;;  %v699_v1 = vld [vmem:[%s13063_s2 + $0x1a0] sm:$0xff] }
  0x37   :  { %951 = vmatprep.subr.mxu0 %v832_v2  ;;  %v689_v2 = vld [vmem:[%s13063_s2 + $0x150] sm:$0xff] }
  0x38   :  { %952 = vmatpush2.msra.mxu0 %v831_v4  ;;  %v692_v4 = vld [vmem:[%s13063_s2 + $0x168] sm:$0xff] }
  0x39   :  { %953 = vmatprep.subr.mxu0 %v824_v6  ;;  %5752 = vmatmul.mubr.msk.f32.gmra.mxu1 %vm91_vm0, %v6301_v32  ;;  %v682_v6 = vld [vmem:[%s13063_s2 + $0x118] sm:$0xff] }
  0x3a   :  { %954 = vmatpush2.msra.mxu0 %v823_v7  ;;  %329 = vmatprep.mubr.f32.mxu1 %v6133_v3  ;;  %v691_v7 = vld [vmem:[%s13063_s2 + $0x160] sm:$0xff] }
  0x3b   :  { %955 = vmatprep.subr.mxu0 %v816_v8  ;;  %v681_v8 = vld [vmem:[%s13063_s2 + $0x110] sm:$0xff] }
  0x3c   :  { %956 = vmatpush2.msra.mxu0 %v815_v9  ;;  %v684_v9 = vld [vmem:[%s13063_s2 + $0x128] sm:$0xff] }
  0x3d   :  { %957 = vmatprep.subr.mxu0 %v808_v10  ;;  %5753 = vmatmul.mubr.msk.f32.gmra.mxu1 %vm91_vm0, %v6324_v37  ;;  %v674_v10 = vld [vmem:[%s13063_s2 + $0xd8] sm:$0xff] }
  0x3e   :  { %958 = vmatpush2.msra.mxu0 %v807_v12  ;;  %335 = vmatprep.mubr.f32.mxu1 %v6133_v3  ;;  %v683_v12 = vld [vmem:[%s13063_s2 + $0x120] sm:$0xff] }
  0x3f   :  { %959 = vmatprep.subr.mxu0 %v800_v13  ;;  %v673_v13 = vld [vmem:[%s13063_s2 + $0xd0] sm:$0xff] }
  0x40   :  { %960 = vmatpush2.msra.mxu0 %v799_v14  ;;  %v676_v14 = vld [vmem:[%s13063_s2 + $0xe8] sm:$0xff] }
  0x41   :  { %961 = vmatprep.subr.mxu0 %v792_v15  ;;  %5754 = vmatmul.mubr.msk.f32.gmra.mxu1 %vm91_vm0, %v6347_v42  ;;  %v666_v15 = vld [vmem:[%s13063_s2 + $0x98] sm:$0xff] }
  0x42   :  { %962 = vmatpush2.msra.mxu0 %v791_v17  ;;  %519 = vmatprep.mubr.f32.mxu1 %v6133_v3  ;;  %v675_v17 = vld [vmem:[%s13063_s2 + $0xe0] sm:$0xff] }
  0x43   :  { %963 = vmatprep.subr.mxu0 %v784_v18  ;;  %v665_v18 = vld [vmem:[%s13063_s2 + $0x90] sm:$0xff] }
  0x44   :  { %964 = vmatpush2.msra.mxu0 %v783_v19  ;;  %v668_v19 = vld [vmem:[%s13063_s2 + $0xa8] sm:$0xff] }
  0x45   :  { %965 = vmatprep.subr.mxu0 %v776_v20  ;;  %5763 = vmatmul.mubr.msk.f32.vlgmr.msra.gmra.mxu1 %vm91_vm0, %v6186_v5  ;;  %v754_v5 = vld [vmem:[%s13063_s2 + $0x358] sm:$0xff] }
  0x46   :  { %966 = vmatpush2.msra.mxu0 %v775_v22  ;;  %975 = vmatpush1.msra.mxu1 %v769_v23  ;;  %v658_v20 = vld [vmem:[%s13063_s2 + $0x58] sm:$0xff]  ;;  %v667_v22 = vld [vmem:[%s13063_s2 + $0xa0] sm:$0xff]  ;;  %v657_v23 = vld [vmem:[%s13063_s2 + $0x50] sm:$0xff] }
  0x47   :  { %968 = vmatmul.mubr.f32.vlgmr.msra.gmra.mxu0 %v6133_v3  ;;  %1045 = vmatprep.subr.mxu0 %v772_v24  ;;  %v660_v24 = vld [vmem:[%s13063_s2 + $0x68] sm:$0xff] }
  0x48   :  { %976 = vmatprep.subr.mxu1 %v762_v25  ;;  %1046 = vmatpush1.msra.mxu0 %v771_v26  ;;  %v650_v25 = vld [vmem:[%s13063_s2 + $0x18] sm:$0xff]  ;;  %v659_v26 = vld [vmem:[%s13063_s2 + $0x60] sm:$0xff] }
  0x49   :  { %977 = vmatpush1.msra.mxu1 %v761_v28  ;;  %1047 = vmatprep.subr.mxu0 %v764_v29  ;;  %v649_v28 = vld [vmem:[%s13063_s2 + $0x10] sm:$0xff]  ;;  %v652_v29 = vld [vmem:[%s13063_s2 + $0x28] sm:$0xff] }
  0x4a   :  { %978 = vmatprep.subr.mxu1 %v754_v5  ;;  %1048 = vmatpush1.msra.mxu0 %v763_v30  ;;  %v898_v5 = vld [vmem:[%s13063_s2 + $0x7d8] sm:$0xff]  ;;  %v651_v30 = vld [vmem:[%s13063_s2 + $0x20] sm:$0xff] }
  0x4b   :  { %979 = vmatpush1.msra.mxu1 %v753_v31  ;;  %1049 = vmatprep.subr.mxu0 %v756_v33  ;;  %v897_v31 = vld [vmem:[%s13063_s2 + $0x7d0] sm:$0xff]  ;;  %v900_v33 = vld [vmem:[%s13063_s2 + $0x7e8] sm:$0xff] }
  0x4c   :  { %980 = vmatprep.subr.mxu1 %v746_v34  ;;  %1050 = vmatpush1.msra.mxu0 %v755_v35  ;;  %v890_v34 = vld [vmem:[%s13063_s2 + $0x798] sm:$0xff]  ;;  %v899_v35 = vld [vmem:[%s13063_s2 + $0x7e0] sm:$0xff] }
  0x4d   :  { %981 = vmatpush1.msra.mxu1 %v745_v36  ;;  %1051 = vmatprep.subr.mxu0 %v748_v38  ;;  %v889_v36 = vld [vmem:[%s13063_s2 + $0x790] sm:$0xff]  ;;  %v892_v38 = vld [vmem:[%s13063_s2 + $0x7a8] sm:$0xff] }
  0x4e   :  { %982 = vmatprep.subr.mxu1 %v738_v39  ;;  %1052 = vmatpush1.msra.mxu0 %v747_v40  ;;  %v882_v39 = vld [vmem:[%s13063_s2 + $0x758] sm:$0xff]  ;;  %v891_v40 = vld [vmem:[%s13063_s2 + $0x7a0] sm:$0xff] }
  0x4f   :  { %983 = vmatpush1.msra.mxu1 %v737_v41  ;;  %1053 = vmatprep.subr.mxu0 %v740_v43  ;;  %v881_v41 = vld [vmem:[%s13063_s2 + $0x750] sm:$0xff]  ;;  %v884_v43 = vld [vmem:[%s13063_s2 + $0x768] sm:$0xff] }
  0x50   :  { %984 = vmatprep.subr.mxu1 %v730_v44  ;;  %1054 = vmatpush1.msra.mxu0 %v739_v45  ;;  %v874_v44 = vld [vmem:[%s13063_s2 + $0x718] sm:$0xff]  ;;  %v883_v45 = vld [vmem:[%s13063_s2 + $0x760] sm:$0xff] }
  0x51   :  { %985 = vmatpush1.msra.mxu1 %v729_v46  ;;  %1055 = vmatprep.subr.mxu0 %v732_v47  ;;  %v873_v46 = vld [vmem:[%s13063_s2 + $0x710] sm:$0xff]  ;;  %v866_v47 = vld [vmem:[%s13063_s2 + $0x6d8] sm:$0xff] }
  0x52   :  { %986 = vmatprep.subr.mxu1 %v722_v48  ;;  %1056 = vmatpush1.msra.mxu0 %v731_v49  ;;  %v875_v48 = vld [vmem:[%s13063_s2 + $0x720] sm:$0xff]  ;;  %v865_v49 = vld [vmem:[%s13063_s2 + $0x6d0] sm:$0xff] }
  0x53   :  { %987 = vmatpush1.msra.mxu1 %v721_v50  ;;  %1057 = vmatprep.subr.mxu0 %v724_v51  ;;  %v868_v50 = vld [vmem:[%s13063_s2 + $0x6e8] sm:$0xff]  ;;  %v858_v51 = vld [vmem:[%s13063_s2 + $0x698] sm:$0xff] }
  0x54   :  { %988 = vmatprep.subr.mxu1 %v714_v52  ;;  %1058 = vmatpush1.msra.mxu0 %v723_v53  ;;  %v867_v52 = vld [vmem:[%s13063_s2 + $0x6e0] sm:$0xff]  ;;  %v857_v53 = vld [vmem:[%s13063_s2 + $0x690] sm:$0xff] }
  0x55   :  { %989 = vmatpush1.msra.mxu1 %v713_v54  ;;  %1059 = vmatprep.subr.mxu0 %v716_v55  ;;  %v850_v54 = vld [vmem:[%s13063_s2 + $0x658] sm:$0xff]  ;;  %v859_v55 = vld [vmem:[%s13063_s2 + $0x6a0] sm:$0xff] }
  0x56   :  { %990 = vmatprep.subr.mxu1 %v706_v56  ;;  %1060 = vmatpush1.msra.mxu0 %v715_v57  ;;  %v849_v56 = vld [vmem:[%s13063_s2 + $0x650] sm:$0xff]  ;;  %v852_v57 = vld [vmem:[%s13063_s2 + $0x668] sm:$0xff] }
  0x57   :  { %991 = vmatpush1.msra.mxu1 %v705_v58  ;;  %1061 = vmatprep.subr.mxu0 %v708_v59  ;;  %v842_v58 = vld [vmem:[%s13063_s2 + $0x618] sm:$0xff]  ;;  %v851_v59 = vld [vmem:[%s13063_s2 + $0x660] sm:$0xff] }
  0x58   :  { %992 = vmatprep.subr.mxu1 %v698_v60  ;;  %1062 = vmatpush1.msra.mxu0 %v707_v61  ;;  %v841_v60 = vld [vmem:[%s13063_s2 + $0x610] sm:$0xff]  ;;  %v834_v61 = vld [vmem:[%s13063_s2 + $0x5d8] sm:$0xff] }
  0x59   :  { %993 = vmatpush1.msra.mxu1 %v697_v62  ;;  %1063 = vmatprep.subr.mxu0 %v700_v63  ;;  %v843_v62 = vld [vmem:[%s13063_s2 + $0x620] sm:$0xff]  ;;  %v833_v63 = vld [vmem:[%s13063_s2 + $0x5d0] sm:$0xff] }
  0x5a   :  { %994 = vmatprep.subr.mxu1 %v690_v0  ;;  %1064 = vmatpush1.msra.mxu0 %v699_v1  ;;  %v836_v0 = vld [vmem:[%s13063_s2 + $0x5e8] sm:$0xff]  ;;  %v826_v1 = vld [vmem:[%s13063_s2 + $0x598] sm:$0xff] }
  0x5b   :  { %995 = vmatpush1.msra.mxu1 %v689_v2  ;;  %1065 = vmatprep.subr.mxu0 %v692_v4  ;;  %v835_v2 = vld [vmem:[%s13063_s2 + $0x5e0] sm:$0xff]  ;;  %v825_v4 = vld [vmem:[%s13063_s2 + $0x590] sm:$0xff] }
  0x5c   :  { %996 = vmatprep.subr.mxu1 %v682_v6  ;;  %1066 = vmatpush1.msra.mxu0 %v691_v7  ;;  %v818_v6 = vld [vmem:[%s13063_s2 + $0x558] sm:$0xff]  ;;  %v827_v7 = vld [vmem:[%s13063_s2 + $0x5a0] sm:$0xff] }
  0x5d   :  { %997 = vmatpush1.msra.mxu1 %v681_v8  ;;  %1067 = vmatprep.subr.mxu0 %v684_v9  ;;  %v817_v8 = vld [vmem:[%s13063_s2 + $0x550] sm:$0xff]  ;;  %v820_v9 = vld [vmem:[%s13063_s2 + $0x568] sm:$0xff] }
  0x5e   :  { %998 = vmatprep.subr.mxu1 %v674_v10  ;;  %1068 = vmatpush1.msra.mxu0 %v683_v12  ;;  %v810_v10 = vld [vmem:[%s13063_s2 + $0x518] sm:$0xff]  ;;  %v819_v12 = vld [vmem:[%s13063_s2 + $0x560] sm:$0xff] }
  0x5f   :  { %999 = vmatpush1.msra.mxu1 %v673_v13  ;;  %1069 = vmatprep.subr.mxu0 %v676_v14  ;;  %v809_v13 = vld [vmem:[%s13063_s2 + $0x510] sm:$0xff]  ;;  %v802_v14 = vld [vmem:[%s13063_s2 + $0x4d8] sm:$0xff] }
  0x60   :  { %1000 = vmatprep.subr.mxu1 %v666_v15  ;;  %1070 = vmatpush1.msra.mxu0 %v675_v17  ;;  %v811_v15 = vld [vmem:[%s13063_s2 + $0x520] sm:$0xff]  ;;  %v801_v17 = vld [vmem:[%s13063_s2 + $0x4d0] sm:$0xff] }
  0x61   :  { %1001 = vmatpush1.msra.mxu1 %v665_v18  ;;  %1071 = vmatprep.subr.mxu0 %v668_v19  ;;  %v804_v18 = vld [vmem:[%s13063_s2 + $0x4e8] sm:$0xff]  ;;  %v794_v19 = vld [vmem:[%s13063_s2 + $0x498] sm:$0xff] }
  0x62   :  { %1002 = vmatprep.subr.mxu1 %v658_v20  ;;  %1072 = vmatpush1.msra.mxu0 %v667_v22  ;;  %v803_v20 = vld [vmem:[%s13063_s2 + $0x4e0] sm:$0xff]  ;;  %v793_v22 = vld [vmem:[%s13063_s2 + $0x490] sm:$0xff] }
  0x63   :  { %1003 = vmatpush1.msra.mxu1 %v657_v23  ;;  %1073 = vmatprep.subr.mxu0 %v660_v24  ;;  %v786_v23 = vld [vmem:[%s13063_s2 + $0x458] sm:$0xff]  ;;  %v795_v24 = vld [vmem:[%s13063_s2 + $0x4a0] sm:$0xff] }
  0x64   :  { %1004 = vmatprep.subr.mxu1 %v650_v25  ;;  %1074 = vmatpush1.msra.mxu0 %v659_v26  ;;  %v785_v25 = vld [vmem:[%s13063_s2 + $0x450] sm:$0xff]  ;;  %v788_v26 = vld [vmem:[%s13063_s2 + $0x468] sm:$0xff] }
  0x65   :  { %1005 = vmatpush1.msra.mxu1 %v649_v28  ;;  %1075 = vmatprep.subr.mxu0 %v652_v29  ;;  %v778_v28 = vld [vmem:[%s13063_s2 + $0x418] sm:$0xff]  ;;  %v787_v29 = vld [vmem:[%s13063_s2 + $0x460] sm:$0xff] }
  0x66   :  { %1006 = vmatprep.subr.mxu1 %v898_v5  ;;  %1076 = vmatpush1.msra.mxu0 %v651_v30  ;;  %v777_v5 = vld [vmem:[%s13063_s2 + $0x410] sm:$0xff]  ;;  %v779_v30 = vld [vmem:[%s13063_s2 + $0x420] sm:$0xff] }
  0x67   :  { %1007 = vmatpush2.msra.mxu1 %v897_v31  ;;  %1077 = vmatprep.subr.mxu0 %v900_v33  ;;  %v774_v31 = vld [vmem:[%s13063_s2 + $0x3f8] sm:$0xff]  ;;  %v773_v33 = vld [vmem:[%s13063_s2 + $0x3f0] sm:$0xff] }
  0x68   :  { %1008 = vmatprep.subr.mxu1 %v890_v34  ;;  %1078 = vmatpush2.msra.mxu0 %v899_v35  ;;  %v766_v34 = vld [vmem:[%s13063_s2 + $0x3b8] sm:$0xff]  ;;  %v765_v35 = vld [vmem:[%s13063_s2 + $0x3b0] sm:$0xff] }
  0x69   :  { %525 = vmatprep.mubr.f32.mxu1 %v6133_v3  ;;  %1009 = vmatpush2.msra.mxu1 %v889_v36  ;;  %v758_v36 = vld [vmem:[%s13063_s2 + $0x378] sm:$0xff] }
  0x6a   :  { %1079 = vmatprep.subr.mxu0 %v892_v38  ;;  %5764 = vmatmul.mubr.msk.f32.gmra.mxu1 %vm91_vm0, %v6208_v11  ;;  %v876_v11 = vld [vmem:[%s13063_s2 + $0x728] sm:$0xff]  ;;  %v757_v38 = vld [vmem:[%s13063_s2 + $0x370] sm:$0xff] }
  0x6b   :  { %1010 = vmatprep.subr.mxu1 %v882_v39  ;;  %1080 = vmatpush2.msra.mxu0 %v891_v40  ;;  %v750_v39 = vld [vmem:[%s13063_s2 + $0x338] sm:$0xff]  ;;  %v749_v40 = vld [vmem:[%s13063_s2 + $0x330] sm:$0xff] }
  0x6c   :  { %1011 = vmatpush2.msra.mxu1 %v881_v41  ;;  %1081 = vmatprep.subr.mxu0 %v884_v43  ;;  %v742_v41 = vld [vmem:[%s13063_s2 + $0x2f8] sm:$0xff]  ;;  %v741_v43 = vld [vmem:[%s13063_s2 + $0x2f0] sm:$0xff] }
  0x6d   :  { %1012 = vmatprep.subr.mxu1 %v874_v44  ;;  %1082 = vmatpush2.msra.mxu0 %v883_v45  ;;  %v734_v44 = vld [vmem:[%s13063_s2 + $0x2b8] sm:$0xff]  ;;  %v733_v45 = vld [vmem:[%s13063_s2 + $0x2b0] sm:$0xff] }
  0x6e   :  { %531 = vmatprep.mubr.f32.mxu1 %v6133_v3  ;;  %1013 = vmatpush2.msra.mxu1 %v873_v46  ;;  %v726_v46 = vld [vmem:[%s13063_s2 + $0x278] sm:$0xff] }
  0x6f   :  { %1083 = vmatprep.subr.mxu0 %v876_v11  ;;  %5765 = vmatmul.mubr.msk.f32.gmra.mxu1 %vm91_vm0, %v6232_v16  ;;  %v860_v16 = vld [vmem:[%s13063_s2 + $0x6a8] sm:$0xff]  ;;  %v725_v11 = vld [vmem:[%s13063_s2 + $0x270] sm:$0xff] }
  0x70   :  { %1014 = vmatprep.subr.mxu1 %v866_v47  ;;  %1084 = vmatpush2.msra.mxu0 %v875_v48  ;;  %v718_v47 = vld [vmem:[%s13063_s2 + $0x238] sm:$0xff]  ;;  %v717_v48 = vld [vmem:[%s13063_s2 + $0x230] sm:$0xff] }
  0x71   :  { %1015 = vmatpush2.msra.mxu1 %v865_v49  ;;  %1085 = vmatprep.subr.mxu0 %v868_v50  ;;  %v710_v49 = vld [vmem:[%s13063_s2 + $0x1f8] sm:$0xff]  ;;  %v709_v50 = vld [vmem:[%s13063_s2 + $0x1f0] sm:$0xff] }
  0x72   :  { %1016 = vmatprep.subr.mxu1 %v858_v51  ;;  %1086 = vmatpush2.msra.mxu0 %v867_v52  ;;  %v702_v51 = vld [vmem:[%s13063_s2 + $0x1b8] sm:$0xff]  ;;  %v701_v52 = vld [vmem:[%s13063_s2 + $0x1b0] sm:$0xff] }
  0x73   :  { %537 = vmatprep.mubr.f32.mxu1 %v6133_v3  ;;  %1017 = vmatpush2.msra.mxu1 %v857_v53  ;;  %v694_v53 = vld [vmem:[%s13063_s2 + $0x178] sm:$0xff] }
  0x74   :  { %1087 = vmatprep.subr.mxu0 %v860_v16  ;;  %5766 = vmatmul.mubr.msk.f32.gmra.mxu1 %vm91_vm0, %v6255_v21  ;;  %v844_v21 = vld [vmem:[%s13063_s2 + $0x628] sm:$0xff]  ;;  %v693_v16 = vld [vmem:[%s13063_s2 + $0x170] sm:$0xff] }
  0x75   :  { %1018 = vmatprep.subr.mxu1 %v850_v54  ;;  %1088 = vmatpush2.msra.mxu0 %v859_v55  ;;  %v686_v54 = vld [vmem:[%s13063_s2 + $0x138] sm:$0xff]  ;;  %v685_v55 = vld [vmem:[%s13063_s2 + $0x130] sm:$0xff] }
  0x76   :  { %1019 = vmatpush2.msra.mxu1 %v849_v56  ;;  %1089 = vmatprep.subr.mxu0 %v852_v57  ;;  %v678_v56 = vld [vmem:[%s13063_s2 + $0xf8] sm:$0xff]  ;;  %v677_v57 = vld [vmem:[%s13063_s2 + $0xf0] sm:$0xff] }
  0x77   :  { %1020 = vmatprep.subr.mxu1 %v842_v58  ;;  %1090 = vmatpush2.msra.mxu0 %v851_v59  ;;  %v670_v58 = vld [vmem:[%s13063_s2 + $0xb8] sm:$0xff]  ;;  %v669_v59 = vld [vmem:[%s13063_s2 + $0xb0] sm:$0xff] }
  0x78   :  { %543 = vmatprep.mubr.f32.mxu1 %v6133_v3  ;;  %1021 = vmatpush2.msra.mxu1 %v841_v60  ;;  %v662_v60 = vld [vmem:[%s13063_s2 + $0x78] sm:$0xff] }
  0x79   :  { %1091 = vmatprep.subr.mxu0 %v844_v21  ;;  %5767 = vmatmul.mubr.msk.f32.gmra.mxu1 %vm91_vm0, %v6281_v27  ;;  %v828_v27 = vld [vmem:[%s13063_s2 + $0x5a8] sm:$0xff]  ;;  %v661_v21 = vld [vmem:[%s13063_s2 + $0x70] sm:$0xff] }
  0x7a   :  { %1022 = vmatprep.subr.mxu1 %v834_v61  ;;  %1092 = vmatpush2.msra.mxu0 %v843_v62  ;;  %v654_v61 = vld [vmem:[%s13063_s2 + $0x38] sm:$0xff]  ;;  %v653_v62 = vld [vmem:[%s13063_s2 + $0x30] sm:$0xff] }
  0x7b   :  { %1023 = vmatpush2.msra.mxu1 %v833_v63  ;;  %1093 = vmatprep.subr.mxu0 %v836_v0  ;;  %v902_v63 = vld [vmem:[%s13063_s2 + $0x7f8] sm:$0xff]  ;;  %v901_v0 = vld [vmem:[%s13063_s2 + $0x7f0] sm:$0xff] }
  0x7c   :  { %1024 = vmatprep.subr.mxu1 %v826_v1  ;;  %1094 = vmatpush2.msra.mxu0 %v835_v2  ;;  %v894_v1 = vld [vmem:[%s13063_s2 + $0x7b8] sm:$0xff]  ;;  %v893_v2 = vld [vmem:[%s13063_s2 + $0x7b0] sm:$0xff] }
  0x7d   :  { %549 = vmatprep.mubr.f32.mxu1 %v6133_v3  ;;  %1025 = vmatpush2.msra.mxu1 %v825_v4  ;;  %v886_v4 = vld [vmem:[%s13063_s2 + $0x778] sm:$0xff] }
  0x7e   :  { %1095 = vmatprep.subr.mxu0 %v828_v27  ;;  %5768 = vmatmul.mubr.msk.f32.gmra.mxu1 %vm91_vm0, %v6301_v32  ;;  %v812_v32 = vld [vmem:[%s13063_s2 + $0x528] sm:$0xff]  ;;  %v885_v27 = vld [vmem:[%s13063_s2 + $0x770] sm:$0xff] }
  0x7f   :  { %1026 = vmatprep.subr.mxu1 %v818_v6  ;;  %1096 = vmatpush2.msra.mxu0 %v827_v7  ;;  %v878_v6 = vld [vmem:[%s13063_s2 + $0x738] sm:$0xff]  ;;  %v877_v7 = vld [vmem:[%s13063_s2 + $0x730] sm:$0xff] }
  0x80   :  { %1027 = vmatpush2.msra.mxu1 %v817_v8  ;;  %1097 = vmatprep.subr.mxu0 %v820_v9  ;;  %v870_v8 = vld [vmem:[%s13063_s2 + $0x6f8] sm:$0xff]  ;;  %v869_v9 = vld [vmem:[%s13063_s2 + $0x6f0] sm:$0xff] }
  0x81   :  { %1028 = vmatprep.subr.mxu1 %v810_v10  ;;  %1098 = vmatpush2.msra.mxu0 %v819_v12  ;;  %v862_v10 = vld [vmem:[%s13063_s2 + $0x6b8] sm:$0xff]  ;;  %v861_v12 = vld [vmem:[%s13063_s2 + $0x6b0] sm:$0xff] }
  0x82   :  { %555 = vmatprep.mubr.f32.mxu1 %v6133_v3  ;;  %1029 = vmatpush2.msra.mxu1 %v809_v13  ;;  %v854_v13 = vld [vmem:[%s13063_s2 + $0x678] sm:$0xff] }
  0x83   :  { %1099 = vmatprep.subr.mxu0 %v812_v32  ;;  %5769 = vmatmul.mubr.msk.f32.gmra.mxu1 %vm91_vm0, %v6324_v37  ;;  %v796_v37 = vld [vmem:[%s13063_s2 + $0x4a8] sm:$0xff]  ;;  %v853_v32 = vld [vmem:[%s13063_s2 + $0x670] sm:$0xff] }
  0x84   :  { %1030 = vmatprep.subr.mxu1 %v802_v14  ;;  %1100 = vmatpush2.msra.mxu0 %v811_v15  ;;  %v846_v14 = vld [vmem:[%s13063_s2 + $0x638] sm:$0xff]  ;;  %v845_v15 = vld [vmem:[%s13063_s2 + $0x630] sm:$0xff] }
  0x85   :  { %1031 = vmatpush2.msra.mxu1 %v801_v17  ;;  %1101 = vmatprep.subr.mxu0 %v804_v18  ;;  %v838_v17 = vld [vmem:[%s13063_s2 + $0x5f8] sm:$0xff]  ;;  %v51_v18 = vlaneseq }
  0x86   :  { %1032 = vmatprep.subr.mxu1 %v794_v19  ;;  %1102 = vmatpush2.msra.mxu0 %v803_v20  ;;  %v837_v19 = vld [vmem:[%s13063_s2 + $0x5f0] sm:$0xff]  ;;  %v830_v20 = vld [vmem:[%s13063_s2 + $0x5b8] sm:$0xff] }
  0x87   :  { %561 = vmatprep.mubr.f32.mxu1 %v6133_v3  ;;  %1033 = vmatpush2.msra.mxu1 %v793_v22  ;;  %v829_v22 = vld [vmem:[%s13063_s2 + $0x5b0] sm:$0xff] }
  0x88   :  { %1103 = vmatprep.subr.mxu0 %v796_v37  ;;  %5770 = vmatmul.mubr.msk.f32.gmra.mxu1 %vm91_vm0, %v6347_v42  ;;  %v780_v42 = vld [vmem:[%s13063_s2 + $0x428] sm:$0xff]  ;;  %v822_v37 = vld [vmem:[%s13063_s2 + $0x578] sm:$0xff] }
  0x89   :  { %1034 = vmatprep.subr.mxu1 %v786_v23  ;;  %1104 = vmatpush2.msra.mxu0 %v795_v24  ;;  %v7071_v23 = vshrl.u32 %v51_v18, 7  ;;  %v821_v24 = vld [vmem:[%s13063_s2 + $0x570] sm:$0xff] }
  0x8a   :  { %1035 = vmatpush2.msra.mxu1 %v785_v25  ;;  %1105 = vmatprep.subr.mxu0 %v788_v26  ;;  %v814_v25 = vld [vmem:[%s13063_s2 + $0x538] sm:$0xff]  ;;  %v813_v26 = vld [vmem:[%s13063_s2 + $0x530] sm:$0xff] }
  0x8b   :  { %1036 = vmatprep.subr.mxu1 %v778_v28  ;;  %1106 = vmatpush2.msra.mxu0 %v787_v29  ;;  %v806_v28 = vld [vmem:[%s13063_s2 + $0x4f8] sm:$0xff]  ;;  %v53_v29 = vsub.s32 0, %v7071_v23 }
  0x8c   :  { %1037 = vmatpush2.msra.mxu1 %v777_v5  ;;  %1038 = vmatprep.mubr.f32.mxu1 %v6133_v3  ;;  %v805_v5 = vld [vmem:[%s13063_s2 + $0x4f0] sm:$0xff] }
  0x8d   :  { %1107 = vmatprep.subr.mxu0 %v780_v42  ;;  %1039 = vmatmul.mubr.f32.vlgmr.msra.gmra.mxu1 %v6133_v3  ;;  %v7092_v42 = vld [vmem:[%s13064_s3] sm:$0xff] }
  0x8e   :  { %1108 = vmatpush2.msra.mxu0 %v779_v30  ;;  %1109 = vmatprep.mubr.f32.mxu0 %v6133_v3 }
  0x8f   :  { %1116 = vmatprep.subr.mxu1 %v774_v31  ;;  %1110 = vmatmul.mubr.f32.vlgmr.msra.gmra.mxu0 %v6133_v3  ;;  %v798_v31 = vld [vmem:[%s13063_s2 + $0x4b8] sm:$0xff] }
  0x90   :  { %1117 = vmatpush1.msra.mxu1 %v773_v33  ;;  %1180 = vmatprep.mubr.f32.mxu1 %v6133_v3  ;;  %v57_v33 = vsub.s32 1, %v7071_v23 }
  0x91   :  { %1118 = vmatprep.subr.mxu1 %v766_v34  ;;  %v69_v34 = vsub.s32 4, %v7071_v23 }
  0x92   :  { %1119 = vmatpush1.msra.mxu1 %v765_v35  ;;  %v797_v35 = vld [vmem:[%s13063_s2 + $0x4b0] sm:$0xff] }
  0x93   :  { %1120 = vmatprep.subr.mxu1 %v758_v36 }
  0x94   :  { %1121 = vmatpush1.msra.mxu1 %v757_v38 }
  0x95   :  { %1122 = vmatprep.subr.mxu1 %v750_v39  ;;  %v790_v39 = vld [vmem:[%s13063_s2 + $0x478] sm:$0xff] }
  0x96   :  { %1123 = vmatpush1.msra.mxu1 %v749_v40  ;;  %v7112_v40 = vrot.slane %v7092_v42, %v53_v29 }
  0x97   :  { %1124 = vmatprep.subr.mxu1 %v742_v41  ;;  %v73_v41 = vsub.s32 5, %v7071_v23 }
  0x98   :  { %1125 = vmatpush1.msra.mxu1 %v741_v43  ;;  %v789_v43 = vld [vmem:[%s13063_s2 + $0x470] sm:$0xff] }
  0x99   :  { %1126 = vmatprep.subr.mxu1 %v734_v44 }
  0x9a   :  { %1127 = vmatpush1.msra.mxu1 %v733_v45 }
  0x9b   :  { %1128 = vmatprep.subr.mxu1 %v726_v46  ;;  %v782_v46 = vld [vmem:[%s13063_s2 + $0x438] sm:$0xff] }
  0x9c   :  { %1129 = vmatpush1.msra.mxu1 %v725_v11  ;;  %v7124_v11 = vrot.slane %v7092_v42, %v57_v33 }
  0x9d   :  { %1130 = vmatprep.subr.mxu1 %v718_v47 }
  0x9e   :  { %1131 = vmatpush1.msra.mxu1 %v717_v48  ;;  %v7130_v48 = vrot.slane %v7092_v42, %v69_v34 }
  0x9f   :  { %1132 = vmatprep.subr.mxu1 %v710_v49  ;;  %v781_v49 = vld [vmem:[%s13063_s2 + $0x430] sm:$0xff] }
  0xa0   :  { %1133 = vmatpush1.msra.mxu1 %v709_v50 }
  0xa1   :  { %1134 = vmatprep.subr.mxu1 %v702_v51 }
  0xa2   :  { %1135 = vmatpush1.msra.mxu1 %v701_v52 }
  0xa3   :  { %1136 = vmatprep.subr.mxu1 %v694_v53  ;;  %v7139_v53 = vrot.slane %v7092_v42, %v73_v41 }
  0xa4   :  { %1137 = vmatpush1.msra.mxu1 %v693_v16 }
  0xa5   :  { %1138 = vmatprep.subr.mxu1 %v686_v54 }
  0xa6   :  { %1139 = vmatpush1.msra.mxu1 %v685_v55 }
  0xa7   :  { %1140 = vmatprep.subr.mxu1 %v678_v56 }
  0xa8   :  { %1141 = vmatpush1.msra.mxu1 %v677_v57 }
  0xa9   :  { %1142 = vmatprep.subr.mxu1 %v670_v58 }
  0xaa   :  { %1143 = vmatpush1.msra.mxu1 %v669_v59 }
  0xab   :  { %1144 = vmatprep.subr.mxu1 %v662_v60 }
  0xac   :  { %1145 = vmatpush1.msra.mxu1 %v661_v21 }
  0xad   :  { %1146 = vmatprep.subr.mxu1 %v654_v61 }
  0xae   :  { %1147 = vmatpush1.msra.mxu1 %v653_v62 }
  0xaf   :  { %1148 = vmatprep.subr.mxu1 %v902_v63 }
  0xb0   :  { %1149 = vmatpush2.msra.mxu1 %v901_v0 }
  0xb1   :  { %1150 = vmatprep.subr.mxu1 %v894_v1 }
  0xb2   :  { %1151 = vmatpush2.msra.mxu1 %v893_v2 }
  0xb3   :  { %1152 = vmatprep.subr.mxu1 %v886_v4 }
  0xb4   :  { %1153 = vmatpush2.msra.mxu1 %v885_v27 }
  0xb5   :  { %1154 = vmatprep.subr.mxu1 %v878_v6 }
  0xb6   :  { %1155 = vmatpush2.msra.mxu1 %v877_v7 }
  0xb7   :  { %1156 = vmatprep.subr.mxu1 %v870_v8 }
  0xb8   :  { %1157 = vmatpush2.msra.mxu1 %v869_v9 }
  0xb9   :  { %1158 = vmatprep.subr.mxu1 %v862_v10 }
  0xba   :  { %1159 = vmatpush2.msra.mxu1 %v861_v12 }
  0xbb   :  { %1160 = vmatprep.subr.mxu1 %v854_v13 }
  0xbc   :  { %1161 = vmatpush2.msra.mxu1 %v853_v32 }
  0xbd   :  { %1162 = vmatprep.subr.mxu1 %v846_v14 }
  0xbe   :  { %1163 = vmatpush2.msra.mxu1 %v845_v15 }
  0xbf   :  { %1164 = vmatprep.subr.mxu1 %v838_v17 }
  0xc0   :  { %1165 = vmatpush2.msra.mxu1 %v837_v19 }
  0xc1   :  { %1166 = vmatprep.subr.mxu1 %v830_v20 }
  0xc2   :  { %1167 = vmatpush2.msra.mxu1 %v829_v22 }
  0xc3   :  { %1168 = vmatprep.subr.mxu1 %v822_v37 }
  0xc4   :  { %1169 = vmatpush2.msra.mxu1 %v821_v24  ;;  %v7094_v30 = vpop.f32.mrf.mxu1 }
  0xc5   :  { %1170 = vmatprep.subr.mxu1 %v814_v25 }
  0xc6   :  { %1171 = vmatpush2.msra.mxu1 %v813_v26  ;;  %v7104_v36 = vpop.f32.mrf.mxu1  ;;  %v7106_v38 = vpop.f32.mrf.mxu0 }
  0xc7   :  { %1172 = vmatprep.subr.mxu1 %v806_v28 }
  0xc8   :  { %1173 = vmatpush2.msra.mxu1 %v805_v5  ;;  %v7118_v45 = vpop.f32.mrf.mxu0 }
  0xc9   :  { %1174 = vmatprep.subr.mxu1 %v798_v31  ;;  %v188_v44 = vpop.f32.mrf.mxu1 }
  0xca   :  { %1175 = vmatpush2.msra.mxu1 %v797_v35  ;;  %v7127_v47 = vadd.f32 %v188_v44, %v7112_v40 }
  0xcb   :  { %1176 = vmatprep.subr.mxu1 %v790_v39  ;;  %v190_v50 = vpop.f32.mrf.mxu1  ;;  %v414_v51 = vpop.f32.mrf.mxu0  ;;  %v61_v39 = vsub.s32 2, %v7071_v23 }
  0xcc   :  { %1177 = vmatpush2.msra.mxu1 %v789_v43  ;;  %v7136_v52 = vadd.f32 %v190_v50, %v7124_v11  ;;  %v7142_v16 = vadd.f32 %v414_v51, %v7130_v48 }
  0xcd   :  { %1178 = vmatprep.subr.mxu1 %v782_v46  ;;  %v194_v54 = vpop.f32.mrf.mxu1  ;;  %v416_v55 = vpop.f32.mrf.mxu0  ;;  %v65_v46 = vsub.s32 3, %v7071_v23  ;;  %v7221_v51 = vrot.slane %v7092_v42, %v61_v39  ;;  %v1383_v39 = vld [vmem:[%s13063_s2 + $0x3d0] sm:$0xff] }
  0xce   :  { %1179 = vmatpush2.msra.mxu1 %v781_v49  ;;  %v7145_v56 = vadd.f32 %v194_v54, %v7112_v40  ;;  %v7148_v57 = vadd.f32 %v416_v55, %v7139_v53 }
  0xcf   :  { %1181 = vmatmul.mubr.f32.vlgmr.msra.gmra.mxu1 %v6133_v3  ;;  %v196_v58 = vpop.f32.mrf.mxu1  ;;  %v420_v59 = vpop.f32.mrf.mxu0  ;;  %v7224_v55 = vrot.slane %v7092_v42, %v65_v46 }
  0xd0   :  { %v7152_v60 = vadd.f32 %v196_v58, %v7124_v11  ;;  %v7155_v21 = vadd.f32 %v420_v59, %v7130_v48 }
  0xd1   :  { %v200_v61 = vpop.f32.mrf.mxu1  ;;  %v422_v62 = vpop.f32.mrf.mxu0 }
  0xd2   :  { %v7158_v63 = vadd.f32 %v200_v61, %v7112_v40  ;;  %v7161_v0 = vadd.f32 %v422_v62, %v7139_v53 }
  0xd3   :  { %v202_v1 = vpop.f32.mrf.mxu1  ;;  %v426_v6 = vpop.f32.mrf.mxu0 }
  0xd4   :  { %v7164_v2 = vadd.f32 %v202_v1, %v7124_v11  ;;  %v7173_v8 = vadd.f32 %v426_v6, %v7130_v48 }
  0xd5   :  { %v206_v3 = vpop.f32.mrf.mxu1  ;;  %v428_v10 = vpop.f32.mrf.mxu0 }
  0xd6   :  { %v7167_v4 = vadd.f32 %v206_v3, %v7112_v40  ;;  %v7179_v13 = vadd.f32 %v428_v10, %v7139_v53 }
  0xd7   :  { %v208_v27 = vpop.f32.mrf.mxu1  ;;  %v432_v14 = vpop.f32.mrf.mxu0 }
  0xd8   :  { %v7170_v7 = vadd.f32 %v208_v27, %v7124_v11  ;;  %v7185_v17 = vadd.f32 %v432_v14, %v7130_v48 }
  0xd9   :  { %v212_v9 = vpop.f32.mrf.mxu1  ;;  %v434_v19 = vpop.f32.mrf.mxu0 }
  0xda   :  { %v7176_v12 = vadd.f32 %v212_v9, %v7112_v40  ;;  %v7191_v22 = vadd.f32 %v434_v19, %v7139_v53 }
  0xdb   :  { %v214_v32 = vpop.f32.mrf.mxu1  ;;  %v438_v24 = vpop.f32.mrf.mxu0 }
  0xdc   :  { %v7182_v15 = vadd.f32 %v214_v32, %v7124_v11  ;;  %v7197_v26 = vadd.f32 %v438_v24, %v7130_v48 }
  0xdd   :  { %v218_v18 = vpop.f32.mrf.mxu1  ;;  %v440_v29 = vpop.f32.mrf.mxu0 }
  0xde   :  { %v7188_v20 = vadd.f32 %v218_v18, %v7112_v40  ;;  %13070 = vst [vmem:[#allocation9_spill] sm:$0xff] %v7197_v26  ;;  %v7203_v31 = vadd.f32 %v440_v29, %v7139_v53  ;;  %v1384_v29 = vld [vmem:[%s13063_s2 + $0x3d8] sm:$0xff] }
  0xdf   :  { %v220_v37 = vpop.f32.mrf.mxu1  ;;  %v444_v34 = vpop.f32.mrf.mxu0  ;;  %1588 = vmatprep.subr.mxu1 %v1384_v29  ;;  %v1360_v29 = vld [vmem:[%s13063_s2 + $0x318] sm:$0xff] }
  0xe0   :  { %13068 = vst [vmem:[#allocation7_spill] sm:$0xff] %v7188_v20  ;;  %v7194_v25 = vadd.f32 %v220_v37, %v7124_v11  ;;  %13072 = vst [vmem:[#allocation11_spill] sm:$0xff] %v7203_v31  ;;  %v7210_v41 = vadd.f32 %v444_v34, %v7130_v48  ;;  %v1381_v34 = vld [vmem:[%s13063_s2 + $0x3c0] sm:$0xff]  ;;  %1589 = vmatpush1.msra.mxu1 %v1383_v39 }
  0xe1   :  { %v224_v28 = vpop.f32.mrf.mxu1  ;;  %v446_v44 = vpop.f32.mrf.mxu0  ;;  %v1357_v39 = vld [vmem:[%s13063_s2 + $0x300] sm:$0xff] }
  0xe2   :  { %13069 = vst [vmem:[#allocation8_spill] sm:$0xff] %v7194_v25  ;;  %v7200_v5 = vadd.f32 %v224_v28, %v7112_v40  ;;  %13074 = vst [vmem:[#allocation13_spill] sm:$0xff] %v7210_v41  ;;  %v7216_v49 = vadd.f32 %v446_v44, %v7139_v53  ;;  %v1382_v28 = vld [vmem:[%s13063_s2 + $0x3c8] sm:$0xff]  ;;  %v1391_v41 = vld [vmem:[%s13063_s2 + $0x410] sm:$0xff] }
  0xe3   :  { %v226_v33 = vpop.f32.mrf.mxu1  ;;  %v450_v61 = vpop.f32.mrf.mxu0  ;;  %1517 = vmatprep.subr.mxu0 %v1382_v28  ;;  %v1374_v44 = vld [vmem:[%s13063_s2 + $0x388] sm:$0xff] }
  0xe4   :  { %13071 = vst [vmem:[#allocation10_spill] sm:$0xff] %v7200_v5  ;;  %v7206_v35 = vadd.f32 %v226_v33, %v7124_v11  ;;  %13075 = vst [vmem:[#allocation14_spill] sm:$0xff] %v7216_v49  ;;  %v7233_v1 = vadd.f32 %v450_v61, %v7130_v48  ;;  %1518 = vmatpush1.msra.mxu0 %v1381_v34  ;;  %v1375_v61 = vld [vmem:[%s13063_s2 + $0x390] sm:$0xff]  ;;  %v1358_v28 = vld [vmem:[%s13063_s2 + $0x308] sm:$0xff] }
  0xe5   :  { %v7212_v43 = vpop.f32.mrf.mxu1  ;;  %v452_v27 = vpop.f32.mrf.mxu0  ;;  %1519 = vmatprep.subr.mxu0 %v1374_v44  ;;  %v1359_v44 = vld [vmem:[%s13063_s2 + $0x310] sm:$0xff]  ;;  %v1408_v5 = vld [vmem:[%s13063_s2 + $0x498] sm:$0xff] }
  0xe6   :  { %13073 = vst [vmem:[#allocation12_spill] sm:$0xff] %v7206_v35  ;;  %13076 = vst [vmem:[#allocation15_spill] sm:$0xff] %v7233_v1  ;;  %v7239_v9 = vadd.f32 %v452_v27, %v7139_v53  ;;  %v1366_v27 = vld [vmem:[%s13063_s2 + $0x348] sm:$0xff]  ;;  %v1399_v49 = vld [vmem:[%s13063_s2 + $0x450] sm:$0xff]  ;;  %v296_v31 = vadd.f32 %v7212_v43, %v7221_v51 }
  0xe7   :  { %v7218_v50 = vpop.f32.mrf.mxu1  ;;  %v1318_v1 = vld [vmem:[%s13063_s2 + $0x1c8] sm:$0xff] }
  0xe8   :  { %13077 = vst [vmem:[#allocation16_spill] sm:$0xff] %v7239_v9  ;;  %v1326_v9 = vld [vmem:[%s13063_s2 + $0x208] sm:$0xff] }
  0xe9   :  { %v301_v54 = vpop.f32.mrf.mxu1  ;;  %v1414_v35 = vld [vmem:[%s13063_s2 + $0x4c8] sm:$0xff] }
  0xea   :  { %v7227_v58 = vadd.f32 %v301_v54, %v7221_v51  ;;  %v1376_v54 = vld [vmem:[%s13063_s2 + $0x398] sm:$0xff] }
  0xeb   :  { %v303_v59 = vpop.f32.mrf.mxu1  ;;  %1590 = vmatprep.subr.mxu1 %v1376_v54  ;;  %v1350_v54 = vld [vmem:[%s13063_s2 + $0x2c8] sm:$0xff] }
  0xec   :  { %v7230_v62 = vadd.f32 %v303_v59, %v7224_v55  ;;  %v1373_v59 = vld [vmem:[%s13063_s2 + $0x380] sm:$0xff]  ;;  %1591 = vmatpush1.msra.mxu1 %v1375_v61 }
  0xed   :  { %v307_v3 = vpop.f32.mrf.mxu1  ;;  %1520 = vmatpush1.msra.mxu0 %v1373_v59  ;;  %v1352_v59 = vld [vmem:[%s13063_s2 + $0x2d8] sm:$0xff] }
  0xee   :  { %v7236_v6 = vadd.f32 %v307_v3, %v7221_v51  ;;  %1521 = vmatprep.subr.mxu0 %v1366_v27  ;;  %v1349_v27 = vld [vmem:[%s13063_s2 + $0x2c0] sm:$0xff] }
  0xef   :  { %v309_v10 = vpop.f32.mrf.mxu1 }
  0xf0   :  { %v7242_v32 = vadd.f32 %v309_v10, %v7224_v55  ;;  %v1368_v10 = vld [vmem:[%s13063_s2 + $0x358] sm:$0xff] }
  0xf1   :  { %v313_v14 = vpop.f32.mrf.mxu1  ;;  %1592 = vmatprep.subr.mxu1 %v1368_v10  ;;  %v1351_v10 = vld [vmem:[%s13063_s2 + $0x2d0] sm:$0xff] }
  0xf2   :  { %v7245_v18 = vadd.f32 %v313_v14, %v7221_v51  ;;  %v1365_v14 = vld [vmem:[%s13063_s2 + $0x340] sm:$0xff] }
  0xf3   :  { %v315_v19 = vpop.f32.mrf.mxu1  ;;  %1522 = vmatpush1.msra.mxu0 %v1365_v14 }
  0xf4   :  { %v7248_v37 = vadd.f32 %v315_v19, %v7224_v55  ;;  %1523 = vmatprep.subr.mxu0 %v1358_v28 }
  0xf5   :  { %v319_v24 = vpop.f32.mrf.mxu1  ;;  %1524 = vmatpush1.msra.mxu0 %v1357_v39  ;;  %v1343_v39 = vld [vmem:[%s13063_s2 + $0x290] sm:$0xff] }
  0xf6   :  { %v7257_v33 = vadd.f32 %v319_v24, %v7221_v51  ;;  %v1367_v24 = vld [vmem:[%s13063_s2 + $0x350] sm:$0xff]  ;;  %1525 = vmatprep.subr.mxu0 %v1350_v54  ;;  %v1336_v54 = vld [vmem:[%s13063_s2 + $0x258] sm:$0xff] }
  0xf7   :  { %v321_v46 = vpop.f32.mrf.mxu1  ;;  %1593 = vmatpush1.msra.mxu1 %v1367_v24  ;;  %v1344_v24 = vld [vmem:[%s13063_s2 + $0x298] sm:$0xff]  ;;  %1526 = vmatpush1.msra.mxu0 %v1349_v27  ;;  %v1335_v27 = vld [vmem:[%s13063_s2 + $0x250] sm:$0xff] }
  0xf8   :  { %v7278_v3 = vadd.f32 %v321_v46, %v7224_v55  ;;  %1594 = vmatprep.subr.mxu1 %v1360_v29  ;;  %v1341_v29 = vld [vmem:[%s13063_s2 + $0x280] sm:$0xff] }
  0xf9   :  { %v325_v19 = vpop.f32.mrf.mxu1  ;;  %1595 = vmatpush1.msra.mxu1 %v1359_v44 }
  0xfa   :  { %v7299_v34 = vadd.f32 %v325_v19, %v7221_v51  ;;  %v1342_v19 = vld [vmem:[%s13063_s2 + $0x288] sm:$0xff]  ;;  %1596 = vmatprep.subr.mxu1 %v1352_v59 }
  0xfb   :  { %v327_v46 = vpop.f32.mrf.mxu1  ;;  %1597 = vmatpush1.msra.mxu1 %v1351_v10  ;;  %1527 = vmatprep.subr.mxu0 %v1342_v19  ;;  %v1328_v19 = vld [vmem:[%s13063_s2 + $0x218] sm:$0xff] }
  0xfc   :  { %v7314_v61 = vadd.f32 %v327_v46, %v7224_v55  ;;  %v1334_v46 = vld [vmem:[%s13063_s2 + $0x248] sm:$0xff]  ;;  %1598 = vmatprep.subr.mxu1 %v1344_v24  ;;  %1528 = vmatpush1.msra.mxu0 %v1341_v29  ;;  %v1327_v29 = vld [vmem:[%s13063_s2 + $0x210] sm:$0xff] }
  0xfd   :  { %v331_v14 = vpop.f32.mrf.mxu1  ;;  %1599 = vmatpush1.msra.mxu1 %v1343_v39  ;;  %1529 = vmatprep.subr.mxu0 %v1334_v46  ;;  %v1320_v46 = vld [vmem:[%s13063_s2 + $0x1d8] sm:$0xff] }
  0xfe   :  { %13078 = vst [vmem:[#allocation17_spill] sm:$0xff] %v7314_v61  ;;  %v7329_v28 = vadd.f32 %v331_v14, %v7221_v51  ;;  %v1333_v14 = vld [vmem:[%s13063_s2 + $0x240] sm:$0xff]  ;;  %1600 = vmatprep.subr.mxu1 %v1336_v54 }
  0xff   :  { %v333_v44 = vpop.f32.mrf.mxu1  ;;  %1530 = vmatpush1.msra.mxu0 %v1333_v14  ;;  %1601 = vmatpush1.msra.mxu1 %v1335_v27  ;;  %v1319_v14 = vld [vmem:[%s13063_s2 + $0x1d0] sm:$0xff]  ;;  %v1310_v27 = vld [vmem:[%s13063_s2 + $0x188] sm:$0xff] }
 0x100   :  { %13079 = vst [vmem:[#allocation18_spill] sm:$0xff] %v7329_v28  ;;  %v7344_v59 = vadd.f32 %v333_v44, %v7224_v55  ;;  %v1325_v44 = vld [vmem:[%s13063_s2 + $0x200] sm:$0xff]  ;;  %1531 = vmatprep.subr.mxu0 %v1326_v9  ;;  %1602 = vmatprep.subr.mxu1 %v1328_v19  ;;  %v1311_v19 = vld [vmem:[%s13063_s2 + $0x190] sm:$0xff] }
 0x101   :  { %v337_v10 = vpop.f32.mrf.mxu1  ;;  %1532 = vmatpush1.msra.mxu0 %v1325_v44  ;;  %1603 = vmatpush1.msra.mxu1 %v1327_v29  ;;  %v1309_v9 = vld [vmem:[%s13063_s2 + $0x180] sm:$0xff]  ;;  %v1302_v44 = vld [vmem:[%s13063_s2 + $0x148] sm:$0xff]  ;;  %v1304_v29 = vld [vmem:[%s13063_s2 + $0x158] sm:$0xff] }
 0x102   :  { %13080 = vst [vmem:[#allocation19_spill] sm:$0xff] %v7344_v59  ;;  %v7359_v24 = vadd.f32 %v337_v10, %v7221_v51  ;;  %v1317_v10 = vld [vmem:[%s13063_s2 + $0x1c0] sm:$0xff]  ;;  %1533 = vmatprep.subr.mxu0 %v1318_v1  ;;  %1604 = vmatprep.subr.mxu1 %v1320_v46  ;;  %v1303_v46 = vld [vmem:[%s13063_s2 + $0x150] sm:$0xff] }
 0x103   :  { %v339_v39 = vpop.f32.mrf.mxu1  ;;  %1534 = vmatpush1.msra.mxu0 %v1317_v10  ;;  %1605 = vmatpush1.msra.mxu1 %v1319_v14  ;;  %v1301_v1 = vld [vmem:[%s13063_s2 + $0x140] sm:$0xff]  ;;  %v1294_v10 = vld [vmem:[%s13063_s2 + $0x108] sm:$0xff]  ;;  %v1296_v14 = vld [vmem:[%s13063_s2 + $0x118] sm:$0xff] }
 0x104   :  { %13081 = vst [vmem:[#allocation20_spill] sm:$0xff] %v7359_v24  ;;  %v7374_v54 = vadd.f32 %v339_v39, %v7224_v55  ;;  %v1312_v39 = vld [vmem:[%s13063_s2 + $0x198] sm:$0xff]  ;;  %1535 = vmatprep.subr.mxu0 %v1310_v27  ;;  %v1293_v27 = vld [vmem:[%s13063_s2 + $0x100] sm:$0xff] }
 0x105   :  { %1606 = vmatprep.subr.mxu1 %v1312_v39  ;;  %1536 = vmatpush1.msra.mxu0 %v1309_v9  ;;  %v1295_v39 = vld [vmem:[%s13063_s2 + $0x110] sm:$0xff]  ;;  %v1286_v9 = vld [vmem:[%s13063_s2 + $0xc8] sm:$0xff]  ;;  %v1416_v24 = vld [vmem:[%s13063_s2 + $0x4d8] sm:$0xff] }
 0x106   :  { %13082 = vst [vmem:[#allocation21_spill] sm:$0xff] %v7374_v54  ;;  %1607 = vmatpush1.msra.mxu1 %v1311_v19  ;;  %1537 = vmatprep.subr.mxu0 %v1302_v44  ;;  %v1288_v19 = vld [vmem:[%s13063_s2 + $0xd8] sm:$0xff]  ;;  %v1285_v44 = vld [vmem:[%s13063_s2 + $0xc0] sm:$0xff] }
 0x107   :  { %1608 = vmatprep.subr.mxu1 %v1304_v29  ;;  %1538 = vmatpush1.msra.mxu0 %v1301_v1  ;;  %v1287_v29 = vld [vmem:[%s13063_s2 + $0xd0] sm:$0xff]  ;;  %v1278_v1 = vld [vmem:[%s13063_s2 + $0x88] sm:$0xff] }
 0x108   :  { %1609 = vmatpush1.msra.mxu1 %v1303_v46  ;;  %1539 = vmatprep.subr.mxu0 %v1294_v10  ;;  %v1280_v46 = vld [vmem:[%s13063_s2 + $0x98] sm:$0xff]  ;;  %v1277_v10 = vld [vmem:[%s13063_s2 + $0x80] sm:$0xff] }
 0x109   :  { %1610 = vmatprep.subr.mxu1 %v1296_v14  ;;  %1540 = vmatpush1.msra.mxu0 %v1293_v27  ;;  %v1279_v14 = vld [vmem:[%s13063_s2 + $0x90] sm:$0xff]  ;;  %v1270_v27 = vld [vmem:[%s13063_s2 + $0x48] sm:$0xff] }
 0x10a   :  { %1611 = vmatpush1.msra.mxu1 %v1295_v39  ;;  %1541 = vmatprep.subr.mxu0 %v1286_v9  ;;  %v1272_v39 = vld [vmem:[%s13063_s2 + $0x58] sm:$0xff]  ;;  %v1269_v9 = vld [vmem:[%s13063_s2 + $0x40] sm:$0xff] }
 0x10b   :  { %1612 = vmatprep.subr.mxu1 %v1288_v19  ;;  %1542 = vmatpush1.msra.mxu0 %v1285_v44  ;;  %v1271_v19 = vld [vmem:[%s13063_s2 + $0x50] sm:$0xff]  ;;  %v1262_v44 = vld [vmem:[%s13063_s2 + $0x8] sm:$0xff] }
 0x10c   :  { %1613 = vmatpush1.msra.mxu1 %v1287_v29  ;;  %1543 = vmatprep.subr.mxu0 %v1278_v1  ;;  %v1264_v29 = vld [vmem:[%s13063_s2 + $0x18] sm:$0xff]  ;;  %v1261_v1 = vld [vmem:[%s13063_s2] sm:$0xff] }
 0x10d   :  { %1614 = vmatprep.subr.mxu1 %v1280_v46  ;;  %1544 = vmatpush1.msra.mxu0 %v1277_v10  ;;  %v1263_v46 = vld [vmem:[%s13063_s2 + $0x10] sm:$0xff]  ;;  %v1510_v10 = vld [vmem:[%s13063_s2 + $0x7c8] sm:$0xff] }
 0x10e   :  { %1615 = vmatpush1.msra.mxu1 %v1279_v14  ;;  %1545 = vmatprep.subr.mxu0 %v1270_v27  ;;  %v1512_v14 = vld [vmem:[%s13063_s2 + $0x7d8] sm:$0xff]  ;;  %v1509_v27 = vld [vmem:[%s13063_s2 + $0x7c0] sm:$0xff] }
 0x10f   :  { %1616 = vmatprep.subr.mxu1 %v1272_v39  ;;  %1546 = vmatpush1.msra.mxu0 %v1269_v9  ;;  %v1511_v39 = vld [vmem:[%s13063_s2 + $0x7d0] sm:$0xff]  ;;  %v1502_v9 = vld [vmem:[%s13063_s2 + $0x788] sm:$0xff] }
 0x110   :  { %1617 = vmatpush1.msra.mxu1 %v1271_v19  ;;  %1547 = vmatprep.subr.mxu0 %v1262_v44  ;;  %v1504_v19 = vld [vmem:[%s13063_s2 + $0x798] sm:$0xff]  ;;  %v1501_v44 = vld [vmem:[%s13063_s2 + $0x780] sm:$0xff] }
 0x111   :  { %1618 = vmatprep.subr.mxu1 %v1264_v29  ;;  %1548 = vmatpush1.msra.mxu0 %v1261_v1  ;;  %v1503_v29 = vld [vmem:[%s13063_s2 + $0x790] sm:$0xff]  ;;  %v1494_v1 = vld [vmem:[%s13063_s2 + $0x748] sm:$0xff] }
 0x112   :  { %1619 = vmatpush1.msra.mxu1 %v1263_v46  ;;  %1549 = vmatprep.subr.mxu0 %v1510_v10  ;;  %v1496_v46 = vld [vmem:[%s13063_s2 + $0x758] sm:$0xff]  ;;  %v1493_v10 = vld [vmem:[%s13063_s2 + $0x740] sm:$0xff] }
 0x113   :  { %1620 = vmatprep.subr.mxu1 %v1512_v14  ;;  %1550 = vmatpush2.msra.mxu0 %v1509_v27  ;;  %v1495_v14 = vld [vmem:[%s13063_s2 + $0x750] sm:$0xff]  ;;  %v1486_v27 = vld [vmem:[%s13063_s2 + $0x708] sm:$0xff] }
 0x114   :  { %1621 = vmatpush2.msra.mxu1 %v1511_v39  ;;  %1551 = vmatprep.subr.mxu0 %v1502_v9  ;;  %v1488_v39 = vld [vmem:[%s13063_s2 + $0x718] sm:$0xff]  ;;  %v1485_v9 = vld [vmem:[%s13063_s2 + $0x700] sm:$0xff] }
 0x115   :  { %1622 = vmatprep.subr.mxu1 %v1504_v19  ;;  %1552 = vmatpush2.msra.mxu0 %v1501_v44  ;;  %v1487_v19 = vld [vmem:[%s13063_s2 + $0x710] sm:$0xff]  ;;  %v1478_v44 = vld [vmem:[%s13063_s2 + $0x6c8] sm:$0xff] }
 0x116   :  { %1623 = vmatpush2.msra.mxu1 %v1503_v29  ;;  %1553 = vmatprep.subr.mxu0 %v1494_v1  ;;  %v1480_v29 = vld [vmem:[%s13063_s2 + $0x6d8] sm:$0xff]  ;;  %v1477_v1 = vld [vmem:[%s13063_s2 + $0x6c0] sm:$0xff] }
 0x117   :  { %1624 = vmatprep.subr.mxu1 %v1496_v46  ;;  %1554 = vmatpush2.msra.mxu0 %v1493_v10  ;;  %v1479_v46 = vld [vmem:[%s13063_s2 + $0x6d0] sm:$0xff]  ;;  %v1470_v10 = vld [vmem:[%s13063_s2 + $0x688] sm:$0xff] }
 0x118   :  { %1625 = vmatpush2.msra.mxu1 %v1495_v14  ;;  %1555 = vmatprep.subr.mxu0 %v1486_v27  ;;  %v1472_v14 = vld [vmem:[%s13063_s2 + $0x698] sm:$0xff]  ;;  %v1469_v27 = vld [vmem:[%s13063_s2 + $0x680] sm:$0xff] }
 0x119   :  { %1626 = vmatprep.subr.mxu1 %v1488_v39  ;;  %1556 = vmatpush2.msra.mxu0 %v1485_v9  ;;  %v1471_v39 = vld [vmem:[%s13063_s2 + $0x690] sm:$0xff]  ;;  %v1462_v9 = vld [vmem:[%s13063_s2 + $0x648] sm:$0xff] }
 0x11a   :  { %1627 = vmatpush2.msra.mxu1 %v1487_v19  ;;  %1557 = vmatprep.subr.mxu0 %v1478_v44  ;;  %v1464_v19 = vld [vmem:[%s13063_s2 + $0x658] sm:$0xff]  ;;  %v1461_v44 = vld [vmem:[%s13063_s2 + $0x640] sm:$0xff] }
 0x11b   :  { %1628 = vmatprep.subr.mxu1 %v1480_v29  ;;  %1558 = vmatpush2.msra.mxu0 %v1477_v1  ;;  %v1463_v29 = vld [vmem:[%s13063_s2 + $0x650] sm:$0xff]  ;;  %v1454_v1 = vld [vmem:[%s13063_s2 + $0x608] sm:$0xff] }
 0x11c   :  { %1629 = vmatpush2.msra.mxu1 %v1479_v46  ;;  %1559 = vmatprep.subr.mxu0 %v1470_v10  ;;  %v1456_v46 = vld [vmem:[%s13063_s2 + $0x618] sm:$0xff]  ;;  %v7556_v10 = vpop.f32.mrf.mxu1 }
 0x11d   :  { %1630 = vmatprep.subr.mxu1 %v1472_v14  ;;  %1560 = vmatpush2.msra.mxu0 %v1469_v27  ;;  %v1453_v14 = vld [vmem:[%s13063_s2 + $0x600] sm:$0xff]  ;;  %v1455_v27 = vld [vmem:[%s13063_s2 + $0x610] sm:$0xff] }
 0x11e   :  { %1631 = vmatpush2.msra.mxu1 %v1471_v39  ;;  %1561 = vmatprep.subr.mxu0 %v1462_v9  ;;  %v1446_v39 = vld [vmem:[%s13063_s2 + $0x5c8] sm:$0xff]  ;;  %v1448_v9 = vld [vmem:[%s13063_s2 + $0x5d8] sm:$0xff] }
 0x11f   :  { %1632 = vmatprep.subr.mxu1 %v1464_v19  ;;  %1562 = vmatpush2.msra.mxu0 %v1461_v44  ;;  %v1445_v19 = vld [vmem:[%s13063_s2 + $0x5c0] sm:$0xff]  ;;  %v1447_v44 = vld [vmem:[%s13063_s2 + $0x5d0] sm:$0xff] }
 0x120   :  { %1633 = vmatpush2.msra.mxu1 %v1463_v29  ;;  %1563 = vmatprep.subr.mxu0 %v1454_v1  ;;  %v1438_v29 = vld [vmem:[%s13063_s2 + $0x588] sm:$0xff]  ;;  %v1440_v1 = vld [vmem:[%s13063_s2 + $0x598] sm:$0xff] }
 0x121   :  { %1634 = vmatprep.subr.mxu1 %v1456_v46  ;;  %1564 = vmatpush2.msra.mxu0 %v1453_v14  ;;  %v1437_v46 = vld [vmem:[%s13063_s2 + $0x580] sm:$0xff]  ;;  %v1439_v14 = vld [vmem:[%s13063_s2 + $0x590] sm:$0xff] }
 0x122   :  { %1635 = vmatpush2.msra.mxu1 %v1455_v27  ;;  %1565 = vmatprep.subr.mxu0 %v1446_v39  ;;  %v7588_v27 = vpop.f32.mrf.mxu1  ;;  %v1430_v39 = vld [vmem:[%s13063_s2 + $0x548] sm:$0xff] }
 0x123   :  { %1636 = vmatprep.subr.mxu1 %v1448_v9  ;;  %1566 = vmatpush2.msra.mxu0 %v1445_v19  ;;  %v1432_v9 = vld [vmem:[%s13063_s2 + $0x558] sm:$0xff]  ;;  %v1429_v19 = vld [vmem:[%s13063_s2 + $0x540] sm:$0xff] }
 0x124   :  { %1637 = vmatpush2.msra.mxu1 %v1447_v44  ;;  %1567 = vmatprep.subr.mxu0 %v1438_v29  ;;  %v1431_v44 = vld [vmem:[%s13063_s2 + $0x550] sm:$0xff]  ;;  %v1422_v29 = vld [vmem:[%s13063_s2 + $0x508] sm:$0xff] }
 0x125   :  { %1638 = vmatprep.subr.mxu1 %v1440_v1  ;;  %1568 = vmatpush2.msra.mxu0 %v1437_v46  ;;  %v1424_v1 = vld [vmem:[%s13063_s2 + $0x518] sm:$0xff]  ;;  %v1421_v46 = vld [vmem:[%s13063_s2 + $0x500] sm:$0xff] }
 0x126   :  { %1639 = vmatpush2.msra.mxu1 %v1439_v14  ;;  %1569 = vmatprep.subr.mxu0 %v1430_v39  ;;  %v1423_v14 = vld [vmem:[%s13063_s2 + $0x510] sm:$0xff] }
 0x127   :  { %1640 = vmatprep.subr.mxu1 %v1432_v9  ;;  %1570 = vmatpush2.msra.mxu0 %v1429_v19  ;;  %v1413_v9 = vld [vmem:[%s13063_s2 + $0x4c0] sm:$0xff]  ;;  %v1415_v19 = vld [vmem:[%s13063_s2 + $0x4d0] sm:$0xff] }
 0x128   :  { %1641 = vmatpush2.msra.mxu1 %v1431_v44  ;;  %1571 = vmatprep.subr.mxu0 %v1422_v29  ;;  %v1406_v44 = vld [vmem:[%s13063_s2 + $0x488] sm:$0xff]  ;;  %v1405_v29 = vld [vmem:[%s13063_s2 + $0x480] sm:$0xff] }
 0x129   :  { %1642 = vmatprep.subr.mxu1 %v1424_v1  ;;  %1572 = vmatpush2.msra.mxu0 %v1421_v46  ;;  %v1407_v1 = vld [vmem:[%s13063_s2 + $0x490] sm:$0xff] }
 0x12a   :  { %v7608_v54 = vpop.f32.mrf.mxu1  ;;  %1643 = vmatpush2.msra.mxu1 %v1423_v14  ;;  %1573 = vmatprep.subr.mxu0 %v1414_v35  ;;  %v1398_v14 = vld [vmem:[%s13063_s2 + $0x448] sm:$0xff]  ;;  %v1400_v35 = vld [vmem:[%s13063_s2 + $0x458] sm:$0xff] }
 0x12b   :  { %1644 = vmatprep.subr.mxu1 %v1416_v24  ;;  %1574 = vmatpush2.msra.mxu0 %v1413_v9  ;;  %v1397_v24 = vld [vmem:[%s13063_s2 + $0x440] sm:$0xff] }
 0x12c   :  { %v7622_v39 = vpop.f32.mrf.mxu1  ;;  %1645 = vmatpush2.msra.mxu1 %v1415_v19  ;;  %1575 = vmatprep.subr.mxu0 %v1406_v44  ;;  %v1390_v19 = vld [vmem:[%s13063_s2 + $0x408] sm:$0xff]  ;;  %v1389_v44 = vld [vmem:[%s13063_s2 + $0x400] sm:$0xff] }
 0x12d   :  { %1646 = vmatprep.subr.mxu1 %v1408_v5  ;;  %1576 = vmatpush2.msra.mxu0 %v1405_v29  ;;  %v1392_v5 = vld [vmem:[%s13063_s2 + $0x418] sm:$0xff] }
 0x12e   :  { %1647 = vmatpush2.msra.mxu1 %v1407_v1  ;;  %1577 = vmatprep.subr.mxu0 %v1398_v14  ;;  %v1386_v1 = vld [vmem:[%s13063_s2 + $0x3e8] sm:$0xff]  ;;  %v1388_v14 = vld [vmem:[%s13063_s2 + $0x3f8] sm:$0xff] }
 0x12f   :  { %v7642_v46 = vpop.f32.mrf.mxu1  ;;  %1648 = vmatprep.subr.mxu1 %v1400_v35  ;;  %1578 = vmatpush2.msra.mxu0 %v1397_v24 }
 0x130   :  { %1649 = vmatpush2.msra.mxu1 %v1399_v49  ;;  %1579 = vmatprep.subr.mxu0 %v1390_v19 }
 0x131   :  { %v7656_v9 = vpop.f32.mrf.mxu1  ;;  %1650 = vmatprep.subr.mxu1 %v1392_v5  ;;  %1580 = vmatpush2.msra.mxu0 %v1389_v44  ;;  %v183_v44 = vadd.f32 %v7094_v30, %v7112_v40 }
 0x132   :  { %1651 = vmatpush2.msra.mxu1 %v1391_v41  ;;  %1659 = vmatprep.subr.mxu0 %v1386_v1  ;;  %v969_v41 = vpop.f32.mrf.mxu0 }
 0x133   :  { %1730 = vmatprep.subr.mxu1 %v1388_v14  ;;  %v1187_v25 = vadd.f32 %v969_v41, %v183_v44  ;;  %v409_v41 = vadd.f32 %v7106_v38, %v7130_v48  ;;  %v185_v38 = vadd.f32 %v7104_v36, %v7124_v11 }
 0x134   :  { %v7670_v29 = vpop.f32.mrf.mxu1  ;;  %v971_v61 = vpop.f32.mrf.mxu0 }
 0x135   :  { %v5771_v1 = vmul.f32 -1.442695, %v1187_v25 }
 0x136   :  { %v7678_v35 = vpop.f32.mrf.mxu1 }
 0x137   :  { %5877 = vpow2.f32 %v5771_v1 }
 0x139   :  { %v7680_v24 = vpop.f32.mrf.mxu1 }
 0x13b   :  { %v7682_v49 = vpop.f32.mrf.mxu1 }
 0x13e   :  { %v7684_v19 = vpop.f32.mrf.mxu1 }
 0x13f   :  { %13083 = vst [vmem:[#allocation22_spill] sm:$0xff] %v7684_v19 }
 0x140   :  { %v7686_v5 = vpop.f32.mrf.mxu1 }
 0x141   :  { %13084 = vst [vmem:[#allocation23_spill] sm:$0xff] %v7686_v5 }
 0x143   :  { %v7690_v59 = vpop.f32.mrf.mxu1 }
 0x144   :  { %v5878_v40 = vpop.eup %5877 }
 0x145   :  { %v7692_v28 = vpop.f32.mrf.mxu1 }
 0x146   :  { %13085 = vst [vmem:[#allocation24_spill] sm:$0xff] %v7692_v28  ;;  %v1201_v28 = vadd.f32 1.0, %v5878_v40 }
 0x148   :  { %v7694_v20 = vpop.f32.mrf.mxu1 }
 0x149   :  { %13086 = vst [vmem:[#allocation25_spill] sm:$0xff] %v7694_v20 }
 0x14a   :  { %v7696_v14 = vpop.f32.mrf.mxu1 }
 0x14b   :  { %13087 = vst [vmem:[#allocation26_spill] sm:$0xff] %v7696_v14 }
 0x14d   :  { %v1040_v26 = vpop.f32.mrf.mxu1 }
 0x14e   :  { %v1189_v5 = vadd.f32 %v1040_v26, %v296_v31  ;;  %v298_v26 = vadd.f32 %v7218_v50, %v7224_v55  ;;  %v411_v50 = vadd.f32 %v7118_v45, %v7139_v53  ;;  %v81_v55 = vsub.s32 7, %v7071_v23 }
 0x14f   :  { %v1111_v30 = vpop.f32.mrf.mxu0  ;;  %v1042_v43 = vpop.f32.mrf.mxu1 }
 0x150   :  { %v5773_v19 = vmul.f32 -1.442695, %v1189_v5  ;;  %v1191_v44 = vadd.f32 %v1111_v30, %v409_v41  ;;  %v1190_v1 = vadd.f32 %v1042_v43, %v298_v26  ;;  %v1188_v30 = vadd.f32 %v971_v61, %v185_v38 }
 0x151   :  { %v77_v41 = vsub.s32 6, %v7071_v23  ;;  %v7716_v61 = vrot.slane %v7092_v42, %v81_v55 }
 0x152   :  { %5879 = vpow2.f32 %v5773_v19  ;;  %v5772_v40 = vmul.f32 -1.442695, %v1188_v30 }
 0x153   :  { %5881 = vtanh.f32 %v1191_v44  ;;  %v1113_v44 = vpop.f32.mrf.mxu0  ;;  %v7713_v36 = vrot.slane %v7092_v42, %v77_v41  ;;  %v524_v45 = vadd.f32 %v7588_v27, %v7716_v61 }
 0x154   :  { %5883 = vrcp.f32 %v1201_v28  ;;  %v1192_v11 = vadd.f32 %v1113_v44, %v411_v50 }
 0x15f   :  { %v5880_v20 = vpop.eup %5879 }
 0x160   :  { %v1213_v25 = vadd.f32 1.0, %v5880_v20  ;;  %v5882_v14 = vpop.eup %5881  ;;  %v5774_v20 = vmul.f32 -1.442695, %v1190_v1 }
 0x161   :  { %v5884_v51 = vpop.eup %5883 }
 0x162   :  { %5885 = vrcp.f32 %v1213_v25  ;;  %v1235_v5 = vmul.f32 %v5884_v51, %v5882_v14  ;;  %v522_v51 = vadd.f32 %v7556_v10, %v7713_v36 }
 0x163   :  { %5887 = vpow2.f32 %v5774_v20 }
 0x164   :  { %5889 = vpow2.f32 %v5772_v40 }
 0x16f   :  { %v5886_v31 = vpop.eup %5885 }
 0x170   :  { %v1233_v19 = vmul.f32 0.0, %v5886_v31  ;;  %v5888_v28 = vpop.eup %5887 }
 0x171   :  { %v1214_v14 = vadd.f32 1.0, %v5888_v28  ;;  %v5890_v25 = vpop.eup %5889 }
 0x172   :  { %v7706_v48 = vadd.f32 %v1235_v5, %v1233_v19  ;;  %v1202_v43 = vadd.f32 1.0, %v5890_v25 }
 0x173   :  { %5891 = vrcp.f32 %v1214_v14 }
 0x174   :  { %5893 = vtanh.f32 %v1192_v11 }
 0x175   :  { %5895 = vrcp.f32 %v1202_v43  ;;  %v1385_v43 = vld [vmem:[%s13063_s2 + $0x3e0] sm:$0xff] }
 0x180   :  { %v5892_v42 = vpop.eup %5891 }
 0x181   :  { %v5894_v1 = vpop.eup %5893  ;;  %v1234_v38 = vmul.f32 0.0, %v5892_v42  ;;  %v1371_v42 = vld [vmem:[%s13063_s2 + $0x370] sm:$0xff] }
 0x182   :  { %v5896_v30 = vpop.eup %5895 }
 0x183   :  { %v1236_v20 = vmul.f32 %v5896_v30, %v5894_v1  ;;  %v1362_v1 = vld [vmem:[%s13063_s2 + $0x328] sm:$0xff]  ;;  %v1361_v30 = vld [vmem:[%s13063_s2 + $0x320] sm:$0xff] }
 0x185   :  { %v7722_v40 = vadd.f32 %v1236_v20, %v1234_v38  ;;  %v1364_v38 = vld [vmem:[%s13063_s2 + $0x338] sm:$0xff]  ;;  %v1363_v20 = vld [vmem:[%s13063_s2 + $0x330] sm:$0xff] }
 0x18f   :  { %v1182_v26 = vpop.f32.mrf.mxu1 }
 0x190   :  { %v1193_v23 = vadd.f32 %v1182_v26, %v522_v51  ;;  %v1387_v51 = vld [vmem:[%s13063_s2 + $0x3f0] sm:$0xff]  ;;  %v1378_v26 = vld [vmem:[%s13063_s2 + $0x3a8] sm:$0xff] }
 0x191   :  { %v1184_v53 = vpop.f32.mrf.mxu1 }
 0x192   :  { %v5775_v31 = vmul.f32 -1.442695, %v1193_v23  ;;  %v1194_v19 = vadd.f32 %v1184_v53, %v524_v45  ;;  %v1380_v45 = vld [vmem:[%s13063_s2 + $0x3b8] sm:$0xff]  ;;  %v1377_v23 = vld [vmem:[%s13063_s2 + $0x3a0] sm:$0xff]  ;;  %v1379_v53 = vld [vmem:[%s13063_s2 + $0x3b0] sm:$0xff] }
 0x194   :  { %5897 = vpow2.f32 %v5775_v31  ;;  %v5776_v5 = vmul.f32 -1.442695, %v1194_v19  ;;  %v1370_v31 = vld [vmem:[%s13063_s2 + $0x368] sm:$0xff]  ;;  %v1372_v19 = vld [vmem:[%s13063_s2 + $0x378] sm:$0xff] }
 0x196   :  { %5899 = vpow2.f32 %v5776_v5  ;;  %v1369_v5 = vld [vmem:[%s13063_s2 + $0x360] sm:$0xff] }
 0x197   :  { %5901 = vtanh.f32 %v7722_v40 }
 0x1a1   :  { %v5898_v10 = vpop.eup %5897 }
 0x1a2   :  { %v1227_v28 = vadd.f32 1.0, %v5898_v10  ;;  %v1354_v10 = vld [vmem:[%s13063_s2 + $0x2e8] sm:$0xff] }
 0x1a3   :  { %v5900_v41 = vpop.eup %5899 }
 0x1a4   :  { %v1228_v27 = vadd.f32 1.0, %v5900_v41  ;;  %5903 = vrcp.f32 %v1227_v28  ;;  %v5902_v44 = vpop.eup %5901  ;;  %v1356_v28 = vld [vmem:[%s13063_s2 + $0x2f8] sm:$0xff]  ;;  %v1353_v41 = vld [vmem:[%s13063_s2 + $0x2e0] sm:$0xff] }
 0x1a6   :  { %5905 = vrcp.f32 %v1228_v27  ;;  %v1355_v27 = vld [vmem:[%s13063_s2 + $0x2f0] sm:$0xff] }
 0x1a7   :  { %5907 = vtanh.f32 %v7706_v48 }
 0x1b1   :  { %v5904_v50 = vpop.eup %5903 }
 0x1b3   :  { %v5906_v55 = vpop.eup %5905 }
 0x1b4   :  { %v5908_v14 = vpop.eup %5907  ;;  %v7726_v25 = vmul.f32 %v5906_v55, %v5902_v44  ;;  %v1346_v44 = vld [vmem:[%s13063_s2 + $0x2a8] sm:$0xff]  ;;  %v1345_v55 = vld [vmem:[%s13063_s2 + $0x2a0] sm:$0xff] }
 0x1b5   :  { %v7728_v11 = vmul.f32 %v5908_v14, %v5904_v50  ;;  %v1348_v50 = vld [vmem:[%s13063_s2 + $0x2b8] sm:$0xff]  ;;  %v1347_v14 = vld [vmem:[%s13063_s2 + $0x2b0] sm:$0xff] }
 0x1b6   :  { %1581 = vmatprep.mubr.f32.mxu0 %v7726_v25  ;;  %1652 = vmatprep.mubr.f32.mxu1 %v7726_v25 }
 0x1b7   :  { %1582 = vmatmul.mubr.f32.vlgmr.msra.gmra.mxu0 %v7728_v11  ;;  %1653 = vmatmul.mubr.f32.vlgmr.msra.gmra.mxu1 %v7728_v11 }
 0x1b8   :  { %1660 = vmatpush1.msra.mxu0 %v1385_v43  ;;  %1731 = vmatpush1.msra.mxu1 %v1387_v51  ;;  %v1338_v43 = vld [vmem:[%s13063_s2 + $0x268] sm:$0xff]  ;;  %v1340_v51 = vld [vmem:[%s13063_s2 + $0x278] sm:$0xff] }
 0x1b9   :  { %1661 = vmatprep.subr.mxu0 %v1378_v26  ;;  %1723 = vmatprep.mubr.f32.mxu0 %v7726_v25  ;;  %v1337_v26 = vld [vmem:[%s13063_s2 + $0x260] sm:$0xff] }
 0x1ba   :  { %1732 = vmatprep.subr.mxu1 %v1380_v45  ;;  %1794 = vmatprep.mubr.f32.mxu1 %v7726_v25  ;;  %v1339_v45 = vld [vmem:[%s13063_s2 + $0x270] sm:$0xff] }
 0x1bb   :  { %1662 = vmatpush1.msra.mxu0 %v1377_v23  ;;  %1733 = vmatpush1.msra.mxu1 %v1379_v53  ;;  %v1330_v23 = vld [vmem:[%s13063_s2 + $0x228] sm:$0xff]  ;;  %v1332_v53 = vld [vmem:[%s13063_s2 + $0x238] sm:$0xff] }
 0x1bc   :  { %1663 = vmatprep.subr.mxu0 %v1370_v31  ;;  %1734 = vmatprep.subr.mxu1 %v1372_v19  ;;  %v1329_v31 = vld [vmem:[%s13063_s2 + $0x220] sm:$0xff]  ;;  %v1331_v19 = vld [vmem:[%s13063_s2 + $0x230] sm:$0xff] }
 0x1bd   :  { %1664 = vmatpush1.msra.mxu0 %v1369_v5  ;;  %1735 = vmatpush1.msra.mxu1 %v1371_v42  ;;  %v1322_v5 = vld [vmem:[%s13063_s2 + $0x1e8] sm:$0xff]  ;;  %v1324_v42 = vld [vmem:[%s13063_s2 + $0x1f8] sm:$0xff] }
 0x1be   :  { %1665 = vmatprep.subr.mxu0 %v1362_v1  ;;  %1736 = vmatprep.subr.mxu1 %v1364_v38  ;;  %v1321_v1 = vld [vmem:[%s13063_s2 + $0x1e0] sm:$0xff]  ;;  %v1323_v38 = vld [vmem:[%s13063_s2 + $0x1f0] sm:$0xff] }
 0x1bf   :  { %1666 = vmatpush1.msra.mxu0 %v1361_v30  ;;  %1737 = vmatpush1.msra.mxu1 %v1363_v20  ;;  %v1314_v30 = vld [vmem:[%s13063_s2 + $0x1a8] sm:$0xff]  ;;  %v1316_v20 = vld [vmem:[%s13063_s2 + $0x1b8] sm:$0xff] }
 0x1c0   :  { %1667 = vmatprep.subr.mxu0 %v1354_v10  ;;  %1738 = vmatprep.subr.mxu1 %v1356_v28  ;;  %v1313_v10 = vld [vmem:[%s13063_s2 + $0x1a0] sm:$0xff]  ;;  %v1315_v28 = vld [vmem:[%s13063_s2 + $0x1b0] sm:$0xff] }
 0x1c1   :  { %1668 = vmatpush1.msra.mxu0 %v1353_v41  ;;  %1739 = vmatpush1.msra.mxu1 %v1355_v27  ;;  %v1306_v41 = vld [vmem:[%s13063_s2 + $0x168] sm:$0xff]  ;;  %v1308_v27 = vld [vmem:[%s13063_s2 + $0x178] sm:$0xff] }
 0x1c2   :  { %1669 = vmatprep.subr.mxu0 %v1346_v44  ;;  %1740 = vmatprep.subr.mxu1 %v1348_v50  ;;  %v1305_v44 = vld [vmem:[%s13063_s2 + $0x160] sm:$0xff]  ;;  %v1307_v50 = vld [vmem:[%s13063_s2 + $0x170] sm:$0xff] }
 0x1c3   :  { %1670 = vmatpush1.msra.mxu0 %v1345_v55  ;;  %1741 = vmatpush1.msra.mxu1 %v1347_v14  ;;  %v1298_v55 = vld [vmem:[%s13063_s2 + $0x128] sm:$0xff]  ;;  %v1300_v14 = vld [vmem:[%s13063_s2 + $0x138] sm:$0xff] }
 0x1c4   :  { %1671 = vmatprep.subr.mxu0 %v1338_v43  ;;  %1742 = vmatprep.subr.mxu1 %v1340_v51  ;;  %v1297_v43 = vld [vmem:[%s13063_s2 + $0x120] sm:$0xff]  ;;  %v1299_v51 = vld [vmem:[%s13063_s2 + $0x130] sm:$0xff] }
 0x1c5   :  { %1672 = vmatpush1.msra.mxu0 %v1337_v26  ;;  %1743 = vmatpush1.msra.mxu1 %v1339_v45  ;;  %v1290_v26 = vld [vmem:[%s13063_s2 + $0xe8] sm:$0xff]  ;;  %v1292_v45 = vld [vmem:[%s13063_s2 + $0xf8] sm:$0xff] }
 0x1c6   :  { %1673 = vmatprep.subr.mxu0 %v1330_v23  ;;  %1744 = vmatprep.subr.mxu1 %v1332_v53  ;;  %v1289_v23 = vld [vmem:[%s13063_s2 + $0xe0] sm:$0xff]  ;;  %v1291_v53 = vld [vmem:[%s13063_s2 + $0xf0] sm:$0xff] }
 0x1c7   :  { %1674 = vmatpush1.msra.mxu0 %v1329_v31  ;;  %1745 = vmatpush1.msra.mxu1 %v1331_v19  ;;  %v1282_v31 = vld [vmem:[%s13063_s2 + $0xa8] sm:$0xff]  ;;  %v1284_v19 = vld [vmem:[%s13063_s2 + $0xb8] sm:$0xff] }
 0x1c8   :  { %1675 = vmatprep.subr.mxu0 %v1322_v5  ;;  %1746 = vmatprep.subr.mxu1 %v1324_v42  ;;  %v1281_v5 = vld [vmem:[%s13063_s2 + $0xa0] sm:$0xff]  ;;  %v1283_v42 = vld [vmem:[%s13063_s2 + $0xb0] sm:$0xff] }
 0x1c9   :  { %1676 = vmatpush1.msra.mxu0 %v1321_v1  ;;  %1747 = vmatpush1.msra.mxu1 %v1323_v38  ;;  %v1274_v1 = vld [vmem:[%s13063_s2 + $0x68] sm:$0xff]  ;;  %v1276_v38 = vld [vmem:[%s13063_s2 + $0x78] sm:$0xff] }
 0x1ca   :  { %1677 = vmatprep.subr.mxu0 %v1314_v30  ;;  %1748 = vmatprep.subr.mxu1 %v1316_v20  ;;  %v1273_v30 = vld [vmem:[%s13063_s2 + $0x60] sm:$0xff]  ;;  %v1275_v20 = vld [vmem:[%s13063_s2 + $0x70] sm:$0xff] }
 0x1cb   :  { %1678 = vmatpush1.msra.mxu0 %v1313_v10  ;;  %1749 = vmatpush1.msra.mxu1 %v1315_v28  ;;  %v1266_v10 = vld [vmem:[%s13063_s2 + $0x28] sm:$0xff]  ;;  %v1268_v28 = vld [vmem:[%s13063_s2 + $0x38] sm:$0xff] }
 0x1cc   :  { %1679 = vmatprep.subr.mxu0 %v1306_v41  ;;  %1750 = vmatprep.subr.mxu1 %v1308_v27  ;;  %v1265_v41 = vld [vmem:[%s13063_s2 + $0x20] sm:$0xff]  ;;  %v1267_v27 = vld [vmem:[%s13063_s2 + $0x30] sm:$0xff] }
 0x1cd   :  { %1680 = vmatpush1.msra.mxu0 %v1305_v44  ;;  %1751 = vmatpush1.msra.mxu1 %v1307_v50  ;;  %v1514_v44 = vld [vmem:[%s13063_s2 + $0x7e8] sm:$0xff]  ;;  %v1516_v50 = vld [vmem:[%s13063_s2 + $0x7f8] sm:$0xff] }
 0x1ce   :  { %1681 = vmatprep.subr.mxu0 %v1298_v55  ;;  %1752 = vmatprep.subr.mxu1 %v1300_v14  ;;  %v1513_v55 = vld [vmem:[%s13063_s2 + $0x7e0] sm:$0xff]  ;;  %v1515_v14 = vld [vmem:[%s13063_s2 + $0x7f0] sm:$0xff] }
 0x1cf   :  { %1682 = vmatpush1.msra.mxu0 %v1297_v43  ;;  %1753 = vmatpush1.msra.mxu1 %v1299_v51  ;;  %v1506_v43 = vld [vmem:[%s13063_s2 + $0x7a8] sm:$0xff]  ;;  %v1508_v51 = vld [vmem:[%s13063_s2 + $0x7b8] sm:$0xff] }
 0x1d0   :  { %1683 = vmatprep.subr.mxu0 %v1290_v26  ;;  %1754 = vmatprep.subr.mxu1 %v1292_v45  ;;  %v1505_v26 = vld [vmem:[%s13063_s2 + $0x7a0] sm:$0xff]  ;;  %v1507_v45 = vld [vmem:[%s13063_s2 + $0x7b0] sm:$0xff] }
 0x1d1   :  { %1684 = vmatpush1.msra.mxu0 %v1289_v23  ;;  %1755 = vmatpush1.msra.mxu1 %v1291_v53  ;;  %v1498_v23 = vld [vmem:[%s13063_s2 + $0x768] sm:$0xff]  ;;  %v1500_v53 = vld [vmem:[%s13063_s2 + $0x778] sm:$0xff] }
 0x1d2   :  { %1685 = vmatprep.subr.mxu0 %v1282_v31  ;;  %1756 = vmatprep.subr.mxu1 %v1284_v19  ;;  %v1497_v31 = vld [vmem:[%s13063_s2 + $0x760] sm:$0xff]  ;;  %v1499_v19 = vld [vmem:[%s13063_s2 + $0x770] sm:$0xff] }
 0x1d3   :  { %1686 = vmatpush1.msra.mxu0 %v1281_v5  ;;  %1757 = vmatpush1.msra.mxu1 %v1283_v42  ;;  %v1490_v5 = vld [vmem:[%s13063_s2 + $0x728] sm:$0xff]  ;;  %v1492_v42 = vld [vmem:[%s13063_s2 + $0x738] sm:$0xff] }
 0x1d4   :  { %1687 = vmatprep.subr.mxu0 %v1274_v1  ;;  %1758 = vmatprep.subr.mxu1 %v1276_v38  ;;  %v1489_v1 = vld [vmem:[%s13063_s2 + $0x720] sm:$0xff]  ;;  %v1491_v38 = vld [vmem:[%s13063_s2 + $0x730] sm:$0xff] }
 0x1d5   :  { %1688 = vmatpush1.msra.mxu0 %v1273_v30  ;;  %1759 = vmatpush1.msra.mxu1 %v1275_v20  ;;  %v1482_v30 = vld [vmem:[%s13063_s2 + $0x6e8] sm:$0xff]  ;;  %v1484_v20 = vld [vmem:[%s13063_s2 + $0x6f8] sm:$0xff] }
 0x1d6   :  { %1689 = vmatprep.subr.mxu0 %v1266_v10  ;;  %1760 = vmatprep.subr.mxu1 %v1268_v28  ;;  %v1481_v10 = vld [vmem:[%s13063_s2 + $0x6e0] sm:$0xff]  ;;  %v1483_v28 = vld [vmem:[%s13063_s2 + $0x6f0] sm:$0xff] }
 0x1d7   :  { %1690 = vmatpush1.msra.mxu0 %v1265_v41  ;;  %1761 = vmatpush1.msra.mxu1 %v1267_v27  ;;  %v1474_v41 = vld [vmem:[%s13063_s2 + $0x6a8] sm:$0xff]  ;;  %v1476_v27 = vld [vmem:[%s13063_s2 + $0x6b8] sm:$0xff] }
 0x1d8   :  { %1691 = vmatprep.subr.mxu0 %v1514_v44  ;;  %1762 = vmatprep.subr.mxu1 %v1516_v50  ;;  %v1473_v44 = vld [vmem:[%s13063_s2 + $0x6a0] sm:$0xff]  ;;  %v1475_v50 = vld [vmem:[%s13063_s2 + $0x6b0] sm:$0xff] }
 0x1d9   :  { %1692 = vmatpush2.msra.mxu0 %v1513_v55  ;;  %1763 = vmatpush2.msra.mxu1 %v1515_v14  ;;  %v1466_v55 = vld [vmem:[%s13063_s2 + $0x668] sm:$0xff]  ;;  %v1468_v14 = vld [vmem:[%s13063_s2 + $0x678] sm:$0xff] }
 0x1da   :  { %1693 = vmatprep.subr.mxu0 %v1506_v43  ;;  %1764 = vmatprep.subr.mxu1 %v1508_v51  ;;  %v1465_v43 = vld [vmem:[%s13063_s2 + $0x660] sm:$0xff]  ;;  %v1467_v51 = vld [vmem:[%s13063_s2 + $0x670] sm:$0xff] }
 0x1db   :  { %1694 = vmatpush2.msra.mxu0 %v1505_v26  ;;  %1765 = vmatpush2.msra.mxu1 %v1507_v45  ;;  %v1458_v26 = vld [vmem:[%s13063_s2 + $0x628] sm:$0xff]  ;;  %v1460_v45 = vld [vmem:[%s13063_s2 + $0x638] sm:$0xff] }
 0x1dc   :  { %1695 = vmatprep.subr.mxu0 %v1498_v23  ;;  %1766 = vmatprep.subr.mxu1 %v1500_v53  ;;  %v1457_v23 = vld [vmem:[%s13063_s2 + $0x620] sm:$0xff]  ;;  %v1459_v53 = vld [vmem:[%s13063_s2 + $0x630] sm:$0xff] }
 0x1dd   :  { %1696 = vmatpush2.msra.mxu0 %v1497_v31  ;;  %1767 = vmatpush2.msra.mxu1 %v1499_v19  ;;  %v1450_v31 = vld [vmem:[%s13063_s2 + $0x5e8] sm:$0xff]  ;;  %v1452_v19 = vld [vmem:[%s13063_s2 + $0x5f8] sm:$0xff] }
 0x1de   :  { %1697 = vmatprep.subr.mxu0 %v1490_v5  ;;  %1768 = vmatprep.subr.mxu1 %v1492_v42  ;;  %v1449_v5 = vld [vmem:[%s13063_s2 + $0x5e0] sm:$0xff]  ;;  %v1451_v42 = vld [vmem:[%s13063_s2 + $0x5f0] sm:$0xff] }
 0x1df   :  { %1698 = vmatpush2.msra.mxu0 %v1489_v1  ;;  %1769 = vmatpush2.msra.mxu1 %v1491_v38  ;;  %v1442_v1 = vld [vmem:[%s13063_s2 + $0x5a8] sm:$0xff]  ;;  %v1444_v38 = vld [vmem:[%s13063_s2 + $0x5b8] sm:$0xff] }
 0x1e0   :  { %1699 = vmatprep.subr.mxu0 %v1482_v30  ;;  %1770 = vmatprep.subr.mxu1 %v1484_v20  ;;  %v1441_v30 = vld [vmem:[%s13063_s2 + $0x5a0] sm:$0xff]  ;;  %v1443_v20 = vld [vmem:[%s13063_s2 + $0x5b0] sm:$0xff] }
 0x1e1   :  { %1700 = vmatpush2.msra.mxu0 %v1481_v10  ;;  %1771 = vmatpush2.msra.mxu1 %v1483_v28  ;;  %v1434_v10 = vld [vmem:[%s13063_s2 + $0x568] sm:$0xff]  ;;  %v1436_v28 = vld [vmem:[%s13063_s2 + $0x578] sm:$0xff] }
 0x1e2   :  { %1701 = vmatprep.subr.mxu0 %v1474_v41  ;;  %1772 = vmatprep.subr.mxu1 %v1476_v27  ;;  %v1433_v41 = vld [vmem:[%s13063_s2 + $0x560] sm:$0xff]  ;;  %v1435_v27 = vld [vmem:[%s13063_s2 + $0x570] sm:$0xff] }
 0x1e3   :  { %1702 = vmatpush2.msra.mxu0 %v1473_v44  ;;  %1773 = vmatpush2.msra.mxu1 %v1475_v50  ;;  %v1426_v44 = vld [vmem:[%s13063_s2 + $0x528] sm:$0xff]  ;;  %v1428_v50 = vld [vmem:[%s13063_s2 + $0x538] sm:$0xff] }
 0x1e4   :  { %1703 = vmatprep.subr.mxu0 %v1466_v55  ;;  %1774 = vmatprep.subr.mxu1 %v1468_v14  ;;  %v1425_v55 = vld [vmem:[%s13063_s2 + $0x520] sm:$0xff]  ;;  %v1427_v14 = vld [vmem:[%s13063_s2 + $0x530] sm:$0xff] }
 0x1e5   :  { %1704 = vmatpush2.msra.mxu0 %v1465_v43  ;;  %1775 = vmatpush2.msra.mxu1 %v1467_v51  ;;  %v1418_v43 = vld [vmem:[%s13063_s2 + $0x4e8] sm:$0xff]  ;;  %v1420_v51 = vld [vmem:[%s13063_s2 + $0x4f8] sm:$0xff] }
 0x1e6   :  { %1705 = vmatprep.subr.mxu0 %v1458_v26  ;;  %1776 = vmatprep.subr.mxu1 %v1460_v45  ;;  %v1417_v26 = vld [vmem:[%s13063_s2 + $0x4e0] sm:$0xff]  ;;  %v1419_v45 = vld [vmem:[%s13063_s2 + $0x4f0] sm:$0xff] }
 0x1e7   :  { %1706 = vmatpush2.msra.mxu0 %v1457_v23  ;;  %1777 = vmatpush2.msra.mxu1 %v1459_v53  ;;  %v1410_v23 = vld [vmem:[%s13063_s2 + $0x4a8] sm:$0xff]  ;;  %v1412_v53 = vld [vmem:[%s13063_s2 + $0x4b8] sm:$0xff] }
 0x1e8   :  { %1707 = vmatprep.subr.mxu0 %v1450_v31  ;;  %1778 = vmatprep.subr.mxu1 %v1452_v19  ;;  %v1409_v31 = vld [vmem:[%s13063_s2 + $0x4a0] sm:$0xff]  ;;  %v1411_v19 = vld [vmem:[%s13063_s2 + $0x4b0] sm:$0xff] }
 0x1e9   :  { %1708 = vmatpush2.msra.mxu0 %v1449_v5  ;;  %1779 = vmatpush2.msra.mxu1 %v1451_v42  ;;  %v1402_v5 = vld [vmem:[%s13063_s2 + $0x468] sm:$0xff]  ;;  %v1404_v42 = vld [vmem:[%s13063_s2 + $0x478] sm:$0xff] }
 0x1ea   :  { %1709 = vmatprep.subr.mxu0 %v1442_v1  ;;  %1780 = vmatprep.subr.mxu1 %v1444_v38  ;;  %v1401_v1 = vld [vmem:[%s13063_s2 + $0x460] sm:$0xff]  ;;  %v1403_v38 = vld [vmem:[%s13063_s2 + $0x470] sm:$0xff] }
 0x1eb   :  { %1710 = vmatpush2.msra.mxu0 %v1441_v30  ;;  %1781 = vmatpush2.msra.mxu1 %v1443_v20  ;;  %v1394_v30 = vld [vmem:[%s13063_s2 + $0x428] sm:$0xff]  ;;  %v1396_v20 = vld [vmem:[%s13063_s2 + $0x438] sm:$0xff] }
 0x1ec   :  { %1711 = vmatprep.subr.mxu0 %v1434_v10  ;;  %1782 = vmatprep.subr.mxu1 %v1436_v28  ;;  %v1393_v10 = vld [vmem:[%s13063_s2 + $0x420] sm:$0xff]  ;;  %v1395_v28 = vld [vmem:[%s13063_s2 + $0x430] sm:$0xff] }
 0x1ed   :  { %1712 = vmatpush2.msra.mxu0 %v1433_v41  ;;  %1783 = vmatpush2.msra.mxu1 %v1435_v27  ;;  %v1996_v41 = vld [vmem:[%s13063_s2 + $0x3c8] sm:$0xff]  ;;  %v1998_v27 = vld [vmem:[%s13063_s2 + $0x3d8] sm:$0xff] }
 0x1ee   :  { %1713 = vmatprep.subr.mxu0 %v1426_v44  ;;  %1784 = vmatprep.subr.mxu1 %v1428_v50  ;;  %v1995_v44 = vld [vmem:[%s13063_s2 + $0x3c0] sm:$0xff]  ;;  %v1997_v50 = vld [vmem:[%s13063_s2 + $0x3d0] sm:$0xff] }
 0x1ef   :  { %1714 = vmatpush2.msra.mxu0 %v1425_v55  ;;  %1785 = vmatpush2.msra.mxu1 %v1427_v14  ;;  %v1988_v55 = vld [vmem:[%s13063_s2 + $0x388] sm:$0xff]  ;;  %v1990_v14 = vld [vmem:[%s13063_s2 + $0x398] sm:$0xff] }
 0x1f0   :  { %1715 = vmatprep.subr.mxu0 %v1418_v43  ;;  %1786 = vmatprep.subr.mxu1 %v1420_v51  ;;  %v1987_v43 = vld [vmem:[%s13063_s2 + $0x380] sm:$0xff]  ;;  %v1989_v51 = vld [vmem:[%s13063_s2 + $0x390] sm:$0xff] }
 0x1f1   :  { %1716 = vmatpush2.msra.mxu0 %v1417_v26  ;;  %1787 = vmatpush2.msra.mxu1 %v1419_v45  ;;  %v1980_v26 = vld [vmem:[%s13063_s2 + $0x348] sm:$0xff]  ;;  %v1982_v45 = vld [vmem:[%s13063_s2 + $0x358] sm:$0xff] }
 0x1f2   :  { %1717 = vmatprep.subr.mxu0 %v1410_v23  ;;  %1788 = vmatprep.subr.mxu1 %v1412_v53  ;;  %v1979_v23 = vld [vmem:[%s13063_s2 + $0x340] sm:$0xff]  ;;  %v1981_v53 = vld [vmem:[%s13063_s2 + $0x350] sm:$0xff] }
 0x1f3   :  { %1718 = vmatpush2.msra.mxu0 %v1409_v31  ;;  %1789 = vmatpush2.msra.mxu1 %v1411_v19  ;;  %v1972_v31 = vld [vmem:[%s13063_s2 + $0x308] sm:$0xff]  ;;  %v1974_v19 = vld [vmem:[%s13063_s2 + $0x318] sm:$0xff] }
 0x1f4   :  { %1719 = vmatprep.subr.mxu0 %v1402_v5  ;;  %1790 = vmatprep.subr.mxu1 %v1404_v42  ;;  %v1971_v5 = vld [vmem:[%s13063_s2 + $0x300] sm:$0xff]  ;;  %v1973_v42 = vld [vmem:[%s13063_s2 + $0x310] sm:$0xff] }
 0x1f5   :  { %1720 = vmatpush2.msra.mxu0 %v1401_v1  ;;  %1791 = vmatpush2.msra.mxu1 %v1403_v38  ;;  %v1964_v1 = vld [vmem:[%s13063_s2 + $0x2c8] sm:$0xff]  ;;  %v1966_v38 = vld [vmem:[%s13063_s2 + $0x2d8] sm:$0xff] }
 0x1f6   :  { %1721 = vmatprep.subr.mxu0 %v1394_v30  ;;  %1792 = vmatprep.subr.mxu1 %v1396_v20  ;;  %v1963_v30 = vld [vmem:[%s13063_s2 + $0x2c0] sm:$0xff]  ;;  %v1965_v20 = vld [vmem:[%s13063_s2 + $0x2d0] sm:$0xff] }
 0x1f7   :  { %1722 = vmatpush2.msra.mxu0 %v1393_v10  ;;  %1793 = vmatpush2.msra.mxu1 %v1395_v28  ;;  %v1956_v10 = vld [vmem:[%s13063_s2 + $0x288] sm:$0xff]  ;;  %v1958_v28 = vld [vmem:[%s13063_s2 + $0x298] sm:$0xff] }
 0x1f8   :  { %1724 = vmatmul.mubr.f32.vlgmr.msra.gmra.mxu0 %v7728_v11  ;;  %1795 = vmatmul.mubr.f32.vlgmr.msra.gmra.mxu1 %v7728_v11 }
 0x1f9   :  { %2131 = vmatprep.subr.mxu0 %v1996_v41  ;;  %2202 = vmatprep.subr.mxu1 %v1998_v27  ;;  %v1955_v41 = vld [vmem:[%s13063_s2 + $0x280] sm:$0xff]  ;;  %v1957_v27 = vld [vmem:[%s13063_s2 + $0x290] sm:$0xff] }
 0x1fa   :  { %2132 = vmatpush1.msra.mxu0 %v1995_v44  ;;  %2203 = vmatpush1.msra.mxu1 %v1997_v50  ;;  %v1948_v44 = vld [vmem:[%s13063_s2 + $0x248] sm:$0xff]  ;;  %v1950_v50 = vld [vmem:[%s13063_s2 + $0x258] sm:$0xff] }
 0x1fb   :  { %2133 = vmatprep.subr.mxu0 %v1988_v55  ;;  %2204 = vmatprep.subr.mxu1 %v1990_v14  ;;  %v1947_v55 = vld [vmem:[%s13063_s2 + $0x240] sm:$0xff]  ;;  %v1949_v14 = vld [vmem:[%s13063_s2 + $0x250] sm:$0xff] }
 0x1fc   :  { %2134 = vmatpush1.msra.mxu0 %v1987_v43  ;;  %2205 = vmatpush1.msra.mxu1 %v1989_v51  ;;  %v1940_v43 = vld [vmem:[%s13063_s2 + $0x208] sm:$0xff]  ;;  %v1942_v51 = vld [vmem:[%s13063_s2 + $0x218] sm:$0xff] }
 0x1fd   :  { %2135 = vmatprep.subr.mxu0 %v1980_v26  ;;  %2206 = vmatprep.subr.mxu1 %v1982_v45  ;;  %v1939_v26 = vld [vmem:[%s13063_s2 + $0x200] sm:$0xff]  ;;  %v1941_v45 = vld [vmem:[%s13063_s2 + $0x210] sm:$0xff] }
 0x1fe   :  { %2136 = vmatpush1.msra.mxu0 %v1979_v23  ;;  %2207 = vmatpush1.msra.mxu1 %v1981_v53  ;;  %v1932_v23 = vld [vmem:[%s13063_s2 + $0x1c8] sm:$0xff]  ;;  %v1934_v53 = vld [vmem:[%s13063_s2 + $0x1d8] sm:$0xff] }
 0x1ff   :  { %2137 = vmatprep.subr.mxu0 %v1972_v31  ;;  %2208 = vmatprep.subr.mxu1 %v1974_v19  ;;  %v1931_v31 = vld [vmem:[%s13063_s2 + $0x1c0] sm:$0xff]  ;;  %v1933_v19 = vld [vmem:[%s13063_s2 + $0x1d0] sm:$0xff] }
 0x200   :  { %2138 = vmatpush1.msra.mxu0 %v1971_v5  ;;  %2209 = vmatpush1.msra.mxu1 %v1973_v42  ;;  %v1924_v5 = vld [vmem:[%s13063_s2 + $0x188] sm:$0xff]  ;;  %v1926_v42 = vld [vmem:[%s13063_s2 + $0x198] sm:$0xff] }
 0x201   :  { %2139 = vmatprep.subr.mxu0 %v1964_v1  ;;  %2210 = vmatprep.subr.mxu1 %v1966_v38  ;;  %v1923_v1 = vld [vmem:[%s13063_s2 + $0x180] sm:$0xff]  ;;  %v1925_v38 = vld [vmem:[%s13063_s2 + $0x190] sm:$0xff] }
 0x202   :  { %2140 = vmatpush1.msra.mxu0 %v1963_v30  ;;  %2211 = vmatpush1.msra.mxu1 %v1965_v20  ;;  %v1916_v30 = vld [vmem:[%s13063_s2 + $0x148] sm:$0xff]  ;;  %v1918_v20 = vld [vmem:[%s13063_s2 + $0x158] sm:$0xff] }
 0x203   :  { %2141 = vmatprep.subr.mxu0 %v1956_v10  ;;  %2212 = vmatprep.subr.mxu1 %v1958_v28  ;;  %v1915_v10 = vld [vmem:[%s13063_s2 + $0x140] sm:$0xff]  ;;  %v1917_v28 = vld [vmem:[%s13063_s2 + $0x150] sm:$0xff] }
 0x204   :  { %2142 = vmatpush1.msra.mxu0 %v1955_v41  ;;  %2213 = vmatpush1.msra.mxu1 %v1957_v27  ;;  %v1908_v41 = vld [vmem:[%s13063_s2 + $0x108] sm:$0xff]  ;;  %v1910_v27 = vld [vmem:[%s13063_s2 + $0x118] sm:$0xff] }
 0x205   :  { %2143 = vmatprep.subr.mxu0 %v1948_v44  ;;  %2214 = vmatprep.subr.mxu1 %v1950_v50  ;;  %v1907_v44 = vld [vmem:[%s13063_s2 + $0x100] sm:$0xff]  ;;  %v1909_v50 = vld [vmem:[%s13063_s2 + $0x110] sm:$0xff] }
 0x206   :  { %2144 = vmatpush1.msra.mxu0 %v1947_v55  ;;  %2215 = vmatpush1.msra.mxu1 %v1949_v14  ;;  %v1900_v55 = vld [vmem:[%s13063_s2 + $0xc8] sm:$0xff]  ;;  %v1902_v14 = vld [vmem:[%s13063_s2 + $0xd8] sm:$0xff] }
 0x207   :  { %2145 = vmatprep.subr.mxu0 %v1940_v43  ;;  %2216 = vmatprep.subr.mxu1 %v1942_v51  ;;  %v1899_v43 = vld [vmem:[%s13063_s2 + $0xc0] sm:$0xff]  ;;  %v1901_v51 = vld [vmem:[%s13063_s2 + $0xd0] sm:$0xff] }
 0x208   :  { %2146 = vmatpush1.msra.mxu0 %v1939_v26  ;;  %2217 = vmatpush1.msra.mxu1 %v1941_v45  ;;  %v1892_v26 = vld [vmem:[%s13063_s2 + $0x88] sm:$0xff]  ;;  %v1894_v45 = vld [vmem:[%s13063_s2 + $0x98] sm:$0xff] }
 0x209   :  { %2147 = vmatprep.subr.mxu0 %v1932_v23  ;;  %2218 = vmatprep.subr.mxu1 %v1934_v53  ;;  %v1891_v23 = vld [vmem:[%s13063_s2 + $0x80] sm:$0xff]  ;;  %v1893_v53 = vld [vmem:[%s13063_s2 + $0x90] sm:$0xff] }
 0x20a   :  { %2148 = vmatpush1.msra.mxu0 %v1931_v31  ;;  %2219 = vmatpush1.msra.mxu1 %v1933_v19  ;;  %v1884_v31 = vld [vmem:[%s13063_s2 + $0x48] sm:$0xff]  ;;  %v1886_v19 = vld [vmem:[%s13063_s2 + $0x58] sm:$0xff] }
 0x20b   :  { %2149 = vmatprep.subr.mxu0 %v1924_v5  ;;  %2220 = vmatprep.subr.mxu1 %v1926_v42  ;;  %v1883_v5 = vld [vmem:[%s13063_s2 + $0x40] sm:$0xff]  ;;  %v1885_v42 = vld [vmem:[%s13063_s2 + $0x50] sm:$0xff] }
 0x20c   :  { %2150 = vmatpush1.msra.mxu0 %v1923_v1  ;;  %2221 = vmatpush1.msra.mxu1 %v1925_v38  ;;  %v1876_v1 = vld [vmem:[%s13063_s2 + $0x8] sm:$0xff]  ;;  %v1878_v38 = vld [vmem:[%s13063_s2 + $0x18] sm:$0xff] }
 0x20d   :  { %2151 = vmatprep.subr.mxu0 %v1916_v30  ;;  %2222 = vmatprep.subr.mxu1 %v1918_v20  ;;  %v1875_v30 = vld [vmem:[%s13063_s2] sm:$0xff]  ;;  %v1877_v20 = vld [vmem:[%s13063_s2 + $0x10] sm:$0xff] }
 0x20e   :  { %2152 = vmatpush1.msra.mxu0 %v1915_v10  ;;  %2223 = vmatpush1.msra.mxu1 %v1917_v28  ;;  %v2124_v10 = vld [vmem:[%s13063_s2 + $0x7c8] sm:$0xff]  ;;  %v2126_v28 = vld [vmem:[%s13063_s2 + $0x7d8] sm:$0xff] }
 0x20f   :  { %2153 = vmatprep.subr.mxu0 %v1908_v41  ;;  %2224 = vmatprep.subr.mxu1 %v1910_v27  ;;  %v2123_v41 = vld [vmem:[%s13063_s2 + $0x7c0] sm:$0xff]  ;;  %v2125_v27 = vld [vmem:[%s13063_s2 + $0x7d0] sm:$0xff] }
 0x210   :  { %2154 = vmatpush1.msra.mxu0 %v1907_v44  ;;  %2225 = vmatpush1.msra.mxu1 %v1909_v50  ;;  %v2116_v44 = vld [vmem:[%s13063_s2 + $0x788] sm:$0xff]  ;;  %v2118_v50 = vld [vmem:[%s13063_s2 + $0x798] sm:$0xff] }
 0x211   :  { %2155 = vmatprep.subr.mxu0 %v1900_v55  ;;  %2226 = vmatprep.subr.mxu1 %v1902_v14  ;;  %v2115_v55 = vld [vmem:[%s13063_s2 + $0x780] sm:$0xff]  ;;  %v2117_v14 = vld [vmem:[%s13063_s2 + $0x790] sm:$0xff] }
 0x212   :  { %2156 = vmatpush1.msra.mxu0 %v1899_v43  ;;  %2227 = vmatpush1.msra.mxu1 %v1901_v51  ;;  %v2108_v43 = vld [vmem:[%s13063_s2 + $0x748] sm:$0xff]  ;;  %v2110_v51 = vld [vmem:[%s13063_s2 + $0x758] sm:$0xff] }
 0x213   :  { %2157 = vmatprep.subr.mxu0 %v1892_v26  ;;  %2228 = vmatprep.subr.mxu1 %v1894_v45  ;;  %v2107_v26 = vld [vmem:[%s13063_s2 + $0x740] sm:$0xff]  ;;  %v2109_v45 = vld [vmem:[%s13063_s2 + $0x750] sm:$0xff] }
 0x214   :  { %2158 = vmatpush1.msra.mxu0 %v1891_v23  ;;  %2229 = vmatpush1.msra.mxu1 %v1893_v53  ;;  %v2100_v23 = vld [vmem:[%s13063_s2 + $0x708] sm:$0xff]  ;;  %v2102_v53 = vld [vmem:[%s13063_s2 + $0x718] sm:$0xff] }
 0x215   :  { %2159 = vmatprep.subr.mxu0 %v1884_v31  ;;  %2230 = vmatprep.subr.mxu1 %v1886_v19  ;;  %v2099_v31 = vld [vmem:[%s13063_s2 + $0x700] sm:$0xff]  ;;  %v2101_v19 = vld [vmem:[%s13063_s2 + $0x710] sm:$0xff] }
 0x216   :  { %2160 = vmatpush1.msra.mxu0 %v1883_v5  ;;  %2231 = vmatpush1.msra.mxu1 %v1885_v42  ;;  %v2092_v5 = vld [vmem:[%s13063_s2 + $0x6c8] sm:$0xff]  ;;  %v2094_v42 = vld [vmem:[%s13063_s2 + $0x6d8] sm:$0xff] }
 0x217   :  { %2161 = vmatprep.subr.mxu0 %v1876_v1  ;;  %2232 = vmatprep.subr.mxu1 %v1878_v38  ;;  %v2091_v1 = vld [vmem:[%s13063_s2 + $0x6c0] sm:$0xff]  ;;  %v2093_v38 = vld [vmem:[%s13063_s2 + $0x6d0] sm:$0xff] }
 0x218   :  { %2162 = vmatpush1.msra.mxu0 %v1875_v30  ;;  %2233 = vmatpush1.msra.mxu1 %v1877_v20  ;;  %v2084_v30 = vld [vmem:[%s13063_s2 + $0x688] sm:$0xff]  ;;  %v2086_v20 = vld [vmem:[%s13063_s2 + $0x698] sm:$0xff] }
 0x219   :  { %2163 = vmatprep.subr.mxu0 %v2124_v10  ;;  %2234 = vmatprep.subr.mxu1 %v2126_v28  ;;  %v2083_v10 = vld [vmem:[%s13063_s2 + $0x680] sm:$0xff]  ;;  %v2085_v28 = vld [vmem:[%s13063_s2 + $0x690] sm:$0xff] }
 0x21a   :  { %2164 = vmatpush2.msra.mxu0 %v2123_v41  ;;  %2235 = vmatpush2.msra.mxu1 %v2125_v27  ;;  %v2076_v41 = vld [vmem:[%s13063_s2 + $0x648] sm:$0xff]  ;;  %v2078_v27 = vld [vmem:[%s13063_s2 + $0x658] sm:$0xff] }
 0x21b   :  { %2165 = vmatprep.subr.mxu0 %v2116_v44  ;;  %2236 = vmatprep.subr.mxu1 %v2118_v50  ;;  %v2075_v44 = vld [vmem:[%s13063_s2 + $0x640] sm:$0xff]  ;;  %v2077_v50 = vld [vmem:[%s13063_s2 + $0x650] sm:$0xff] }
 0x21c   :  { %2166 = vmatpush2.msra.mxu0 %v2115_v55  ;;  %2237 = vmatpush2.msra.mxu1 %v2117_v14  ;;  %v2068_v55 = vld [vmem:[%s13063_s2 + $0x608] sm:$0xff]  ;;  %v2070_v14 = vld [vmem:[%s13063_s2 + $0x618] sm:$0xff] }
 0x21d   :  { %2167 = vmatprep.subr.mxu0 %v2108_v43  ;;  %2238 = vmatprep.subr.mxu1 %v2110_v51  ;;  %v2067_v43 = vld [vmem:[%s13063_s2 + $0x600] sm:$0xff]  ;;  %v2069_v51 = vld [vmem:[%s13063_s2 + $0x610] sm:$0xff] }
 0x21e   :  { %2168 = vmatpush2.msra.mxu0 %v2107_v26  ;;  %2239 = vmatpush2.msra.mxu1 %v2109_v45  ;;  %v2060_v26 = vld [vmem:[%s13063_s2 + $0x5c8] sm:$0xff]  ;;  %v2062_v45 = vld [vmem:[%s13063_s2 + $0x5d8] sm:$0xff] }
 0x21f   :  { %2169 = vmatprep.subr.mxu0 %v2100_v23  ;;  %2240 = vmatprep.subr.mxu1 %v2102_v53  ;;  %v2059_v23 = vld [vmem:[%s13063_s2 + $0x5c0] sm:$0xff]  ;;  %v2061_v53 = vld [vmem:[%s13063_s2 + $0x5d0] sm:$0xff] }
 0x220   :  { %2170 = vmatpush2.msra.mxu0 %v2099_v31  ;;  %2241 = vmatpush2.msra.mxu1 %v2101_v19  ;;  %v2052_v31 = vld [vmem:[%s13063_s2 + $0x588] sm:$0xff]  ;;  %v2054_v19 = vld [vmem:[%s13063_s2 + $0x598] sm:$0xff] }
 0x221   :  { %2171 = vmatprep.subr.mxu0 %v2092_v5  ;;  %2242 = vmatprep.subr.mxu1 %v2094_v42  ;;  %v2051_v5 = vld [vmem:[%s13063_s2 + $0x580] sm:$0xff]  ;;  %v2053_v42 = vld [vmem:[%s13063_s2 + $0x590] sm:$0xff] }
 0x222   :  { %2172 = vmatpush2.msra.mxu0 %v2091_v1  ;;  %2243 = vmatpush2.msra.mxu1 %v2093_v38  ;;  %v2044_v1 = vld [vmem:[%s13063_s2 + $0x548] sm:$0xff]  ;;  %v2046_v38 = vld [vmem:[%s13063_s2 + $0x558] sm:$0xff] }
 0x223   :  { %2173 = vmatprep.subr.mxu0 %v2084_v30  ;;  %2244 = vmatprep.subr.mxu1 %v2086_v20  ;;  %v2043_v30 = vld [vmem:[%s13063_s2 + $0x540] sm:$0xff]  ;;  %v2045_v20 = vld [vmem:[%s13063_s2 + $0x550] sm:$0xff] }
 0x224   :  { %2174 = vmatpush2.msra.mxu0 %v2083_v10  ;;  %2245 = vmatpush2.msra.mxu1 %v2085_v28  ;;  %v2036_v10 = vld [vmem:[%s13063_s2 + $0x508] sm:$0xff]  ;;  %v2038_v28 = vld [vmem:[%s13063_s2 + $0x518] sm:$0xff] }
 0x225   :  { %2175 = vmatprep.subr.mxu0 %v2076_v41  ;;  %2246 = vmatprep.subr.mxu1 %v2078_v27  ;;  %v2035_v41 = vld [vmem:[%s13063_s2 + $0x500] sm:$0xff]  ;;  %v2037_v27 = vld [vmem:[%s13063_s2 + $0x510] sm:$0xff] }
 0x226   :  { %2176 = vmatpush2.msra.mxu0 %v2075_v44  ;;  %2247 = vmatpush2.msra.mxu1 %v2077_v50  ;;  %v2028_v44 = vld [vmem:[%s13063_s2 + $0x4c8] sm:$0xff]  ;;  %v2030_v50 = vld [vmem:[%s13063_s2 + $0x4d8] sm:$0xff] }
 0x227   :  { %2177 = vmatprep.subr.mxu0 %v2068_v55  ;;  %2248 = vmatprep.subr.mxu1 %v2070_v14  ;;  %v2027_v55 = vld [vmem:[%s13063_s2 + $0x4c0] sm:$0xff]  ;;  %v2029_v14 = vld [vmem:[%s13063_s2 + $0x4d0] sm:$0xff] }
 0x228   :  { %2178 = vmatpush2.msra.mxu0 %v2067_v43  ;;  %2249 = vmatpush2.msra.mxu1 %v2069_v51  ;;  %v2020_v43 = vld [vmem:[%s13063_s2 + $0x488] sm:$0xff]  ;;  %v2022_v51 = vld [vmem:[%s13063_s2 + $0x498] sm:$0xff] }
 0x229   :  { %2179 = vmatprep.subr.mxu0 %v2060_v26  ;;  %2250 = vmatprep.subr.mxu1 %v2062_v45  ;;  %v2019_v26 = vld [vmem:[%s13063_s2 + $0x480] sm:$0xff]  ;;  %v2021_v45 = vld [vmem:[%s13063_s2 + $0x490] sm:$0xff] }
 0x22a   :  { %2180 = vmatpush2.msra.mxu0 %v2059_v23  ;;  %2251 = vmatpush2.msra.mxu1 %v2061_v53  ;;  %v2012_v23 = vld [vmem:[%s13063_s2 + $0x448] sm:$0xff]  ;;  %v2014_v53 = vld [vmem:[%s13063_s2 + $0x458] sm:$0xff] }
 0x22b   :  { %2181 = vmatprep.subr.mxu0 %v2052_v31  ;;  %2252 = vmatprep.subr.mxu1 %v2054_v19  ;;  %v2011_v31 = vld [vmem:[%s13063_s2 + $0x440] sm:$0xff]  ;;  %v2013_v19 = vld [vmem:[%s13063_s2 + $0x450] sm:$0xff] }
 0x22c   :  { %2182 = vmatpush2.msra.mxu0 %v2051_v5  ;;  %2253 = vmatpush2.msra.mxu1 %v2053_v42  ;;  %v2004_v5 = vld [vmem:[%s13063_s2 + $0x408] sm:$0xff]  ;;  %v2006_v42 = vld [vmem:[%s13063_s2 + $0x418] sm:$0xff] }
 0x22d   :  { %2183 = vmatprep.subr.mxu0 %v2044_v1  ;;  %2254 = vmatprep.subr.mxu1 %v2046_v38  ;;  %v2003_v1 = vld [vmem:[%s13063_s2 + $0x400] sm:$0xff]  ;;  %v2005_v38 = vld [vmem:[%s13063_s2 + $0x410] sm:$0xff] }
 0x22e   :  { %2184 = vmatpush2.msra.mxu0 %v2043_v30  ;;  %2255 = vmatpush2.msra.mxu1 %v2045_v20  ;;  %v2000_v30 = vld [vmem:[%s13063_s2 + $0x3e8] sm:$0xff]  ;;  %v2002_v20 = vld [vmem:[%s13063_s2 + $0x3f8] sm:$0xff] }
 0x22f   :  { %2185 = vmatprep.subr.mxu0 %v2036_v10  ;;  %2256 = vmatprep.subr.mxu1 %v2038_v28 }
 0x230   :  { %2186 = vmatpush2.msra.mxu0 %v2035_v41  ;;  %2257 = vmatpush2.msra.mxu1 %v2037_v27 }
 0x231   :  { %2187 = vmatprep.subr.mxu0 %v2028_v44  ;;  %2258 = vmatprep.subr.mxu1 %v2030_v50 }
 0x232   :  { %2188 = vmatpush2.msra.mxu0 %v2027_v55  ;;  %2259 = vmatpush2.msra.mxu1 %v2029_v14 }
 0x233   :  { %2189 = vmatprep.subr.mxu0 %v2020_v43  ;;  %2260 = vmatprep.subr.mxu1 %v2022_v51 }
 0x234   :  { %2190 = vmatpush2.msra.mxu0 %v2019_v26  ;;  %2261 = vmatpush2.msra.mxu1 %v2021_v45 }
 0x235   :  { %2191 = vmatprep.subr.mxu0 %v2012_v23  ;;  %2262 = vmatprep.subr.mxu1 %v2014_v53 }
 0x236   :  { %2192 = vmatpush2.msra.mxu0 %v2011_v31  ;;  %2263 = vmatpush2.msra.mxu1 %v2013_v19 }
 0x237   :  { %2193 = vmatprep.subr.mxu0 %v2004_v5  ;;  %2264 = vmatprep.subr.mxu1 %v2006_v42 }
 0x238   :  { %2194 = vmatpush2.msra.mxu0 %v2003_v1  ;;  %2265 = vmatpush2.msra.mxu1 %v2005_v38  ;;  %v530_v38 = vadd.f32 %v7622_v39, %v7716_v61 }
 0x239   :  { %2273 = vmatprep.subr.mxu0 %v2000_v30  ;;  %2344 = vmatprep.subr.mxu1 %v2002_v20 }
 0x277   :  { %v1583_v10 = vpop.f32.mrf.mxu0  ;;  %v1654_v28 = vpop.f32.mrf.mxu1 }
 0x278   :  { %v1801_v27 = vadd.f32 %v1583_v10, %v7127_v47  ;;  %v1803_v44 = vadd.f32 %v1654_v28, %v7227_v58 }
 0x279   :  { %v1585_v41 = vpop.f32.mrf.mxu0  ;;  %v1656_v50 = vpop.f32.mrf.mxu1 }
 0x27a   :  { %v1802_v55 = vadd.f32 %v1585_v41, %v7136_v52  ;;  %v5777_v14 = vmul.f32 -1.442695, %v1801_v27  ;;  %v1804_v43 = vadd.f32 %v1656_v50, %v7230_v62  ;;  %v5779_v51 = vmul.f32 -1.442695, %v1803_v44 }
 0x27b   :  { %v528_v52 = vadd.f32 %v7608_v54, %v7713_v36 }
 0x27c   :  { %v5778_v26 = vmul.f32 -1.442695, %v1802_v55  ;;  %5909 = vpow2.f32 %v5777_v14  ;;  %v5780_v45 = vmul.f32 -1.442695, %v1804_v43 }
 0x27d   :  { %5911 = vpow2.f32 %v5779_v51 }
 0x27e   :  { %5913 = vpow2.f32 %v5778_v26 }
 0x27f   :  { %5915 = vpow2.f32 %v5780_v45 }
 0x289   :  { %v5910_v23 = vpop.eup %5909 }
 0x28a   :  { %v5912_v53 = vpop.eup %5911  ;;  %v1815_v19 = vadd.f32 1.0, %v5910_v23 }
 0x28b   :  { %v5914_v31 = vpop.eup %5913  ;;  %v1827_v5 = vadd.f32 1.0, %v5912_v53 }
 0x28c   :  { %v5916_v47 = vpop.eup %5915  ;;  %v1816_v58 = vadd.f32 1.0, %v5914_v31  ;;  %5917 = vrcp.f32 %v1815_v19 }
 0x28d   :  { %v1828_v42 = vadd.f32 1.0, %v5916_v47  ;;  %5919 = vrcp.f32 %v1827_v5 }
 0x28e   :  { %5921 = vrcp.f32 %v1816_v58 }
 0x299   :  { %v5918_v50 = vpop.eup %5917 }
 0x29a   :  { %v5920_v55 = vpop.eup %5919 }
 0x29b   :  { %v5922_v39 = vpop.eup %5921 }
 0x2b8   :  { %v1725_v62 = vpop.f32.mrf.mxu0  ;;  %v1796_v1 = vpop.f32.mrf.mxu1 }
 0x2b9   :  { %v1805_v30 = vadd.f32 %v1725_v62, %v7142_v16  ;;  %v1807_v20 = vadd.f32 %v1796_v1, %v528_v52  ;;  %v1847_v16 = vmul.f32 %v5920_v55, %v7706_v48  ;;  %v1978_v55 = vld [vmem:[%s13063_s2 + $0x338] sm:$0xff] }
 0x2ba   :  { %v1727_v10 = vpop.f32.mrf.mxu0  ;;  %v1798_v28 = vpop.f32.mrf.mxu1 }
 0x2bb   :  { %5923 = vtanh.f32 %v1805_v30  ;;  %v5781_v41 = vmul.f32 -1.442695, %v1807_v20  ;;  %v1806_v27 = vadd.f32 %v1727_v10, %v7148_v57  ;;  %v1808_v44 = vadd.f32 %v1798_v28, %v530_v38  ;;  %v2001_v38 = vld [vmem:[%s13063_s2 + $0x3f0] sm:$0xff]  ;;  %v1992_v30 = vld [vmem:[%s13063_s2 + $0x3a8] sm:$0xff]  ;;  %v1994_v20 = vld [vmem:[%s13063_s2 + $0x3b8] sm:$0xff] }
 0x2bc   :  { %5925 = vrcp.f32 %v1828_v42  ;;  %v1991_v10 = vld [vmem:[%s13063_s2 + $0x3a0] sm:$0xff]  ;;  %v1993_v28 = vld [vmem:[%s13063_s2 + $0x3b0] sm:$0xff] }
 0x2bd   :  { %5927 = vpow2.f32 %v5781_v41  ;;  %v5782_v54 = vmul.f32 -1.442695, %v1808_v44  ;;  %v1984_v41 = vld [vmem:[%s13063_s2 + $0x368] sm:$0xff]  ;;  %v1983_v44 = vld [vmem:[%s13063_s2 + $0x360] sm:$0xff] }
 0x2be   :  { %5929 = vtanh.f32 %v1806_v27  ;;  %v1986_v27 = vld [vmem:[%s13063_s2 + $0x378] sm:$0xff] }
 0x2bf   :  { %5931 = vpow2.f32 %v5782_v54  ;;  %v1985_v54 = vld [vmem:[%s13063_s2 + $0x370] sm:$0xff] }
 0x2c8   :  { %v5924_v14 = vpop.eup %5923 }
 0x2c9   :  { %v5926_v43 = vpop.eup %5925  ;;  %v1849_v51 = vmul.f32 %v5924_v14, %v5918_v50  ;;  %v1976_v50 = vld [vmem:[%s13063_s2 + $0x328] sm:$0xff]  ;;  %v1977_v14 = vld [vmem:[%s13063_s2 + $0x330] sm:$0xff] }
 0x2ca   :  { %v5928_v26 = vpop.eup %5927  ;;  %v1848_v31 = vmul.f32 %v5926_v43, %v7722_v40  ;;  %v1999_v40 = vld [vmem:[%s13063_s2 + $0x3e0] sm:$0xff]  ;;  %v1968_v43 = vld [vmem:[%s13063_s2 + $0x2e8] sm:$0xff] }
 0x2cb   :  { %v5930_v45 = vpop.eup %5929  ;;  %v8517_v23 = vadd.f32 %v1849_v51, %v1847_v16  ;;  %v1841_v53 = vadd.f32 1.0, %v5928_v26  ;;  %v1970_v16 = vld [vmem:[%s13063_s2 + $0x2f8] sm:$0xff]  ;;  %v1967_v51 = vld [vmem:[%s13063_s2 + $0x2e0] sm:$0xff]  ;;  %v1969_v26 = vld [vmem:[%s13063_s2 + $0x2f0] sm:$0xff] }
 0x2cc   :  { %v5932_v57 = vpop.eup %5931  ;;  %v1850_v19 = vmul.f32 %v5930_v45, %v5922_v39  ;;  %v1975_v39 = vld [vmem:[%s13063_s2 + $0x320] sm:$0xff]  ;;  %v1960_v45 = vld [vmem:[%s13063_s2 + $0x2a8] sm:$0xff] }
 0x2cd   :  { %5933 = vtanh.f32 %v8517_v23  ;;  %v1842_v47 = vadd.f32 1.0, %v5932_v57  ;;  %v1959_v57 = vld [vmem:[%s13063_s2 + $0x2a0] sm:$0xff] }
 0x2ce   :  { %5935 = vrcp.f32 %v1841_v53  ;;  %v8521_v5 = vadd.f32 %v1850_v19, %v1848_v31  ;;  %v1962_v53 = vld [vmem:[%s13063_s2 + $0x2b8] sm:$0xff]  ;;  %v1961_v31 = vld [vmem:[%s13063_s2 + $0x2b0] sm:$0xff]  ;;  %v1952_v19 = vld [vmem:[%s13063_s2 + $0x268] sm:$0xff] }
 0x2cf   :  { %5937 = vrcp.f32 %v1842_v47  ;;  %v1954_v47 = vld [vmem:[%s13063_s2 + $0x278] sm:$0xff] }
 0x2d0   :  { %5939 = vtanh.f32 %v8521_v5 }
 0x2da   :  { %v5934_v48 = vpop.eup %5933 }
 0x2db   :  { %v5936_v58 = vpop.eup %5935 }
 0x2dc   :  { %v5938_v52 = vpop.eup %5937  ;;  %v8526_v1 = vmul.f32 %v5936_v58, %v5934_v48  ;;  %v1951_v48 = vld [vmem:[%s13063_s2 + $0x260] sm:$0xff]  ;;  %v1953_v58 = vld [vmem:[%s13063_s2 + $0x270] sm:$0xff] }
 0x2dd   :  { %v5940_v42 = vpop.eup %5939 }
 0x2de   :  { %v8524_v62 = vmul.f32 %v5940_v42, %v5938_v52  ;;  %v1944_v52 = vld [vmem:[%s13063_s2 + $0x228] sm:$0xff]  ;;  %v1946_v42 = vld [vmem:[%s13063_s2 + $0x238] sm:$0xff] }
 0x2e0   :  { %2195 = vmatprep.mubr.f32.mxu0 %v8524_v62  ;;  %2266 = vmatprep.mubr.f32.mxu1 %v8524_v62 }
 0x2e1   :  { %2196 = vmatmul.mubr.f32.vlgmr.msra.gmra.mxu0 %v8526_v1  ;;  %2267 = vmatmul.mubr.f32.vlgmr.msra.gmra.mxu1 %v8526_v1 }
 0x2e2   :  { %2274 = vmatpush1.msra.mxu0 %v1999_v40  ;;  %2345 = vmatpush1.msra.mxu1 %v2001_v38  ;;  %v1943_v40 = vld [vmem:[%s13063_s2 + $0x220] sm:$0xff]  ;;  %v1945_v38 = vld [vmem:[%s13063_s2 + $0x230] sm:$0xff] }
 0x2e3   :  { %2275 = vmatprep.subr.mxu0 %v1992_v30  ;;  %2337 = vmatprep.mubr.f32.mxu0 %v8524_v62  ;;  %v1936_v30 = vld [vmem:[%s13063_s2 + $0x1e8] sm:$0xff] }
 0x2e4   :  { %2346 = vmatprep.subr.mxu1 %v1994_v20  ;;  %2408 = vmatprep.mubr.f32.mxu1 %v8524_v62  ;;  %v1938_v20 = vld [vmem:[%s13063_s2 + $0x1f8] sm:$0xff] }
 0x2e5   :  { %2276 = vmatpush1.msra.mxu0 %v1991_v10  ;;  %2347 = vmatpush1.msra.mxu1 %v1993_v28  ;;  %v1935_v10 = vld [vmem:[%s13063_s2 + $0x1e0] sm:$0xff]  ;;  %v1937_v28 = vld [vmem:[%s13063_s2 + $0x1f0] sm:$0xff] }
 0x2e6   :  { %2277 = vmatprep.subr.mxu0 %v1984_v41  ;;  %2348 = vmatprep.subr.mxu1 %v1986_v27  ;;  %v1928_v41 = vld [vmem:[%s13063_s2 + $0x1a8] sm:$0xff]  ;;  %v1930_v27 = vld [vmem:[%s13063_s2 + $0x1b8] sm:$0xff] }
 0x2e7   :  { %2278 = vmatpush1.msra.mxu0 %v1983_v44  ;;  %2349 = vmatpush1.msra.mxu1 %v1985_v54  ;;  %v1927_v44 = vld [vmem:[%s13063_s2 + $0x1a0] sm:$0xff]  ;;  %v1929_v54 = vld [vmem:[%s13063_s2 + $0x1b0] sm:$0xff] }
 0x2e8   :  { %2279 = vmatprep.subr.mxu0 %v1976_v50  ;;  %2350 = vmatprep.subr.mxu1 %v1978_v55  ;;  %v1920_v50 = vld [vmem:[%s13063_s2 + $0x168] sm:$0xff]  ;;  %v1922_v55 = vld [vmem:[%s13063_s2 + $0x178] sm:$0xff] }
 0x2e9   :  { %2280 = vmatpush1.msra.mxu0 %v1975_v39  ;;  %2351 = vmatpush1.msra.mxu1 %v1977_v14  ;;  %v1919_v39 = vld [vmem:[%s13063_s2 + $0x160] sm:$0xff]  ;;  %v1921_v14 = vld [vmem:[%s13063_s2 + $0x170] sm:$0xff] }
 0x2ea   :  { %2281 = vmatprep.subr.mxu0 %v1968_v43  ;;  %2352 = vmatprep.subr.mxu1 %v1970_v16  ;;  %v1912_v43 = vld [vmem:[%s13063_s2 + $0x128] sm:$0xff]  ;;  %v1914_v16 = vld [vmem:[%s13063_s2 + $0x138] sm:$0xff] }
 0x2eb   :  { %2282 = vmatpush1.msra.mxu0 %v1967_v51  ;;  %2353 = vmatpush1.msra.mxu1 %v1969_v26  ;;  %v1911_v51 = vld [vmem:[%s13063_s2 + $0x120] sm:$0xff]  ;;  %v1913_v26 = vld [vmem:[%s13063_s2 + $0x130] sm:$0xff] }
 0x2ec   :  { %2283 = vmatprep.subr.mxu0 %v1960_v45  ;;  %2354 = vmatprep.subr.mxu1 %v1962_v53  ;;  %v1904_v45 = vld [vmem:[%s13063_s2 + $0xe8] sm:$0xff]  ;;  %v1906_v53 = vld [vmem:[%s13063_s2 + $0xf8] sm:$0xff] }
 0x2ed   :  { %2284 = vmatpush1.msra.mxu0 %v1959_v57  ;;  %2355 = vmatpush1.msra.mxu1 %v1961_v31  ;;  %v1903_v57 = vld [vmem:[%s13063_s2 + $0xe0] sm:$0xff]  ;;  %v1905_v31 = vld [vmem:[%s13063_s2 + $0xf0] sm:$0xff] }
 0x2ee   :  { %2285 = vmatprep.subr.mxu0 %v1952_v19  ;;  %2356 = vmatprep.subr.mxu1 %v1954_v47  ;;  %v1896_v19 = vld [vmem:[%s13063_s2 + $0xa8] sm:$0xff]  ;;  %v1898_v47 = vld [vmem:[%s13063_s2 + $0xb8] sm:$0xff] }
 0x2ef   :  { %2286 = vmatpush1.msra.mxu0 %v1951_v48  ;;  %2357 = vmatpush1.msra.mxu1 %v1953_v58  ;;  %v1895_v48 = vld [vmem:[%s13063_s2 + $0xa0] sm:$0xff]  ;;  %v1897_v58 = vld [vmem:[%s13063_s2 + $0xb0] sm:$0xff] }
 0x2f0   :  { %2287 = vmatprep.subr.mxu0 %v1944_v52  ;;  %2358 = vmatprep.subr.mxu1 %v1946_v42  ;;  %v1888_v52 = vld [vmem:[%s13063_s2 + $0x68] sm:$0xff]  ;;  %v1890_v42 = vld [vmem:[%s13063_s2 + $0x78] sm:$0xff] }
 0x2f1   :  { %2288 = vmatpush1.msra.mxu0 %v1943_v40  ;;  %2359 = vmatpush1.msra.mxu1 %v1945_v38  ;;  %v1887_v40 = vld [vmem:[%s13063_s2 + $0x60] sm:$0xff]  ;;  %v1889_v38 = vld [vmem:[%s13063_s2 + $0x70] sm:$0xff] }
 0x2f2   :  { %2289 = vmatprep.subr.mxu0 %v1936_v30  ;;  %2360 = vmatprep.subr.mxu1 %v1938_v20  ;;  %v1880_v30 = vld [vmem:[%s13063_s2 + $0x28] sm:$0xff]  ;;  %v1882_v20 = vld [vmem:[%s13063_s2 + $0x38] sm:$0xff] }
 0x2f3   :  { %2290 = vmatpush1.msra.mxu0 %v1935_v10  ;;  %2361 = vmatpush1.msra.mxu1 %v1937_v28  ;;  %v1879_v10 = vld [vmem:[%s13063_s2 + $0x20] sm:$0xff]  ;;  %v1881_v28 = vld [vmem:[%s13063_s2 + $0x30] sm:$0xff] }
 0x2f4   :  { %2291 = vmatprep.subr.mxu0 %v1928_v41  ;;  %2362 = vmatprep.subr.mxu1 %v1930_v27  ;;  %v2128_v41 = vld [vmem:[%s13063_s2 + $0x7e8] sm:$0xff]  ;;  %v2130_v27 = vld [vmem:[%s13063_s2 + $0x7f8] sm:$0xff] }
 0x2f5   :  { %2292 = vmatpush1.msra.mxu0 %v1927_v44  ;;  %2363 = vmatpush1.msra.mxu1 %v1929_v54  ;;  %v2127_v44 = vld [vmem:[%s13063_s2 + $0x7e0] sm:$0xff]  ;;  %v2129_v54 = vld [vmem:[%s13063_s2 + $0x7f0] sm:$0xff] }
 0x2f6   :  { %2293 = vmatprep.subr.mxu0 %v1920_v50  ;;  %2364 = vmatprep.subr.mxu1 %v1922_v55  ;;  %v2120_v50 = vld [vmem:[%s13063_s2 + $0x7a8] sm:$0xff]  ;;  %v2122_v55 = vld [vmem:[%s13063_s2 + $0x7b8] sm:$0xff] }
 0x2f7   :  { %2294 = vmatpush1.msra.mxu0 %v1919_v39  ;;  %2365 = vmatpush1.msra.mxu1 %v1921_v14  ;;  %v2119_v39 = vld [vmem:[%s13063_s2 + $0x7a0] sm:$0xff]  ;;  %v2121_v14 = vld [vmem:[%s13063_s2 + $0x7b0] sm:$0xff] }
 0x2f8   :  { %2295 = vmatprep.subr.mxu0 %v1912_v43  ;;  %2366 = vmatprep.subr.mxu1 %v1914_v16  ;;  %v2112_v43 = vld [vmem:[%s13063_s2 + $0x768] sm:$0xff]  ;;  %v2114_v16 = vld [vmem:[%s13063_s2 + $0x778] sm:$0xff] }
 0x2f9   :  { %2296 = vmatpush1.msra.mxu0 %v1911_v51  ;;  %2367 = vmatpush1.msra.mxu1 %v1913_v26  ;;  %v2111_v51 = vld [vmem:[%s13063_s2 + $0x760] sm:$0xff]  ;;  %v2113_v26 = vld [vmem:[%s13063_s2 + $0x770] sm:$0xff] }
 0x2fa   :  { %2297 = vmatprep.subr.mxu0 %v1904_v45  ;;  %2368 = vmatprep.subr.mxu1 %v1906_v53  ;;  %v2104_v45 = vld [vmem:[%s13063_s2 + $0x728] sm:$0xff]  ;;  %v2106_v53 = vld [vmem:[%s13063_s2 + $0x738] sm:$0xff] }
 0x2fb   :  { %2298 = vmatpush1.msra.mxu0 %v1903_v57  ;;  %2369 = vmatpush1.msra.mxu1 %v1905_v31  ;;  %v2103_v57 = vld [vmem:[%s13063_s2 + $0x720] sm:$0xff]  ;;  %v2105_v31 = vld [vmem:[%s13063_s2 + $0x730] sm:$0xff] }
 0x2fc   :  { %2299 = vmatprep.subr.mxu0 %v1896_v19  ;;  %2370 = vmatprep.subr.mxu1 %v1898_v47  ;;  %v2096_v19 = vld [vmem:[%s13063_s2 + $0x6e8] sm:$0xff]  ;;  %v2098_v47 = vld [vmem:[%s13063_s2 + $0x6f8] sm:$0xff] }
 0x2fd   :  { %2300 = vmatpush1.msra.mxu0 %v1895_v48  ;;  %2371 = vmatpush1.msra.mxu1 %v1897_v58  ;;  %v2095_v48 = vld [vmem:[%s13063_s2 + $0x6e0] sm:$0xff]  ;;  %v2097_v58 = vld [vmem:[%s13063_s2 + $0x6f0] sm:$0xff] }
 0x2fe   :  { %2301 = vmatprep.subr.mxu0 %v1888_v52  ;;  %2372 = vmatprep.subr.mxu1 %v1890_v42  ;;  %v2088_v52 = vld [vmem:[%s13063_s2 + $0x6a8] sm:$0xff]  ;;  %v2090_v42 = vld [vmem:[%s13063_s2 + $0x6b8] sm:$0xff] }
 0x2ff   :  { %2302 = vmatpush1.msra.mxu0 %v1887_v40  ;;  %2373 = vmatpush1.msra.mxu1 %v1889_v38  ;;  %v2087_v40 = vld [vmem:[%s13063_s2 + $0x6a0] sm:$0xff]  ;;  %v2089_v38 = vld [vmem:[%s13063_s2 + $0x6b0] sm:$0xff] }
 0x300   :  { %2303 = vmatprep.subr.mxu0 %v1880_v30  ;;  %2374 = vmatprep.subr.mxu1 %v1882_v20  ;;  %v2080_v30 = vld [vmem:[%s13063_s2 + $0x668] sm:$0xff]  ;;  %v2082_v20 = vld [vmem:[%s13063_s2 + $0x678] sm:$0xff] }
 0x301   :  { %2304 = vmatpush1.msra.mxu0 %v1879_v10  ;;  %2375 = vmatpush1.msra.mxu1 %v1881_v28  ;;  %v2079_v10 = vld [vmem:[%s13063_s2 + $0x660] sm:$0xff]  ;;  %v2081_v28 = vld [vmem:[%s13063_s2 + $0x670] sm:$0xff] }
 0x302   :  { %2305 = vmatprep.subr.mxu0 %v2128_v41  ;;  %2376 = vmatprep.subr.mxu1 %v2130_v27  ;;  %v2072_v41 = vld [vmem:[%s13063_s2 + $0x628] sm:$0xff]  ;;  %v2074_v27 = vld [vmem:[%s13063_s2 + $0x638] sm:$0xff] }
 0x303   :  { %2306 = vmatpush2.msra.mxu0 %v2127_v44  ;;  %2377 = vmatpush2.msra.mxu1 %v2129_v54  ;;  %v2071_v44 = vld [vmem:[%s13063_s2 + $0x620] sm:$0xff]  ;;  %v2073_v54 = vld [vmem:[%s13063_s2 + $0x630] sm:$0xff] }
 0x304   :  { %2307 = vmatprep.subr.mxu0 %v2120_v50  ;;  %2378 = vmatprep.subr.mxu1 %v2122_v55  ;;  %v2064_v50 = vld [vmem:[%s13063_s2 + $0x5e8] sm:$0xff]  ;;  %v2066_v55 = vld [vmem:[%s13063_s2 + $0x5f8] sm:$0xff] }
 0x305   :  { %2308 = vmatpush2.msra.mxu0 %v2119_v39  ;;  %2379 = vmatpush2.msra.mxu1 %v2121_v14  ;;  %v2063_v39 = vld [vmem:[%s13063_s2 + $0x5e0] sm:$0xff]  ;;  %v2065_v14 = vld [vmem:[%s13063_s2 + $0x5f0] sm:$0xff] }
 0x306   :  { %2309 = vmatprep.subr.mxu0 %v2112_v43  ;;  %2380 = vmatprep.subr.mxu1 %v2114_v16  ;;  %v2056_v43 = vld [vmem:[%s13063_s2 + $0x5a8] sm:$0xff]  ;;  %v2058_v16 = vld [vmem:[%s13063_s2 + $0x5b8] sm:$0xff] }
 0x307   :  { %2310 = vmatpush2.msra.mxu0 %v2111_v51  ;;  %2381 = vmatpush2.msra.mxu1 %v2113_v26  ;;  %v2055_v51 = vld [vmem:[%s13063_s2 + $0x5a0] sm:$0xff]  ;;  %v2057_v26 = vld [vmem:[%s13063_s2 + $0x5b0] sm:$0xff] }
 0x308   :  { %2311 = vmatprep.subr.mxu0 %v2104_v45  ;;  %2382 = vmatprep.subr.mxu1 %v2106_v53  ;;  %v2048_v45 = vld [vmem:[%s13063_s2 + $0x568] sm:$0xff]  ;;  %v2050_v53 = vld [vmem:[%s13063_s2 + $0x578] sm:$0xff] }
 0x309   :  { %2312 = vmatpush2.msra.mxu0 %v2103_v57  ;;  %2383 = vmatpush2.msra.mxu1 %v2105_v31  ;;  %v2047_v57 = vld [vmem:[%s13063_s2 + $0x560] sm:$0xff]  ;;  %v2049_v31 = vld [vmem:[%s13063_s2 + $0x570] sm:$0xff] }
 0x30a   :  { %2313 = vmatprep.subr.mxu0 %v2096_v19  ;;  %2384 = vmatprep.subr.mxu1 %v2098_v47  ;;  %v2040_v19 = vld [vmem:[%s13063_s2 + $0x528] sm:$0xff]  ;;  %v2042_v47 = vld [vmem:[%s13063_s2 + $0x538] sm:$0xff] }
 0x30b   :  { %2314 = vmatpush2.msra.mxu0 %v2095_v48  ;;  %2385 = vmatpush2.msra.mxu1 %v2097_v58  ;;  %v2039_v48 = vld [vmem:[%s13063_s2 + $0x520] sm:$0xff]  ;;  %v2041_v58 = vld [vmem:[%s13063_s2 + $0x530] sm:$0xff] }
 0x30c   :  { %2315 = vmatprep.subr.mxu0 %v2088_v52  ;;  %2386 = vmatprep.subr.mxu1 %v2090_v42  ;;  %v2032_v52 = vld [vmem:[%s13063_s2 + $0x4e8] sm:$0xff]  ;;  %v2034_v42 = vld [vmem:[%s13063_s2 + $0x4f8] sm:$0xff] }
 0x30d   :  { %2316 = vmatpush2.msra.mxu0 %v2087_v40  ;;  %2387 = vmatpush2.msra.mxu1 %v2089_v38  ;;  %v2031_v40 = vld [vmem:[%s13063_s2 + $0x4e0] sm:$0xff]  ;;  %v2033_v38 = vld [vmem:[%s13063_s2 + $0x4f0] sm:$0xff] }
 0x30e   :  { %2317 = vmatprep.subr.mxu0 %v2080_v30  ;;  %2388 = vmatprep.subr.mxu1 %v2082_v20  ;;  %v2024_v30 = vld [vmem:[%s13063_s2 + $0x4a8] sm:$0xff]  ;;  %v2026_v20 = vld [vmem:[%s13063_s2 + $0x4b8] sm:$0xff] }
 0x30f   :  { %2318 = vmatpush2.msra.mxu0 %v2079_v10  ;;  %2389 = vmatpush2.msra.mxu1 %v2081_v28  ;;  %v2023_v10 = vld [vmem:[%s13063_s2 + $0x4a0] sm:$0xff]  ;;  %v2025_v28 = vld [vmem:[%s13063_s2 + $0x4b0] sm:$0xff] }
 0x310   :  { %2319 = vmatprep.subr.mxu0 %v2072_v41  ;;  %2390 = vmatprep.subr.mxu1 %v2074_v27  ;;  %v2016_v41 = vld [vmem:[%s13063_s2 + $0x468] sm:$0xff]  ;;  %v2018_v27 = vld [vmem:[%s13063_s2 + $0x478] sm:$0xff] }
 0x311   :  { %2320 = vmatpush2.msra.mxu0 %v2071_v44  ;;  %2391 = vmatpush2.msra.mxu1 %v2073_v54  ;;  %v2015_v44 = vld [vmem:[%s13063_s2 + $0x460] sm:$0xff]  ;;  %v2017_v54 = vld [vmem:[%s13063_s2 + $0x470] sm:$0xff] }
 0x312   :  { %2321 = vmatprep.subr.mxu0 %v2064_v50  ;;  %2392 = vmatprep.subr.mxu1 %v2066_v55  ;;  %v2008_v50 = vld [vmem:[%s13063_s2 + $0x428] sm:$0xff]  ;;  %v2010_v55 = vld [vmem:[%s13063_s2 + $0x438] sm:$0xff] }
 0x313   :  { %2322 = vmatpush2.msra.mxu0 %v2063_v39  ;;  %2393 = vmatpush2.msra.mxu1 %v2065_v14  ;;  %v2007_v39 = vld [vmem:[%s13063_s2 + $0x420] sm:$0xff]  ;;  %v2009_v14 = vld [vmem:[%s13063_s2 + $0x430] sm:$0xff] }
 0x314   :  { %2323 = vmatprep.subr.mxu0 %v2056_v43  ;;  %2394 = vmatprep.subr.mxu1 %v2058_v16  ;;  %v2610_v43 = vld [vmem:[%s13063_s2 + $0x3c8] sm:$0xff]  ;;  %v2612_v16 = vld [vmem:[%s13063_s2 + $0x3d8] sm:$0xff] }
 0x315   :  { %2324 = vmatpush2.msra.mxu0 %v2055_v51  ;;  %2395 = vmatpush2.msra.mxu1 %v2057_v26  ;;  %v2609_v51 = vld [vmem:[%s13063_s2 + $0x3c0] sm:$0xff]  ;;  %v2611_v26 = vld [vmem:[%s13063_s2 + $0x3d0] sm:$0xff] }
 0x316   :  { %2325 = vmatprep.subr.mxu0 %v2048_v45  ;;  %2396 = vmatprep.subr.mxu1 %v2050_v53  ;;  %v2602_v45 = vld [vmem:[%s13063_s2 + $0x388] sm:$0xff]  ;;  %v2604_v53 = vld [vmem:[%s13063_s2 + $0x398] sm:$0xff] }
 0x317   :  { %2326 = vmatpush2.msra.mxu0 %v2047_v57  ;;  %2397 = vmatpush2.msra.mxu1 %v2049_v31  ;;  %v2601_v57 = vld [vmem:[%s13063_s2 + $0x380] sm:$0xff]  ;;  %v2603_v31 = vld [vmem:[%s13063_s2 + $0x390] sm:$0xff] }
 0x318   :  { %2327 = vmatprep.subr.mxu0 %v2040_v19  ;;  %2398 = vmatprep.subr.mxu1 %v2042_v47  ;;  %v2594_v19 = vld [vmem:[%s13063_s2 + $0x348] sm:$0xff]  ;;  %v2596_v47 = vld [vmem:[%s13063_s2 + $0x358] sm:$0xff] }
 0x319   :  { %2328 = vmatpush2.msra.mxu0 %v2039_v48  ;;  %2399 = vmatpush2.msra.mxu1 %v2041_v58  ;;  %v2593_v48 = vld [vmem:[%s13063_s2 + $0x340] sm:$0xff]  ;;  %v2595_v58 = vld [vmem:[%s13063_s2 + $0x350] sm:$0xff] }
 0x31a   :  { %2329 = vmatprep.subr.mxu0 %v2032_v52  ;;  %2400 = vmatprep.subr.mxu1 %v2034_v42  ;;  %v2586_v52 = vld [vmem:[%s13063_s2 + $0x308] sm:$0xff]  ;;  %v2588_v42 = vld [vmem:[%s13063_s2 + $0x318] sm:$0xff] }
 0x31b   :  { %2330 = vmatpush2.msra.mxu0 %v2031_v40  ;;  %2401 = vmatpush2.msra.mxu1 %v2033_v38  ;;  %v2585_v40 = vld [vmem:[%s13063_s2 + $0x300] sm:$0xff]  ;;  %v2587_v38 = vld [vmem:[%s13063_s2 + $0x310] sm:$0xff] }
 0x31c   :  { %2331 = vmatprep.subr.mxu0 %v2024_v30  ;;  %2402 = vmatprep.subr.mxu1 %v2026_v20  ;;  %v2578_v30 = vld [vmem:[%s13063_s2 + $0x2c8] sm:$0xff]  ;;  %v2580_v20 = vld [vmem:[%s13063_s2 + $0x2d8] sm:$0xff] }
 0x31d   :  { %2332 = vmatpush2.msra.mxu0 %v2023_v10  ;;  %2403 = vmatpush2.msra.mxu1 %v2025_v28  ;;  %v2577_v10 = vld [vmem:[%s13063_s2 + $0x2c0] sm:$0xff]  ;;  %v2579_v28 = vld [vmem:[%s13063_s2 + $0x2d0] sm:$0xff] }
 0x31e   :  { %2333 = vmatprep.subr.mxu0 %v2016_v41  ;;  %2404 = vmatprep.subr.mxu1 %v2018_v27  ;;  %v2570_v41 = vld [vmem:[%s13063_s2 + $0x288] sm:$0xff]  ;;  %v2572_v27 = vld [vmem:[%s13063_s2 + $0x298] sm:$0xff] }
 0x31f   :  { %2334 = vmatpush2.msra.mxu0 %v2015_v44  ;;  %2405 = vmatpush2.msra.mxu1 %v2017_v54  ;;  %v2569_v44 = vld [vmem:[%s13063_s2 + $0x280] sm:$0xff]  ;;  %v2571_v54 = vld [vmem:[%s13063_s2 + $0x290] sm:$0xff] }
 0x320   :  { %2335 = vmatprep.subr.mxu0 %v2008_v50  ;;  %2406 = vmatprep.subr.mxu1 %v2010_v55  ;;  %v2562_v50 = vld [vmem:[%s13063_s2 + $0x248] sm:$0xff]  ;;  %v2564_v55 = vld [vmem:[%s13063_s2 + $0x258] sm:$0xff] }
 0x321   :  { %2336 = vmatpush2.msra.mxu0 %v2007_v39  ;;  %2407 = vmatpush2.msra.mxu1 %v2009_v14  ;;  %v2561_v39 = vld [vmem:[%s13063_s2 + $0x240] sm:$0xff]  ;;  %v2563_v14 = vld [vmem:[%s13063_s2 + $0x250] sm:$0xff] }
 0x322   :  { %2338 = vmatmul.mubr.f32.vlgmr.msra.gmra.mxu0 %v8526_v1  ;;  %2409 = vmatmul.mubr.f32.vlgmr.msra.gmra.mxu1 %v8526_v1 }
 0x323   :  { %2745 = vmatprep.subr.mxu0 %v2610_v43  ;;  %2816 = vmatprep.subr.mxu1 %v2612_v16  ;;  %v2554_v43 = vld [vmem:[%s13063_s2 + $0x208] sm:$0xff]  ;;  %v2556_v16 = vld [vmem:[%s13063_s2 + $0x218] sm:$0xff] }
 0x324   :  { %2746 = vmatpush1.msra.mxu0 %v2609_v51  ;;  %2817 = vmatpush1.msra.mxu1 %v2611_v26  ;;  %v2553_v51 = vld [vmem:[%s13063_s2 + $0x200] sm:$0xff]  ;;  %v2555_v26 = vld [vmem:[%s13063_s2 + $0x210] sm:$0xff] }
 0x325   :  { %2747 = vmatprep.subr.mxu0 %v2602_v45  ;;  %2818 = vmatprep.subr.mxu1 %v2604_v53  ;;  %v2546_v45 = vld [vmem:[%s13063_s2 + $0x1c8] sm:$0xff]  ;;  %v2548_v53 = vld [vmem:[%s13063_s2 + $0x1d8] sm:$0xff] }
 0x326   :  { %2748 = vmatpush1.msra.mxu0 %v2601_v57  ;;  %2819 = vmatpush1.msra.mxu1 %v2603_v31  ;;  %v2545_v57 = vld [vmem:[%s13063_s2 + $0x1c0] sm:$0xff]  ;;  %v2547_v31 = vld [vmem:[%s13063_s2 + $0x1d0] sm:$0xff] }
 0x327   :  { %2749 = vmatprep.subr.mxu0 %v2594_v19  ;;  %2820 = vmatprep.subr.mxu1 %v2596_v47  ;;  %v2538_v19 = vld [vmem:[%s13063_s2 + $0x188] sm:$0xff]  ;;  %v2540_v47 = vld [vmem:[%s13063_s2 + $0x198] sm:$0xff] }
 0x328   :  { %2750 = vmatpush1.msra.mxu0 %v2593_v48  ;;  %2821 = vmatpush1.msra.mxu1 %v2595_v58  ;;  %v2537_v48 = vld [vmem:[%s13063_s2 + $0x180] sm:$0xff]  ;;  %v2539_v58 = vld [vmem:[%s13063_s2 + $0x190] sm:$0xff] }
 0x329   :  { %2751 = vmatprep.subr.mxu0 %v2586_v52  ;;  %2822 = vmatprep.subr.mxu1 %v2588_v42  ;;  %v2530_v52 = vld [vmem:[%s13063_s2 + $0x148] sm:$0xff]  ;;  %v2532_v42 = vld [vmem:[%s13063_s2 + $0x158] sm:$0xff] }
 0x32a   :  { %2752 = vmatpush1.msra.mxu0 %v2585_v40  ;;  %2823 = vmatpush1.msra.mxu1 %v2587_v38  ;;  %v2529_v40 = vld [vmem:[%s13063_s2 + $0x140] sm:$0xff]  ;;  %v2531_v38 = vld [vmem:[%s13063_s2 + $0x150] sm:$0xff] }
 0x32b   :  { %2753 = vmatprep.subr.mxu0 %v2578_v30  ;;  %2824 = vmatprep.subr.mxu1 %v2580_v20  ;;  %v2522_v30 = vld [vmem:[%s13063_s2 + $0x108] sm:$0xff]  ;;  %v2524_v20 = vld [vmem:[%s13063_s2 + $0x118] sm:$0xff] }
 0x32c   :  { %2754 = vmatpush1.msra.mxu0 %v2577_v10  ;;  %2825 = vmatpush1.msra.mxu1 %v2579_v28  ;;  %v2521_v10 = vld [vmem:[%s13063_s2 + $0x100] sm:$0xff]  ;;  %v2523_v28 = vld [vmem:[%s13063_s2 + $0x110] sm:$0xff] }
 0x32d   :  { %2755 = vmatprep.subr.mxu0 %v2570_v41  ;;  %2826 = vmatprep.subr.mxu1 %v2572_v27  ;;  %v2514_v41 = vld [vmem:[%s13063_s2 + $0xc8] sm:$0xff]  ;;  %v2516_v27 = vld [vmem:[%s13063_s2 + $0xd8] sm:$0xff] }
 0x32e   :  { %2756 = vmatpush1.msra.mxu0 %v2569_v44  ;;  %2827 = vmatpush1.msra.mxu1 %v2571_v54  ;;  %v2513_v44 = vld [vmem:[%s13063_s2 + $0xc0] sm:$0xff]  ;;  %v2515_v54 = vld [vmem:[%s13063_s2 + $0xd0] sm:$0xff] }
 0x32f   :  { %2757 = vmatprep.subr.mxu0 %v2562_v50  ;;  %2828 = vmatprep.subr.mxu1 %v2564_v55  ;;  %v2506_v50 = vld [vmem:[%s13063_s2 + $0x88] sm:$0xff]  ;;  %v2508_v55 = vld [vmem:[%s13063_s2 + $0x98] sm:$0xff] }
 0x330   :  { %2758 = vmatpush1.msra.mxu0 %v2561_v39  ;;  %2829 = vmatpush1.msra.mxu1 %v2563_v14  ;;  %v2505_v39 = vld [vmem:[%s13063_s2 + $0x80] sm:$0xff]  ;;  %v2507_v14 = vld [vmem:[%s13063_s2 + $0x90] sm:$0xff] }
 0x331   :  { %2759 = vmatprep.subr.mxu0 %v2554_v43  ;;  %2830 = vmatprep.subr.mxu1 %v2556_v16  ;;  %v2498_v43 = vld [vmem:[%s13063_s2 + $0x48] sm:$0xff]  ;;  %v2500_v16 = vld [vmem:[%s13063_s2 + $0x58] sm:$0xff] }
 0x332   :  { %2760 = vmatpush1.msra.mxu0 %v2553_v51  ;;  %2831 = vmatpush1.msra.mxu1 %v2555_v26  ;;  %v2497_v51 = vld [vmem:[%s13063_s2 + $0x40] sm:$0xff]  ;;  %v2499_v26 = vld [vmem:[%s13063_s2 + $0x50] sm:$0xff] }
 0x333   :  { %2761 = vmatprep.subr.mxu0 %v2546_v45  ;;  %2832 = vmatprep.subr.mxu1 %v2548_v53  ;;  %v2490_v45 = vld [vmem:[%s13063_s2 + $0x8] sm:$0xff]  ;;  %v2492_v53 = vld [vmem:[%s13063_s2 + $0x18] sm:$0xff] }
 0x334   :  { %2762 = vmatpush1.msra.mxu0 %v2545_v57  ;;  %2833 = vmatpush1.msra.mxu1 %v2547_v31  ;;  %v2489_v57 = vld [vmem:[%s13063_s2] sm:$0xff]  ;;  %v2491_v31 = vld [vmem:[%s13063_s2 + $0x10] sm:$0xff] }
 0x335   :  { %2763 = vmatprep.subr.mxu0 %v2538_v19  ;;  %2834 = vmatprep.subr.mxu1 %v2540_v47  ;;  %v2738_v19 = vld [vmem:[%s13063_s2 + $0x7c8] sm:$0xff]  ;;  %v2740_v47 = vld [vmem:[%s13063_s2 + $0x7d8] sm:$0xff] }
 0x336   :  { %2764 = vmatpush1.msra.mxu0 %v2537_v48  ;;  %2835 = vmatpush1.msra.mxu1 %v2539_v58  ;;  %v2737_v48 = vld [vmem:[%s13063_s2 + $0x7c0] sm:$0xff]  ;;  %v2739_v58 = vld [vmem:[%s13063_s2 + $0x7d0] sm:$0xff] }
 0x337   :  { %2765 = vmatprep.subr.mxu0 %v2530_v52  ;;  %2836 = vmatprep.subr.mxu1 %v2532_v42  ;;  %v2730_v52 = vld [vmem:[%s13063_s2 + $0x788] sm:$0xff]  ;;  %v2732_v42 = vld [vmem:[%s13063_s2 + $0x798] sm:$0xff] }
 0x338   :  { %2766 = vmatpush1.msra.mxu0 %v2529_v40  ;;  %2837 = vmatpush1.msra.mxu1 %v2531_v38  ;;  %v2729_v40 = vld [vmem:[%s13063_s2 + $0x780] sm:$0xff]  ;;  %v2731_v38 = vld [vmem:[%s13063_s2 + $0x790] sm:$0xff] }
 0x339   :  { %2767 = vmatprep.subr.mxu0 %v2522_v30  ;;  %2838 = vmatprep.subr.mxu1 %v2524_v20  ;;  %v2722_v30 = vld [vmem:[%s13063_s2 + $0x748] sm:$0xff]  ;;  %v2724_v20 = vld [vmem:[%s13063_s2 + $0x758] sm:$0xff] }
 0x33a   :  { %2768 = vmatpush1.msra.mxu0 %v2521_v10  ;;  %2839 = vmatpush1.msra.mxu1 %v2523_v28  ;;  %v2721_v10 = vld [vmem:[%s13063_s2 + $0x740] sm:$0xff]  ;;  %v2723_v28 = vld [vmem:[%s13063_s2 + $0x750] sm:$0xff] }
 0x33b   :  { %2769 = vmatprep.subr.mxu0 %v2514_v41  ;;  %2840 = vmatprep.subr.mxu1 %v2516_v27  ;;  %v2714_v41 = vld [vmem:[%s13063_s2 + $0x708] sm:$0xff]  ;;  %v2716_v27 = vld [vmem:[%s13063_s2 + $0x718] sm:$0xff] }
 0x33c   :  { %2770 = vmatpush1.msra.mxu0 %v2513_v44  ;;  %2841 = vmatpush1.msra.mxu1 %v2515_v54  ;;  %v2713_v44 = vld [vmem:[%s13063_s2 + $0x700] sm:$0xff]  ;;  %v2715_v54 = vld [vmem:[%s13063_s2 + $0x710] sm:$0xff] }
 0x33d   :  { %2771 = vmatprep.subr.mxu0 %v2506_v50  ;;  %2842 = vmatprep.subr.mxu1 %v2508_v55  ;;  %v2706_v50 = vld [vmem:[%s13063_s2 + $0x6c8] sm:$0xff]  ;;  %v2708_v55 = vld [vmem:[%s13063_s2 + $0x6d8] sm:$0xff] }
 0x33e   :  { %2772 = vmatpush1.msra.mxu0 %v2505_v39  ;;  %2843 = vmatpush1.msra.mxu1 %v2507_v14  ;;  %v2705_v39 = vld [vmem:[%s13063_s2 + $0x6c0] sm:$0xff]  ;;  %v2707_v14 = vld [vmem:[%s13063_s2 + $0x6d0] sm:$0xff] }
 0x33f   :  { %2773 = vmatprep.subr.mxu0 %v2498_v43  ;;  %2844 = vmatprep.subr.mxu1 %v2500_v16  ;;  %v2698_v43 = vld [vmem:[%s13063_s2 + $0x688] sm:$0xff]  ;;  %v2700_v16 = vld [vmem:[%s13063_s2 + $0x698] sm:$0xff] }
 0x340   :  { %2774 = vmatpush1.msra.mxu0 %v2497_v51  ;;  %2845 = vmatpush1.msra.mxu1 %v2499_v26  ;;  %v2697_v51 = vld [vmem:[%s13063_s2 + $0x680] sm:$0xff]  ;;  %v2699_v26 = vld [vmem:[%s13063_s2 + $0x690] sm:$0xff] }
 0x341   :  { %2775 = vmatprep.subr.mxu0 %v2490_v45  ;;  %2846 = vmatprep.subr.mxu1 %v2492_v53  ;;  %v2690_v45 = vld [vmem:[%s13063_s2 + $0x648] sm:$0xff]  ;;  %v2692_v53 = vld [vmem:[%s13063_s2 + $0x658] sm:$0xff] }
 0x342   :  { %2776 = vmatpush1.msra.mxu0 %v2489_v57  ;;  %2847 = vmatpush1.msra.mxu1 %v2491_v31  ;;  %v2689_v57 = vld [vmem:[%s13063_s2 + $0x640] sm:$0xff]  ;;  %v2691_v31 = vld [vmem:[%s13063_s2 + $0x650] sm:$0xff] }
 0x343   :  { %2777 = vmatprep.subr.mxu0 %v2738_v19  ;;  %2848 = vmatprep.subr.mxu1 %v2740_v47  ;;  %v2682_v19 = vld [vmem:[%s13063_s2 + $0x608] sm:$0xff]  ;;  %v2684_v47 = vld [vmem:[%s13063_s2 + $0x618] sm:$0xff] }
 0x344   :  { %2778 = vmatpush2.msra.mxu0 %v2737_v48  ;;  %2849 = vmatpush2.msra.mxu1 %v2739_v58  ;;  %v2681_v48 = vld [vmem:[%s13063_s2 + $0x600] sm:$0xff]  ;;  %v2683_v58 = vld [vmem:[%s13063_s2 + $0x610] sm:$0xff] }
 0x345   :  { %2779 = vmatprep.subr.mxu0 %v2730_v52  ;;  %2850 = vmatprep.subr.mxu1 %v2732_v42  ;;  %v2674_v52 = vld [vmem:[%s13063_s2 + $0x5c8] sm:$0xff]  ;;  %v2676_v42 = vld [vmem:[%s13063_s2 + $0x5d8] sm:$0xff] }
 0x346   :  { %2780 = vmatpush2.msra.mxu0 %v2729_v40  ;;  %2851 = vmatpush2.msra.mxu1 %v2731_v38  ;;  %v2673_v40 = vld [vmem:[%s13063_s2 + $0x5c0] sm:$0xff]  ;;  %v2675_v38 = vld [vmem:[%s13063_s2 + $0x5d0] sm:$0xff] }
 0x347   :  { %2781 = vmatprep.subr.mxu0 %v2722_v30  ;;  %2852 = vmatprep.subr.mxu1 %v2724_v20  ;;  %v2666_v30 = vld [vmem:[%s13063_s2 + $0x588] sm:$0xff]  ;;  %v2668_v20 = vld [vmem:[%s13063_s2 + $0x598] sm:$0xff] }
 0x348   :  { %2782 = vmatpush2.msra.mxu0 %v2721_v10  ;;  %2853 = vmatpush2.msra.mxu1 %v2723_v28  ;;  %v2665_v10 = vld [vmem:[%s13063_s2 + $0x580] sm:$0xff]  ;;  %v2667_v28 = vld [vmem:[%s13063_s2 + $0x590] sm:$0xff] }
 0x349   :  { %2783 = vmatprep.subr.mxu0 %v2714_v41  ;;  %2854 = vmatprep.subr.mxu1 %v2716_v27  ;;  %v2658_v41 = vld [vmem:[%s13063_s2 + $0x548] sm:$0xff]  ;;  %v2660_v27 = vld [vmem:[%s13063_s2 + $0x558] sm:$0xff] }
 0x34a   :  { %2784 = vmatpush2.msra.mxu0 %v2713_v44  ;;  %2855 = vmatpush2.msra.mxu1 %v2715_v54  ;;  %v2657_v44 = vld [vmem:[%s13063_s2 + $0x540] sm:$0xff]  ;;  %v2659_v54 = vld [vmem:[%s13063_s2 + $0x550] sm:$0xff] }
 0x34b   :  { %2785 = vmatprep.subr.mxu0 %v2706_v50  ;;  %2856 = vmatprep.subr.mxu1 %v2708_v55  ;;  %v2650_v50 = vld [vmem:[%s13063_s2 + $0x508] sm:$0xff]  ;;  %v2652_v55 = vld [vmem:[%s13063_s2 + $0x518] sm:$0xff] }
 0x34c   :  { %2786 = vmatpush2.msra.mxu0 %v2705_v39  ;;  %2857 = vmatpush2.msra.mxu1 %v2707_v14  ;;  %v2649_v39 = vld [vmem:[%s13063_s2 + $0x500] sm:$0xff]  ;;  %v2651_v14 = vld [vmem:[%s13063_s2 + $0x510] sm:$0xff] }
 0x34d   :  { %2787 = vmatprep.subr.mxu0 %v2698_v43  ;;  %2858 = vmatprep.subr.mxu1 %v2700_v16  ;;  %v2642_v43 = vld [vmem:[%s13063_s2 + $0x4c8] sm:$0xff]  ;;  %v2644_v16 = vld [vmem:[%s13063_s2 + $0x4d8] sm:$0xff] }
 0x34e   :  { %2788 = vmatpush2.msra.mxu0 %v2697_v51  ;;  %2859 = vmatpush2.msra.mxu1 %v2699_v26  ;;  %v2641_v51 = vld [vmem:[%s13063_s2 + $0x4c0] sm:$0xff]  ;;  %v2643_v26 = vld [vmem:[%s13063_s2 + $0x4d0] sm:$0xff] }
 0x34f   :  { %2789 = vmatprep.subr.mxu0 %v2690_v45  ;;  %2860 = vmatprep.subr.mxu1 %v2692_v53  ;;  %v2634_v45 = vld [vmem:[%s13063_s2 + $0x488] sm:$0xff]  ;;  %v2636_v53 = vld [vmem:[%s13063_s2 + $0x498] sm:$0xff] }
 0x350   :  { %2790 = vmatpush2.msra.mxu0 %v2689_v57  ;;  %2861 = vmatpush2.msra.mxu1 %v2691_v31  ;;  %v2633_v57 = vld [vmem:[%s13063_s2 + $0x480] sm:$0xff]  ;;  %v2635_v31 = vld [vmem:[%s13063_s2 + $0x490] sm:$0xff] }
 0x351   :  { %2791 = vmatprep.subr.mxu0 %v2682_v19  ;;  %2862 = vmatprep.subr.mxu1 %v2684_v47  ;;  %v2626_v19 = vld [vmem:[%s13063_s2 + $0x448] sm:$0xff]  ;;  %v2628_v47 = vld [vmem:[%s13063_s2 + $0x458] sm:$0xff] }
 0x352   :  { %2792 = vmatpush2.msra.mxu0 %v2681_v48  ;;  %2863 = vmatpush2.msra.mxu1 %v2683_v58  ;;  %v2625_v48 = vld [vmem:[%s13063_s2 + $0x440] sm:$0xff]  ;;  %v2627_v58 = vld [vmem:[%s13063_s2 + $0x450] sm:$0xff] }
 0x353   :  { %2793 = vmatprep.subr.mxu0 %v2674_v52  ;;  %2864 = vmatprep.subr.mxu1 %v2676_v42  ;;  %v2618_v52 = vld [vmem:[%s13063_s2 + $0x408] sm:$0xff]  ;;  %v2620_v42 = vld [vmem:[%s13063_s2 + $0x418] sm:$0xff] }
 0x354   :  { %2794 = vmatpush2.msra.mxu0 %v2673_v40  ;;  %2865 = vmatpush2.msra.mxu1 %v2675_v38  ;;  %v2617_v40 = vld [vmem:[%s13063_s2 + $0x400] sm:$0xff]  ;;  %v2619_v38 = vld [vmem:[%s13063_s2 + $0x410] sm:$0xff] }
 0x355   :  { %2795 = vmatprep.subr.mxu0 %v2666_v30  ;;  %2866 = vmatprep.subr.mxu1 %v2668_v20  ;;  %v2614_v30 = vld [vmem:[%s13063_s2 + $0x3e8] sm:$0xff]  ;;  %v2616_v20 = vld [vmem:[%s13063_s2 + $0x3f8] sm:$0xff] }
 0x356   :  { %2796 = vmatpush2.msra.mxu0 %v2665_v10  ;;  %2867 = vmatpush2.msra.mxu1 %v2667_v28 }
 0x357   :  { %2797 = vmatprep.subr.mxu0 %v2658_v41  ;;  %2868 = vmatprep.subr.mxu1 %v2660_v27 }
 0x358   :  { %2798 = vmatpush2.msra.mxu0 %v2657_v44  ;;  %2869 = vmatpush2.msra.mxu1 %v2659_v54 }
 0x359   :  { %2799 = vmatprep.subr.mxu0 %v2650_v50  ;;  %2870 = vmatprep.subr.mxu1 %v2652_v55 }
 0x35a   :  { %2800 = vmatpush2.msra.mxu0 %v2649_v39  ;;  %2871 = vmatpush2.msra.mxu1 %v2651_v14 }
 0x35b   :  { %2801 = vmatprep.subr.mxu0 %v2642_v43  ;;  %2872 = vmatprep.subr.mxu1 %v2644_v16 }
 0x35c   :  { %2802 = vmatpush2.msra.mxu0 %v2641_v51  ;;  %2873 = vmatpush2.msra.mxu1 %v2643_v26 }
 0x35d   :  { %2803 = vmatprep.subr.mxu0 %v2634_v45  ;;  %2874 = vmatprep.subr.mxu1 %v2636_v53 }
 0x35e   :  { %2804 = vmatpush2.msra.mxu0 %v2633_v57  ;;  %2875 = vmatpush2.msra.mxu1 %v2635_v31 }
 0x35f   :  { %2805 = vmatprep.subr.mxu0 %v2626_v19  ;;  %2876 = vmatprep.subr.mxu1 %v2628_v47  ;;  %v536_v47 = vadd.f32 %v7656_v9, %v7716_v61 }
 0x360   :  { %2806 = vmatpush2.msra.mxu0 %v2625_v48  ;;  %2877 = vmatpush2.msra.mxu1 %v2627_v58 }
 0x361   :  { %2807 = vmatprep.subr.mxu0 %v2618_v52  ;;  %2878 = vmatprep.subr.mxu1 %v2620_v42 }
 0x362   :  { %2808 = vmatpush2.msra.mxu0 %v2617_v40  ;;  %2879 = vmatpush2.msra.mxu1 %v2619_v38 }
 0x363   :  { %2887 = vmatprep.subr.mxu0 %v2614_v30  ;;  %2958 = vmatprep.subr.mxu1 %v2616_v20 }
 0x3a1   :  { %v2197_v10 = vpop.f32.mrf.mxu0  ;;  %v2268_v28 = vpop.f32.mrf.mxu1 }
 0x3a2   :  { %v2415_v27 = vadd.f32 %v2197_v10, %v7145_v56  ;;  %v2417_v44 = vadd.f32 %v2268_v28, %v7236_v6 }
 0x3a3   :  { %v2199_v41 = vpop.f32.mrf.mxu0  ;;  %v2270_v54 = vpop.f32.mrf.mxu1 }
 0x3a4   :  { %v2416_v50 = vadd.f32 %v2199_v41, %v7152_v60  ;;  %v5783_v55 = vmul.f32 -1.442695, %v2415_v27  ;;  %v2418_v39 = vadd.f32 %v2270_v54, %v7242_v32  ;;  %v5785_v14 = vmul.f32 -1.442695, %v2417_v44 }
 0x3a5   :  { %v534_v60 = vadd.f32 %v7642_v46, %v7713_v36 }
 0x3a6   :  { %v5784_v43 = vmul.f32 -1.442695, %v2416_v50  ;;  %5941 = vpow2.f32 %v5783_v55  ;;  %v5786_v16 = vmul.f32 -1.442695, %v2418_v39 }
 0x3a7   :  { %5943 = vpow2.f32 %v5785_v14 }
 0x3a8   :  { %5945 = vpow2.f32 %v5784_v43 }
 0x3a9   :  { %5947 = vpow2.f32 %v5786_v16 }
 0x3b3   :  { %v5942_v51 = vpop.eup %5941 }
 0x3b4   :  { %v5944_v26 = vpop.eup %5943  ;;  %v2429_v53 = vadd.f32 1.0, %v5942_v51 }
 0x3b5   :  { %v5946_v45 = vpop.eup %5945  ;;  %v2441_v57 = vadd.f32 1.0, %v5944_v26 }
 0x3b6   :  { %v5948_v56 = vpop.eup %5947  ;;  %v2430_v6 = vadd.f32 1.0, %v5946_v45  ;;  %5949 = vrcp.f32 %v2429_v53 }
 0x3b7   :  { %v2442_v31 = vadd.f32 1.0, %v5948_v56  ;;  %5951 = vrcp.f32 %v2441_v57  ;;  %v2615_v57 = vld [vmem:[%s13063_s2 + $0x3f0] sm:$0xff] }
 0x3b8   :  { %5953 = vrcp.f32 %v2430_v6  ;;  %v2606_v6 = vld [vmem:[%s13063_s2 + $0x3a8] sm:$0xff] }
 0x3c3   :  { %v5950_v20 = vpop.eup %5949 }
 0x3c4   :  { %v5952_v10 = vpop.eup %5951 }
 0x3c5   :  { %v5954_v9 = vpop.eup %5953 }
 0x3e2   :  { %v2339_v32 = vpop.f32.mrf.mxu0  ;;  %v2410_v19 = vpop.f32.mrf.mxu1 }
 0x3e3   :  { %v2419_v48 = vadd.f32 %v2339_v32, %v7155_v21  ;;  %v2421_v58 = vadd.f32 %v2410_v19, %v534_v60  ;;  %v2461_v21 = vmul.f32 %v5952_v10, %v8517_v23  ;;  %v2608_v60 = vld [vmem:[%s13063_s2 + $0x3b8] sm:$0xff]  ;;  %v2607_v32 = vld [vmem:[%s13063_s2 + $0x3b0] sm:$0xff]  ;;  %v2598_v19 = vld [vmem:[%s13063_s2 + $0x368] sm:$0xff] }
 0x3e4   :  { %v2341_v52 = vpop.f32.mrf.mxu0  ;;  %v2412_v42 = vpop.f32.mrf.mxu1  ;;  %v2583_v10 = vld [vmem:[%s13063_s2 + $0x2f0] sm:$0xff] }
 0x3e5   :  { %5955 = vtanh.f32 %v2419_v48  ;;  %v5787_v40 = vmul.f32 -1.442695, %v2421_v58  ;;  %v2420_v38 = vadd.f32 %v2341_v52, %v7161_v0  ;;  %v2422_v30 = vadd.f32 %v2412_v42, %v536_v47  ;;  %v2600_v47 = vld [vmem:[%s13063_s2 + $0x378] sm:$0xff]  ;;  %v2597_v48 = vld [vmem:[%s13063_s2 + $0x360] sm:$0xff]  ;;  %v2599_v58 = vld [vmem:[%s13063_s2 + $0x370] sm:$0xff] }
 0x3e6   :  { %5957 = vrcp.f32 %v2442_v31  ;;  %v2605_v31 = vld [vmem:[%s13063_s2 + $0x3a0] sm:$0xff]  ;;  %v2590_v52 = vld [vmem:[%s13063_s2 + $0x328] sm:$0xff]  ;;  %v2592_v42 = vld [vmem:[%s13063_s2 + $0x338] sm:$0xff] }
 0x3e7   :  { %5959 = vpow2.f32 %v5787_v40  ;;  %v5788_v46 = vmul.f32 -1.442695, %v2422_v30  ;;  %v2589_v40 = vld [vmem:[%s13063_s2 + $0x320] sm:$0xff]  ;;  %v2582_v30 = vld [vmem:[%s13063_s2 + $0x2e8] sm:$0xff] }
 0x3e8   :  { %5961 = vtanh.f32 %v2420_v38  ;;  %v2591_v38 = vld [vmem:[%s13063_s2 + $0x330] sm:$0xff] }
 0x3e9   :  { %5963 = vpow2.f32 %v5788_v46  ;;  %v2584_v46 = vld [vmem:[%s13063_s2 + $0x2f8] sm:$0xff] }
 0x3f2   :  { %v5956_v28 = vpop.eup %5955 }
 0x3f3   :  { %v5958_v41 = vpop.eup %5957  ;;  %v2463_v27 = vmul.f32 %v5956_v28, %v5950_v20  ;;  %v2581_v20 = vld [vmem:[%s13063_s2 + $0x2e0] sm:$0xff]  ;;  %v2576_v28 = vld [vmem:[%s13063_s2 + $0x2b8] sm:$0xff] }
 0x3f4   :  { %v5960_v44 = vpop.eup %5959  ;;  %v2462_v39 = vmul.f32 %v5958_v41, %v8521_v5  ;;  %v2613_v5 = vld [vmem:[%s13063_s2 + $0x3e0] sm:$0xff] }
 0x3f5   :  { %v5962_v54 = vpop.eup %5961  ;;  %v9315_v50 = vadd.f32 %v2463_v27, %v2461_v21  ;;  %v2455_v55 = vadd.f32 1.0, %v5960_v44  ;;  %v2573_v41 = vld [vmem:[%s13063_s2 + $0x2a0] sm:$0xff]  ;;  %v2575_v21 = vld [vmem:[%s13063_s2 + $0x2b0] sm:$0xff]  ;;  %v2566_v27 = vld [vmem:[%s13063_s2 + $0x268] sm:$0xff] }
 0x3f6   :  { %v5964_v0 = vpop.eup %5963  ;;  %v2464_v14 = vmul.f32 %v5962_v54, %v5954_v9  ;;  %v2574_v9 = vld [vmem:[%s13063_s2 + $0x2a8] sm:$0xff]  ;;  %v2568_v44 = vld [vmem:[%s13063_s2 + $0x278] sm:$0xff]  ;;  %v2565_v54 = vld [vmem:[%s13063_s2 + $0x260] sm:$0xff] }
 0x3f7   :  { %5965 = vtanh.f32 %v9315_v50  ;;  %v2456_v43 = vadd.f32 1.0, %v5964_v0  ;;  %v2558_v0 = vld [vmem:[%s13063_s2 + $0x228] sm:$0xff] }
 0x3f8   :  { %5967 = vrcp.f32 %v2455_v55  ;;  %v9319_v16 = vadd.f32 %v2464_v14, %v2462_v39  ;;  %v2567_v55 = vld [vmem:[%s13063_s2 + $0x270] sm:$0xff]  ;;  %v2560_v39 = vld [vmem:[%s13063_s2 + $0x238] sm:$0xff]  ;;  %v2557_v14 = vld [vmem:[%s13063_s2 + $0x220] sm:$0xff] }
 0x3f9   :  { %5969 = vrcp.f32 %v2456_v43  ;;  %v2559_v43 = vld [vmem:[%s13063_s2 + $0x230] sm:$0xff] }
 0x3fa   :  { %5971 = vtanh.f32 %v9319_v16 }
 0x404   :  { %v5966_v23 = vpop.eup %5965 }
 0x405   :  { %v5968_v51 = vpop.eup %5967 }
 0x406   :  { %v5970_v26 = vpop.eup %5969  ;;  %v9324_v56 = vmul.f32 %v5968_v51, %v5966_v23  ;;  %v2550_v23 = vld [vmem:[%s13063_s2 + $0x1e8] sm:$0xff]  ;;  %v2552_v51 = vld [vmem:[%s13063_s2 + $0x1f8] sm:$0xff] }
 0x407   :  { %v5972_v45 = vpop.eup %5971 }
 0x408   :  { %v9322_v53 = vmul.f32 %v5972_v45, %v5970_v26  ;;  %v2549_v26 = vld [vmem:[%s13063_s2 + $0x1e0] sm:$0xff]  ;;  %v2551_v45 = vld [vmem:[%s13063_s2 + $0x1f0] sm:$0xff] }
 0x40a   :  { %2809 = vmatprep.mubr.f32.mxu0 %v9322_v53  ;;  %2880 = vmatprep.mubr.f32.mxu1 %v9322_v53 }
 0x40b   :  { %2810 = vmatmul.mubr.f32.vlgmr.msra.gmra.mxu0 %v9324_v56  ;;  %2881 = vmatmul.mubr.f32.vlgmr.msra.gmra.mxu1 %v9324_v56 }
 0x40c   :  { %2888 = vmatpush1.msra.mxu0 %v2613_v5  ;;  %2959 = vmatpush1.msra.mxu1 %v2615_v57  ;;  %v2542_v5 = vld [vmem:[%s13063_s2 + $0x1a8] sm:$0xff]  ;;  %v2544_v57 = vld [vmem:[%s13063_s2 + $0x1b8] sm:$0xff] }
 0x40d   :  { %2889 = vmatprep.subr.mxu0 %v2606_v6  ;;  %2951 = vmatprep.mubr.f32.mxu0 %v9322_v53  ;;  %v2541_v6 = vld [vmem:[%s13063_s2 + $0x1a0] sm:$0xff] }
 0x40e   :  { %2960 = vmatprep.subr.mxu1 %v2608_v60  ;;  %3022 = vmatprep.mubr.f32.mxu1 %v9322_v53  ;;  %v2543_v60 = vld [vmem:[%s13063_s2 + $0x1b0] sm:$0xff] }
 0x40f   :  { %2890 = vmatpush1.msra.mxu0 %v2605_v31  ;;  %2961 = vmatpush1.msra.mxu1 %v2607_v32  ;;  %v2534_v31 = vld [vmem:[%s13063_s2 + $0x168] sm:$0xff]  ;;  %v2536_v32 = vld [vmem:[%s13063_s2 + $0x178] sm:$0xff] }
 0x410   :  { %2891 = vmatprep.subr.mxu0 %v2598_v19  ;;  %2962 = vmatprep.subr.mxu1 %v2600_v47  ;;  %v2533_v19 = vld [vmem:[%s13063_s2 + $0x160] sm:$0xff]  ;;  %v2535_v47 = vld [vmem:[%s13063_s2 + $0x170] sm:$0xff] }
 0x411   :  { %2892 = vmatpush1.msra.mxu0 %v2597_v48  ;;  %2963 = vmatpush1.msra.mxu1 %v2599_v58  ;;  %v2526_v48 = vld [vmem:[%s13063_s2 + $0x128] sm:$0xff]  ;;  %v2528_v58 = vld [vmem:[%s13063_s2 + $0x138] sm:$0xff] }
 0x412   :  { %2893 = vmatprep.subr.mxu0 %v2590_v52  ;;  %2964 = vmatprep.subr.mxu1 %v2592_v42  ;;  %v2525_v52 = vld [vmem:[%s13063_s2 + $0x120] sm:$0xff]  ;;  %v2527_v42 = vld [vmem:[%s13063_s2 + $0x130] sm:$0xff] }
 0x413   :  { %2894 = vmatpush1.msra.mxu0 %v2589_v40  ;;  %2965 = vmatpush1.msra.mxu1 %v2591_v38  ;;  %v2518_v40 = vld [vmem:[%s13063_s2 + $0xe8] sm:$0xff]  ;;  %v2520_v38 = vld [vmem:[%s13063_s2 + $0xf8] sm:$0xff] }
 0x414   :  { %2895 = vmatprep.subr.mxu0 %v2582_v30  ;;  %2966 = vmatprep.subr.mxu1 %v2584_v46  ;;  %v2517_v30 = vld [vmem:[%s13063_s2 + $0xe0] sm:$0xff]  ;;  %v2519_v46 = vld [vmem:[%s13063_s2 + $0xf0] sm:$0xff] }
 0x415   :  { %2896 = vmatpush1.msra.mxu0 %v2581_v20  ;;  %2967 = vmatpush1.msra.mxu1 %v2583_v10  ;;  %v2510_v20 = vld [vmem:[%s13063_s2 + $0xa8] sm:$0xff]  ;;  %v2512_v10 = vld [vmem:[%s13063_s2 + $0xb8] sm:$0xff] }
 0x416   :  { %2897 = vmatprep.subr.mxu0 %v2574_v9  ;;  %2968 = vmatprep.subr.mxu1 %v2576_v28  ;;  %v2509_v9 = vld [vmem:[%s13063_s2 + $0xa0] sm:$0xff]  ;;  %v2511_v28 = vld [vmem:[%s13063_s2 + $0xb0] sm:$0xff] }
 0x417   :  { %2898 = vmatpush1.msra.mxu0 %v2573_v41  ;;  %2969 = vmatpush1.msra.mxu1 %v2575_v21  ;;  %v2502_v41 = vld [vmem:[%s13063_s2 + $0x68] sm:$0xff]  ;;  %v2504_v21 = vld [vmem:[%s13063_s2 + $0x78] sm:$0xff] }
 0x418   :  { %2899 = vmatprep.subr.mxu0 %v2566_v27  ;;  %2970 = vmatprep.subr.mxu1 %v2568_v44  ;;  %v2501_v27 = vld [vmem:[%s13063_s2 + $0x60] sm:$0xff]  ;;  %v2503_v44 = vld [vmem:[%s13063_s2 + $0x70] sm:$0xff] }
 0x419   :  { %2900 = vmatpush1.msra.mxu0 %v2565_v54  ;;  %2971 = vmatpush1.msra.mxu1 %v2567_v55  ;;  %v2494_v54 = vld [vmem:[%s13063_s2 + $0x28] sm:$0xff]  ;;  %v2496_v55 = vld [vmem:[%s13063_s2 + $0x38] sm:$0xff] }
 0x41a   :  { %2901 = vmatprep.subr.mxu0 %v2558_v0  ;;  %2972 = vmatprep.subr.mxu1 %v2560_v39  ;;  %v2493_v0 = vld [vmem:[%s13063_s2 + $0x20] sm:$0xff]  ;;  %v2495_v39 = vld [vmem:[%s13063_s2 + $0x30] sm:$0xff] }
 0x41b   :  { %2902 = vmatpush1.msra.mxu0 %v2557_v14  ;;  %2973 = vmatpush1.msra.mxu1 %v2559_v43  ;;  %v2742_v14 = vld [vmem:[%s13063_s2 + $0x7e8] sm:$0xff]  ;;  %v2744_v43 = vld [vmem:[%s13063_s2 + $0x7f8] sm:$0xff] }
 0x41c   :  { %2903 = vmatprep.subr.mxu0 %v2550_v23  ;;  %2974 = vmatprep.subr.mxu1 %v2552_v51  ;;  %v2741_v23 = vld [vmem:[%s13063_s2 + $0x7e0] sm:$0xff]  ;;  %v2743_v51 = vld [vmem:[%s13063_s2 + $0x7f0] sm:$0xff] }
 0x41d   :  { %2904 = vmatpush1.msra.mxu0 %v2549_v26  ;;  %2975 = vmatpush1.msra.mxu1 %v2551_v45  ;;  %v2734_v26 = vld [vmem:[%s13063_s2 + $0x7a8] sm:$0xff]  ;;  %v2736_v45 = vld [vmem:[%s13063_s2 + $0x7b8] sm:$0xff] }
 0x41e   :  { %2905 = vmatprep.subr.mxu0 %v2542_v5  ;;  %2976 = vmatprep.subr.mxu1 %v2544_v57  ;;  %v2733_v5 = vld [vmem:[%s13063_s2 + $0x7a0] sm:$0xff]  ;;  %v2735_v57 = vld [vmem:[%s13063_s2 + $0x7b0] sm:$0xff] }
 0x41f   :  { %2906 = vmatpush1.msra.mxu0 %v2541_v6  ;;  %2977 = vmatpush1.msra.mxu1 %v2543_v60  ;;  %v2726_v6 = vld [vmem:[%s13063_s2 + $0x768] sm:$0xff]  ;;  %v2728_v60 = vld [vmem:[%s13063_s2 + $0x778] sm:$0xff] }
 0x420   :  { %2907 = vmatprep.subr.mxu0 %v2534_v31  ;;  %2978 = vmatprep.subr.mxu1 %v2536_v32  ;;  %v2725_v31 = vld [vmem:[%s13063_s2 + $0x760] sm:$0xff]  ;;  %v2727_v32 = vld [vmem:[%s13063_s2 + $0x770] sm:$0xff] }
 0x421   :  { %2908 = vmatpush1.msra.mxu0 %v2533_v19  ;;  %2979 = vmatpush1.msra.mxu1 %v2535_v47  ;;  %v2718_v19 = vld [vmem:[%s13063_s2 + $0x728] sm:$0xff]  ;;  %v2720_v47 = vld [vmem:[%s13063_s2 + $0x738] sm:$0xff] }
 0x422   :  { %2909 = vmatprep.subr.mxu0 %v2526_v48  ;;  %2980 = vmatprep.subr.mxu1 %v2528_v58  ;;  %v2717_v48 = vld [vmem:[%s13063_s2 + $0x720] sm:$0xff]  ;;  %v2719_v58 = vld [vmem:[%s13063_s2 + $0x730] sm:$0xff] }
 0x423   :  { %2910 = vmatpush1.msra.mxu0 %v2525_v52  ;;  %2981 = vmatpush1.msra.mxu1 %v2527_v42  ;;  %v2710_v52 = vld [vmem:[%s13063_s2 + $0x6e8] sm:$0xff]  ;;  %v2712_v42 = vld [vmem:[%s13063_s2 + $0x6f8] sm:$0xff] }
 0x424   :  { %2911 = vmatprep.subr.mxu0 %v2518_v40  ;;  %2982 = vmatprep.subr.mxu1 %v2520_v38  ;;  %v2709_v40 = vld [vmem:[%s13063_s2 + $0x6e0] sm:$0xff]  ;;  %v2711_v38 = vld [vmem:[%s13063_s2 + $0x6f0] sm:$0xff] }
 0x425   :  { %2912 = vmatpush1.msra.mxu0 %v2517_v30  ;;  %2983 = vmatpush1.msra.mxu1 %v2519_v46  ;;  %v2702_v30 = vld [vmem:[%s13063_s2 + $0x6a8] sm:$0xff]  ;;  %v2704_v46 = vld [vmem:[%s13063_s2 + $0x6b8] sm:$0xff] }
 0x426   :  { %2913 = vmatprep.subr.mxu0 %v2510_v20  ;;  %2984 = vmatprep.subr.mxu1 %v2512_v10  ;;  %v2701_v20 = vld [vmem:[%s13063_s2 + $0x6a0] sm:$0xff]  ;;  %v2703_v10 = vld [vmem:[%s13063_s2 + $0x6b0] sm:$0xff] }
 0x427   :  { %2914 = vmatpush1.msra.mxu0 %v2509_v9  ;;  %2985 = vmatpush1.msra.mxu1 %v2511_v28  ;;  %v2694_v9 = vld [vmem:[%s13063_s2 + $0x668] sm:$0xff]  ;;  %v2696_v28 = vld [vmem:[%s13063_s2 + $0x678] sm:$0xff] }
 0x428   :  { %2915 = vmatprep.subr.mxu0 %v2502_v41  ;;  %2986 = vmatprep.subr.mxu1 %v2504_v21  ;;  %v2693_v41 = vld [vmem:[%s13063_s2 + $0x660] sm:$0xff]  ;;  %v2695_v21 = vld [vmem:[%s13063_s2 + $0x670] sm:$0xff] }
 0x429   :  { %2916 = vmatpush1.msra.mxu0 %v2501_v27  ;;  %2987 = vmatpush1.msra.mxu1 %v2503_v44  ;;  %v2686_v27 = vld [vmem:[%s13063_s2 + $0x628] sm:$0xff]  ;;  %v2688_v44 = vld [vmem:[%s13063_s2 + $0x638] sm:$0xff] }
 0x42a   :  { %2917 = vmatprep.subr.mxu0 %v2494_v54  ;;  %2988 = vmatprep.subr.mxu1 %v2496_v55  ;;  %v2685_v54 = vld [vmem:[%s13063_s2 + $0x620] sm:$0xff]  ;;  %v2687_v55 = vld [vmem:[%s13063_s2 + $0x630] sm:$0xff] }
 0x42b   :  { %2918 = vmatpush1.msra.mxu0 %v2493_v0  ;;  %2989 = vmatpush1.msra.mxu1 %v2495_v39  ;;  %v2678_v0 = vld [vmem:[%s13063_s2 + $0x5e8] sm:$0xff]  ;;  %v2680_v39 = vld [vmem:[%s13063_s2 + $0x5f8] sm:$0xff] }
 0x42c   :  { %2919 = vmatprep.subr.mxu0 %v2742_v14  ;;  %2990 = vmatprep.subr.mxu1 %v2744_v43  ;;  %v2677_v14 = vld [vmem:[%s13063_s2 + $0x5e0] sm:$0xff]  ;;  %v2679_v43 = vld [vmem:[%s13063_s2 + $0x5f0] sm:$0xff] }
 0x42d   :  { %2920 = vmatpush2.msra.mxu0 %v2741_v23  ;;  %2991 = vmatpush2.msra.mxu1 %v2743_v51  ;;  %v2670_v23 = vld [vmem:[%s13063_s2 + $0x5a8] sm:$0xff]  ;;  %v2672_v51 = vld [vmem:[%s13063_s2 + $0x5b8] sm:$0xff] }
 0x42e   :  { %2921 = vmatprep.subr.mxu0 %v2734_v26  ;;  %2992 = vmatprep.subr.mxu1 %v2736_v45  ;;  %v2669_v26 = vld [vmem:[%s13063_s2 + $0x5a0] sm:$0xff]  ;;  %v2671_v45 = vld [vmem:[%s13063_s2 + $0x5b0] sm:$0xff] }
 0x42f   :  { %2922 = vmatpush2.msra.mxu0 %v2733_v5  ;;  %2993 = vmatpush2.msra.mxu1 %v2735_v57  ;;  %v2662_v5 = vld [vmem:[%s13063_s2 + $0x568] sm:$0xff]  ;;  %v2664_v57 = vld [vmem:[%s13063_s2 + $0x578] sm:$0xff] }
 0x430   :  { %2923 = vmatprep.subr.mxu0 %v2726_v6  ;;  %2994 = vmatprep.subr.mxu1 %v2728_v60  ;;  %v2661_v6 = vld [vmem:[%s13063_s2 + $0x560] sm:$0xff]  ;;  %v2663_v60 = vld [vmem:[%s13063_s2 + $0x570] sm:$0xff] }
 0x431   :  { %2924 = vmatpush2.msra.mxu0 %v2725_v31  ;;  %2995 = vmatpush2.msra.mxu1 %v2727_v32  ;;  %v2654_v31 = vld [vmem:[%s13063_s2 + $0x528] sm:$0xff]  ;;  %v2656_v32 = vld [vmem:[%s13063_s2 + $0x538] sm:$0xff] }
 0x432   :  { %2925 = vmatprep.subr.mxu0 %v2718_v19  ;;  %2996 = vmatprep.subr.mxu1 %v2720_v47  ;;  %v2653_v19 = vld [vmem:[%s13063_s2 + $0x520] sm:$0xff]  ;;  %v2655_v47 = vld [vmem:[%s13063_s2 + $0x530] sm:$0xff] }
 0x433   :  { %2926 = vmatpush2.msra.mxu0 %v2717_v48  ;;  %2997 = vmatpush2.msra.mxu1 %v2719_v58  ;;  %v2646_v48 = vld [vmem:[%s13063_s2 + $0x4e8] sm:$0xff]  ;;  %v2648_v58 = vld [vmem:[%s13063_s2 + $0x4f8] sm:$0xff] }
 0x434   :  { %2927 = vmatprep.subr.mxu0 %v2710_v52  ;;  %2998 = vmatprep.subr.mxu1 %v2712_v42  ;;  %v2645_v52 = vld [vmem:[%s13063_s2 + $0x4e0] sm:$0xff]  ;;  %v2647_v42 = vld [vmem:[%s13063_s2 + $0x4f0] sm:$0xff] }
 0x435   :  { %2928 = vmatpush2.msra.mxu0 %v2709_v40  ;;  %2999 = vmatpush2.msra.mxu1 %v2711_v38  ;;  %v2638_v40 = vld [vmem:[%s13063_s2 + $0x4a8] sm:$0xff]  ;;  %v2640_v38 = vld [vmem:[%s13063_s2 + $0x4b8] sm:$0xff] }
 0x436   :  { %2929 = vmatprep.subr.mxu0 %v2702_v30  ;;  %3000 = vmatprep.subr.mxu1 %v2704_v46  ;;  %v2637_v30 = vld [vmem:[%s13063_s2 + $0x4a0] sm:$0xff]  ;;  %v2639_v46 = vld [vmem:[%s13063_s2 + $0x4b0] sm:$0xff] }
 0x437   :  { %2930 = vmatpush2.msra.mxu0 %v2701_v20  ;;  %3001 = vmatpush2.msra.mxu1 %v2703_v10  ;;  %v2630_v20 = vld [vmem:[%s13063_s2 + $0x468] sm:$0xff]  ;;  %v2632_v10 = vld [vmem:[%s13063_s2 + $0x478] sm:$0xff] }
 0x438   :  { %2931 = vmatprep.subr.mxu0 %v2694_v9  ;;  %3002 = vmatprep.subr.mxu1 %v2696_v28  ;;  %v2629_v9 = vld [vmem:[%s13063_s2 + $0x460] sm:$0xff]  ;;  %v2631_v28 = vld [vmem:[%s13063_s2 + $0x470] sm:$0xff] }
 0x439   :  { %2932 = vmatpush2.msra.mxu0 %v2693_v41  ;;  %3003 = vmatpush2.msra.mxu1 %v2695_v21  ;;  %v2622_v41 = vld [vmem:[%s13063_s2 + $0x428] sm:$0xff]  ;;  %v2624_v21 = vld [vmem:[%s13063_s2 + $0x438] sm:$0xff] }
 0x43a   :  { %2933 = vmatprep.subr.mxu0 %v2686_v27  ;;  %3004 = vmatprep.subr.mxu1 %v2688_v44  ;;  %v2621_v27 = vld [vmem:[%s13063_s2 + $0x420] sm:$0xff]  ;;  %v2623_v44 = vld [vmem:[%s13063_s2 + $0x430] sm:$0xff] }
 0x43b   :  { %2934 = vmatpush2.msra.mxu0 %v2685_v54  ;;  %3005 = vmatpush2.msra.mxu1 %v2687_v55  ;;  %v3224_v54 = vld [vmem:[%s13063_s2 + $0x3c8] sm:$0xff]  ;;  %v3226_v55 = vld [vmem:[%s13063_s2 + $0x3d8] sm:$0xff] }
 0x43c   :  { %2935 = vmatprep.subr.mxu0 %v2678_v0  ;;  %3006 = vmatprep.subr.mxu1 %v2680_v39  ;;  %v3223_v0 = vld [vmem:[%s13063_s2 + $0x3c0] sm:$0xff]  ;;  %v3225_v39 = vld [vmem:[%s13063_s2 + $0x3d0] sm:$0xff] }
 0x43d   :  { %2936 = vmatpush2.msra.mxu0 %v2677_v14  ;;  %3007 = vmatpush2.msra.mxu1 %v2679_v43  ;;  %v3216_v14 = vld [vmem:[%s13063_s2 + $0x388] sm:$0xff]  ;;  %v3218_v43 = vld [vmem:[%s13063_s2 + $0x398] sm:$0xff] }
 0x43e   :  { %2937 = vmatprep.subr.mxu0 %v2670_v23  ;;  %3008 = vmatprep.subr.mxu1 %v2672_v51  ;;  %v3215_v23 = vld [vmem:[%s13063_s2 + $0x380] sm:$0xff]  ;;  %v3217_v51 = vld [vmem:[%s13063_s2 + $0x390] sm:$0xff] }
 0x43f   :  { %2938 = vmatpush2.msra.mxu0 %v2669_v26  ;;  %3009 = vmatpush2.msra.mxu1 %v2671_v45  ;;  %v3208_v26 = vld [vmem:[%s13063_s2 + $0x348] sm:$0xff]  ;;  %v3210_v45 = vld [vmem:[%s13063_s2 + $0x358] sm:$0xff] }
 0x440   :  { %2939 = vmatprep.subr.mxu0 %v2662_v5  ;;  %3010 = vmatprep.subr.mxu1 %v2664_v57  ;;  %v3207_v5 = vld [vmem:[%s13063_s2 + $0x340] sm:$0xff]  ;;  %v3209_v57 = vld [vmem:[%s13063_s2 + $0x350] sm:$0xff] }
 0x441   :  { %2940 = vmatpush2.msra.mxu0 %v2661_v6  ;;  %3011 = vmatpush2.msra.mxu1 %v2663_v60  ;;  %v3200_v6 = vld [vmem:[%s13063_s2 + $0x308] sm:$0xff]  ;;  %v3202_v60 = vld [vmem:[%s13063_s2 + $0x318] sm:$0xff] }
 0x442   :  { %2941 = vmatprep.subr.mxu0 %v2654_v31  ;;  %3012 = vmatprep.subr.mxu1 %v2656_v32  ;;  %v3199_v31 = vld [vmem:[%s13063_s2 + $0x300] sm:$0xff]  ;;  %v3201_v32 = vld [vmem:[%s13063_s2 + $0x310] sm:$0xff] }
 0x443   :  { %2942 = vmatpush2.msra.mxu0 %v2653_v19  ;;  %3013 = vmatpush2.msra.mxu1 %v2655_v47  ;;  %v3192_v19 = vld [vmem:[%s13063_s2 + $0x2c8] sm:$0xff]  ;;  %v3194_v47 = vld [vmem:[%s13063_s2 + $0x2d8] sm:$0xff] }
 0x444   :  { %2943 = vmatprep.subr.mxu0 %v2646_v48  ;;  %3014 = vmatprep.subr.mxu1 %v2648_v58  ;;  %v3191_v48 = vld [vmem:[%s13063_s2 + $0x2c0] sm:$0xff]  ;;  %v3193_v58 = vld [vmem:[%s13063_s2 + $0x2d0] sm:$0xff] }
 0x445   :  { %2944 = vmatpush2.msra.mxu0 %v2645_v52  ;;  %3015 = vmatpush2.msra.mxu1 %v2647_v42  ;;  %v3184_v52 = vld [vmem:[%s13063_s2 + $0x288] sm:$0xff]  ;;  %v3186_v42 = vld [vmem:[%s13063_s2 + $0x298] sm:$0xff] }
 0x446   :  { %2945 = vmatprep.subr.mxu0 %v2638_v40  ;;  %3016 = vmatprep.subr.mxu1 %v2640_v38  ;;  %v3183_v40 = vld [vmem:[%s13063_s2 + $0x280] sm:$0xff]  ;;  %v3185_v38 = vld [vmem:[%s13063_s2 + $0x290] sm:$0xff] }
 0x447   :  { %2946 = vmatpush2.msra.mxu0 %v2637_v30  ;;  %3017 = vmatpush2.msra.mxu1 %v2639_v46  ;;  %v3176_v30 = vld [vmem:[%s13063_s2 + $0x248] sm:$0xff]  ;;  %v3178_v46 = vld [vmem:[%s13063_s2 + $0x258] sm:$0xff] }
 0x448   :  { %2947 = vmatprep.subr.mxu0 %v2630_v20  ;;  %3018 = vmatprep.subr.mxu1 %v2632_v10  ;;  %v3175_v20 = vld [vmem:[%s13063_s2 + $0x240] sm:$0xff]  ;;  %v3177_v10 = vld [vmem:[%s13063_s2 + $0x250] sm:$0xff] }
 0x449   :  { %2948 = vmatpush2.msra.mxu0 %v2629_v9  ;;  %3019 = vmatpush2.msra.mxu1 %v2631_v28  ;;  %v3168_v9 = vld [vmem:[%s13063_s2 + $0x208] sm:$0xff]  ;;  %v3170_v28 = vld [vmem:[%s13063_s2 + $0x218] sm:$0xff] }
 0x44a   :  { %2949 = vmatprep.subr.mxu0 %v2622_v41  ;;  %3020 = vmatprep.subr.mxu1 %v2624_v21  ;;  %v3167_v41 = vld [vmem:[%s13063_s2 + $0x200] sm:$0xff]  ;;  %v3169_v21 = vld [vmem:[%s13063_s2 + $0x210] sm:$0xff] }
 0x44b   :  { %2950 = vmatpush2.msra.mxu0 %v2621_v27  ;;  %3021 = vmatpush2.msra.mxu1 %v2623_v44  ;;  %v3160_v27 = vld [vmem:[%s13063_s2 + $0x1c8] sm:$0xff]  ;;  %v3162_v44 = vld [vmem:[%s13063_s2 + $0x1d8] sm:$0xff] }
 0x44c   :  { %2952 = vmatmul.mubr.f32.vlgmr.msra.gmra.mxu0 %v9324_v56  ;;  %3023 = vmatmul.mubr.f32.vlgmr.msra.gmra.mxu1 %v9324_v56 }
 0x44d   :  { %3359 = vmatprep.subr.mxu0 %v3224_v54  ;;  %3430 = vmatprep.subr.mxu1 %v3226_v55  ;;  %v3159_v54 = vld [vmem:[%s13063_s2 + $0x1c0] sm:$0xff]  ;;  %v3161_v55 = vld [vmem:[%s13063_s2 + $0x1d0] sm:$0xff] }
 0x44e   :  { %3360 = vmatpush1.msra.mxu0 %v3223_v0  ;;  %3431 = vmatpush1.msra.mxu1 %v3225_v39  ;;  %v3152_v0 = vld [vmem:[%s13063_s2 + $0x188] sm:$0xff]  ;;  %v3154_v39 = vld [vmem:[%s13063_s2 + $0x198] sm:$0xff] }
 0x44f   :  { %3361 = vmatprep.subr.mxu0 %v3216_v14  ;;  %3432 = vmatprep.subr.mxu1 %v3218_v43  ;;  %v3151_v14 = vld [vmem:[%s13063_s2 + $0x180] sm:$0xff]  ;;  %v3153_v43 = vld [vmem:[%s13063_s2 + $0x190] sm:$0xff] }
 0x450   :  { %3362 = vmatpush1.msra.mxu0 %v3215_v23  ;;  %3433 = vmatpush1.msra.mxu1 %v3217_v51  ;;  %v3144_v23 = vld [vmem:[%s13063_s2 + $0x148] sm:$0xff]  ;;  %v3146_v51 = vld [vmem:[%s13063_s2 + $0x158] sm:$0xff] }
 0x451   :  { %3363 = vmatprep.subr.mxu0 %v3208_v26  ;;  %3434 = vmatprep.subr.mxu1 %v3210_v45  ;;  %v3143_v26 = vld [vmem:[%s13063_s2 + $0x140] sm:$0xff]  ;;  %v3145_v45 = vld [vmem:[%s13063_s2 + $0x150] sm:$0xff] }
 0x452   :  { %3364 = vmatpush1.msra.mxu0 %v3207_v5  ;;  %3435 = vmatpush1.msra.mxu1 %v3209_v57  ;;  %v3136_v5 = vld [vmem:[%s13063_s2 + $0x108] sm:$0xff]  ;;  %v3138_v57 = vld [vmem:[%s13063_s2 + $0x118] sm:$0xff] }
 0x453   :  { %3365 = vmatprep.subr.mxu0 %v3200_v6  ;;  %3436 = vmatprep.subr.mxu1 %v3202_v60  ;;  %v3135_v6 = vld [vmem:[%s13063_s2 + $0x100] sm:$0xff]  ;;  %v3137_v60 = vld [vmem:[%s13063_s2 + $0x110] sm:$0xff] }
 0x454   :  { %3366 = vmatpush1.msra.mxu0 %v3199_v31  ;;  %3437 = vmatpush1.msra.mxu1 %v3201_v32  ;;  %v3128_v31 = vld [vmem:[%s13063_s2 + $0xc8] sm:$0xff]  ;;  %v3130_v32 = vld [vmem:[%s13063_s2 + $0xd8] sm:$0xff] }
 0x455   :  { %3367 = vmatprep.subr.mxu0 %v3192_v19  ;;  %3438 = vmatprep.subr.mxu1 %v3194_v47  ;;  %v3127_v19 = vld [vmem:[%s13063_s2 + $0xc0] sm:$0xff]  ;;  %v3129_v47 = vld [vmem:[%s13063_s2 + $0xd0] sm:$0xff] }
 0x456   :  { %3368 = vmatpush1.msra.mxu0 %v3191_v48  ;;  %3439 = vmatpush1.msra.mxu1 %v3193_v58  ;;  %v3120_v48 = vld [vmem:[%s13063_s2 + $0x88] sm:$0xff]  ;;  %v3122_v58 = vld [vmem:[%s13063_s2 + $0x98] sm:$0xff] }
 0x457   :  { %3369 = vmatprep.subr.mxu0 %v3184_v52  ;;  %3440 = vmatprep.subr.mxu1 %v3186_v42  ;;  %v3119_v52 = vld [vmem:[%s13063_s2 + $0x80] sm:$0xff]  ;;  %v3121_v42 = vld [vmem:[%s13063_s2 + $0x90] sm:$0xff] }
 0x458   :  { %3370 = vmatpush1.msra.mxu0 %v3183_v40  ;;  %3441 = vmatpush1.msra.mxu1 %v3185_v38  ;;  %v3112_v40 = vld [vmem:[%s13063_s2 + $0x48] sm:$0xff]  ;;  %v3114_v38 = vld [vmem:[%s13063_s2 + $0x58] sm:$0xff] }
 0x459   :  { %3371 = vmatprep.subr.mxu0 %v3176_v30  ;;  %3442 = vmatprep.subr.mxu1 %v3178_v46  ;;  %v3111_v30 = vld [vmem:[%s13063_s2 + $0x40] sm:$0xff]  ;;  %v3113_v46 = vld [vmem:[%s13063_s2 + $0x50] sm:$0xff] }
 0x45a   :  { %3372 = vmatpush1.msra.mxu0 %v3175_v20  ;;  %3443 = vmatpush1.msra.mxu1 %v3177_v10  ;;  %v3104_v20 = vld [vmem:[%s13063_s2 + $0x8] sm:$0xff]  ;;  %v3106_v10 = vld [vmem:[%s13063_s2 + $0x18] sm:$0xff] }
 0x45b   :  { %3373 = vmatprep.subr.mxu0 %v3168_v9  ;;  %3444 = vmatprep.subr.mxu1 %v3170_v28  ;;  %v3103_v9 = vld [vmem:[%s13063_s2] sm:$0xff]  ;;  %v3105_v28 = vld [vmem:[%s13063_s2 + $0x10] sm:$0xff] }
 0x45c   :  { %3374 = vmatpush1.msra.mxu0 %v3167_v41  ;;  %3445 = vmatpush1.msra.mxu1 %v3169_v21  ;;  %v3352_v41 = vld [vmem:[%s13063_s2 + $0x7c8] sm:$0xff]  ;;  %v3354_v21 = vld [vmem:[%s13063_s2 + $0x7d8] sm:$0xff] }
 0x45d   :  { %3375 = vmatprep.subr.mxu0 %v3160_v27  ;;  %3446 = vmatprep.subr.mxu1 %v3162_v44  ;;  %v3351_v27 = vld [vmem:[%s13063_s2 + $0x7c0] sm:$0xff]  ;;  %v3353_v44 = vld [vmem:[%s13063_s2 + $0x7d0] sm:$0xff] }
 0x45e   :  { %3376 = vmatpush1.msra.mxu0 %v3159_v54  ;;  %3447 = vmatpush1.msra.mxu1 %v3161_v55  ;;  %v3344_v54 = vld [vmem:[%s13063_s2 + $0x788] sm:$0xff]  ;;  %v3346_v55 = vld [vmem:[%s13063_s2 + $0x798] sm:$0xff] }
 0x45f   :  { %3377 = vmatprep.subr.mxu0 %v3152_v0  ;;  %3448 = vmatprep.subr.mxu1 %v3154_v39  ;;  %v3343_v0 = vld [vmem:[%s13063_s2 + $0x780] sm:$0xff]  ;;  %v3345_v39 = vld [vmem:[%s13063_s2 + $0x790] sm:$0xff] }
 0x460   :  { %3378 = vmatpush1.msra.mxu0 %v3151_v14  ;;  %3449 = vmatpush1.msra.mxu1 %v3153_v43  ;;  %v3336_v14 = vld [vmem:[%s13063_s2 + $0x748] sm:$0xff]  ;;  %v3338_v43 = vld [vmem:[%s13063_s2 + $0x758] sm:$0xff] }
 0x461   :  { %3379 = vmatprep.subr.mxu0 %v3144_v23  ;;  %3450 = vmatprep.subr.mxu1 %v3146_v51  ;;  %v3335_v23 = vld [vmem:[%s13063_s2 + $0x740] sm:$0xff]  ;;  %v3337_v51 = vld [vmem:[%s13063_s2 + $0x750] sm:$0xff] }
 0x462   :  { %3380 = vmatpush1.msra.mxu0 %v3143_v26  ;;  %3451 = vmatpush1.msra.mxu1 %v3145_v45  ;;  %v3328_v26 = vld [vmem:[%s13063_s2 + $0x708] sm:$0xff]  ;;  %v3330_v45 = vld [vmem:[%s13063_s2 + $0x718] sm:$0xff] }
 0x463   :  { %3381 = vmatprep.subr.mxu0 %v3136_v5  ;;  %3452 = vmatprep.subr.mxu1 %v3138_v57  ;;  %v3327_v5 = vld [vmem:[%s13063_s2 + $0x700] sm:$0xff]  ;;  %v3329_v57 = vld [vmem:[%s13063_s2 + $0x710] sm:$0xff] }
 0x464   :  { %3382 = vmatpush1.msra.mxu0 %v3135_v6  ;;  %3453 = vmatpush1.msra.mxu1 %v3137_v60  ;;  %v3320_v6 = vld [vmem:[%s13063_s2 + $0x6c8] sm:$0xff]  ;;  %v3322_v60 = vld [vmem:[%s13063_s2 + $0x6d8] sm:$0xff] }
 0x465   :  { %3383 = vmatprep.subr.mxu0 %v3128_v31  ;;  %3454 = vmatprep.subr.mxu1 %v3130_v32  ;;  %v3319_v31 = vld [vmem:[%s13063_s2 + $0x6c0] sm:$0xff]  ;;  %v3321_v32 = vld [vmem:[%s13063_s2 + $0x6d0] sm:$0xff] }
 0x466   :  { %3384 = vmatpush1.msra.mxu0 %v3127_v19  ;;  %3455 = vmatpush1.msra.mxu1 %v3129_v47  ;;  %v3312_v19 = vld [vmem:[%s13063_s2 + $0x688] sm:$0xff]  ;;  %v3314_v47 = vld [vmem:[%s13063_s2 + $0x698] sm:$0xff] }
 0x467   :  { %3385 = vmatprep.subr.mxu0 %v3120_v48  ;;  %3456 = vmatprep.subr.mxu1 %v3122_v58  ;;  %v3311_v48 = vld [vmem:[%s13063_s2 + $0x680] sm:$0xff]  ;;  %v3313_v58 = vld [vmem:[%s13063_s2 + $0x690] sm:$0xff] }
 0x468   :  { %3386 = vmatpush1.msra.mxu0 %v3119_v52  ;;  %3457 = vmatpush1.msra.mxu1 %v3121_v42  ;;  %v3304_v52 = vld [vmem:[%s13063_s2 + $0x648] sm:$0xff]  ;;  %v3306_v42 = vld [vmem:[%s13063_s2 + $0x658] sm:$0xff] }
 0x469   :  { %3387 = vmatprep.subr.mxu0 %v3112_v40  ;;  %3458 = vmatprep.subr.mxu1 %v3114_v38  ;;  %v3303_v40 = vld [vmem:[%s13063_s2 + $0x640] sm:$0xff]  ;;  %v3305_v38 = vld [vmem:[%s13063_s2 + $0x650] sm:$0xff] }
 0x46a   :  { %3388 = vmatpush1.msra.mxu0 %v3111_v30  ;;  %3459 = vmatpush1.msra.mxu1 %v3113_v46  ;;  %v3296_v30 = vld [vmem:[%s13063_s2 + $0x608] sm:$0xff]  ;;  %v3298_v46 = vld [vmem:[%s13063_s2 + $0x618] sm:$0xff] }
 0x46b   :  { %3389 = vmatprep.subr.mxu0 %v3104_v20  ;;  %3460 = vmatprep.subr.mxu1 %v3106_v10  ;;  %v3295_v20 = vld [vmem:[%s13063_s2 + $0x600] sm:$0xff]  ;;  %v3297_v10 = vld [vmem:[%s13063_s2 + $0x610] sm:$0xff] }
 0x46c   :  { %3390 = vmatpush1.msra.mxu0 %v3103_v9  ;;  %3461 = vmatpush1.msra.mxu1 %v3105_v28  ;;  %v3288_v9 = vld [vmem:[%s13063_s2 + $0x5c8] sm:$0xff]  ;;  %v3290_v28 = vld [vmem:[%s13063_s2 + $0x5d8] sm:$0xff] }
 0x46d   :  { %3391 = vmatprep.subr.mxu0 %v3352_v41  ;;  %3462 = vmatprep.subr.mxu1 %v3354_v21  ;;  %v3287_v41 = vld [vmem:[%s13063_s2 + $0x5c0] sm:$0xff]  ;;  %v3289_v21 = vld [vmem:[%s13063_s2 + $0x5d0] sm:$0xff] }
 0x46e   :  { %3392 = vmatpush2.msra.mxu0 %v3351_v27  ;;  %3463 = vmatpush2.msra.mxu1 %v3353_v44  ;;  %v3280_v27 = vld [vmem:[%s13063_s2 + $0x588] sm:$0xff]  ;;  %v3282_v44 = vld [vmem:[%s13063_s2 + $0x598] sm:$0xff] }
 0x46f   :  { %3393 = vmatprep.subr.mxu0 %v3344_v54  ;;  %3464 = vmatprep.subr.mxu1 %v3346_v55  ;;  %v3279_v54 = vld [vmem:[%s13063_s2 + $0x580] sm:$0xff]  ;;  %v3281_v55 = vld [vmem:[%s13063_s2 + $0x590] sm:$0xff] }
 0x470   :  { %3394 = vmatpush2.msra.mxu0 %v3343_v0  ;;  %3465 = vmatpush2.msra.mxu1 %v3345_v39  ;;  %v3272_v0 = vld [vmem:[%s13063_s2 + $0x548] sm:$0xff]  ;;  %v3274_v39 = vld [vmem:[%s13063_s2 + $0x558] sm:$0xff] }
 0x471   :  { %3395 = vmatprep.subr.mxu0 %v3336_v14  ;;  %3466 = vmatprep.subr.mxu1 %v3338_v43  ;;  %v3271_v14 = vld [vmem:[%s13063_s2 + $0x540] sm:$0xff]  ;;  %v3273_v43 = vld [vmem:[%s13063_s2 + $0x550] sm:$0xff] }
 0x472   :  { %3396 = vmatpush2.msra.mxu0 %v3335_v23  ;;  %3467 = vmatpush2.msra.mxu1 %v3337_v51  ;;  %v3264_v23 = vld [vmem:[%s13063_s2 + $0x508] sm:$0xff]  ;;  %v3266_v51 = vld [vmem:[%s13063_s2 + $0x518] sm:$0xff] }
 0x473   :  { %3397 = vmatprep.subr.mxu0 %v3328_v26  ;;  %3468 = vmatprep.subr.mxu1 %v3330_v45  ;;  %v3263_v26 = vld [vmem:[%s13063_s2 + $0x500] sm:$0xff]  ;;  %v3265_v45 = vld [vmem:[%s13063_s2 + $0x510] sm:$0xff] }
 0x474   :  { %3398 = vmatpush2.msra.mxu0 %v3327_v5  ;;  %3469 = vmatpush2.msra.mxu1 %v3329_v57  ;;  %v3256_v5 = vld [vmem:[%s13063_s2 + $0x4c8] sm:$0xff]  ;;  %v3258_v57 = vld [vmem:[%s13063_s2 + $0x4d8] sm:$0xff] }
 0x475   :  { %3399 = vmatprep.subr.mxu0 %v3320_v6  ;;  %3470 = vmatprep.subr.mxu1 %v3322_v60  ;;  %v3255_v6 = vld [vmem:[%s13063_s2 + $0x4c0] sm:$0xff]  ;;  %v3257_v60 = vld [vmem:[%s13063_s2 + $0x4d0] sm:$0xff] }
 0x476   :  { %3400 = vmatpush2.msra.mxu0 %v3319_v31  ;;  %3471 = vmatpush2.msra.mxu1 %v3321_v32  ;;  %v3248_v31 = vld [vmem:[%s13063_s2 + $0x488] sm:$0xff]  ;;  %v3250_v32 = vld [vmem:[%s13063_s2 + $0x498] sm:$0xff] }
 0x477   :  { %3401 = vmatprep.subr.mxu0 %v3312_v19  ;;  %3472 = vmatprep.subr.mxu1 %v3314_v47  ;;  %v3247_v19 = vld [vmem:[%s13063_s2 + $0x480] sm:$0xff]  ;;  %v3249_v47 = vld [vmem:[%s13063_s2 + $0x490] sm:$0xff] }
 0x478   :  { %3402 = vmatpush2.msra.mxu0 %v3311_v48  ;;  %3473 = vmatpush2.msra.mxu1 %v3313_v58  ;;  %v3240_v48 = vld [vmem:[%s13063_s2 + $0x448] sm:$0xff]  ;;  %v3242_v58 = vld [vmem:[%s13063_s2 + $0x458] sm:$0xff] }
 0x479   :  { %3403 = vmatprep.subr.mxu0 %v3304_v52  ;;  %3474 = vmatprep.subr.mxu1 %v3306_v42  ;;  %v3239_v52 = vld [vmem:[%s13063_s2 + $0x440] sm:$0xff]  ;;  %v3241_v42 = vld [vmem:[%s13063_s2 + $0x450] sm:$0xff] }
 0x47a   :  { %3404 = vmatpush2.msra.mxu0 %v3303_v40  ;;  %3475 = vmatpush2.msra.mxu1 %v3305_v38  ;;  %v3232_v40 = vld [vmem:[%s13063_s2 + $0x408] sm:$0xff]  ;;  %v3234_v38 = vld [vmem:[%s13063_s2 + $0x418] sm:$0xff] }
 0x47b   :  { %3405 = vmatprep.subr.mxu0 %v3296_v30  ;;  %3476 = vmatprep.subr.mxu1 %v3298_v46  ;;  %v3231_v30 = vld [vmem:[%s13063_s2 + $0x400] sm:$0xff]  ;;  %v3233_v46 = vld [vmem:[%s13063_s2 + $0x410] sm:$0xff] }
 0x47c   :  { %3406 = vmatpush2.msra.mxu0 %v3295_v20  ;;  %3477 = vmatpush2.msra.mxu1 %v3297_v10  ;;  %v3228_v20 = vld [vmem:[%s13063_s2 + $0x3e8] sm:$0xff]  ;;  %v3230_v10 = vld [vmem:[%s13063_s2 + $0x3f8] sm:$0xff] }
 0x47d   :  { %3407 = vmatprep.subr.mxu0 %v3288_v9  ;;  %3478 = vmatprep.subr.mxu1 %v3290_v28 }
 0x47e   :  { %3408 = vmatpush2.msra.mxu0 %v3287_v41  ;;  %3479 = vmatpush2.msra.mxu1 %v3289_v21 }
 0x47f   :  { %3409 = vmatprep.subr.mxu0 %v3280_v27  ;;  %3480 = vmatprep.subr.mxu1 %v3282_v44 }
 0x480   :  { %3410 = vmatpush2.msra.mxu0 %v3279_v54  ;;  %3481 = vmatpush2.msra.mxu1 %v3281_v55 }
 0x481   :  { %3411 = vmatprep.subr.mxu0 %v3272_v0  ;;  %3482 = vmatprep.subr.mxu1 %v3274_v39 }
 0x482   :  { %3412 = vmatpush2.msra.mxu0 %v3271_v14  ;;  %3483 = vmatpush2.msra.mxu1 %v3273_v43 }
 0x483   :  { %3413 = vmatprep.subr.mxu0 %v3264_v23  ;;  %3484 = vmatprep.subr.mxu1 %v3266_v51 }
 0x484   :  { %3414 = vmatpush2.msra.mxu0 %v3263_v26  ;;  %3485 = vmatpush2.msra.mxu1 %v3265_v45 }
 0x485   :  { %3415 = vmatprep.subr.mxu0 %v3256_v5  ;;  %3486 = vmatprep.subr.mxu1 %v3258_v57 }
 0x486   :  { %3416 = vmatpush2.msra.mxu0 %v3255_v6  ;;  %3487 = vmatpush2.msra.mxu1 %v3257_v60  ;;  %v542_v60 = vadd.f32 %v7678_v35, %v7716_v61 }
 0x487   :  { %3417 = vmatprep.subr.mxu0 %v3248_v31  ;;  %3488 = vmatprep.subr.mxu1 %v3250_v32 }
 0x488   :  { %3418 = vmatpush2.msra.mxu0 %v3247_v19  ;;  %3489 = vmatpush2.msra.mxu1 %v3249_v47 }
 0x489   :  { %3419 = vmatprep.subr.mxu0 %v3240_v48  ;;  %3490 = vmatprep.subr.mxu1 %v3242_v58 }
 0x48a   :  { %3420 = vmatpush2.msra.mxu0 %v3239_v52  ;;  %3491 = vmatpush2.msra.mxu1 %v3241_v42 }
 0x48b   :  { %3421 = vmatprep.subr.mxu0 %v3232_v40  ;;  %3492 = vmatprep.subr.mxu1 %v3234_v38 }
 0x48c   :  { %3422 = vmatpush2.msra.mxu0 %v3231_v30  ;;  %3493 = vmatpush2.msra.mxu1 %v3233_v46 }
 0x48d   :  { %3501 = vmatprep.subr.mxu0 %v3228_v20  ;;  %3572 = vmatprep.subr.mxu1 %v3230_v10 }
 0x4cb   :  { %v2811_v9 = vpop.f32.mrf.mxu0  ;;  %v2882_v28 = vpop.f32.mrf.mxu1 }
 0x4cc   :  { %v3029_v21 = vadd.f32 %v2811_v9, %v7158_v63  ;;  %v3031_v27 = vadd.f32 %v2882_v28, %v7245_v18 }
 0x4cd   :  { %v2813_v41 = vpop.f32.mrf.mxu0  ;;  %v2884_v44 = vpop.f32.mrf.mxu1 }
 0x4ce   :  { %v3030_v54 = vadd.f32 %v2813_v41, %v7164_v2  ;;  %v5789_v55 = vmul.f32 -1.442695, %v3029_v21  ;;  %v3032_v0 = vadd.f32 %v2884_v44, %v7248_v37  ;;  %v5791_v39 = vmul.f32 -1.442695, %v3031_v27 }
 0x4cf   :  { %v540_v2 = vadd.f32 %v7670_v29, %v7713_v36 }
 0x4d0   :  { %v5790_v14 = vmul.f32 -1.442695, %v3030_v54  ;;  %5973 = vpow2.f32 %v5789_v55  ;;  %v5792_v43 = vmul.f32 -1.442695, %v3032_v0 }
 0x4d1   :  { %5975 = vpow2.f32 %v5791_v39 }
 0x4d2   :  { %5977 = vpow2.f32 %v5790_v14 }
 0x4d3   :  { %5979 = vpow2.f32 %v5792_v43  ;;  %v3229_v43 = vld [vmem:[%s13063_s2 + $0x3f0] sm:$0xff] }
 0x4dd   :  { %v5974_v23 = vpop.eup %5973 }
 0x4de   :  { %v5976_v51 = vpop.eup %5975  ;;  %v3043_v45 = vadd.f32 1.0, %v5974_v23  ;;  %v3220_v23 = vld [vmem:[%s13063_s2 + $0x3a8] sm:$0xff] }
 0x4df   :  { %v5978_v26 = vpop.eup %5977  ;;  %v3055_v5 = vadd.f32 1.0, %v5976_v51  ;;  %v3222_v51 = vld [vmem:[%s13063_s2 + $0x3b8] sm:$0xff] }
 0x4e0   :  { %v5980_v63 = vpop.eup %5979  ;;  %v3044_v18 = vadd.f32 1.0, %v5978_v26  ;;  %5981 = vrcp.f32 %v3043_v45  ;;  %v3219_v26 = vld [vmem:[%s13063_s2 + $0x3a0] sm:$0xff]  ;;  %v3221_v45 = vld [vmem:[%s13063_s2 + $0x3b0] sm:$0xff] }
 0x4e1   :  { %v3056_v57 = vadd.f32 1.0, %v5980_v63  ;;  %5983 = vrcp.f32 %v3055_v5  ;;  %v3212_v63 = vld [vmem:[%s13063_s2 + $0x368] sm:$0xff]  ;;  %v3214_v5 = vld [vmem:[%s13063_s2 + $0x378] sm:$0xff] }
 0x4e2   :  { %5985 = vrcp.f32 %v3044_v18  ;;  %v3211_v18 = vld [vmem:[%s13063_s2 + $0x360] sm:$0xff] }
 0x4ed   :  { %v5982_v42 = vpop.eup %5981 }
 0x4ee   :  { %v5984_v40 = vpop.eup %5983 }
 0x4ef   :  { %v5986_v35 = vpop.eup %5985 }
 0x50c   :  { %v2953_v37 = vpop.f32.mrf.mxu0  ;;  %v3024_v6 = vpop.f32.mrf.mxu1 }
 0x50d   :  { %v3033_v31 = vadd.f32 %v2953_v37, %v7173_v8  ;;  %v3035_v32 = vadd.f32 %v3024_v6, %v540_v2  ;;  %v3075_v8 = vmul.f32 %v5984_v40, %v9315_v50  ;;  %v3213_v2 = vld [vmem:[%s13063_s2 + $0x370] sm:$0xff]  ;;  %v3206_v37 = vld [vmem:[%s13063_s2 + $0x338] sm:$0xff]  ;;  %v3203_v6 = vld [vmem:[%s13063_s2 + $0x320] sm:$0xff] }
 0x50e   :  { %v2955_v19 = vpop.f32.mrf.mxu0  ;;  %v3026_v47 = vpop.f32.mrf.mxu1  ;;  %v3182_v40 = vld [vmem:[%s13063_s2 + $0x278] sm:$0xff] }
 0x50f   :  { %5987 = vtanh.f32 %v3033_v31  ;;  %v5793_v48 = vmul.f32 -1.442695, %v3035_v32  ;;  %v3034_v58 = vadd.f32 %v2955_v19, %v7179_v13  ;;  %v3036_v52 = vadd.f32 %v3026_v47, %v542_v60  ;;  %v3205_v60 = vld [vmem:[%s13063_s2 + $0x330] sm:$0xff]  ;;  %v3196_v31 = vld [vmem:[%s13063_s2 + $0x2e8] sm:$0xff]  ;;  %v3198_v32 = vld [vmem:[%s13063_s2 + $0x2f8] sm:$0xff] }
 0x510   :  { %5989 = vrcp.f32 %v3056_v57  ;;  %v3204_v57 = vld [vmem:[%s13063_s2 + $0x328] sm:$0xff]  ;;  %v3195_v19 = vld [vmem:[%s13063_s2 + $0x2e0] sm:$0xff]  ;;  %v3197_v47 = vld [vmem:[%s13063_s2 + $0x2f0] sm:$0xff] }
 0x511   :  { %5991 = vpow2.f32 %v5793_v48  ;;  %v5794_v29 = vmul.f32 -1.442695, %v3036_v52  ;;  %v3188_v48 = vld [vmem:[%s13063_s2 + $0x2a8] sm:$0xff]  ;;  %v3187_v52 = vld [vmem:[%s13063_s2 + $0x2a0] sm:$0xff] }
 0x512   :  { %5993 = vtanh.f32 %v3034_v58  ;;  %v3190_v58 = vld [vmem:[%s13063_s2 + $0x2b8] sm:$0xff] }
 0x513   :  { %5995 = vpow2.f32 %v5794_v29  ;;  %v3189_v29 = vld [vmem:[%s13063_s2 + $0x2b0] sm:$0xff] }
 0x51c   :  { %v5988_v38 = vpop.eup %5987 }
 0x51d   :  { %v5990_v30 = vpop.eup %5989  ;;  %v3077_v46 = vmul.f32 %v5988_v38, %v5982_v42  ;;  %v3180_v42 = vld [vmem:[%s13063_s2 + $0x268] sm:$0xff]  ;;  %v3181_v38 = vld [vmem:[%s13063_s2 + $0x270] sm:$0xff] }
 0x51e   :  { %v5992_v20 = vpop.eup %5991  ;;  %v3076_v41 = vmul.f32 %v5990_v30, %v9319_v16  ;;  %v3227_v16 = vld [vmem:[%s13063_s2 + $0x3e0] sm:$0xff]  ;;  %v3172_v30 = vld [vmem:[%s13063_s2 + $0x228] sm:$0xff] }
 0x51f   :  { %v5994_v10 = vpop.eup %5993  ;;  %v10113_v9 = vadd.f32 %v3077_v46, %v3075_v8  ;;  %v3069_v28 = vadd.f32 1.0, %v5992_v20  ;;  %v3174_v8 = vld [vmem:[%s13063_s2 + $0x238] sm:$0xff]  ;;  %v3171_v46 = vld [vmem:[%s13063_s2 + $0x220] sm:$0xff]  ;;  %v3173_v20 = vld [vmem:[%s13063_s2 + $0x230] sm:$0xff] }
 0x520   :  { %v5996_v13 = vpop.eup %5995  ;;  %v3078_v21 = vmul.f32 %v5994_v10, %v5986_v35  ;;  %v3179_v35 = vld [vmem:[%s13063_s2 + $0x260] sm:$0xff]  ;;  %v3164_v10 = vld [vmem:[%s13063_s2 + $0x1e8] sm:$0xff] }
 0x521   :  { %5997 = vtanh.f32 %v10113_v9  ;;  %v3070_v27 = vadd.f32 1.0, %v5996_v13  ;;  %v3163_v13 = vld [vmem:[%s13063_s2 + $0x1e0] sm:$0xff] }
 0x522   :  { %5999 = vrcp.f32 %v3069_v28  ;;  %v10117_v44 = vadd.f32 %v3078_v21, %v3076_v41  ;;  %v3166_v28 = vld [vmem:[%s13063_s2 + $0x1f8] sm:$0xff]  ;;  %v3165_v41 = vld [vmem:[%s13063_s2 + $0x1f0] sm:$0xff]  ;;  %v3156_v21 = vld [vmem:[%s13063_s2 + $0x1a8] sm:$0xff] }
 0x523   :  { %6001 = vrcp.f32 %v3070_v27  ;;  %v3158_v27 = vld [vmem:[%s13063_s2 + $0x1b8] sm:$0xff] }
 0x524   :  { %6003 = vtanh.f32 %v10117_v44 }
 0x52e   :  { %v5998_v50 = vpop.eup %5997 }
 0x52f   :  { %v6000_v54 = vpop.eup %5999 }
 0x530   :  { %v6002_v55 = vpop.eup %6001  ;;  %v10122_v14 = vmul.f32 %v6000_v54, %v5998_v50  ;;  %v3155_v50 = vld [vmem:[%s13063_s2 + $0x1a0] sm:$0xff]  ;;  %v3157_v54 = vld [vmem:[%s13063_s2 + $0x1b0] sm:$0xff] }
 0x531   :  { %v6004_v0 = vpop.eup %6003 }
 0x532   :  { %v10120_v39 = vmul.f32 %v6004_v0, %v6002_v55  ;;  %v3148_v55 = vld [vmem:[%s13063_s2 + $0x168] sm:$0xff]  ;;  %v3150_v0 = vld [vmem:[%s13063_s2 + $0x178] sm:$0xff] }
 0x534   :  { %3423 = vmatprep.mubr.f32.mxu0 %v10120_v39  ;;  %3494 = vmatprep.mubr.f32.mxu1 %v10120_v39 }
 0x535   :  { %3424 = vmatmul.mubr.f32.vlgmr.msra.gmra.mxu0 %v10122_v14  ;;  %3495 = vmatmul.mubr.f32.vlgmr.msra.gmra.mxu1 %v10122_v14 }
 0x536   :  { %3502 = vmatpush1.msra.mxu0 %v3227_v16  ;;  %3573 = vmatpush1.msra.mxu1 %v3229_v43  ;;  %v3147_v16 = vld [vmem:[%s13063_s2 + $0x160] sm:$0xff]  ;;  %v3149_v43 = vld [vmem:[%s13063_s2 + $0x170] sm:$0xff] }
 0x537   :  { %3503 = vmatprep.subr.mxu0 %v3220_v23  ;;  %3565 = vmatprep.mubr.f32.mxu0 %v10120_v39  ;;  %v3140_v23 = vld [vmem:[%s13063_s2 + $0x128] sm:$0xff] }
 0x538   :  { %3574 = vmatprep.subr.mxu1 %v3222_v51  ;;  %3636 = vmatprep.mubr.f32.mxu1 %v10120_v39  ;;  %v3142_v51 = vld [vmem:[%s13063_s2 + $0x138] sm:$0xff] }
 0x539   :  { %3504 = vmatpush1.msra.mxu0 %v3219_v26  ;;  %3575 = vmatpush1.msra.mxu1 %v3221_v45  ;;  %v3139_v26 = vld [vmem:[%s13063_s2 + $0x120] sm:$0xff]  ;;  %v3141_v45 = vld [vmem:[%s13063_s2 + $0x130] sm:$0xff] }
 0x53a   :  { %3505 = vmatprep.subr.mxu0 %v3212_v63  ;;  %3576 = vmatprep.subr.mxu1 %v3214_v5  ;;  %v3132_v63 = vld [vmem:[%s13063_s2 + $0xe8] sm:$0xff]  ;;  %v3134_v5 = vld [vmem:[%s13063_s2 + $0xf8] sm:$0xff] }
 0x53b   :  { %3506 = vmatpush1.msra.mxu0 %v3211_v18  ;;  %3577 = vmatpush1.msra.mxu1 %v3213_v2  ;;  %v3131_v18 = vld [vmem:[%s13063_s2 + $0xe0] sm:$0xff]  ;;  %v3133_v2 = vld [vmem:[%s13063_s2 + $0xf0] sm:$0xff] }
 0x53c   :  { %3507 = vmatprep.subr.mxu0 %v3204_v57  ;;  %3578 = vmatprep.subr.mxu1 %v3206_v37  ;;  %v3124_v57 = vld [vmem:[%s13063_s2 + $0xa8] sm:$0xff]  ;;  %v3126_v37 = vld [vmem:[%s13063_s2 + $0xb8] sm:$0xff] }
 0x53d   :  { %3508 = vmatpush1.msra.mxu0 %v3203_v6  ;;  %3579 = vmatpush1.msra.mxu1 %v3205_v60  ;;  %v3123_v6 = vld [vmem:[%s13063_s2 + $0xa0] sm:$0xff]  ;;  %v3125_v60 = vld [vmem:[%s13063_s2 + $0xb0] sm:$0xff] }
 0x53e   :  { %3509 = vmatprep.subr.mxu0 %v3196_v31  ;;  %3580 = vmatprep.subr.mxu1 %v3198_v32  ;;  %v3116_v31 = vld [vmem:[%s13063_s2 + $0x68] sm:$0xff]  ;;  %v3118_v32 = vld [vmem:[%s13063_s2 + $0x78] sm:$0xff] }
 0x53f   :  { %3510 = vmatpush1.msra.mxu0 %v3195_v19  ;;  %3581 = vmatpush1.msra.mxu1 %v3197_v47  ;;  %v3115_v19 = vld [vmem:[%s13063_s2 + $0x60] sm:$0xff]  ;;  %v3117_v47 = vld [vmem:[%s13063_s2 + $0x70] sm:$0xff] }
 0x540   :  { %3511 = vmatprep.subr.mxu0 %v3188_v48  ;;  %3582 = vmatprep.subr.mxu1 %v3190_v58  ;;  %v3108_v48 = vld [vmem:[%s13063_s2 + $0x28] sm:$0xff]  ;;  %v3110_v58 = vld [vmem:[%s13063_s2 + $0x38] sm:$0xff] }
 0x541   :  { %3512 = vmatpush1.msra.mxu0 %v3187_v52  ;;  %3583 = vmatpush1.msra.mxu1 %v3189_v29  ;;  %v3107_v52 = vld [vmem:[%s13063_s2 + $0x20] sm:$0xff]  ;;  %v3109_v29 = vld [vmem:[%s13063_s2 + $0x30] sm:$0xff] }
 0x542   :  { %3513 = vmatprep.subr.mxu0 %v3180_v42  ;;  %3584 = vmatprep.subr.mxu1 %v3182_v40  ;;  %v3356_v42 = vld [vmem:[%s13063_s2 + $0x7e8] sm:$0xff]  ;;  %v3358_v40 = vld [vmem:[%s13063_s2 + $0x7f8] sm:$0xff] }
 0x543   :  { %3514 = vmatpush1.msra.mxu0 %v3179_v35  ;;  %3585 = vmatpush1.msra.mxu1 %v3181_v38  ;;  %v3355_v35 = vld [vmem:[%s13063_s2 + $0x7e0] sm:$0xff]  ;;  %v3357_v38 = vld [vmem:[%s13063_s2 + $0x7f0] sm:$0xff] }
 0x544   :  { %3515 = vmatprep.subr.mxu0 %v3172_v30  ;;  %3586 = vmatprep.subr.mxu1 %v3174_v8  ;;  %v3348_v30 = vld [vmem:[%s13063_s2 + $0x7a8] sm:$0xff]  ;;  %v3350_v8 = vld [vmem:[%s13063_s2 + $0x7b8] sm:$0xff] }
 0x545   :  { %3516 = vmatpush1.msra.mxu0 %v3171_v46  ;;  %3587 = vmatpush1.msra.mxu1 %v3173_v20  ;;  %v3347_v46 = vld [vmem:[%s13063_s2 + $0x7a0] sm:$0xff]  ;;  %v3349_v20 = vld [vmem:[%s13063_s2 + $0x7b0] sm:$0xff] }
 0x546   :  { %3517 = vmatprep.subr.mxu0 %v3164_v10  ;;  %3588 = vmatprep.subr.mxu1 %v3166_v28  ;;  %v3340_v10 = vld [vmem:[%s13063_s2 + $0x768] sm:$0xff]  ;;  %v3342_v28 = vld [vmem:[%s13063_s2 + $0x778] sm:$0xff] }
 0x547   :  { %3518 = vmatpush1.msra.mxu0 %v3163_v13  ;;  %3589 = vmatpush1.msra.mxu1 %v3165_v41  ;;  %v3339_v13 = vld [vmem:[%s13063_s2 + $0x760] sm:$0xff]  ;;  %v3341_v41 = vld [vmem:[%s13063_s2 + $0x770] sm:$0xff] }
 0x548   :  { %3519 = vmatprep.subr.mxu0 %v3156_v21  ;;  %3590 = vmatprep.subr.mxu1 %v3158_v27  ;;  %v3332_v21 = vld [vmem:[%s13063_s2 + $0x728] sm:$0xff]  ;;  %v3334_v27 = vld [vmem:[%s13063_s2 + $0x738] sm:$0xff] }
 0x549   :  { %3520 = vmatpush1.msra.mxu0 %v3155_v50  ;;  %3591 = vmatpush1.msra.mxu1 %v3157_v54  ;;  %v3331_v50 = vld [vmem:[%s13063_s2 + $0x720] sm:$0xff]  ;;  %v3333_v54 = vld [vmem:[%s13063_s2 + $0x730] sm:$0xff] }
 0x54a   :  { %3521 = vmatprep.subr.mxu0 %v3148_v55  ;;  %3592 = vmatprep.subr.mxu1 %v3150_v0  ;;  %v3324_v55 = vld [vmem:[%s13063_s2 + $0x6e8] sm:$0xff]  ;;  %v3326_v0 = vld [vmem:[%s13063_s2 + $0x6f8] sm:$0xff] }
 0x54b   :  { %3522 = vmatpush1.msra.mxu0 %v3147_v16  ;;  %3593 = vmatpush1.msra.mxu1 %v3149_v43  ;;  %v3323_v16 = vld [vmem:[%s13063_s2 + $0x6e0] sm:$0xff]  ;;  %v3325_v43 = vld [vmem:[%s13063_s2 + $0x6f0] sm:$0xff] }
 0x54c   :  { %3523 = vmatprep.subr.mxu0 %v3140_v23  ;;  %3594 = vmatprep.subr.mxu1 %v3142_v51  ;;  %v3316_v23 = vld [vmem:[%s13063_s2 + $0x6a8] sm:$0xff]  ;;  %v3318_v51 = vld [vmem:[%s13063_s2 + $0x6b8] sm:$0xff] }
 0x54d   :  { %3524 = vmatpush1.msra.mxu0 %v3139_v26  ;;  %3595 = vmatpush1.msra.mxu1 %v3141_v45  ;;  %v3315_v26 = vld [vmem:[%s13063_s2 + $0x6a0] sm:$0xff]  ;;  %v3317_v45 = vld [vmem:[%s13063_s2 + $0x6b0] sm:$0xff] }
 0x54e   :  { %3525 = vmatprep.subr.mxu0 %v3132_v63  ;;  %3596 = vmatprep.subr.mxu1 %v3134_v5  ;;  %v3308_v63 = vld [vmem:[%s13063_s2 + $0x668] sm:$0xff]  ;;  %v3310_v5 = vld [vmem:[%s13063_s2 + $0x678] sm:$0xff] }
 0x54f   :  { %3526 = vmatpush1.msra.mxu0 %v3131_v18  ;;  %3597 = vmatpush1.msra.mxu1 %v3133_v2  ;;  %v3307_v18 = vld [vmem:[%s13063_s2 + $0x660] sm:$0xff]  ;;  %v3309_v2 = vld [vmem:[%s13063_s2 + $0x670] sm:$0xff] }
 0x550   :  { %3527 = vmatprep.subr.mxu0 %v3124_v57  ;;  %3598 = vmatprep.subr.mxu1 %v3126_v37  ;;  %v3300_v57 = vld [vmem:[%s13063_s2 + $0x628] sm:$0xff]  ;;  %v3302_v37 = vld [vmem:[%s13063_s2 + $0x638] sm:$0xff] }
 0x551   :  { %3528 = vmatpush1.msra.mxu0 %v3123_v6  ;;  %3599 = vmatpush1.msra.mxu1 %v3125_v60  ;;  %v3299_v6 = vld [vmem:[%s13063_s2 + $0x620] sm:$0xff]  ;;  %v3301_v60 = vld [vmem:[%s13063_s2 + $0x630] sm:$0xff] }
 0x552   :  { %3529 = vmatprep.subr.mxu0 %v3116_v31  ;;  %3600 = vmatprep.subr.mxu1 %v3118_v32  ;;  %v3292_v31 = vld [vmem:[%s13063_s2 + $0x5e8] sm:$0xff]  ;;  %v3294_v32 = vld [vmem:[%s13063_s2 + $0x5f8] sm:$0xff] }
 0x553   :  { %3530 = vmatpush1.msra.mxu0 %v3115_v19  ;;  %3601 = vmatpush1.msra.mxu1 %v3117_v47  ;;  %v3291_v19 = vld [vmem:[%s13063_s2 + $0x5e0] sm:$0xff]  ;;  %v3293_v47 = vld [vmem:[%s13063_s2 + $0x5f0] sm:$0xff] }
 0x554   :  { %3531 = vmatprep.subr.mxu0 %v3108_v48  ;;  %3602 = vmatprep.subr.mxu1 %v3110_v58  ;;  %v3284_v48 = vld [vmem:[%s13063_s2 + $0x5a8] sm:$0xff]  ;;  %v3286_v58 = vld [vmem:[%s13063_s2 + $0x5b8] sm:$0xff] }
 0x555   :  { %3532 = vmatpush1.msra.mxu0 %v3107_v52  ;;  %3603 = vmatpush1.msra.mxu1 %v3109_v29  ;;  %v3283_v52 = vld [vmem:[%s13063_s2 + $0x5a0] sm:$0xff]  ;;  %v3285_v29 = vld [vmem:[%s13063_s2 + $0x5b0] sm:$0xff] }
 0x556   :  { %3533 = vmatprep.subr.mxu0 %v3356_v42  ;;  %3604 = vmatprep.subr.mxu1 %v3358_v40  ;;  %v3276_v42 = vld [vmem:[%s13063_s2 + $0x568] sm:$0xff]  ;;  %v3278_v40 = vld [vmem:[%s13063_s2 + $0x578] sm:$0xff] }
 0x557   :  { %3534 = vmatpush2.msra.mxu0 %v3355_v35  ;;  %3605 = vmatpush2.msra.mxu1 %v3357_v38  ;;  %v3275_v35 = vld [vmem:[%s13063_s2 + $0x560] sm:$0xff]  ;;  %v3277_v38 = vld [vmem:[%s13063_s2 + $0x570] sm:$0xff] }
 0x558   :  { %3535 = vmatprep.subr.mxu0 %v3348_v30  ;;  %3606 = vmatprep.subr.mxu1 %v3350_v8  ;;  %v3268_v30 = vld [vmem:[%s13063_s2 + $0x528] sm:$0xff]  ;;  %v3270_v8 = vld [vmem:[%s13063_s2 + $0x538] sm:$0xff] }
 0x559   :  { %3536 = vmatpush2.msra.mxu0 %v3347_v46  ;;  %3607 = vmatpush2.msra.mxu1 %v3349_v20  ;;  %v3267_v46 = vld [vmem:[%s13063_s2 + $0x520] sm:$0xff]  ;;  %v3269_v20 = vld [vmem:[%s13063_s2 + $0x530] sm:$0xff] }
 0x55a   :  { %3537 = vmatprep.subr.mxu0 %v3340_v10  ;;  %3608 = vmatprep.subr.mxu1 %v3342_v28  ;;  %v3260_v10 = vld [vmem:[%s13063_s2 + $0x4e8] sm:$0xff]  ;;  %v3262_v28 = vld [vmem:[%s13063_s2 + $0x4f8] sm:$0xff] }
 0x55b   :  { %3538 = vmatpush2.msra.mxu0 %v3339_v13  ;;  %3609 = vmatpush2.msra.mxu1 %v3341_v41  ;;  %v3259_v13 = vld [vmem:[%s13063_s2 + $0x4e0] sm:$0xff]  ;;  %v3261_v41 = vld [vmem:[%s13063_s2 + $0x4f0] sm:$0xff] }
 0x55c   :  { %3539 = vmatprep.subr.mxu0 %v3332_v21  ;;  %3610 = vmatprep.subr.mxu1 %v3334_v27  ;;  %v3252_v21 = vld [vmem:[%s13063_s2 + $0x4a8] sm:$0xff]  ;;  %v3254_v27 = vld [vmem:[%s13063_s2 + $0x4b8] sm:$0xff] }
 0x55d   :  { %3540 = vmatpush2.msra.mxu0 %v3331_v50  ;;  %3611 = vmatpush2.msra.mxu1 %v3333_v54  ;;  %v3251_v50 = vld [vmem:[%s13063_s2 + $0x4a0] sm:$0xff]  ;;  %v3253_v54 = vld [vmem:[%s13063_s2 + $0x4b0] sm:$0xff] }
 0x55e   :  { %3541 = vmatprep.subr.mxu0 %v3324_v55  ;;  %3612 = vmatprep.subr.mxu1 %v3326_v0  ;;  %v3244_v55 = vld [vmem:[%s13063_s2 + $0x468] sm:$0xff]  ;;  %v3246_v0 = vld [vmem:[%s13063_s2 + $0x478] sm:$0xff] }
 0x55f   :  { %3542 = vmatpush2.msra.mxu0 %v3323_v16  ;;  %3613 = vmatpush2.msra.mxu1 %v3325_v43  ;;  %v3243_v16 = vld [vmem:[%s13063_s2 + $0x460] sm:$0xff]  ;;  %v3245_v43 = vld [vmem:[%s13063_s2 + $0x470] sm:$0xff] }
 0x560   :  { %3543 = vmatprep.subr.mxu0 %v3316_v23  ;;  %3614 = vmatprep.subr.mxu1 %v3318_v51  ;;  %v3236_v23 = vld [vmem:[%s13063_s2 + $0x428] sm:$0xff]  ;;  %v3238_v51 = vld [vmem:[%s13063_s2 + $0x438] sm:$0xff] }
 0x561   :  { %3544 = vmatpush2.msra.mxu0 %v3315_v26  ;;  %3615 = vmatpush2.msra.mxu1 %v3317_v45  ;;  %v3235_v26 = vld [vmem:[%s13063_s2 + $0x420] sm:$0xff]  ;;  %v3237_v45 = vld [vmem:[%s13063_s2 + $0x430] sm:$0xff] }
 0x562   :  { %3545 = vmatprep.subr.mxu0 %v3308_v63  ;;  %3616 = vmatprep.subr.mxu1 %v3310_v5  ;;  %v3838_v63 = vld [vmem:[%s13063_s2 + $0x3c8] sm:$0xff]  ;;  %v3840_v5 = vld [vmem:[%s13063_s2 + $0x3d8] sm:$0xff] }
 0x563   :  { %3546 = vmatpush2.msra.mxu0 %v3307_v18  ;;  %3617 = vmatpush2.msra.mxu1 %v3309_v2  ;;  %v3837_v18 = vld [vmem:[%s13063_s2 + $0x3c0] sm:$0xff]  ;;  %v3839_v2 = vld [vmem:[%s13063_s2 + $0x3d0] sm:$0xff] }
 0x564   :  { %3547 = vmatprep.subr.mxu0 %v3300_v57  ;;  %3618 = vmatprep.subr.mxu1 %v3302_v37  ;;  %v3830_v57 = vld [vmem:[%s13063_s2 + $0x388] sm:$0xff]  ;;  %v3832_v37 = vld [vmem:[%s13063_s2 + $0x398] sm:$0xff] }
 0x565   :  { %3548 = vmatpush2.msra.mxu0 %v3299_v6  ;;  %3619 = vmatpush2.msra.mxu1 %v3301_v60  ;;  %v3829_v6 = vld [vmem:[%s13063_s2 + $0x380] sm:$0xff]  ;;  %v3831_v60 = vld [vmem:[%s13063_s2 + $0x390] sm:$0xff] }
 0x566   :  { %3549 = vmatprep.subr.mxu0 %v3292_v31  ;;  %3620 = vmatprep.subr.mxu1 %v3294_v32  ;;  %v3822_v31 = vld [vmem:[%s13063_s2 + $0x348] sm:$0xff]  ;;  %v3824_v32 = vld [vmem:[%s13063_s2 + $0x358] sm:$0xff] }
 0x567   :  { %3550 = vmatpush2.msra.mxu0 %v3291_v19  ;;  %3621 = vmatpush2.msra.mxu1 %v3293_v47  ;;  %v3821_v19 = vld [vmem:[%s13063_s2 + $0x340] sm:$0xff]  ;;  %v3823_v47 = vld [vmem:[%s13063_s2 + $0x350] sm:$0xff] }
 0x568   :  { %3551 = vmatprep.subr.mxu0 %v3284_v48  ;;  %3622 = vmatprep.subr.mxu1 %v3286_v58  ;;  %v3814_v48 = vld [vmem:[%s13063_s2 + $0x308] sm:$0xff]  ;;  %v3816_v58 = vld [vmem:[%s13063_s2 + $0x318] sm:$0xff] }
 0x569   :  { %3552 = vmatpush2.msra.mxu0 %v3283_v52  ;;  %3623 = vmatpush2.msra.mxu1 %v3285_v29  ;;  %v3813_v52 = vld [vmem:[%s13063_s2 + $0x300] sm:$0xff]  ;;  %v3815_v29 = vld [vmem:[%s13063_s2 + $0x310] sm:$0xff] }
 0x56a   :  { %3553 = vmatprep.subr.mxu0 %v3276_v42  ;;  %3624 = vmatprep.subr.mxu1 %v3278_v40  ;;  %v3806_v42 = vld [vmem:[%s13063_s2 + $0x2c8] sm:$0xff]  ;;  %v3808_v40 = vld [vmem:[%s13063_s2 + $0x2d8] sm:$0xff] }
 0x56b   :  { %3554 = vmatpush2.msra.mxu0 %v3275_v35  ;;  %3625 = vmatpush2.msra.mxu1 %v3277_v38  ;;  %v3805_v35 = vld [vmem:[%s13063_s2 + $0x2c0] sm:$0xff]  ;;  %v3807_v38 = vld [vmem:[%s13063_s2 + $0x2d0] sm:$0xff] }
 0x56c   :  { %3555 = vmatprep.subr.mxu0 %v3268_v30  ;;  %3626 = vmatprep.subr.mxu1 %v3270_v8  ;;  %v3798_v30 = vld [vmem:[%s13063_s2 + $0x288] sm:$0xff]  ;;  %v3800_v8 = vld [vmem:[%s13063_s2 + $0x298] sm:$0xff] }
 0x56d   :  { %3556 = vmatpush2.msra.mxu0 %v3267_v46  ;;  %3627 = vmatpush2.msra.mxu1 %v3269_v20  ;;  %v3797_v46 = vld [vmem:[%s13063_s2 + $0x280] sm:$0xff]  ;;  %v3799_v20 = vld [vmem:[%s13063_s2 + $0x290] sm:$0xff] }
 0x56e   :  { %3557 = vmatprep.subr.mxu0 %v3260_v10  ;;  %3628 = vmatprep.subr.mxu1 %v3262_v28  ;;  %v3790_v10 = vld [vmem:[%s13063_s2 + $0x248] sm:$0xff]  ;;  %v3792_v28 = vld [vmem:[%s13063_s2 + $0x258] sm:$0xff] }
 0x56f   :  { %3558 = vmatpush2.msra.mxu0 %v3259_v13  ;;  %3629 = vmatpush2.msra.mxu1 %v3261_v41  ;;  %v3789_v13 = vld [vmem:[%s13063_s2 + $0x240] sm:$0xff]  ;;  %v3791_v41 = vld [vmem:[%s13063_s2 + $0x250] sm:$0xff] }
 0x570   :  { %3559 = vmatprep.subr.mxu0 %v3252_v21  ;;  %3630 = vmatprep.subr.mxu1 %v3254_v27  ;;  %v3782_v21 = vld [vmem:[%s13063_s2 + $0x208] sm:$0xff]  ;;  %v3784_v27 = vld [vmem:[%s13063_s2 + $0x218] sm:$0xff] }
 0x571   :  { %3560 = vmatpush2.msra.mxu0 %v3251_v50  ;;  %3631 = vmatpush2.msra.mxu1 %v3253_v54  ;;  %v3781_v50 = vld [vmem:[%s13063_s2 + $0x200] sm:$0xff]  ;;  %v3783_v54 = vld [vmem:[%s13063_s2 + $0x210] sm:$0xff] }
 0x572   :  { %3561 = vmatprep.subr.mxu0 %v3244_v55  ;;  %3632 = vmatprep.subr.mxu1 %v3246_v0  ;;  %v3774_v55 = vld [vmem:[%s13063_s2 + $0x1c8] sm:$0xff]  ;;  %v3776_v0 = vld [vmem:[%s13063_s2 + $0x1d8] sm:$0xff] }
 0x573   :  { %3562 = vmatpush2.msra.mxu0 %v3243_v16  ;;  %3633 = vmatpush2.msra.mxu1 %v3245_v43  ;;  %v3773_v16 = vld [vmem:[%s13063_s2 + $0x1c0] sm:$0xff]  ;;  %v3775_v43 = vld [vmem:[%s13063_s2 + $0x1d0] sm:$0xff] }
 0x574   :  { %3563 = vmatprep.subr.mxu0 %v3236_v23  ;;  %3634 = vmatprep.subr.mxu1 %v3238_v51  ;;  %v3766_v23 = vld [vmem:[%s13063_s2 + $0x188] sm:$0xff]  ;;  %v3768_v51 = vld [vmem:[%s13063_s2 + $0x198] sm:$0xff] }
 0x575   :  { %3564 = vmatpush2.msra.mxu0 %v3235_v26  ;;  %3635 = vmatpush2.msra.mxu1 %v3237_v45  ;;  %v3765_v26 = vld [vmem:[%s13063_s2 + $0x180] sm:$0xff]  ;;  %v3767_v45 = vld [vmem:[%s13063_s2 + $0x190] sm:$0xff] }
 0x576   :  { %3566 = vmatmul.mubr.f32.vlgmr.msra.gmra.mxu0 %v10122_v14  ;;  %3637 = vmatmul.mubr.f32.vlgmr.msra.gmra.mxu1 %v10122_v14 }
 0x577   :  { %3973 = vmatprep.subr.mxu0 %v3838_v63  ;;  %4044 = vmatprep.subr.mxu1 %v3840_v5  ;;  %v3758_v63 = vld [vmem:[%s13063_s2 + $0x148] sm:$0xff]  ;;  %v3760_v5 = vld [vmem:[%s13063_s2 + $0x158] sm:$0xff] }
 0x578   :  { %3974 = vmatpush1.msra.mxu0 %v3837_v18  ;;  %4045 = vmatpush1.msra.mxu1 %v3839_v2  ;;  %v3757_v18 = vld [vmem:[%s13063_s2 + $0x140] sm:$0xff]  ;;  %v3759_v2 = vld [vmem:[%s13063_s2 + $0x150] sm:$0xff] }
 0x579   :  { %3975 = vmatprep.subr.mxu0 %v3830_v57  ;;  %4046 = vmatprep.subr.mxu1 %v3832_v37  ;;  %v3750_v57 = vld [vmem:[%s13063_s2 + $0x108] sm:$0xff]  ;;  %v3752_v37 = vld [vmem:[%s13063_s2 + $0x118] sm:$0xff] }
 0x57a   :  { %3976 = vmatpush1.msra.mxu0 %v3829_v6  ;;  %4047 = vmatpush1.msra.mxu1 %v3831_v60  ;;  %v3749_v6 = vld [vmem:[%s13063_s2 + $0x100] sm:$0xff]  ;;  %v3751_v60 = vld [vmem:[%s13063_s2 + $0x110] sm:$0xff] }
 0x57b   :  { %3977 = vmatprep.subr.mxu0 %v3822_v31  ;;  %4048 = vmatprep.subr.mxu1 %v3824_v32  ;;  %v3742_v31 = vld [vmem:[%s13063_s2 + $0xc8] sm:$0xff]  ;;  %v3744_v32 = vld [vmem:[%s13063_s2 + $0xd8] sm:$0xff] }
 0x57c   :  { %3978 = vmatpush1.msra.mxu0 %v3821_v19  ;;  %4049 = vmatpush1.msra.mxu1 %v3823_v47  ;;  %v3741_v19 = vld [vmem:[%s13063_s2 + $0xc0] sm:$0xff]  ;;  %v3743_v47 = vld [vmem:[%s13063_s2 + $0xd0] sm:$0xff] }
 0x57d   :  { %3979 = vmatprep.subr.mxu0 %v3814_v48  ;;  %4050 = vmatprep.subr.mxu1 %v3816_v58  ;;  %v3734_v48 = vld [vmem:[%s13063_s2 + $0x88] sm:$0xff]  ;;  %v3736_v58 = vld [vmem:[%s13063_s2 + $0x98] sm:$0xff] }
 0x57e   :  { %3980 = vmatpush1.msra.mxu0 %v3813_v52  ;;  %4051 = vmatpush1.msra.mxu1 %v3815_v29  ;;  %v3733_v52 = vld [vmem:[%s13063_s2 + $0x80] sm:$0xff]  ;;  %v3735_v29 = vld [vmem:[%s13063_s2 + $0x90] sm:$0xff] }
 0x57f   :  { %3981 = vmatprep.subr.mxu0 %v3806_v42  ;;  %4052 = vmatprep.subr.mxu1 %v3808_v40  ;;  %v3726_v42 = vld [vmem:[%s13063_s2 + $0x48] sm:$0xff]  ;;  %v3728_v40 = vld [vmem:[%s13063_s2 + $0x58] sm:$0xff] }
 0x580   :  { %3982 = vmatpush1.msra.mxu0 %v3805_v35  ;;  %4053 = vmatpush1.msra.mxu1 %v3807_v38  ;;  %v3725_v35 = vld [vmem:[%s13063_s2 + $0x40] sm:$0xff]  ;;  %v3727_v38 = vld [vmem:[%s13063_s2 + $0x50] sm:$0xff] }
 0x581   :  { %3983 = vmatprep.subr.mxu0 %v3798_v30  ;;  %4054 = vmatprep.subr.mxu1 %v3800_v8  ;;  %v3718_v30 = vld [vmem:[%s13063_s2 + $0x8] sm:$0xff]  ;;  %v3720_v8 = vld [vmem:[%s13063_s2 + $0x18] sm:$0xff] }
 0x582   :  { %3984 = vmatpush1.msra.mxu0 %v3797_v46  ;;  %4055 = vmatpush1.msra.mxu1 %v3799_v20  ;;  %v3717_v46 = vld [vmem:[%s13063_s2] sm:$0xff]  ;;  %v3719_v20 = vld [vmem:[%s13063_s2 + $0x10] sm:$0xff] }
 0x583   :  { %3985 = vmatprep.subr.mxu0 %v3790_v10  ;;  %4056 = vmatprep.subr.mxu1 %v3792_v28  ;;  %v3966_v10 = vld [vmem:[%s13063_s2 + $0x7c8] sm:$0xff]  ;;  %v3968_v28 = vld [vmem:[%s13063_s2 + $0x7d8] sm:$0xff] }
 0x584   :  { %3986 = vmatpush1.msra.mxu0 %v3789_v13  ;;  %4057 = vmatpush1.msra.mxu1 %v3791_v41  ;;  %v3965_v13 = vld [vmem:[%s13063_s2 + $0x7c0] sm:$0xff]  ;;  %v3967_v41 = vld [vmem:[%s13063_s2 + $0x7d0] sm:$0xff] }
 0x585   :  { %3987 = vmatprep.subr.mxu0 %v3782_v21  ;;  %4058 = vmatprep.subr.mxu1 %v3784_v27  ;;  %v3958_v21 = vld [vmem:[%s13063_s2 + $0x788] sm:$0xff]  ;;  %v3960_v27 = vld [vmem:[%s13063_s2 + $0x798] sm:$0xff] }
 0x586   :  { %3988 = vmatpush1.msra.mxu0 %v3781_v50  ;;  %4059 = vmatpush1.msra.mxu1 %v3783_v54  ;;  %v3957_v50 = vld [vmem:[%s13063_s2 + $0x780] sm:$0xff]  ;;  %v3959_v54 = vld [vmem:[%s13063_s2 + $0x790] sm:$0xff] }
 0x587   :  { %3989 = vmatprep.subr.mxu0 %v3774_v55  ;;  %4060 = vmatprep.subr.mxu1 %v3776_v0  ;;  %v3950_v55 = vld [vmem:[%s13063_s2 + $0x748] sm:$0xff]  ;;  %v3952_v0 = vld [vmem:[%s13063_s2 + $0x758] sm:$0xff] }
 0x588   :  { %3990 = vmatpush1.msra.mxu0 %v3773_v16  ;;  %4061 = vmatpush1.msra.mxu1 %v3775_v43  ;;  %v3949_v16 = vld [vmem:[%s13063_s2 + $0x740] sm:$0xff]  ;;  %v3951_v43 = vld [vmem:[%s13063_s2 + $0x750] sm:$0xff] }
 0x589   :  { %3991 = vmatprep.subr.mxu0 %v3766_v23  ;;  %4062 = vmatprep.subr.mxu1 %v3768_v51  ;;  %v3942_v23 = vld [vmem:[%s13063_s2 + $0x708] sm:$0xff]  ;;  %v3944_v51 = vld [vmem:[%s13063_s2 + $0x718] sm:$0xff] }
 0x58a   :  { %3992 = vmatpush1.msra.mxu0 %v3765_v26  ;;  %4063 = vmatpush1.msra.mxu1 %v3767_v45  ;;  %v3941_v26 = vld [vmem:[%s13063_s2 + $0x700] sm:$0xff]  ;;  %v3943_v45 = vld [vmem:[%s13063_s2 + $0x710] sm:$0xff] }
 0x58b   :  { %3993 = vmatprep.subr.mxu0 %v3758_v63  ;;  %4064 = vmatprep.subr.mxu1 %v3760_v5  ;;  %v3934_v63 = vld [vmem:[%s13063_s2 + $0x6c8] sm:$0xff]  ;;  %v3936_v5 = vld [vmem:[%s13063_s2 + $0x6d8] sm:$0xff] }
 0x58c   :  { %3994 = vmatpush1.msra.mxu0 %v3757_v18  ;;  %4065 = vmatpush1.msra.mxu1 %v3759_v2  ;;  %v3933_v18 = vld [vmem:[%s13063_s2 + $0x6c0] sm:$0xff]  ;;  %v3935_v2 = vld [vmem:[%s13063_s2 + $0x6d0] sm:$0xff] }
 0x58d   :  { %3995 = vmatprep.subr.mxu0 %v3750_v57  ;;  %4066 = vmatprep.subr.mxu1 %v3752_v37  ;;  %v3926_v57 = vld [vmem:[%s13063_s2 + $0x688] sm:$0xff]  ;;  %v3928_v37 = vld [vmem:[%s13063_s2 + $0x698] sm:$0xff] }
 0x58e   :  { %3996 = vmatpush1.msra.mxu0 %v3749_v6  ;;  %4067 = vmatpush1.msra.mxu1 %v3751_v60  ;;  %v3925_v6 = vld [vmem:[%s13063_s2 + $0x680] sm:$0xff]  ;;  %v3927_v60 = vld [vmem:[%s13063_s2 + $0x690] sm:$0xff] }
 0x58f   :  { %3997 = vmatprep.subr.mxu0 %v3742_v31  ;;  %4068 = vmatprep.subr.mxu1 %v3744_v32  ;;  %v3918_v31 = vld [vmem:[%s13063_s2 + $0x648] sm:$0xff]  ;;  %v3920_v32 = vld [vmem:[%s13063_s2 + $0x658] sm:$0xff] }
 0x590   :  { %3998 = vmatpush1.msra.mxu0 %v3741_v19  ;;  %4069 = vmatpush1.msra.mxu1 %v3743_v47  ;;  %v3917_v19 = vld [vmem:[%s13063_s2 + $0x640] sm:$0xff]  ;;  %v3919_v47 = vld [vmem:[%s13063_s2 + $0x650] sm:$0xff] }
 0x591   :  { %3999 = vmatprep.subr.mxu0 %v3734_v48  ;;  %4070 = vmatprep.subr.mxu1 %v3736_v58  ;;  %v3910_v48 = vld [vmem:[%s13063_s2 + $0x608] sm:$0xff]  ;;  %v3912_v58 = vld [vmem:[%s13063_s2 + $0x618] sm:$0xff] }
 0x592   :  { %4000 = vmatpush1.msra.mxu0 %v3733_v52  ;;  %4071 = vmatpush1.msra.mxu1 %v3735_v29  ;;  %v3909_v52 = vld [vmem:[%s13063_s2 + $0x600] sm:$0xff]  ;;  %v3911_v29 = vld [vmem:[%s13063_s2 + $0x610] sm:$0xff] }
 0x593   :  { %4001 = vmatprep.subr.mxu0 %v3726_v42  ;;  %4072 = vmatprep.subr.mxu1 %v3728_v40  ;;  %v3902_v42 = vld [vmem:[%s13063_s2 + $0x5c8] sm:$0xff]  ;;  %v3904_v40 = vld [vmem:[%s13063_s2 + $0x5d8] sm:$0xff] }
 0x594   :  { %4002 = vmatpush1.msra.mxu0 %v3725_v35  ;;  %4073 = vmatpush1.msra.mxu1 %v3727_v38  ;;  %v3901_v35 = vld [vmem:[%s13063_s2 + $0x5c0] sm:$0xff]  ;;  %v3903_v38 = vld [vmem:[%s13063_s2 + $0x5d0] sm:$0xff] }
 0x595   :  { %4003 = vmatprep.subr.mxu0 %v3718_v30  ;;  %4074 = vmatprep.subr.mxu1 %v3720_v8  ;;  %v3894_v30 = vld [vmem:[%s13063_s2 + $0x588] sm:$0xff]  ;;  %v3896_v8 = vld [vmem:[%s13063_s2 + $0x598] sm:$0xff] }
 0x596   :  { %4004 = vmatpush1.msra.mxu0 %v3717_v46  ;;  %4075 = vmatpush1.msra.mxu1 %v3719_v20  ;;  %v3893_v46 = vld [vmem:[%s13063_s2 + $0x580] sm:$0xff]  ;;  %v3895_v20 = vld [vmem:[%s13063_s2 + $0x590] sm:$0xff] }
 0x597   :  { %4005 = vmatprep.subr.mxu0 %v3966_v10  ;;  %4076 = vmatprep.subr.mxu1 %v3968_v28  ;;  %v3886_v10 = vld [vmem:[%s13063_s2 + $0x548] sm:$0xff]  ;;  %v3888_v28 = vld [vmem:[%s13063_s2 + $0x558] sm:$0xff] }
 0x598   :  { %4006 = vmatpush2.msra.mxu0 %v3965_v13  ;;  %4077 = vmatpush2.msra.mxu1 %v3967_v41  ;;  %v3885_v13 = vld [vmem:[%s13063_s2 + $0x540] sm:$0xff]  ;;  %v3887_v41 = vld [vmem:[%s13063_s2 + $0x550] sm:$0xff] }
 0x599   :  { %4007 = vmatprep.subr.mxu0 %v3958_v21  ;;  %4078 = vmatprep.subr.mxu1 %v3960_v27  ;;  %v3878_v21 = vld [vmem:[%s13063_s2 + $0x508] sm:$0xff]  ;;  %v3880_v27 = vld [vmem:[%s13063_s2 + $0x518] sm:$0xff] }
 0x59a   :  { %4008 = vmatpush2.msra.mxu0 %v3957_v50  ;;  %4079 = vmatpush2.msra.mxu1 %v3959_v54  ;;  %v3877_v50 = vld [vmem:[%s13063_s2 + $0x500] sm:$0xff]  ;;  %v3879_v54 = vld [vmem:[%s13063_s2 + $0x510] sm:$0xff] }
 0x59b   :  { %4009 = vmatprep.subr.mxu0 %v3950_v55  ;;  %4080 = vmatprep.subr.mxu1 %v3952_v0  ;;  %v3870_v55 = vld [vmem:[%s13063_s2 + $0x4c8] sm:$0xff]  ;;  %v3872_v0 = vld [vmem:[%s13063_s2 + $0x4d8] sm:$0xff] }
 0x59c   :  { %4010 = vmatpush2.msra.mxu0 %v3949_v16  ;;  %4081 = vmatpush2.msra.mxu1 %v3951_v43  ;;  %v3869_v16 = vld [vmem:[%s13063_s2 + $0x4c0] sm:$0xff]  ;;  %v3871_v43 = vld [vmem:[%s13063_s2 + $0x4d0] sm:$0xff] }
 0x59d   :  { %4011 = vmatprep.subr.mxu0 %v3942_v23  ;;  %4082 = vmatprep.subr.mxu1 %v3944_v51  ;;  %v3862_v23 = vld [vmem:[%s13063_s2 + $0x488] sm:$0xff]  ;;  %v3864_v51 = vld [vmem:[%s13063_s2 + $0x498] sm:$0xff] }
 0x59e   :  { %4012 = vmatpush2.msra.mxu0 %v3941_v26  ;;  %4083 = vmatpush2.msra.mxu1 %v3943_v45  ;;  %v3861_v26 = vld [vmem:[%s13063_s2 + $0x480] sm:$0xff]  ;;  %v3863_v45 = vld [vmem:[%s13063_s2 + $0x490] sm:$0xff] }
 0x59f   :  { %4013 = vmatprep.subr.mxu0 %v3934_v63  ;;  %4084 = vmatprep.subr.mxu1 %v3936_v5  ;;  %v3854_v63 = vld [vmem:[%s13063_s2 + $0x448] sm:$0xff]  ;;  %v3856_v5 = vld [vmem:[%s13063_s2 + $0x458] sm:$0xff] }
 0x5a0   :  { %4014 = vmatpush2.msra.mxu0 %v3933_v18  ;;  %4085 = vmatpush2.msra.mxu1 %v3935_v2  ;;  %v3853_v18 = vld [vmem:[%s13063_s2 + $0x440] sm:$0xff]  ;;  %v3855_v2 = vld [vmem:[%s13063_s2 + $0x450] sm:$0xff] }
 0x5a1   :  { %4015 = vmatprep.subr.mxu0 %v3926_v57  ;;  %4086 = vmatprep.subr.mxu1 %v3928_v37  ;;  %v3846_v57 = vld [vmem:[%s13063_s2 + $0x408] sm:$0xff]  ;;  %v3848_v37 = vld [vmem:[%s13063_s2 + $0x418] sm:$0xff] }
 0x5a2   :  { %4016 = vmatpush2.msra.mxu0 %v3925_v6  ;;  %4087 = vmatpush2.msra.mxu1 %v3927_v60  ;;  %v3845_v6 = vld [vmem:[%s13063_s2 + $0x400] sm:$0xff]  ;;  %v3847_v60 = vld [vmem:[%s13063_s2 + $0x410] sm:$0xff] }
 0x5a3   :  { %4017 = vmatprep.subr.mxu0 %v3918_v31  ;;  %4088 = vmatprep.subr.mxu1 %v3920_v32  ;;  %v3842_v31 = vld [vmem:[%s13063_s2 + $0x3e8] sm:$0xff]  ;;  %v3844_v32 = vld [vmem:[%s13063_s2 + $0x3f8] sm:$0xff] }
 0x5a4   :  { %4018 = vmatpush2.msra.mxu0 %v3917_v19  ;;  %4089 = vmatpush2.msra.mxu1 %v3919_v47 }
 0x5a5   :  { %4019 = vmatprep.subr.mxu0 %v3910_v48  ;;  %4090 = vmatprep.subr.mxu1 %v3912_v58 }
 0x5a6   :  { %4020 = vmatpush2.msra.mxu0 %v3909_v52  ;;  %4091 = vmatpush2.msra.mxu1 %v3911_v29 }
 0x5a7   :  { %4021 = vmatprep.subr.mxu0 %v3902_v42  ;;  %4092 = vmatprep.subr.mxu1 %v3904_v40 }
 0x5a8   :  { %4022 = vmatpush2.msra.mxu0 %v3901_v35  ;;  %4093 = vmatpush2.msra.mxu1 %v3903_v38 }
 0x5a9   :  { %4023 = vmatprep.subr.mxu0 %v3894_v30  ;;  %4094 = vmatprep.subr.mxu1 %v3896_v8 }
 0x5aa   :  { %4024 = vmatpush2.msra.mxu0 %v3893_v46  ;;  %4095 = vmatpush2.msra.mxu1 %v3895_v20 }
 0x5ab   :  { %4025 = vmatprep.subr.mxu0 %v3886_v10  ;;  %4096 = vmatprep.subr.mxu1 %v3888_v28 }
 0x5ac   :  { %4026 = vmatpush2.msra.mxu0 %v3885_v13  ;;  %4097 = vmatpush2.msra.mxu1 %v3887_v41 }
 0x5ad   :  { %4027 = vmatprep.subr.mxu0 %v3878_v21  ;;  %4098 = vmatprep.subr.mxu1 %v3880_v27  ;;  %v548_v27 = vadd.f32 %v7682_v49, %v7716_v61 }
 0x5ae   :  { %4028 = vmatpush2.msra.mxu0 %v3877_v50  ;;  %4099 = vmatpush2.msra.mxu1 %v3879_v54 }
 0x5af   :  { %4029 = vmatprep.subr.mxu0 %v3870_v55  ;;  %4100 = vmatprep.subr.mxu1 %v3872_v0 }
 0x5b0   :  { %4030 = vmatpush2.msra.mxu0 %v3869_v16  ;;  %4101 = vmatpush2.msra.mxu1 %v3871_v43 }
 0x5b1   :  { %4031 = vmatprep.subr.mxu0 %v3862_v23  ;;  %4102 = vmatprep.subr.mxu1 %v3864_v51 }
 0x5b2   :  { %4032 = vmatpush2.msra.mxu0 %v3861_v26  ;;  %4103 = vmatpush2.msra.mxu1 %v3863_v45 }
 0x5b3   :  { %4033 = vmatprep.subr.mxu0 %v3854_v63  ;;  %4104 = vmatprep.subr.mxu1 %v3856_v5 }
 0x5b4   :  { %4034 = vmatpush2.msra.mxu0 %v3853_v18  ;;  %4105 = vmatpush2.msra.mxu1 %v3855_v2 }
 0x5b5   :  { %4035 = vmatprep.subr.mxu0 %v3846_v57  ;;  %4106 = vmatprep.subr.mxu1 %v3848_v37 }
 0x5b6   :  { %4036 = vmatpush2.msra.mxu0 %v3845_v6  ;;  %4107 = vmatpush2.msra.mxu1 %v3847_v60 }
 0x5b7   :  { %4115 = vmatprep.subr.mxu0 %v3842_v31  ;;  %4186 = vmatprep.subr.mxu1 %v3844_v32 }
 0x5f5   :  { %v3425_v19 = vpop.f32.mrf.mxu0  ;;  %v3496_v47 = vpop.f32.mrf.mxu1 }
 0x5f6   :  { %v3643_v58 = vadd.f32 %v3425_v19, %v7167_v4  ;;  %v3645_v52 = vadd.f32 %v3496_v47, %v7257_v33 }
 0x5f7   :  { %v3427_v48 = vpop.f32.mrf.mxu0  ;;  %v3498_v29 = vpop.f32.mrf.mxu1 }
 0x5f8   :  { %v3644_v42 = vadd.f32 %v3427_v48, %v7170_v7  ;;  %v5795_v40 = vmul.f32 -1.442695, %v3643_v58  ;;  %v3646_v35 = vadd.f32 %v3498_v29, %v7278_v3  ;;  %v5797_v38 = vmul.f32 -1.442695, %v3645_v52  ;;  %v3843_v29 = vld [vmem:[%s13063_s2 + $0x3f0] sm:$0xff] }
 0x5f9   :  { %v546_v7 = vadd.f32 %v7680_v24, %v7713_v36 }
 0x5fa   :  { %v5796_v30 = vmul.f32 -1.442695, %v3644_v42  ;;  %6005 = vpow2.f32 %v5795_v40  ;;  %v5798_v8 = vmul.f32 -1.442695, %v3646_v35  ;;  %v3834_v42 = vld [vmem:[%s13063_s2 + $0x3a8] sm:$0xff]  ;;  %v3836_v40 = vld [vmem:[%s13063_s2 + $0x3b8] sm:$0xff] }
 0x5fb   :  { %6007 = vpow2.f32 %v5797_v38  ;;  %v3833_v35 = vld [vmem:[%s13063_s2 + $0x3a0] sm:$0xff]  ;;  %v3835_v38 = vld [vmem:[%s13063_s2 + $0x3b0] sm:$0xff] }
 0x5fc   :  { %6009 = vpow2.f32 %v5796_v30  ;;  %v3826_v30 = vld [vmem:[%s13063_s2 + $0x368] sm:$0xff] }
 0x5fd   :  { %6011 = vpow2.f32 %v5798_v8  ;;  %v3828_v8 = vld [vmem:[%s13063_s2 + $0x378] sm:$0xff] }
 0x607   :  { %v6006_v46 = vpop.eup %6005 }
 0x608   :  { %v6008_v20 = vpop.eup %6007  ;;  %v3657_v28 = vadd.f32 1.0, %v6006_v46  ;;  %v3825_v46 = vld [vmem:[%s13063_s2 + $0x360] sm:$0xff] }
 0x609   :  { %v6010_v10 = vpop.eup %6009  ;;  %v3669_v13 = vadd.f32 1.0, %v6008_v20  ;;  %v3827_v20 = vld [vmem:[%s13063_s2 + $0x370] sm:$0xff] }
 0x60a   :  { %v6012_v4 = vpop.eup %6011  ;;  %v3658_v33 = vadd.f32 1.0, %v6010_v10  ;;  %6013 = vrcp.f32 %v3657_v28  ;;  %v3818_v10 = vld [vmem:[%s13063_s2 + $0x328] sm:$0xff]  ;;  %v3820_v28 = vld [vmem:[%s13063_s2 + $0x338] sm:$0xff] }
 0x60b   :  { %v3670_v41 = vadd.f32 1.0, %v6012_v4  ;;  %6015 = vrcp.f32 %v3669_v13  ;;  %v3817_v4 = vld [vmem:[%s13063_s2 + $0x320] sm:$0xff]  ;;  %v3819_v13 = vld [vmem:[%s13063_s2 + $0x330] sm:$0xff] }
 0x60c   :  { %6017 = vrcp.f32 %v3658_v33  ;;  %v3810_v33 = vld [vmem:[%s13063_s2 + $0x2e8] sm:$0xff] }
 0x617   :  { %v6014_v51 = vpop.eup %6013 }
 0x618   :  { %v6016_v26 = vpop.eup %6015 }
 0x619   :  { %v6018_v49 = vpop.eup %6017 }
 0x636   :  { %v3567_v3 = vpop.f32.mrf.mxu0  ;;  %v3638_v21 = vpop.f32.mrf.mxu1 }
 0x637   :  { %v3647_v50 = vadd.f32 %v3567_v3, %v7185_v17  ;;  %v3649_v54 = vadd.f32 %v3638_v21, %v546_v7  ;;  %v3689_v17 = vmul.f32 %v6016_v26, %v10113_v9  ;;  %v3812_v7 = vld [vmem:[%s13063_s2 + $0x2f8] sm:$0xff]  ;;  %v3811_v3 = vld [vmem:[%s13063_s2 + $0x2f0] sm:$0xff]  ;;  %v3802_v21 = vld [vmem:[%s13063_s2 + $0x2a8] sm:$0xff] }
 0x638   :  { %v3569_v55 = vpop.f32.mrf.mxu0  ;;  %v3640_v0 = vpop.f32.mrf.mxu1  ;;  %v3787_v26 = vld [vmem:[%s13063_s2 + $0x230] sm:$0xff] }
 0x639   :  { %6019 = vtanh.f32 %v3647_v50  ;;  %v5799_v16 = vmul.f32 -1.442695, %v3649_v54  ;;  %v3648_v43 = vadd.f32 %v3569_v55, %v7191_v22  ;;  %v3650_v23 = vadd.f32 %v3640_v0, %v548_v27  ;;  %v3804_v27 = vld [vmem:[%s13063_s2 + $0x2b8] sm:$0xff]  ;;  %v3801_v50 = vld [vmem:[%s13063_s2 + $0x2a0] sm:$0xff]  ;;  %v3803_v54 = vld [vmem:[%s13063_s2 + $0x2b0] sm:$0xff] }
 0x63a   :  { %6021 = vrcp.f32 %v3670_v41  ;;  %v3809_v41 = vld [vmem:[%s13063_s2 + $0x2e0] sm:$0xff]  ;;  %v3794_v55 = vld [vmem:[%s13063_s2 + $0x268] sm:$0xff]  ;;  %v3796_v0 = vld [vmem:[%s13063_s2 + $0x278] sm:$0xff] }
 0x63b   :  { %6023 = vpow2.f32 %v5799_v16  ;;  %v5800_v24 = vmul.f32 -1.442695, %v3650_v23  ;;  %v3793_v16 = vld [vmem:[%s13063_s2 + $0x260] sm:$0xff]  ;;  %v3786_v23 = vld [vmem:[%s13063_s2 + $0x228] sm:$0xff] }
 0x63c   :  { %6025 = vtanh.f32 %v3648_v43  ;;  %v3795_v43 = vld [vmem:[%s13063_s2 + $0x270] sm:$0xff] }
 0x63d   :  { %6027 = vpow2.f32 %v5800_v24  ;;  %v3788_v24 = vld [vmem:[%s13063_s2 + $0x238] sm:$0xff] }
 0x646   :  { %v6020_v45 = vpop.eup %6019 }
 0x647   :  { %v6022_v63 = vpop.eup %6021  ;;  %v3691_v5 = vmul.f32 %v6020_v45, %v6014_v51  ;;  %v3785_v51 = vld [vmem:[%s13063_s2 + $0x220] sm:$0xff]  ;;  %v3780_v45 = vld [vmem:[%s13063_s2 + $0x1f8] sm:$0xff] }
 0x648   :  { %v6024_v18 = vpop.eup %6023  ;;  %v3690_v6 = vmul.f32 %v6022_v63, %v10117_v44  ;;  %v3841_v44 = vld [vmem:[%s13063_s2 + $0x3e0] sm:$0xff] }
 0x649   :  { %v6026_v2 = vpop.eup %6025  ;;  %v10911_v57 = vadd.f32 %v3691_v5, %v3689_v17  ;;  %v3683_v37 = vadd.f32 1.0, %v6024_v18  ;;  %v3777_v63 = vld [vmem:[%s13063_s2 + $0x1e0] sm:$0xff]  ;;  %v3779_v17 = vld [vmem:[%s13063_s2 + $0x1f0] sm:$0xff]  ;;  %v3770_v5 = vld [vmem:[%s13063_s2 + $0x1a8] sm:$0xff] }
 0x64a   :  { %v6028_v22 = vpop.eup %6027  ;;  %v3692_v60 = vmul.f32 %v6026_v2, %v6018_v49  ;;  %v3778_v49 = vld [vmem:[%s13063_s2 + $0x1e8] sm:$0xff]  ;;  %v3772_v18 = vld [vmem:[%s13063_s2 + $0x1b8] sm:$0xff]  ;;  %v3769_v2 = vld [vmem:[%s13063_s2 + $0x1a0] sm:$0xff] }
 0x64b   :  { %6029 = vtanh.f32 %v10911_v57  ;;  %v3684_v31 = vadd.f32 1.0, %v6028_v22  ;;  %v3762_v22 = vld [vmem:[%s13063_s2 + $0x168] sm:$0xff] }
 0x64c   :  { %6031 = vrcp.f32 %v3683_v37  ;;  %v10915_v32 = vadd.f32 %v3692_v60, %v3690_v6  ;;  %v3771_v37 = vld [vmem:[%s13063_s2 + $0x1b0] sm:$0xff]  ;;  %v3764_v6 = vld [vmem:[%s13063_s2 + $0x178] sm:$0xff]  ;;  %v3761_v60 = vld [vmem:[%s13063_s2 + $0x160] sm:$0xff] }
 0x64d   :  { %6033 = vrcp.f32 %v3684_v31  ;;  %v3763_v31 = vld [vmem:[%s13063_s2 + $0x170] sm:$0xff] }
 0x64e   :  { %6035 = vtanh.f32 %v10915_v32 }
 0x658   :  { %v6030_v9 = vpop.eup %6029 }
 0x659   :  { %v6032_v19 = vpop.eup %6031 }
 0x65a   :  { %v6034_v47 = vpop.eup %6033  ;;  %v10920_v52 = vmul.f32 %v6032_v19, %v6030_v9  ;;  %v3754_v9 = vld [vmem:[%s13063_s2 + $0x128] sm:$0xff]  ;;  %v3756_v19 = vld [vmem:[%s13063_s2 + $0x138] sm:$0xff] }
 0x65b   :  { %v6036_v48 = vpop.eup %6035 }
 0x65c   :  { %v10918_v58 = vmul.f32 %v6036_v48, %v6034_v47  ;;  %v3753_v47 = vld [vmem:[%s13063_s2 + $0x120] sm:$0xff]  ;;  %v3755_v48 = vld [vmem:[%s13063_s2 + $0x130] sm:$0xff] }
 0x65e   :  { %4037 = vmatprep.mubr.f32.mxu0 %v10918_v58  ;;  %4108 = vmatprep.mubr.f32.mxu1 %v10918_v58 }
 0x65f   :  { %4038 = vmatmul.mubr.f32.vlgmr.msra.gmra.mxu0 %v10920_v52  ;;  %4109 = vmatmul.mubr.f32.vlgmr.msra.gmra.mxu1 %v10920_v52 }
 0x660   :  { %4116 = vmatpush1.msra.mxu0 %v3841_v44  ;;  %4187 = vmatpush1.msra.mxu1 %v3843_v29  ;;  %v3746_v44 = vld [vmem:[%s13063_s2 + $0xe8] sm:$0xff]  ;;  %v3748_v29 = vld [vmem:[%s13063_s2 + $0xf8] sm:$0xff] }
 0x661   :  { %4117 = vmatprep.subr.mxu0 %v3834_v42  ;;  %4179 = vmatprep.mubr.f32.mxu0 %v10918_v58  ;;  %v3745_v42 = vld [vmem:[%s13063_s2 + $0xe0] sm:$0xff] }
 0x662   :  { %4188 = vmatprep.subr.mxu1 %v3836_v40  ;;  %4250 = vmatprep.mubr.f32.mxu1 %v10918_v58  ;;  %v3747_v40 = vld [vmem:[%s13063_s2 + $0xf0] sm:$0xff] }
 0x663   :  { %4118 = vmatpush1.msra.mxu0 %v3833_v35  ;;  %4189 = vmatpush1.msra.mxu1 %v3835_v38  ;;  %v3738_v35 = vld [vmem:[%s13063_s2 + $0xa8] sm:$0xff]  ;;  %v3740_v38 = vld [vmem:[%s13063_s2 + $0xb8] sm:$0xff] }
 0x664   :  { %4119 = vmatprep.subr.mxu0 %v3826_v30  ;;  %4190 = vmatprep.subr.mxu1 %v3828_v8  ;;  %v3737_v30 = vld [vmem:[%s13063_s2 + $0xa0] sm:$0xff]  ;;  %v3739_v8 = vld [vmem:[%s13063_s2 + $0xb0] sm:$0xff] }
 0x665   :  { %4120 = vmatpush1.msra.mxu0 %v3825_v46  ;;  %4191 = vmatpush1.msra.mxu1 %v3827_v20  ;;  %v3730_v46 = vld [vmem:[%s13063_s2 + $0x68] sm:$0xff]  ;;  %v3732_v20 = vld [vmem:[%s13063_s2 + $0x78] sm:$0xff] }
 0x666   :  { %4121 = vmatprep.subr.mxu0 %v3818_v10  ;;  %4192 = vmatprep.subr.mxu1 %v3820_v28  ;;  %v3729_v10 = vld [vmem:[%s13063_s2 + $0x60] sm:$0xff]  ;;  %v3731_v28 = vld [vmem:[%s13063_s2 + $0x70] sm:$0xff] }
 0x667   :  { %4122 = vmatpush1.msra.mxu0 %v3817_v4  ;;  %4193 = vmatpush1.msra.mxu1 %v3819_v13  ;;  %v3722_v4 = vld [vmem:[%s13063_s2 + $0x28] sm:$0xff]  ;;  %v3724_v13 = vld [vmem:[%s13063_s2 + $0x38] sm:$0xff] }
 0x668   :  { %4123 = vmatprep.subr.mxu0 %v3810_v33  ;;  %4194 = vmatprep.subr.mxu1 %v3812_v7  ;;  %v3721_v33 = vld [vmem:[%s13063_s2 + $0x20] sm:$0xff]  ;;  %v3723_v7 = vld [vmem:[%s13063_s2 + $0x30] sm:$0xff] }
 0x669   :  { %4124 = vmatpush1.msra.mxu0 %v3809_v41  ;;  %4195 = vmatpush1.msra.mxu1 %v3811_v3  ;;  %v3970_v41 = vld [vmem:[%s13063_s2 + $0x7e8] sm:$0xff]  ;;  %v3972_v3 = vld [vmem:[%s13063_s2 + $0x7f8] sm:$0xff] }
 0x66a   :  { %4125 = vmatprep.subr.mxu0 %v3802_v21  ;;  %4196 = vmatprep.subr.mxu1 %v3804_v27  ;;  %v3969_v21 = vld [vmem:[%s13063_s2 + $0x7e0] sm:$0xff]  ;;  %v3971_v27 = vld [vmem:[%s13063_s2 + $0x7f0] sm:$0xff] }
 0x66b   :  { %4126 = vmatpush1.msra.mxu0 %v3801_v50  ;;  %4197 = vmatpush1.msra.mxu1 %v3803_v54  ;;  %v3962_v50 = vld [vmem:[%s13063_s2 + $0x7a8] sm:$0xff]  ;;  %v3964_v54 = vld [vmem:[%s13063_s2 + $0x7b8] sm:$0xff] }
 0x66c   :  { %4127 = vmatprep.subr.mxu0 %v3794_v55  ;;  %4198 = vmatprep.subr.mxu1 %v3796_v0  ;;  %v3961_v55 = vld [vmem:[%s13063_s2 + $0x7a0] sm:$0xff]  ;;  %v3963_v0 = vld [vmem:[%s13063_s2 + $0x7b0] sm:$0xff] }
 0x66d   :  { %4128 = vmatpush1.msra.mxu0 %v3793_v16  ;;  %4199 = vmatpush1.msra.mxu1 %v3795_v43  ;;  %v3954_v16 = vld [vmem:[%s13063_s2 + $0x768] sm:$0xff]  ;;  %v3956_v43 = vld [vmem:[%s13063_s2 + $0x778] sm:$0xff] }
 0x66e   :  { %4129 = vmatprep.subr.mxu0 %v3786_v23  ;;  %4200 = vmatprep.subr.mxu1 %v3788_v24  ;;  %v3953_v23 = vld [vmem:[%s13063_s2 + $0x760] sm:$0xff]  ;;  %v3955_v24 = vld [vmem:[%s13063_s2 + $0x770] sm:$0xff] }
 0x66f   :  { %4130 = vmatpush1.msra.mxu0 %v3785_v51  ;;  %4201 = vmatpush1.msra.mxu1 %v3787_v26  ;;  %v3946_v51 = vld [vmem:[%s13063_s2 + $0x728] sm:$0xff]  ;;  %v3948_v26 = vld [vmem:[%s13063_s2 + $0x738] sm:$0xff] }
 0x670   :  { %4131 = vmatprep.subr.mxu0 %v3778_v49  ;;  %4202 = vmatprep.subr.mxu1 %v3780_v45  ;;  %v3945_v49 = vld [vmem:[%s13063_s2 + $0x720] sm:$0xff]  ;;  %v3947_v45 = vld [vmem:[%s13063_s2 + $0x730] sm:$0xff] }
 0x671   :  { %4132 = vmatpush1.msra.mxu0 %v3777_v63  ;;  %4203 = vmatpush1.msra.mxu1 %v3779_v17  ;;  %v3938_v63 = vld [vmem:[%s13063_s2 + $0x6e8] sm:$0xff]  ;;  %v3940_v17 = vld [vmem:[%s13063_s2 + $0x6f8] sm:$0xff] }
 0x672   :  { %4133 = vmatprep.subr.mxu0 %v3770_v5  ;;  %4204 = vmatprep.subr.mxu1 %v3772_v18  ;;  %v3937_v5 = vld [vmem:[%s13063_s2 + $0x6e0] sm:$0xff]  ;;  %v3939_v18 = vld [vmem:[%s13063_s2 + $0x6f0] sm:$0xff] }
 0x673   :  { %4134 = vmatpush1.msra.mxu0 %v3769_v2  ;;  %4205 = vmatpush1.msra.mxu1 %v3771_v37  ;;  %v3930_v2 = vld [vmem:[%s13063_s2 + $0x6a8] sm:$0xff]  ;;  %v3932_v37 = vld [vmem:[%s13063_s2 + $0x6b8] sm:$0xff] }
 0x674   :  { %4135 = vmatprep.subr.mxu0 %v3762_v22  ;;  %4206 = vmatprep.subr.mxu1 %v3764_v6  ;;  %v3929_v22 = vld [vmem:[%s13063_s2 + $0x6a0] sm:$0xff]  ;;  %v3931_v6 = vld [vmem:[%s13063_s2 + $0x6b0] sm:$0xff] }
 0x675   :  { %4136 = vmatpush1.msra.mxu0 %v3761_v60  ;;  %4207 = vmatpush1.msra.mxu1 %v3763_v31  ;;  %v3922_v60 = vld [vmem:[%s13063_s2 + $0x668] sm:$0xff]  ;;  %v3924_v31 = vld [vmem:[%s13063_s2 + $0x678] sm:$0xff] }
 0x676   :  { %4137 = vmatprep.subr.mxu0 %v3754_v9  ;;  %4208 = vmatprep.subr.mxu1 %v3756_v19  ;;  %v3921_v9 = vld [vmem:[%s13063_s2 + $0x660] sm:$0xff]  ;;  %v3923_v19 = vld [vmem:[%s13063_s2 + $0x670] sm:$0xff] }
 0x677   :  { %4138 = vmatpush1.msra.mxu0 %v3753_v47  ;;  %4209 = vmatpush1.msra.mxu1 %v3755_v48  ;;  %v3914_v47 = vld [vmem:[%s13063_s2 + $0x628] sm:$0xff]  ;;  %v3916_v48 = vld [vmem:[%s13063_s2 + $0x638] sm:$0xff] }
 0x678   :  { %4139 = vmatprep.subr.mxu0 %v3746_v44  ;;  %4210 = vmatprep.subr.mxu1 %v3748_v29  ;;  %v3913_v44 = vld [vmem:[%s13063_s2 + $0x620] sm:$0xff]  ;;  %v3915_v29 = vld [vmem:[%s13063_s2 + $0x630] sm:$0xff] }
 0x679   :  { %4140 = vmatpush1.msra.mxu0 %v3745_v42  ;;  %4211 = vmatpush1.msra.mxu1 %v3747_v40  ;;  %v3906_v42 = vld [vmem:[%s13063_s2 + $0x5e8] sm:$0xff]  ;;  %v3908_v40 = vld [vmem:[%s13063_s2 + $0x5f8] sm:$0xff] }
 0x67a   :  { %4141 = vmatprep.subr.mxu0 %v3738_v35  ;;  %4212 = vmatprep.subr.mxu1 %v3740_v38  ;;  %v3905_v35 = vld [vmem:[%s13063_s2 + $0x5e0] sm:$0xff]  ;;  %v3907_v38 = vld [vmem:[%s13063_s2 + $0x5f0] sm:$0xff] }
 0x67b   :  { %4142 = vmatpush1.msra.mxu0 %v3737_v30  ;;  %4213 = vmatpush1.msra.mxu1 %v3739_v8  ;;  %v3898_v30 = vld [vmem:[%s13063_s2 + $0x5a8] sm:$0xff]  ;;  %v3900_v8 = vld [vmem:[%s13063_s2 + $0x5b8] sm:$0xff] }
 0x67c   :  { %4143 = vmatprep.subr.mxu0 %v3730_v46  ;;  %4214 = vmatprep.subr.mxu1 %v3732_v20  ;;  %v3897_v46 = vld [vmem:[%s13063_s2 + $0x5a0] sm:$0xff]  ;;  %v3899_v20 = vld [vmem:[%s13063_s2 + $0x5b0] sm:$0xff] }
 0x67d   :  { %4144 = vmatpush1.msra.mxu0 %v3729_v10  ;;  %4215 = vmatpush1.msra.mxu1 %v3731_v28  ;;  %v3890_v10 = vld [vmem:[%s13063_s2 + $0x568] sm:$0xff]  ;;  %v3892_v28 = vld [vmem:[%s13063_s2 + $0x578] sm:$0xff] }
 0x67e   :  { %4145 = vmatprep.subr.mxu0 %v3722_v4  ;;  %4216 = vmatprep.subr.mxu1 %v3724_v13  ;;  %v3889_v4 = vld [vmem:[%s13063_s2 + $0x560] sm:$0xff]  ;;  %v3891_v13 = vld [vmem:[%s13063_s2 + $0x570] sm:$0xff] }
 0x67f   :  { %4146 = vmatpush1.msra.mxu0 %v3721_v33  ;;  %4217 = vmatpush1.msra.mxu1 %v3723_v7  ;;  %v3882_v33 = vld [vmem:[%s13063_s2 + $0x528] sm:$0xff]  ;;  %v3884_v7 = vld [vmem:[%s13063_s2 + $0x538] sm:$0xff] }
 0x680   :  { %4147 = vmatprep.subr.mxu0 %v3970_v41  ;;  %4218 = vmatprep.subr.mxu1 %v3972_v3  ;;  %v3881_v41 = vld [vmem:[%s13063_s2 + $0x520] sm:$0xff]  ;;  %v3883_v3 = vld [vmem:[%s13063_s2 + $0x530] sm:$0xff] }
 0x681   :  { %4148 = vmatpush2.msra.mxu0 %v3969_v21  ;;  %4219 = vmatpush2.msra.mxu1 %v3971_v27  ;;  %v3874_v21 = vld [vmem:[%s13063_s2 + $0x4e8] sm:$0xff]  ;;  %v3876_v27 = vld [vmem:[%s13063_s2 + $0x4f8] sm:$0xff] }
 0x682   :  { %4149 = vmatprep.subr.mxu0 %v3962_v50  ;;  %4220 = vmatprep.subr.mxu1 %v3964_v54  ;;  %v3873_v50 = vld [vmem:[%s13063_s2 + $0x4e0] sm:$0xff]  ;;  %v3875_v54 = vld [vmem:[%s13063_s2 + $0x4f0] sm:$0xff] }
 0x683   :  { %4150 = vmatpush2.msra.mxu0 %v3961_v55  ;;  %4221 = vmatpush2.msra.mxu1 %v3963_v0  ;;  %v3866_v55 = vld [vmem:[%s13063_s2 + $0x4a8] sm:$0xff]  ;;  %v3868_v0 = vld [vmem:[%s13063_s2 + $0x4b8] sm:$0xff] }
 0x684   :  { %4151 = vmatprep.subr.mxu0 %v3954_v16  ;;  %4222 = vmatprep.subr.mxu1 %v3956_v43  ;;  %v3865_v16 = vld [vmem:[%s13063_s2 + $0x4a0] sm:$0xff]  ;;  %v3867_v43 = vld [vmem:[%s13063_s2 + $0x4b0] sm:$0xff] }
 0x685   :  { %4152 = vmatpush2.msra.mxu0 %v3953_v23  ;;  %4223 = vmatpush2.msra.mxu1 %v3955_v24  ;;  %v3858_v23 = vld [vmem:[%s13063_s2 + $0x468] sm:$0xff]  ;;  %v3860_v24 = vld [vmem:[%s13063_s2 + $0x478] sm:$0xff] }
 0x686   :  { %4153 = vmatprep.subr.mxu0 %v3946_v51  ;;  %4224 = vmatprep.subr.mxu1 %v3948_v26  ;;  %v3857_v51 = vld [vmem:[%s13063_s2 + $0x460] sm:$0xff]  ;;  %v3859_v26 = vld [vmem:[%s13063_s2 + $0x470] sm:$0xff] }
 0x687   :  { %4154 = vmatpush2.msra.mxu0 %v3945_v49  ;;  %4225 = vmatpush2.msra.mxu1 %v3947_v45  ;;  %v3850_v49 = vld [vmem:[%s13063_s2 + $0x428] sm:$0xff]  ;;  %v3852_v45 = vld [vmem:[%s13063_s2 + $0x438] sm:$0xff] }
 0x688   :  { %4155 = vmatprep.subr.mxu0 %v3938_v63  ;;  %4226 = vmatprep.subr.mxu1 %v3940_v17  ;;  %v3849_v63 = vld [vmem:[%s13063_s2 + $0x420] sm:$0xff]  ;;  %v3851_v17 = vld [vmem:[%s13063_s2 + $0x430] sm:$0xff] }
 0x689   :  { %4156 = vmatpush2.msra.mxu0 %v3937_v5  ;;  %4227 = vmatpush2.msra.mxu1 %v3939_v18  ;;  %v4452_v5 = vld [vmem:[%s13063_s2 + $0x3c8] sm:$0xff]  ;;  %v4454_v18 = vld [vmem:[%s13063_s2 + $0x3d8] sm:$0xff] }
 0x68a   :  { %4157 = vmatprep.subr.mxu0 %v3930_v2  ;;  %4228 = vmatprep.subr.mxu1 %v3932_v37  ;;  %v4451_v2 = vld [vmem:[%s13063_s2 + $0x3c0] sm:$0xff]  ;;  %v4453_v37 = vld [vmem:[%s13063_s2 + $0x3d0] sm:$0xff] }
 0x68b   :  { %4158 = vmatpush2.msra.mxu0 %v3929_v22  ;;  %4229 = vmatpush2.msra.mxu1 %v3931_v6  ;;  %v4444_v22 = vld [vmem:[%s13063_s2 + $0x388] sm:$0xff]  ;;  %v4446_v6 = vld [vmem:[%s13063_s2 + $0x398] sm:$0xff] }
 0x68c   :  { %4159 = vmatprep.subr.mxu0 %v3922_v60  ;;  %4230 = vmatprep.subr.mxu1 %v3924_v31  ;;  %v4443_v60 = vld [vmem:[%s13063_s2 + $0x380] sm:$0xff]  ;;  %v4445_v31 = vld [vmem:[%s13063_s2 + $0x390] sm:$0xff] }
 0x68d   :  { %4160 = vmatpush2.msra.mxu0 %v3921_v9  ;;  %4231 = vmatpush2.msra.mxu1 %v3923_v19  ;;  %v4436_v9 = vld [vmem:[%s13063_s2 + $0x348] sm:$0xff]  ;;  %v4438_v19 = vld [vmem:[%s13063_s2 + $0x358] sm:$0xff] }
 0x68e   :  { %4161 = vmatprep.subr.mxu0 %v3914_v47  ;;  %4232 = vmatprep.subr.mxu1 %v3916_v48  ;;  %v4435_v47 = vld [vmem:[%s13063_s2 + $0x340] sm:$0xff]  ;;  %v4437_v48 = vld [vmem:[%s13063_s2 + $0x350] sm:$0xff] }
 0x68f   :  { %4162 = vmatpush2.msra.mxu0 %v3913_v44  ;;  %4233 = vmatpush2.msra.mxu1 %v3915_v29  ;;  %v4428_v44 = vld [vmem:[%s13063_s2 + $0x308] sm:$0xff]  ;;  %v4430_v29 = vld [vmem:[%s13063_s2 + $0x318] sm:$0xff] }
 0x690   :  { %4163 = vmatprep.subr.mxu0 %v3906_v42  ;;  %4234 = vmatprep.subr.mxu1 %v3908_v40  ;;  %v4427_v42 = vld [vmem:[%s13063_s2 + $0x300] sm:$0xff]  ;;  %v4429_v40 = vld [vmem:[%s13063_s2 + $0x310] sm:$0xff] }
 0x691   :  { %4164 = vmatpush2.msra.mxu0 %v3905_v35  ;;  %4235 = vmatpush2.msra.mxu1 %v3907_v38  ;;  %v4420_v35 = vld [vmem:[%s13063_s2 + $0x2c8] sm:$0xff]  ;;  %v4422_v38 = vld [vmem:[%s13063_s2 + $0x2d8] sm:$0xff] }
 0x692   :  { %4165 = vmatprep.subr.mxu0 %v3898_v30  ;;  %4236 = vmatprep.subr.mxu1 %v3900_v8  ;;  %v4419_v30 = vld [vmem:[%s13063_s2 + $0x2c0] sm:$0xff]  ;;  %v4421_v8 = vld [vmem:[%s13063_s2 + $0x2d0] sm:$0xff] }
 0x693   :  { %4166 = vmatpush2.msra.mxu0 %v3897_v46  ;;  %4237 = vmatpush2.msra.mxu1 %v3899_v20  ;;  %v4412_v46 = vld [vmem:[%s13063_s2 + $0x288] sm:$0xff]  ;;  %v4414_v20 = vld [vmem:[%s13063_s2 + $0x298] sm:$0xff] }
 0x694   :  { %4167 = vmatprep.subr.mxu0 %v3890_v10  ;;  %4238 = vmatprep.subr.mxu1 %v3892_v28  ;;  %v4411_v10 = vld [vmem:[%s13063_s2 + $0x280] sm:$0xff]  ;;  %v4413_v28 = vld [vmem:[%s13063_s2 + $0x290] sm:$0xff] }
 0x695   :  { %4168 = vmatpush2.msra.mxu0 %v3889_v4  ;;  %4239 = vmatpush2.msra.mxu1 %v3891_v13  ;;  %v4404_v4 = vld [vmem:[%s13063_s2 + $0x248] sm:$0xff]  ;;  %v4406_v13 = vld [vmem:[%s13063_s2 + $0x258] sm:$0xff] }
 0x696   :  { %4169 = vmatprep.subr.mxu0 %v3882_v33  ;;  %4240 = vmatprep.subr.mxu1 %v3884_v7  ;;  %v4403_v33 = vld [vmem:[%s13063_s2 + $0x240] sm:$0xff]  ;;  %v4405_v7 = vld [vmem:[%s13063_s2 + $0x250] sm:$0xff] }
 0x697   :  { %4170 = vmatpush2.msra.mxu0 %v3881_v41  ;;  %4241 = vmatpush2.msra.mxu1 %v3883_v3  ;;  %v4396_v41 = vld [vmem:[%s13063_s2 + $0x208] sm:$0xff]  ;;  %v4398_v3 = vld [vmem:[%s13063_s2 + $0x218] sm:$0xff] }
 0x698   :  { %4171 = vmatprep.subr.mxu0 %v3874_v21  ;;  %4242 = vmatprep.subr.mxu1 %v3876_v27  ;;  %v4395_v21 = vld [vmem:[%s13063_s2 + $0x200] sm:$0xff]  ;;  %v4397_v27 = vld [vmem:[%s13063_s2 + $0x210] sm:$0xff] }
 0x699   :  { %4172 = vmatpush2.msra.mxu0 %v3873_v50  ;;  %4243 = vmatpush2.msra.mxu1 %v3875_v54  ;;  %v4388_v50 = vld [vmem:[%s13063_s2 + $0x1c8] sm:$0xff]  ;;  %v4390_v54 = vld [vmem:[%s13063_s2 + $0x1d8] sm:$0xff] }
 0x69a   :  { %4173 = vmatprep.subr.mxu0 %v3866_v55  ;;  %4244 = vmatprep.subr.mxu1 %v3868_v0  ;;  %v4387_v55 = vld [vmem:[%s13063_s2 + $0x1c0] sm:$0xff]  ;;  %v4389_v0 = vld [vmem:[%s13063_s2 + $0x1d0] sm:$0xff] }
 0x69b   :  { %4174 = vmatpush2.msra.mxu0 %v3865_v16  ;;  %4245 = vmatpush2.msra.mxu1 %v3867_v43  ;;  %v4380_v16 = vld [vmem:[%s13063_s2 + $0x188] sm:$0xff]  ;;  %v4382_v43 = vld [vmem:[%s13063_s2 + $0x198] sm:$0xff] }
 0x69c   :  { %4175 = vmatprep.subr.mxu0 %v3858_v23  ;;  %4246 = vmatprep.subr.mxu1 %v3860_v24  ;;  %v4379_v23 = vld [vmem:[%s13063_s2 + $0x180] sm:$0xff]  ;;  %v4381_v24 = vld [vmem:[%s13063_s2 + $0x190] sm:$0xff] }
 0x69d   :  { %4176 = vmatpush2.msra.mxu0 %v3857_v51  ;;  %4247 = vmatpush2.msra.mxu1 %v3859_v26  ;;  %v4372_v51 = vld [vmem:[%s13063_s2 + $0x148] sm:$0xff]  ;;  %v4374_v26 = vld [vmem:[%s13063_s2 + $0x158] sm:$0xff] }
 0x69e   :  { %4177 = vmatprep.subr.mxu0 %v3850_v49  ;;  %4248 = vmatprep.subr.mxu1 %v3852_v45  ;;  %v4371_v49 = vld [vmem:[%s13063_s2 + $0x140] sm:$0xff]  ;;  %v4373_v45 = vld [vmem:[%s13063_s2 + $0x150] sm:$0xff] }
 0x69f   :  { %4178 = vmatpush2.msra.mxu0 %v3849_v63  ;;  %4249 = vmatpush2.msra.mxu1 %v3851_v17  ;;  %v4364_v63 = vld [vmem:[%s13063_s2 + $0x108] sm:$0xff]  ;;  %v4366_v17 = vld [vmem:[%s13063_s2 + $0x118] sm:$0xff] }
 0x6a0   :  { %4180 = vmatmul.mubr.f32.vlgmr.msra.gmra.mxu0 %v10920_v52  ;;  %4251 = vmatmul.mubr.f32.vlgmr.msra.gmra.mxu1 %v10920_v52 }
 0x6a1   :  { %4587 = vmatprep.subr.mxu0 %v4452_v5  ;;  %4658 = vmatprep.subr.mxu1 %v4454_v18  ;;  %v4363_v5 = vld [vmem:[%s13063_s2 + $0x100] sm:$0xff]  ;;  %v4365_v18 = vld [vmem:[%s13063_s2 + $0x110] sm:$0xff] }
 0x6a2   :  { %4588 = vmatpush1.msra.mxu0 %v4451_v2  ;;  %4659 = vmatpush1.msra.mxu1 %v4453_v37  ;;  %v4356_v2 = vld [vmem:[%s13063_s2 + $0xc8] sm:$0xff]  ;;  %v4358_v37 = vld [vmem:[%s13063_s2 + $0xd8] sm:$0xff] }
 0x6a3   :  { %4589 = vmatprep.subr.mxu0 %v4444_v22  ;;  %4660 = vmatprep.subr.mxu1 %v4446_v6  ;;  %v4355_v22 = vld [vmem:[%s13063_s2 + $0xc0] sm:$0xff]  ;;  %v4357_v6 = vld [vmem:[%s13063_s2 + $0xd0] sm:$0xff] }
 0x6a4   :  { %4590 = vmatpush1.msra.mxu0 %v4443_v60  ;;  %4661 = vmatpush1.msra.mxu1 %v4445_v31  ;;  %v4348_v60 = vld [vmem:[%s13063_s2 + $0x88] sm:$0xff]  ;;  %v4350_v31 = vld [vmem:[%s13063_s2 + $0x98] sm:$0xff] }
 0x6a5   :  { %4591 = vmatprep.subr.mxu0 %v4436_v9  ;;  %4662 = vmatprep.subr.mxu1 %v4438_v19  ;;  %v4347_v9 = vld [vmem:[%s13063_s2 + $0x80] sm:$0xff]  ;;  %v4349_v19 = vld [vmem:[%s13063_s2 + $0x90] sm:$0xff] }
 0x6a6   :  { %4592 = vmatpush1.msra.mxu0 %v4435_v47  ;;  %4663 = vmatpush1.msra.mxu1 %v4437_v48  ;;  %v4340_v47 = vld [vmem:[%s13063_s2 + $0x48] sm:$0xff]  ;;  %v4342_v48 = vld [vmem:[%s13063_s2 + $0x58] sm:$0xff] }
 0x6a7   :  { %4593 = vmatprep.subr.mxu0 %v4428_v44  ;;  %4664 = vmatprep.subr.mxu1 %v4430_v29  ;;  %v4339_v44 = vld [vmem:[%s13063_s2 + $0x40] sm:$0xff]  ;;  %v4341_v29 = vld [vmem:[%s13063_s2 + $0x50] sm:$0xff] }
 0x6a8   :  { %4594 = vmatpush1.msra.mxu0 %v4427_v42  ;;  %4665 = vmatpush1.msra.mxu1 %v4429_v40  ;;  %v4332_v42 = vld [vmem:[%s13063_s2 + $0x8] sm:$0xff]  ;;  %v4334_v40 = vld [vmem:[%s13063_s2 + $0x18] sm:$0xff] }
 0x6a9   :  { %4595 = vmatprep.subr.mxu0 %v4420_v35  ;;  %4666 = vmatprep.subr.mxu1 %v4422_v38  ;;  %v4331_v35 = vld [vmem:[%s13063_s2] sm:$0xff]  ;;  %v4333_v38 = vld [vmem:[%s13063_s2 + $0x10] sm:$0xff] }
 0x6aa   :  { %4596 = vmatpush1.msra.mxu0 %v4419_v30  ;;  %4667 = vmatpush1.msra.mxu1 %v4421_v8  ;;  %v4580_v30 = vld [vmem:[%s13063_s2 + $0x7c8] sm:$0xff]  ;;  %v4582_v8 = vld [vmem:[%s13063_s2 + $0x7d8] sm:$0xff] }
 0x6ab   :  { %4597 = vmatprep.subr.mxu0 %v4412_v46  ;;  %4668 = vmatprep.subr.mxu1 %v4414_v20  ;;  %v4579_v46 = vld [vmem:[%s13063_s2 + $0x7c0] sm:$0xff]  ;;  %v4581_v20 = vld [vmem:[%s13063_s2 + $0x7d0] sm:$0xff] }
 0x6ac   :  { %4598 = vmatpush1.msra.mxu0 %v4411_v10  ;;  %4669 = vmatpush1.msra.mxu1 %v4413_v28  ;;  %v4572_v10 = vld [vmem:[%s13063_s2 + $0x788] sm:$0xff]  ;;  %v4574_v28 = vld [vmem:[%s13063_s2 + $0x798] sm:$0xff] }
 0x6ad   :  { %4599 = vmatprep.subr.mxu0 %v4404_v4  ;;  %4670 = vmatprep.subr.mxu1 %v4406_v13  ;;  %v4571_v4 = vld [vmem:[%s13063_s2 + $0x780] sm:$0xff]  ;;  %v4573_v13 = vld [vmem:[%s13063_s2 + $0x790] sm:$0xff] }
 0x6ae   :  { %4600 = vmatpush1.msra.mxu0 %v4403_v33  ;;  %4671 = vmatpush1.msra.mxu1 %v4405_v7  ;;  %v4564_v33 = vld [vmem:[%s13063_s2 + $0x748] sm:$0xff]  ;;  %v4566_v7 = vld [vmem:[%s13063_s2 + $0x758] sm:$0xff] }
 0x6af   :  { %4601 = vmatprep.subr.mxu0 %v4396_v41  ;;  %4672 = vmatprep.subr.mxu1 %v4398_v3  ;;  %v4563_v41 = vld [vmem:[%s13063_s2 + $0x740] sm:$0xff]  ;;  %v4565_v3 = vld [vmem:[%s13063_s2 + $0x750] sm:$0xff] }
 0x6b0   :  { %4602 = vmatpush1.msra.mxu0 %v4395_v21  ;;  %4673 = vmatpush1.msra.mxu1 %v4397_v27  ;;  %v4556_v21 = vld [vmem:[%s13063_s2 + $0x708] sm:$0xff]  ;;  %v4558_v27 = vld [vmem:[%s13063_s2 + $0x718] sm:$0xff] }
 0x6b1   :  { %4603 = vmatprep.subr.mxu0 %v4388_v50  ;;  %4674 = vmatprep.subr.mxu1 %v4390_v54  ;;  %v4555_v50 = vld [vmem:[%s13063_s2 + $0x700] sm:$0xff]  ;;  %v4557_v54 = vld [vmem:[%s13063_s2 + $0x710] sm:$0xff] }
 0x6b2   :  { %4604 = vmatpush1.msra.mxu0 %v4387_v55  ;;  %4675 = vmatpush1.msra.mxu1 %v4389_v0  ;;  %v4548_v55 = vld [vmem:[%s13063_s2 + $0x6c8] sm:$0xff]  ;;  %v4550_v0 = vld [vmem:[%s13063_s2 + $0x6d8] sm:$0xff] }
 0x6b3   :  { %4605 = vmatprep.subr.mxu0 %v4380_v16  ;;  %4676 = vmatprep.subr.mxu1 %v4382_v43  ;;  %v4547_v16 = vld [vmem:[%s13063_s2 + $0x6c0] sm:$0xff]  ;;  %v4549_v43 = vld [vmem:[%s13063_s2 + $0x6d0] sm:$0xff] }
 0x6b4   :  { %4606 = vmatpush1.msra.mxu0 %v4379_v23  ;;  %4677 = vmatpush1.msra.mxu1 %v4381_v24  ;;  %v4540_v23 = vld [vmem:[%s13063_s2 + $0x688] sm:$0xff]  ;;  %v4542_v24 = vld [vmem:[%s13063_s2 + $0x698] sm:$0xff] }
 0x6b5   :  { %4607 = vmatprep.subr.mxu0 %v4372_v51  ;;  %4678 = vmatprep.subr.mxu1 %v4374_v26  ;;  %v4539_v51 = vld [vmem:[%s13063_s2 + $0x680] sm:$0xff]  ;;  %v4541_v26 = vld [vmem:[%s13063_s2 + $0x690] sm:$0xff] }
 0x6b6   :  { %4608 = vmatpush1.msra.mxu0 %v4371_v49  ;;  %4679 = vmatpush1.msra.mxu1 %v4373_v45  ;;  %v4532_v49 = vld [vmem:[%s13063_s2 + $0x648] sm:$0xff]  ;;  %v4534_v45 = vld [vmem:[%s13063_s2 + $0x658] sm:$0xff] }
 0x6b7   :  { %4609 = vmatprep.subr.mxu0 %v4364_v63  ;;  %4680 = vmatprep.subr.mxu1 %v4366_v17  ;;  %v4531_v63 = vld [vmem:[%s13063_s2 + $0x640] sm:$0xff]  ;;  %v4533_v17 = vld [vmem:[%s13063_s2 + $0x650] sm:$0xff] }
 0x6b8   :  { %4610 = vmatpush1.msra.mxu0 %v4363_v5  ;;  %4681 = vmatpush1.msra.mxu1 %v4365_v18  ;;  %v4524_v5 = vld [vmem:[%s13063_s2 + $0x608] sm:$0xff]  ;;  %v4526_v18 = vld [vmem:[%s13063_s2 + $0x618] sm:$0xff] }
 0x6b9   :  { %4611 = vmatprep.subr.mxu0 %v4356_v2  ;;  %4682 = vmatprep.subr.mxu1 %v4358_v37  ;;  %v4523_v2 = vld [vmem:[%s13063_s2 + $0x600] sm:$0xff]  ;;  %v4525_v37 = vld [vmem:[%s13063_s2 + $0x610] sm:$0xff] }
 0x6ba   :  { %4612 = vmatpush1.msra.mxu0 %v4355_v22  ;;  %4683 = vmatpush1.msra.mxu1 %v4357_v6  ;;  %v4516_v22 = vld [vmem:[%s13063_s2 + $0x5c8] sm:$0xff]  ;;  %v4518_v6 = vld [vmem:[%s13063_s2 + $0x5d8] sm:$0xff] }
 0x6bb   :  { %4613 = vmatprep.subr.mxu0 %v4348_v60  ;;  %4684 = vmatprep.subr.mxu1 %v4350_v31  ;;  %v4515_v60 = vld [vmem:[%s13063_s2 + $0x5c0] sm:$0xff]  ;;  %v4517_v31 = vld [vmem:[%s13063_s2 + $0x5d0] sm:$0xff] }
 0x6bc   :  { %4614 = vmatpush1.msra.mxu0 %v4347_v9  ;;  %4685 = vmatpush1.msra.mxu1 %v4349_v19  ;;  %v4508_v9 = vld [vmem:[%s13063_s2 + $0x588] sm:$0xff]  ;;  %v4510_v19 = vld [vmem:[%s13063_s2 + $0x598] sm:$0xff] }
 0x6bd   :  { %4615 = vmatprep.subr.mxu0 %v4340_v47  ;;  %4686 = vmatprep.subr.mxu1 %v4342_v48  ;;  %v4507_v47 = vld [vmem:[%s13063_s2 + $0x580] sm:$0xff]  ;;  %v4509_v48 = vld [vmem:[%s13063_s2 + $0x590] sm:$0xff] }
 0x6be   :  { %4616 = vmatpush1.msra.mxu0 %v4339_v44  ;;  %4687 = vmatpush1.msra.mxu1 %v4341_v29  ;;  %v4500_v44 = vld [vmem:[%s13063_s2 + $0x548] sm:$0xff]  ;;  %v4502_v29 = vld [vmem:[%s13063_s2 + $0x558] sm:$0xff] }
 0x6bf   :  { %4617 = vmatprep.subr.mxu0 %v4332_v42  ;;  %4688 = vmatprep.subr.mxu1 %v4334_v40  ;;  %v4499_v42 = vld [vmem:[%s13063_s2 + $0x540] sm:$0xff]  ;;  %v4501_v40 = vld [vmem:[%s13063_s2 + $0x550] sm:$0xff] }
 0x6c0   :  { %4618 = vmatpush1.msra.mxu0 %v4331_v35  ;;  %4689 = vmatpush1.msra.mxu1 %v4333_v38  ;;  %v4492_v35 = vld [vmem:[%s13063_s2 + $0x508] sm:$0xff]  ;;  %v4494_v38 = vld [vmem:[%s13063_s2 + $0x518] sm:$0xff] }
 0x6c1   :  { %4619 = vmatprep.subr.mxu0 %v4580_v30  ;;  %4690 = vmatprep.subr.mxu1 %v4582_v8  ;;  %v4491_v30 = vld [vmem:[%s13063_s2 + $0x500] sm:$0xff]  ;;  %v4493_v8 = vld [vmem:[%s13063_s2 + $0x510] sm:$0xff] }
 0x6c2   :  { %4620 = vmatpush2.msra.mxu0 %v4579_v46  ;;  %4691 = vmatpush2.msra.mxu1 %v4581_v20  ;;  %v4484_v46 = vld [vmem:[%s13063_s2 + $0x4c8] sm:$0xff]  ;;  %v4486_v20 = vld [vmem:[%s13063_s2 + $0x4d8] sm:$0xff] }
 0x6c3   :  { %4621 = vmatprep.subr.mxu0 %v4572_v10  ;;  %4692 = vmatprep.subr.mxu1 %v4574_v28  ;;  %v4483_v10 = vld [vmem:[%s13063_s2 + $0x4c0] sm:$0xff]  ;;  %v4485_v28 = vld [vmem:[%s13063_s2 + $0x4d0] sm:$0xff] }
 0x6c4   :  { %4622 = vmatpush2.msra.mxu0 %v4571_v4  ;;  %4693 = vmatpush2.msra.mxu1 %v4573_v13  ;;  %v4476_v4 = vld [vmem:[%s13063_s2 + $0x488] sm:$0xff]  ;;  %v4478_v13 = vld [vmem:[%s13063_s2 + $0x498] sm:$0xff] }
 0x6c5   :  { %4623 = vmatprep.subr.mxu0 %v4564_v33  ;;  %4694 = vmatprep.subr.mxu1 %v4566_v7  ;;  %v4475_v33 = vld [vmem:[%s13063_s2 + $0x480] sm:$0xff]  ;;  %v4477_v7 = vld [vmem:[%s13063_s2 + $0x490] sm:$0xff] }
 0x6c6   :  { %4624 = vmatpush2.msra.mxu0 %v4563_v41  ;;  %4695 = vmatpush2.msra.mxu1 %v4565_v3  ;;  %v4468_v41 = vld [vmem:[%s13063_s2 + $0x448] sm:$0xff]  ;;  %v4470_v3 = vld [vmem:[%s13063_s2 + $0x458] sm:$0xff] }
 0x6c7   :  { %4625 = vmatprep.subr.mxu0 %v4556_v21  ;;  %4696 = vmatprep.subr.mxu1 %v4558_v27  ;;  %v4467_v21 = vld [vmem:[%s13063_s2 + $0x440] sm:$0xff]  ;;  %v4469_v27 = vld [vmem:[%s13063_s2 + $0x450] sm:$0xff] }
 0x6c8   :  { %4626 = vmatpush2.msra.mxu0 %v4555_v50  ;;  %4697 = vmatpush2.msra.mxu1 %v4557_v54  ;;  %v4460_v50 = vld [vmem:[%s13063_s2 + $0x408] sm:$0xff]  ;;  %v4462_v54 = vld [vmem:[%s13063_s2 + $0x418] sm:$0xff] }
 0x6c9   :  { %4627 = vmatprep.subr.mxu0 %v4548_v55  ;;  %4698 = vmatprep.subr.mxu1 %v4550_v0  ;;  %v4459_v55 = vld [vmem:[%s13063_s2 + $0x400] sm:$0xff]  ;;  %v4461_v0 = vld [vmem:[%s13063_s2 + $0x410] sm:$0xff] }
 0x6ca   :  { %4628 = vmatpush2.msra.mxu0 %v4547_v16  ;;  %4699 = vmatpush2.msra.mxu1 %v4549_v43  ;;  %v4456_v16 = vld [vmem:[%s13063_s2 + $0x3e8] sm:$0xff]  ;;  %v4458_v43 = vld [vmem:[%s13063_s2 + $0x3f8] sm:$0xff] }
 0x6cb   :  { %4629 = vmatprep.subr.mxu0 %v4540_v23  ;;  %4700 = vmatprep.subr.mxu1 %v4542_v24 }
 0x6cc   :  { %4630 = vmatpush2.msra.mxu0 %v4539_v51  ;;  %4701 = vmatpush2.msra.mxu1 %v4541_v26 }
 0x6cd   :  { %4631 = vmatprep.subr.mxu0 %v4532_v49  ;;  %4702 = vmatprep.subr.mxu1 %v4534_v45 }
 0x6ce   :  { %4632 = vmatpush2.msra.mxu0 %v4531_v63  ;;  %4703 = vmatpush2.msra.mxu1 %v4533_v17 }
 0x6cf   :  { %4633 = vmatprep.subr.mxu0 %v4524_v5  ;;  %4704 = vmatprep.subr.mxu1 %v4526_v18  ;;  %v13088_v5 = vld [vmem:[#allocation17_spill] sm:$0xff] }
 0x6d0   :  { %4634 = vmatpush2.msra.mxu0 %v4523_v2  ;;  %4705 = vmatpush2.msra.mxu1 %v4525_v37 }
 0x6d1   :  { %4635 = vmatprep.subr.mxu0 %v4516_v22  ;;  %4706 = vmatprep.subr.mxu1 %v4518_v6 }
 0x6d2   :  { %4636 = vmatpush2.msra.mxu0 %v4515_v60  ;;  %4707 = vmatpush2.msra.mxu1 %v4517_v31 }
 0x6d3   :  { %4637 = vmatprep.subr.mxu0 %v4508_v9  ;;  %4708 = vmatprep.subr.mxu1 %v4510_v19 }
 0x6d4   :  { %4638 = vmatpush2.msra.mxu0 %v4507_v47  ;;  %4709 = vmatpush2.msra.mxu1 %v4509_v48  ;;  %v13089_v47 = vld [vmem:[#allocation22_spill] sm:$0xff] }
 0x6d5   :  { %4639 = vmatprep.subr.mxu0 %v4500_v44  ;;  %4710 = vmatprep.subr.mxu1 %v4502_v29 }
 0x6d6   :  { %4640 = vmatpush2.msra.mxu0 %v4499_v42  ;;  %4711 = vmatpush2.msra.mxu1 %v4501_v40  ;;  %v13090_v42 = vld [vmem:[#allocation23_spill] sm:$0xff] }
 0x6d7   :  { %4641 = vmatprep.subr.mxu0 %v4492_v35  ;;  %4712 = vmatprep.subr.mxu1 %v4494_v38  ;;  %v554_v40 = vadd.f32 %v13090_v42, %v7716_v61  ;;  %v13091_v35 = vld [vmem:[#allocation9_spill] sm:$0xff] }
 0x6d8   :  { %4642 = vmatpush2.msra.mxu0 %v4491_v30  ;;  %4713 = vmatpush2.msra.mxu1 %v4493_v8  ;;  %v4425_v42 = vld [vmem:[%s13063_s2 + $0x2f0] sm:$0xff] }
 0x6d9   :  { %4643 = vmatprep.subr.mxu0 %v4484_v46  ;;  %4714 = vmatprep.subr.mxu1 %v4486_v20 }
 0x6da   :  { %4644 = vmatpush2.msra.mxu0 %v4483_v10  ;;  %4715 = vmatpush2.msra.mxu1 %v4485_v28  ;;  %v13092_v10 = vld [vmem:[#allocation11_spill] sm:$0xff] }
 0x6db   :  { %4645 = vmatprep.subr.mxu0 %v4476_v4  ;;  %4716 = vmatprep.subr.mxu1 %v4478_v13 }
 0x6dc   :  { %4646 = vmatpush2.msra.mxu0 %v4475_v33  ;;  %4717 = vmatpush2.msra.mxu1 %v4477_v7 }
 0x6dd   :  { %4647 = vmatprep.subr.mxu0 %v4468_v41  ;;  %4718 = vmatprep.subr.mxu1 %v4470_v3 }
 0x6de   :  { %4648 = vmatpush2.msra.mxu0 %v4467_v21  ;;  %4719 = vmatpush2.msra.mxu1 %v4469_v27 }
 0x6df   :  { %4649 = vmatprep.subr.mxu0 %v4460_v50  ;;  %4720 = vmatprep.subr.mxu1 %v4462_v54 }
 0x6e0   :  { %4650 = vmatpush2.msra.mxu0 %v4459_v55  ;;  %4721 = vmatpush2.msra.mxu1 %v4461_v0 }
 0x6e1   :  { %4729 = vmatprep.subr.mxu0 %v4456_v16  ;;  %4800 = vmatprep.subr.mxu1 %v4458_v43 }
 0x71f   :  { %v4039_v23 = vpop.f32.mrf.mxu0  ;;  %v4110_v24 = vpop.f32.mrf.mxu1 }
 0x720   :  { %v4257_v26 = vadd.f32 %v4039_v23, %v7176_v12  ;;  %v4259_v49 = vadd.f32 %v4110_v24, %v7299_v34 }
 0x721   :  { %v4041_v51 = vpop.f32.mrf.mxu0  ;;  %v4112_v45 = vpop.f32.mrf.mxu1 }
 0x722   :  { %v4258_v63 = vadd.f32 %v4041_v51, %v7182_v15  ;;  %v5801_v17 = vmul.f32 -1.442695, %v4257_v26  ;;  %v4260_v18 = vadd.f32 %v4112_v45, %v13088_v5  ;;  %v5803_v2 = vmul.f32 -1.442695, %v4259_v49 }
 0x723   :  { %v552_v15 = vadd.f32 %v13089_v47, %v7713_v36  ;;  %v4431_v47 = vld [vmem:[%s13063_s2 + $0x320] sm:$0xff] }
 0x724   :  { %v5802_v37 = vmul.f32 -1.442695, %v4258_v63  ;;  %6037 = vpow2.f32 %v5801_v17  ;;  %v5804_v22 = vmul.f32 -1.442695, %v4260_v18  ;;  %v4457_v18 = vld [vmem:[%s13063_s2 + $0x3f0] sm:$0xff] }
 0x725   :  { %6039 = vpow2.f32 %v5803_v2  ;;  %v4448_v2 = vld [vmem:[%s13063_s2 + $0x3a8] sm:$0xff] }
 0x726   :  { %6041 = vpow2.f32 %v5802_v37  ;;  %v4450_v37 = vld [vmem:[%s13063_s2 + $0x3b8] sm:$0xff] }
 0x727   :  { %6043 = vpow2.f32 %v5804_v22  ;;  %v4447_v22 = vld [vmem:[%s13063_s2 + $0x3a0] sm:$0xff] }
 0x731   :  { %v6038_v6 = vpop.eup %6037 }
 0x732   :  { %v6040_v60 = vpop.eup %6039  ;;  %v4271_v9 = vadd.f32 1.0, %v6038_v6  ;;  %v4449_v6 = vld [vmem:[%s13063_s2 + $0x3b0] sm:$0xff] }
 0x733   :  { %v6042_v31 = vpop.eup %6041  ;;  %v4283_v19 = vadd.f32 1.0, %v6040_v60  ;;  %v4440_v60 = vld [vmem:[%s13063_s2 + $0x368] sm:$0xff] }
 0x734   :  { %v6044_v12 = vpop.eup %6043  ;;  %v4272_v34 = vadd.f32 1.0, %v6042_v31  ;;  %6045 = vrcp.f32 %v4271_v9  ;;  %v4442_v31 = vld [vmem:[%s13063_s2 + $0x378] sm:$0xff]  ;;  %v4439_v9 = vld [vmem:[%s13063_s2 + $0x360] sm:$0xff] }
 0x735   :  { %v4284_v48 = vadd.f32 1.0, %v6044_v12  ;;  %6047 = vrcp.f32 %v4283_v19  ;;  %v4441_v12 = vld [vmem:[%s13063_s2 + $0x370] sm:$0xff]  ;;  %v4432_v19 = vld [vmem:[%s13063_s2 + $0x328] sm:$0xff] }
 0x736   :  { %6049 = vrcp.f32 %v4272_v34  ;;  %v4434_v34 = vld [vmem:[%s13063_s2 + $0x338] sm:$0xff] }
 0x741   :  { %v6046_v33 = vpop.eup %6045 }
 0x742   :  { %v6048_v7 = vpop.eup %6047 }
 0x743   :  { %v6050_v41 = vpop.eup %6049  ;;  %v4303_v27 = vmul.f32 %v6048_v7, %v10911_v57  ;;  %v4392_v7 = vld [vmem:[%s13063_s2 + $0x1e8] sm:$0xff] }
 0x760   :  { %v4181_v44 = vpop.f32.mrf.mxu0  ;;  %v4252_v29 = vpop.f32.mrf.mxu1 }
 0x761   :  { %v4261_v38 = vadd.f32 %v4181_v44, %v13091_v35  ;;  %v4263_v30 = vadd.f32 %v4252_v29, %v552_v15  ;;  %v4433_v15 = vld [vmem:[%s13063_s2 + $0x330] sm:$0xff]  ;;  %v4426_v44 = vld [vmem:[%s13063_s2 + $0x2f8] sm:$0xff]  ;;  %v4423_v29 = vld [vmem:[%s13063_s2 + $0x2e0] sm:$0xff] }
 0x762   :  { %v4183_v8 = vpop.f32.mrf.mxu0  ;;  %v4254_v46 = vpop.f32.mrf.mxu1  ;;  %v4418_v35 = vld [vmem:[%s13063_s2 + $0x2b8] sm:$0xff] }
 0x763   :  { %6051 = vtanh.f32 %v4261_v38  ;;  %v5805_v20 = vmul.f32 -1.442695, %v4263_v30  ;;  %v4262_v28 = vadd.f32 %v4183_v8, %v13092_v10  ;;  %v4264_v4 = vadd.f32 %v4254_v46, %v554_v40  ;;  %v4416_v40 = vld [vmem:[%s13063_s2 + $0x2a8] sm:$0xff]  ;;  %v4415_v38 = vld [vmem:[%s13063_s2 + $0x2a0] sm:$0xff]  ;;  %v4417_v30 = vld [vmem:[%s13063_s2 + $0x2b0] sm:$0xff] }
 0x764   :  { %6053 = vrcp.f32 %v4284_v48  ;;  %v4424_v48 = vld [vmem:[%s13063_s2 + $0x2e8] sm:$0xff]  ;;  %v4410_v46 = vld [vmem:[%s13063_s2 + $0x278] sm:$0xff]  ;;  %v4409_v10 = vld [vmem:[%s13063_s2 + $0x270] sm:$0xff] }
 0x765   :  { %6055 = vpow2.f32 %v5805_v20  ;;  %v5806_v13 = vmul.f32 -1.442695, %v4264_v4  ;;  %v4408_v8 = vld [vmem:[%s13063_s2 + $0x268] sm:$0xff]  ;;  %v4407_v20 = vld [vmem:[%s13063_s2 + $0x260] sm:$0xff]  ;;  %v4402_v4 = vld [vmem:[%s13063_s2 + $0x238] sm:$0xff] }
 0x766   :  { %6057 = vtanh.f32 %v4262_v28  ;;  %v4400_v28 = vld [vmem:[%s13063_s2 + $0x228] sm:$0xff] }
 0x767   :  { %6059 = vpow2.f32 %v5806_v13  ;;  %v4399_v13 = vld [vmem:[%s13063_s2 + $0x220] sm:$0xff] }
 0x770   :  { %v6052_v3 = vpop.eup %6051 }
 0x771   :  { %v6054_v21 = vpop.eup %6053  ;;  %v4305_v50 = vmul.f32 %v6052_v3, %v6046_v33  ;;  %v4401_v33 = vld [vmem:[%s13063_s2 + $0x230] sm:$0xff]  ;;  %v4391_v3 = vld [vmem:[%s13063_s2 + $0x1e0] sm:$0xff] }
 0x772   :  { %v6056_v54 = vpop.eup %6055  ;;  %v4304_v23 = vmul.f32 %v6054_v21, %v10915_v32  ;;  %v4455_v32 = vld [vmem:[%s13063_s2 + $0x3e0] sm:$0xff]  ;;  %v4393_v21 = vld [vmem:[%s13063_s2 + $0x1f0] sm:$0xff] }
 0x773   :  { %v6058_v55 = vpop.eup %6057  ;;  %v11709_v0 = vadd.f32 %v4305_v50, %v4303_v27  ;;  %v4297_v16 = vadd.f32 1.0, %v6056_v54  ;;  %v4384_v27 = vld [vmem:[%s13063_s2 + $0x1a8] sm:$0xff]  ;;  %v4386_v50 = vld [vmem:[%s13063_s2 + $0x1b8] sm:$0xff]  ;;  %v4383_v54 = vld [vmem:[%s13063_s2 + $0x1a0] sm:$0xff] }
 0x774   :  { %v6060_v43 = vpop.eup %6059  ;;  %v4306_v24 = vmul.f32 %v6058_v55, %v6050_v41  ;;  %v4394_v41 = vld [vmem:[%s13063_s2 + $0x1f8] sm:$0xff]  ;;  %v4385_v55 = vld [vmem:[%s13063_s2 + $0x1b0] sm:$0xff] }
 0x775   :  { %6061 = vtanh.f32 %v11709_v0  ;;  %v4298_v51 = vadd.f32 1.0, %v6060_v43  ;;  %v4378_v43 = vld [vmem:[%s13063_s2 + $0x178] sm:$0xff] }
 0x776   :  { %6063 = vrcp.f32 %v4297_v16  ;;  %v11713_v26 = vadd.f32 %v4306_v24, %v4304_v23  ;;  %v4376_v16 = vld [vmem:[%s13063_s2 + $0x168] sm:$0xff]  ;;  %v4375_v23 = vld [vmem:[%s13063_s2 + $0x160] sm:$0xff]  ;;  %v4377_v24 = vld [vmem:[%s13063_s2 + $0x170] sm:$0xff] }
 0x777   :  { %6065 = vrcp.f32 %v4298_v51  ;;  %v4368_v51 = vld [vmem:[%s13063_s2 + $0x128] sm:$0xff] }
 0x778   :  { %6067 = vtanh.f32 %v11713_v26 }
 0x782   :  { %v6062_v57 = vpop.eup %6061 }
 0x783   :  { %v6064_v49 = vpop.eup %6063 }
 0x784   :  { %v6066_v45 = vpop.eup %6065  ;;  %v11718_v5 = vmul.f32 %v6064_v49, %v6062_v57  ;;  %v4370_v57 = vld [vmem:[%s13063_s2 + $0x138] sm:$0xff]  ;;  %v4367_v49 = vld [vmem:[%s13063_s2 + $0x120] sm:$0xff] }
 0x785   :  { %v6068_v63 = vpop.eup %6067 }
 0x786   :  { %v11716_v17 = vmul.f32 %v6068_v63, %v6066_v45  ;;  %v4369_v45 = vld [vmem:[%s13063_s2 + $0x130] sm:$0xff]  ;;  %v4360_v63 = vld [vmem:[%s13063_s2 + $0xe8] sm:$0xff] }
 0x788   :  { %4651 = vmatprep.mubr.f32.mxu0 %v11716_v17  ;;  %4722 = vmatprep.mubr.f32.mxu1 %v11716_v17 }
 0x789   :  { %4652 = vmatmul.mubr.f32.vlgmr.msra.gmra.mxu0 %v11718_v5  ;;  %4723 = vmatmul.mubr.f32.vlgmr.msra.gmra.mxu1 %v11718_v5 }
 0x78a   :  { %4730 = vmatpush1.msra.mxu0 %v4455_v32  ;;  %4801 = vmatpush1.msra.mxu1 %v4457_v18  ;;  %v4362_v32 = vld [vmem:[%s13063_s2 + $0xf8] sm:$0xff]  ;;  %v4359_v18 = vld [vmem:[%s13063_s2 + $0xe0] sm:$0xff] }
 0x78b   :  { %4731 = vmatprep.subr.mxu0 %v4448_v2  ;;  %4793 = vmatprep.mubr.f32.mxu0 %v11716_v17  ;;  %v4361_v2 = vld [vmem:[%s13063_s2 + $0xf0] sm:$0xff] }
 0x78c   :  { %4802 = vmatprep.subr.mxu1 %v4450_v37  ;;  %4864 = vmatprep.mubr.f32.mxu1 %v11716_v17  ;;  %v4352_v37 = vld [vmem:[%s13063_s2 + $0xa8] sm:$0xff] }
 0x78d   :  { %4732 = vmatpush1.msra.mxu0 %v4447_v22  ;;  %4803 = vmatpush1.msra.mxu1 %v4449_v6  ;;  %v4354_v22 = vld [vmem:[%s13063_s2 + $0xb8] sm:$0xff]  ;;  %v4351_v6 = vld [vmem:[%s13063_s2 + $0xa0] sm:$0xff] }
 0x78e   :  { %4733 = vmatprep.subr.mxu0 %v4440_v60  ;;  %4804 = vmatprep.subr.mxu1 %v4442_v31  ;;  %v4353_v60 = vld [vmem:[%s13063_s2 + $0xb0] sm:$0xff]  ;;  %v4344_v31 = vld [vmem:[%s13063_s2 + $0x68] sm:$0xff] }
 0x78f   :  { %4734 = vmatpush1.msra.mxu0 %v4439_v9  ;;  %4805 = vmatpush1.msra.mxu1 %v4441_v12  ;;  %v4346_v9 = vld [vmem:[%s13063_s2 + $0x78] sm:$0xff]  ;;  %v4343_v12 = vld [vmem:[%s13063_s2 + $0x60] sm:$0xff] }
 0x790   :  { %4735 = vmatprep.subr.mxu0 %v4432_v19  ;;  %4806 = vmatprep.subr.mxu1 %v4434_v34  ;;  %v4345_v19 = vld [vmem:[%s13063_s2 + $0x70] sm:$0xff]  ;;  %v4336_v34 = vld [vmem:[%s13063_s2 + $0x28] sm:$0xff] }
 0x791   :  { %4736 = vmatpush1.msra.mxu0 %v4431_v47  ;;  %4807 = vmatpush1.msra.mxu1 %v4433_v15  ;;  %v4338_v47 = vld [vmem:[%s13063_s2 + $0x38] sm:$0xff]  ;;  %v4335_v15 = vld [vmem:[%s13063_s2 + $0x20] sm:$0xff] }
 0x792   :  { %4737 = vmatprep.subr.mxu0 %v4424_v48  ;;  %4808 = vmatprep.subr.mxu1 %v4426_v44  ;;  %v4337_v48 = vld [vmem:[%s13063_s2 + $0x30] sm:$0xff]  ;;  %v4584_v44 = vld [vmem:[%s13063_s2 + $0x7e8] sm:$0xff] }
 0x793   :  { %4738 = vmatpush1.msra.mxu0 %v4423_v29  ;;  %4809 = vmatpush1.msra.mxu1 %v4425_v42  ;;  %v4586_v29 = vld [vmem:[%s13063_s2 + $0x7f8] sm:$0xff]  ;;  %v4583_v42 = vld [vmem:[%s13063_s2 + $0x7e0] sm:$0xff] }
 0x794   :  { %4739 = vmatprep.subr.mxu0 %v4416_v40  ;;  %4810 = vmatprep.subr.mxu1 %v4418_v35  ;;  %v4585_v40 = vld [vmem:[%s13063_s2 + $0x7f0] sm:$0xff]  ;;  %v4576_v35 = vld [vmem:[%s13063_s2 + $0x7a8] sm:$0xff] }
 0x795   :  { %4740 = vmatpush1.msra.mxu0 %v4415_v38  ;;  %4811 = vmatpush1.msra.mxu1 %v4417_v30  ;;  %v4578_v38 = vld [vmem:[%s13063_s2 + $0x7b8] sm:$0xff]  ;;  %v4575_v30 = vld [vmem:[%s13063_s2 + $0x7a0] sm:$0xff] }
 0x796   :  { %4741 = vmatprep.subr.mxu0 %v4408_v8  ;;  %4812 = vmatprep.subr.mxu1 %v4410_v46  ;;  %v4577_v8 = vld [vmem:[%s13063_s2 + $0x7b0] sm:$0xff]  ;;  %v4568_v46 = vld [vmem:[%s13063_s2 + $0x768] sm:$0xff] }
 0x797   :  { %4742 = vmatpush1.msra.mxu0 %v4407_v20  ;;  %4813 = vmatpush1.msra.mxu1 %v4409_v10  ;;  %v4570_v20 = vld [vmem:[%s13063_s2 + $0x778] sm:$0xff]  ;;  %v4567_v10 = vld [vmem:[%s13063_s2 + $0x760] sm:$0xff] }
 0x798   :  { %4743 = vmatprep.subr.mxu0 %v4400_v28  ;;  %4814 = vmatprep.subr.mxu1 %v4402_v4  ;;  %v4569_v28 = vld [vmem:[%s13063_s2 + $0x770] sm:$0xff]  ;;  %v4560_v4 = vld [vmem:[%s13063_s2 + $0x728] sm:$0xff] }
 0x799   :  { %4744 = vmatpush1.msra.mxu0 %v4399_v13  ;;  %4815 = vmatpush1.msra.mxu1 %v4401_v33  ;;  %v4562_v13 = vld [vmem:[%s13063_s2 + $0x738] sm:$0xff]  ;;  %v4559_v33 = vld [vmem:[%s13063_s2 + $0x720] sm:$0xff] }
 0x79a   :  { %4745 = vmatprep.subr.mxu0 %v4392_v7  ;;  %4816 = vmatprep.subr.mxu1 %v4394_v41  ;;  %v4561_v7 = vld [vmem:[%s13063_s2 + $0x730] sm:$0xff]  ;;  %v4552_v41 = vld [vmem:[%s13063_s2 + $0x6e8] sm:$0xff] }
 0x79b   :  { %4746 = vmatpush1.msra.mxu0 %v4391_v3  ;;  %4817 = vmatpush1.msra.mxu1 %v4393_v21  ;;  %v4554_v3 = vld [vmem:[%s13063_s2 + $0x6f8] sm:$0xff]  ;;  %v4551_v21 = vld [vmem:[%s13063_s2 + $0x6e0] sm:$0xff] }
 0x79c   :  { %4747 = vmatprep.subr.mxu0 %v4384_v27  ;;  %4818 = vmatprep.subr.mxu1 %v4386_v50  ;;  %v4553_v27 = vld [vmem:[%s13063_s2 + $0x6f0] sm:$0xff]  ;;  %v4544_v50 = vld [vmem:[%s13063_s2 + $0x6a8] sm:$0xff] }
 0x79d   :  { %4748 = vmatpush1.msra.mxu0 %v4383_v54  ;;  %4819 = vmatpush1.msra.mxu1 %v4385_v55  ;;  %v4546_v54 = vld [vmem:[%s13063_s2 + $0x6b8] sm:$0xff]  ;;  %v4543_v55 = vld [vmem:[%s13063_s2 + $0x6a0] sm:$0xff] }
 0x79e   :  { %4749 = vmatprep.subr.mxu0 %v4376_v16  ;;  %4820 = vmatprep.subr.mxu1 %v4378_v43  ;;  %v4545_v16 = vld [vmem:[%s13063_s2 + $0x6b0] sm:$0xff]  ;;  %v4536_v43 = vld [vmem:[%s13063_s2 + $0x668] sm:$0xff] }
 0x79f   :  { %4750 = vmatpush1.msra.mxu0 %v4375_v23  ;;  %4821 = vmatpush1.msra.mxu1 %v4377_v24  ;;  %v4538_v23 = vld [vmem:[%s13063_s2 + $0x678] sm:$0xff]  ;;  %v4535_v24 = vld [vmem:[%s13063_s2 + $0x660] sm:$0xff] }
 0x7a0   :  { %4751 = vmatprep.subr.mxu0 %v4368_v51  ;;  %4822 = vmatprep.subr.mxu1 %v4370_v57  ;;  %v4537_v51 = vld [vmem:[%s13063_s2 + $0x670] sm:$0xff]  ;;  %v4528_v57 = vld [vmem:[%s13063_s2 + $0x628] sm:$0xff] }
 0x7a1   :  { %4752 = vmatpush1.msra.mxu0 %v4367_v49  ;;  %4823 = vmatpush1.msra.mxu1 %v4369_v45  ;;  %v4530_v49 = vld [vmem:[%s13063_s2 + $0x638] sm:$0xff]  ;;  %v4527_v45 = vld [vmem:[%s13063_s2 + $0x620] sm:$0xff] }
 0x7a2   :  { %4753 = vmatprep.subr.mxu0 %v4360_v63  ;;  %4824 = vmatprep.subr.mxu1 %v4362_v32  ;;  %v4529_v63 = vld [vmem:[%s13063_s2 + $0x630] sm:$0xff]  ;;  %v4520_v32 = vld [vmem:[%s13063_s2 + $0x5e8] sm:$0xff] }
 0x7a3   :  { %4754 = vmatpush1.msra.mxu0 %v4359_v18  ;;  %4825 = vmatpush1.msra.mxu1 %v4361_v2  ;;  %v4522_v18 = vld [vmem:[%s13063_s2 + $0x5f8] sm:$0xff]  ;;  %v4519_v2 = vld [vmem:[%s13063_s2 + $0x5e0] sm:$0xff] }
 0x7a4   :  { %4755 = vmatprep.subr.mxu0 %v4352_v37  ;;  %4826 = vmatprep.subr.mxu1 %v4354_v22  ;;  %v4521_v37 = vld [vmem:[%s13063_s2 + $0x5f0] sm:$0xff]  ;;  %v4512_v22 = vld [vmem:[%s13063_s2 + $0x5a8] sm:$0xff] }
 0x7a5   :  { %4756 = vmatpush1.msra.mxu0 %v4351_v6  ;;  %4827 = vmatpush1.msra.mxu1 %v4353_v60  ;;  %v4514_v6 = vld [vmem:[%s13063_s2 + $0x5b8] sm:$0xff]  ;;  %v4511_v60 = vld [vmem:[%s13063_s2 + $0x5a0] sm:$0xff] }
 0x7a6   :  { %4757 = vmatprep.subr.mxu0 %v4344_v31  ;;  %4828 = vmatprep.subr.mxu1 %v4346_v9  ;;  %v4513_v31 = vld [vmem:[%s13063_s2 + $0x5b0] sm:$0xff]  ;;  %v4504_v9 = vld [vmem:[%s13063_s2 + $0x568] sm:$0xff] }
 0x7a7   :  { %4758 = vmatpush1.msra.mxu0 %v4343_v12  ;;  %4829 = vmatpush1.msra.mxu1 %v4345_v19  ;;  %v4506_v12 = vld [vmem:[%s13063_s2 + $0x578] sm:$0xff]  ;;  %v4503_v19 = vld [vmem:[%s13063_s2 + $0x560] sm:$0xff] }
 0x7a8   :  { %4759 = vmatprep.subr.mxu0 %v4336_v34  ;;  %4830 = vmatprep.subr.mxu1 %v4338_v47  ;;  %v4505_v34 = vld [vmem:[%s13063_s2 + $0x570] sm:$0xff]  ;;  %v4496_v47 = vld [vmem:[%s13063_s2 + $0x528] sm:$0xff] }
 0x7a9   :  { %4760 = vmatpush1.msra.mxu0 %v4335_v15  ;;  %4831 = vmatpush1.msra.mxu1 %v4337_v48  ;;  %v4498_v15 = vld [vmem:[%s13063_s2 + $0x538] sm:$0xff]  ;;  %v4495_v48 = vld [vmem:[%s13063_s2 + $0x520] sm:$0xff] }
 0x7aa   :  { %4761 = vmatprep.subr.mxu0 %v4584_v44  ;;  %4832 = vmatprep.subr.mxu1 %v4586_v29  ;;  %v4497_v44 = vld [vmem:[%s13063_s2 + $0x530] sm:$0xff]  ;;  %v4488_v29 = vld [vmem:[%s13063_s2 + $0x4e8] sm:$0xff] }
 0x7ab   :  { %4762 = vmatpush2.msra.mxu0 %v4583_v42  ;;  %4833 = vmatpush2.msra.mxu1 %v4585_v40  ;;  %v4490_v42 = vld [vmem:[%s13063_s2 + $0x4f8] sm:$0xff]  ;;  %v4487_v40 = vld [vmem:[%s13063_s2 + $0x4e0] sm:$0xff] }
 0x7ac   :  { %4763 = vmatprep.subr.mxu0 %v4576_v35  ;;  %4834 = vmatprep.subr.mxu1 %v4578_v38  ;;  %v4489_v35 = vld [vmem:[%s13063_s2 + $0x4f0] sm:$0xff]  ;;  %v4480_v38 = vld [vmem:[%s13063_s2 + $0x4a8] sm:$0xff] }
 0x7ad   :  { %4764 = vmatpush2.msra.mxu0 %v4575_v30  ;;  %4835 = vmatpush2.msra.mxu1 %v4577_v8  ;;  %v4482_v30 = vld [vmem:[%s13063_s2 + $0x4b8] sm:$0xff]  ;;  %v4479_v8 = vld [vmem:[%s13063_s2 + $0x4a0] sm:$0xff] }
 0x7ae   :  { %4765 = vmatprep.subr.mxu0 %v4568_v46  ;;  %4836 = vmatprep.subr.mxu1 %v4570_v20  ;;  %v4481_v46 = vld [vmem:[%s13063_s2 + $0x4b0] sm:$0xff]  ;;  %v4472_v20 = vld [vmem:[%s13063_s2 + $0x468] sm:$0xff] }
 0x7af   :  { %4766 = vmatpush2.msra.mxu0 %v4567_v10  ;;  %4837 = vmatpush2.msra.mxu1 %v4569_v28  ;;  %v4474_v10 = vld [vmem:[%s13063_s2 + $0x478] sm:$0xff]  ;;  %v4471_v28 = vld [vmem:[%s13063_s2 + $0x460] sm:$0xff] }
 0x7b0   :  { %4767 = vmatprep.subr.mxu0 %v4560_v4  ;;  %4838 = vmatprep.subr.mxu1 %v4562_v13  ;;  %v4473_v4 = vld [vmem:[%s13063_s2 + $0x470] sm:$0xff]  ;;  %v4464_v13 = vld [vmem:[%s13063_s2 + $0x428] sm:$0xff] }
 0x7b1   :  { %4768 = vmatpush2.msra.mxu0 %v4559_v33  ;;  %4839 = vmatpush2.msra.mxu1 %v4561_v7  ;;  %v4466_v33 = vld [vmem:[%s13063_s2 + $0x438] sm:$0xff]  ;;  %v4463_v7 = vld [vmem:[%s13063_s2 + $0x420] sm:$0xff] }
 0x7b2   :  { %4769 = vmatprep.subr.mxu0 %v4552_v41  ;;  %4840 = vmatprep.subr.mxu1 %v4554_v3  ;;  %v4465_v41 = vld [vmem:[%s13063_s2 + $0x430] sm:$0xff]  ;;  %v5066_v3 = vld [vmem:[%s13063_s2 + $0x3c8] sm:$0xff] }
 0x7b3   :  { %4770 = vmatpush2.msra.mxu0 %v4551_v21  ;;  %4841 = vmatpush2.msra.mxu1 %v4553_v27  ;;  %v5068_v21 = vld [vmem:[%s13063_s2 + $0x3d8] sm:$0xff]  ;;  %v5065_v27 = vld [vmem:[%s13063_s2 + $0x3c0] sm:$0xff] }
 0x7b4   :  { %4771 = vmatprep.subr.mxu0 %v4544_v50  ;;  %4842 = vmatprep.subr.mxu1 %v4546_v54  ;;  %v5067_v50 = vld [vmem:[%s13063_s2 + $0x3d0] sm:$0xff]  ;;  %v5058_v54 = vld [vmem:[%s13063_s2 + $0x388] sm:$0xff] }
 0x7b5   :  { %4772 = vmatpush2.msra.mxu0 %v4543_v55  ;;  %4843 = vmatpush2.msra.mxu1 %v4545_v16  ;;  %v5060_v55 = vld [vmem:[%s13063_s2 + $0x398] sm:$0xff]  ;;  %v5057_v16 = vld [vmem:[%s13063_s2 + $0x380] sm:$0xff] }
 0x7b6   :  { %4773 = vmatprep.subr.mxu0 %v4536_v43  ;;  %4844 = vmatprep.subr.mxu1 %v4538_v23  ;;  %v5059_v43 = vld [vmem:[%s13063_s2 + $0x390] sm:$0xff]  ;;  %v5050_v23 = vld [vmem:[%s13063_s2 + $0x348] sm:$0xff] }
 0x7b7   :  { %4774 = vmatpush2.msra.mxu0 %v4535_v24  ;;  %4845 = vmatpush2.msra.mxu1 %v4537_v51  ;;  %v5052_v24 = vld [vmem:[%s13063_s2 + $0x358] sm:$0xff]  ;;  %v5049_v51 = vld [vmem:[%s13063_s2 + $0x340] sm:$0xff] }
 0x7b8   :  { %4775 = vmatprep.subr.mxu0 %v4528_v57  ;;  %4846 = vmatprep.subr.mxu1 %v4530_v49  ;;  %v5051_v57 = vld [vmem:[%s13063_s2 + $0x350] sm:$0xff]  ;;  %v5042_v49 = vld [vmem:[%s13063_s2 + $0x308] sm:$0xff] }
 0x7b9   :  { %4776 = vmatpush2.msra.mxu0 %v4527_v45  ;;  %4847 = vmatpush2.msra.mxu1 %v4529_v63  ;;  %v5044_v45 = vld [vmem:[%s13063_s2 + $0x318] sm:$0xff]  ;;  %v5041_v63 = vld [vmem:[%s13063_s2 + $0x300] sm:$0xff] }
 0x7ba   :  { %4777 = vmatprep.subr.mxu0 %v4520_v32  ;;  %4848 = vmatprep.subr.mxu1 %v4522_v18  ;;  %v5043_v32 = vld [vmem:[%s13063_s2 + $0x310] sm:$0xff]  ;;  %v5034_v18 = vld [vmem:[%s13063_s2 + $0x2c8] sm:$0xff] }
 0x7bb   :  { %4778 = vmatpush2.msra.mxu0 %v4519_v2  ;;  %4849 = vmatpush2.msra.mxu1 %v4521_v37  ;;  %v5036_v2 = vld [vmem:[%s13063_s2 + $0x2d8] sm:$0xff]  ;;  %v5033_v37 = vld [vmem:[%s13063_s2 + $0x2c0] sm:$0xff] }
 0x7bc   :  { %4779 = vmatprep.subr.mxu0 %v4512_v22  ;;  %4850 = vmatprep.subr.mxu1 %v4514_v6  ;;  %v5035_v22 = vld [vmem:[%s13063_s2 + $0x2d0] sm:$0xff]  ;;  %v5026_v6 = vld [vmem:[%s13063_s2 + $0x288] sm:$0xff] }
 0x7bd   :  { %4780 = vmatpush2.msra.mxu0 %v4511_v60  ;;  %4851 = vmatpush2.msra.mxu1 %v4513_v31  ;;  %v5028_v60 = vld [vmem:[%s13063_s2 + $0x298] sm:$0xff]  ;;  %v5025_v31 = vld [vmem:[%s13063_s2 + $0x280] sm:$0xff] }
 0x7be   :  { %4781 = vmatprep.subr.mxu0 %v4504_v9  ;;  %4852 = vmatprep.subr.mxu1 %v4506_v12  ;;  %v5027_v9 = vld [vmem:[%s13063_s2 + $0x290] sm:$0xff]  ;;  %v5018_v12 = vld [vmem:[%s13063_s2 + $0x248] sm:$0xff] }
 0x7bf   :  { %4782 = vmatpush2.msra.mxu0 %v4503_v19  ;;  %4853 = vmatpush2.msra.mxu1 %v4505_v34  ;;  %v5020_v19 = vld [vmem:[%s13063_s2 + $0x258] sm:$0xff]  ;;  %v5017_v34 = vld [vmem:[%s13063_s2 + $0x240] sm:$0xff] }
 0x7c0   :  { %4783 = vmatprep.subr.mxu0 %v4496_v47  ;;  %4854 = vmatprep.subr.mxu1 %v4498_v15  ;;  %v5019_v47 = vld [vmem:[%s13063_s2 + $0x250] sm:$0xff]  ;;  %v5010_v15 = vld [vmem:[%s13063_s2 + $0x208] sm:$0xff] }
 0x7c1   :  { %4784 = vmatpush2.msra.mxu0 %v4495_v48  ;;  %4855 = vmatpush2.msra.mxu1 %v4497_v44  ;;  %v5012_v48 = vld [vmem:[%s13063_s2 + $0x218] sm:$0xff]  ;;  %v5009_v44 = vld [vmem:[%s13063_s2 + $0x200] sm:$0xff] }
 0x7c2   :  { %4785 = vmatprep.subr.mxu0 %v4488_v29  ;;  %4856 = vmatprep.subr.mxu1 %v4490_v42  ;;  %v5011_v29 = vld [vmem:[%s13063_s2 + $0x210] sm:$0xff]  ;;  %v5002_v42 = vld [vmem:[%s13063_s2 + $0x1c8] sm:$0xff] }
 0x7c3   :  { %4786 = vmatpush2.msra.mxu0 %v4487_v40  ;;  %4857 = vmatpush2.msra.mxu1 %v4489_v35  ;;  %v5004_v40 = vld [vmem:[%s13063_s2 + $0x1d8] sm:$0xff]  ;;  %v5001_v35 = vld [vmem:[%s13063_s2 + $0x1c0] sm:$0xff] }
 0x7c4   :  { %4787 = vmatprep.subr.mxu0 %v4480_v38  ;;  %4858 = vmatprep.subr.mxu1 %v4482_v30  ;;  %v5003_v38 = vld [vmem:[%s13063_s2 + $0x1d0] sm:$0xff]  ;;  %v4994_v30 = vld [vmem:[%s13063_s2 + $0x188] sm:$0xff] }
 0x7c5   :  { %4788 = vmatpush2.msra.mxu0 %v4479_v8  ;;  %4859 = vmatpush2.msra.mxu1 %v4481_v46  ;;  %v4996_v8 = vld [vmem:[%s13063_s2 + $0x198] sm:$0xff]  ;;  %v4993_v46 = vld [vmem:[%s13063_s2 + $0x180] sm:$0xff] }
 0x7c6   :  { %4789 = vmatprep.subr.mxu0 %v4472_v20  ;;  %4860 = vmatprep.subr.mxu1 %v4474_v10  ;;  %v4995_v20 = vld [vmem:[%s13063_s2 + $0x190] sm:$0xff]  ;;  %v4986_v10 = vld [vmem:[%s13063_s2 + $0x148] sm:$0xff] }
 0x7c7   :  { %4790 = vmatpush2.msra.mxu0 %v4471_v28  ;;  %4861 = vmatpush2.msra.mxu1 %v4473_v4  ;;  %v4988_v28 = vld [vmem:[%s13063_s2 + $0x158] sm:$0xff]  ;;  %v4985_v4 = vld [vmem:[%s13063_s2 + $0x140] sm:$0xff] }
 0x7c8   :  { %4791 = vmatprep.subr.mxu0 %v4464_v13  ;;  %4862 = vmatprep.subr.mxu1 %v4466_v33  ;;  %v4987_v13 = vld [vmem:[%s13063_s2 + $0x150] sm:$0xff]  ;;  %v4978_v33 = vld [vmem:[%s13063_s2 + $0x108] sm:$0xff] }
 0x7c9   :  { %4792 = vmatpush2.msra.mxu0 %v4463_v7  ;;  %4863 = vmatpush2.msra.mxu1 %v4465_v41  ;;  %v4980_v7 = vld [vmem:[%s13063_s2 + $0x118] sm:$0xff]  ;;  %v4977_v41 = vld [vmem:[%s13063_s2 + $0x100] sm:$0xff] }
 0x7ca   :  { %4794 = vmatmul.mubr.f32.vlgmr.msra.gmra.mxu0 %v11718_v5  ;;  %4865 = vmatmul.mubr.f32.vlgmr.msra.gmra.mxu1 %v11718_v5 }
 0x7cb   :  { %5201 = vmatprep.subr.mxu0 %v5066_v3  ;;  %5272 = vmatprep.subr.mxu1 %v5068_v21  ;;  %v4979_v3 = vld [vmem:[%s13063_s2 + $0x110] sm:$0xff]  ;;  %v4970_v21 = vld [vmem:[%s13063_s2 + $0xc8] sm:$0xff] }
 0x7cc   :  { %5202 = vmatpush1.msra.mxu0 %v5065_v27  ;;  %5273 = vmatpush1.msra.mxu1 %v5067_v50  ;;  %v4972_v27 = vld [vmem:[%s13063_s2 + $0xd8] sm:$0xff]  ;;  %v4969_v50 = vld [vmem:[%s13063_s2 + $0xc0] sm:$0xff] }
 0x7cd   :  { %5203 = vmatprep.subr.mxu0 %v5058_v54  ;;  %5274 = vmatprep.subr.mxu1 %v5060_v55  ;;  %v4971_v54 = vld [vmem:[%s13063_s2 + $0xd0] sm:$0xff]  ;;  %v4962_v55 = vld [vmem:[%s13063_s2 + $0x88] sm:$0xff] }
 0x7ce   :  { %5204 = vmatpush1.msra.mxu0 %v5057_v16  ;;  %5275 = vmatpush1.msra.mxu1 %v5059_v43  ;;  %v4964_v16 = vld [vmem:[%s13063_s2 + $0x98] sm:$0xff]  ;;  %v4961_v43 = vld [vmem:[%s13063_s2 + $0x80] sm:$0xff] }
 0x7cf   :  { %5205 = vmatprep.subr.mxu0 %v5050_v23  ;;  %5276 = vmatprep.subr.mxu1 %v5052_v24  ;;  %v4963_v23 = vld [vmem:[%s13063_s2 + $0x90] sm:$0xff]  ;;  %v4954_v24 = vld [vmem:[%s13063_s2 + $0x48] sm:$0xff] }
 0x7d0   :  { %5206 = vmatpush1.msra.mxu0 %v5049_v51  ;;  %5277 = vmatpush1.msra.mxu1 %v5051_v57  ;;  %v4956_v51 = vld [vmem:[%s13063_s2 + $0x58] sm:$0xff]  ;;  %v4953_v57 = vld [vmem:[%s13063_s2 + $0x40] sm:$0xff] }
 0x7d1   :  { %5207 = vmatprep.subr.mxu0 %v5042_v49  ;;  %5278 = vmatprep.subr.mxu1 %v5044_v45  ;;  %v4955_v49 = vld [vmem:[%s13063_s2 + $0x50] sm:$0xff]  ;;  %v4946_v45 = vld [vmem:[%s13063_s2 + $0x8] sm:$0xff] }
 0x7d2   :  { %5208 = vmatpush1.msra.mxu0 %v5041_v63  ;;  %5279 = vmatpush1.msra.mxu1 %v5043_v32  ;;  %v4948_v63 = vld [vmem:[%s13063_s2 + $0x18] sm:$0xff]  ;;  %v4945_v32 = vld [vmem:[%s13063_s2] sm:$0xff] }
 0x7d3   :  { %5209 = vmatprep.subr.mxu0 %v5034_v18  ;;  %5280 = vmatprep.subr.mxu1 %v5036_v2  ;;  %v4947_v18 = vld [vmem:[%s13063_s2 + $0x10] sm:$0xff]  ;;  %v5194_v2 = vld [vmem:[%s13063_s2 + $0x7c8] sm:$0xff] }
 0x7d4   :  { %5210 = vmatpush1.msra.mxu0 %v5033_v37  ;;  %5281 = vmatpush1.msra.mxu1 %v5035_v22  ;;  %v5196_v37 = vld [vmem:[%s13063_s2 + $0x7d8] sm:$0xff]  ;;  %v5193_v22 = vld [vmem:[%s13063_s2 + $0x7c0] sm:$0xff] }
 0x7d5   :  { %5211 = vmatprep.subr.mxu0 %v5026_v6  ;;  %5282 = vmatprep.subr.mxu1 %v5028_v60  ;;  %v5195_v6 = vld [vmem:[%s13063_s2 + $0x7d0] sm:$0xff]  ;;  %v5186_v60 = vld [vmem:[%s13063_s2 + $0x788] sm:$0xff] }
 0x7d6   :  { %5212 = vmatpush1.msra.mxu0 %v5025_v31  ;;  %5283 = vmatpush1.msra.mxu1 %v5027_v9  ;;  %v5188_v31 = vld [vmem:[%s13063_s2 + $0x798] sm:$0xff]  ;;  %v5185_v9 = vld [vmem:[%s13063_s2 + $0x780] sm:$0xff] }
 0x7d7   :  { %5213 = vmatprep.subr.mxu0 %v5018_v12  ;;  %5284 = vmatprep.subr.mxu1 %v5020_v19  ;;  %v5187_v12 = vld [vmem:[%s13063_s2 + $0x790] sm:$0xff]  ;;  %v5178_v19 = vld [vmem:[%s13063_s2 + $0x748] sm:$0xff] }
 0x7d8   :  { %5214 = vmatpush1.msra.mxu0 %v5017_v34  ;;  %5285 = vmatpush1.msra.mxu1 %v5019_v47  ;;  %v5180_v34 = vld [vmem:[%s13063_s2 + $0x758] sm:$0xff]  ;;  %v5177_v47 = vld [vmem:[%s13063_s2 + $0x740] sm:$0xff] }
 0x7d9   :  { %5215 = vmatprep.subr.mxu0 %v5010_v15  ;;  %5286 = vmatprep.subr.mxu1 %v5012_v48  ;;  %v5179_v15 = vld [vmem:[%s13063_s2 + $0x750] sm:$0xff]  ;;  %v5170_v48 = vld [vmem:[%s13063_s2 + $0x708] sm:$0xff] }
 0x7da   :  { %5216 = vmatpush1.msra.mxu0 %v5009_v44  ;;  %5287 = vmatpush1.msra.mxu1 %v5011_v29  ;;  %v5172_v44 = vld [vmem:[%s13063_s2 + $0x718] sm:$0xff]  ;;  %v5169_v29 = vld [vmem:[%s13063_s2 + $0x700] sm:$0xff] }
 0x7db   :  { %5217 = vmatprep.subr.mxu0 %v5002_v42  ;;  %5288 = vmatprep.subr.mxu1 %v5004_v40  ;;  %v5171_v42 = vld [vmem:[%s13063_s2 + $0x710] sm:$0xff]  ;;  %v5162_v40 = vld [vmem:[%s13063_s2 + $0x6c8] sm:$0xff] }
 0x7dc   :  { %5218 = vmatpush1.msra.mxu0 %v5001_v35  ;;  %5289 = vmatpush1.msra.mxu1 %v5003_v38  ;;  %v5164_v35 = vld [vmem:[%s13063_s2 + $0x6d8] sm:$0xff]  ;;  %v5161_v38 = vld [vmem:[%s13063_s2 + $0x6c0] sm:$0xff] }
 0x7dd   :  { %5219 = vmatprep.subr.mxu0 %v4994_v30  ;;  %5290 = vmatprep.subr.mxu1 %v4996_v8  ;;  %v5163_v30 = vld [vmem:[%s13063_s2 + $0x6d0] sm:$0xff]  ;;  %v5154_v8 = vld [vmem:[%s13063_s2 + $0x688] sm:$0xff] }
 0x7de   :  { %5220 = vmatpush1.msra.mxu0 %v4993_v46  ;;  %5291 = vmatpush1.msra.mxu1 %v4995_v20  ;;  %v5156_v46 = vld [vmem:[%s13063_s2 + $0x698] sm:$0xff]  ;;  %v5153_v20 = vld [vmem:[%s13063_s2 + $0x680] sm:$0xff] }
 0x7df   :  { %5221 = vmatprep.subr.mxu0 %v4986_v10  ;;  %5292 = vmatprep.subr.mxu1 %v4988_v28  ;;  %v5155_v10 = vld [vmem:[%s13063_s2 + $0x690] sm:$0xff]  ;;  %v5146_v28 = vld [vmem:[%s13063_s2 + $0x648] sm:$0xff] }
 0x7e0   :  { %5222 = vmatpush1.msra.mxu0 %v4985_v4  ;;  %5293 = vmatpush1.msra.mxu1 %v4987_v13  ;;  %v5148_v4 = vld [vmem:[%s13063_s2 + $0x658] sm:$0xff]  ;;  %v5145_v13 = vld [vmem:[%s13063_s2 + $0x640] sm:$0xff] }
 0x7e1   :  { %5223 = vmatprep.subr.mxu0 %v4978_v33  ;;  %5294 = vmatprep.subr.mxu1 %v4980_v7  ;;  %v5147_v33 = vld [vmem:[%s13063_s2 + $0x650] sm:$0xff]  ;;  %v5138_v7 = vld [vmem:[%s13063_s2 + $0x608] sm:$0xff] }
 0x7e2   :  { %5224 = vmatpush1.msra.mxu0 %v4977_v41  ;;  %5295 = vmatpush1.msra.mxu1 %v4979_v3  ;;  %v5140_v41 = vld [vmem:[%s13063_s2 + $0x618] sm:$0xff]  ;;  %v5137_v3 = vld [vmem:[%s13063_s2 + $0x600] sm:$0xff] }
 0x7e3   :  { %5225 = vmatprep.subr.mxu0 %v4970_v21  ;;  %5296 = vmatprep.subr.mxu1 %v4972_v27  ;;  %v5139_v21 = vld [vmem:[%s13063_s2 + $0x610] sm:$0xff]  ;;  %v5130_v27 = vld [vmem:[%s13063_s2 + $0x5c8] sm:$0xff] }
 0x7e4   :  { %5226 = vmatpush1.msra.mxu0 %v4969_v50  ;;  %5297 = vmatpush1.msra.mxu1 %v4971_v54  ;;  %v5132_v50 = vld [vmem:[%s13063_s2 + $0x5d8] sm:$0xff]  ;;  %v5129_v54 = vld [vmem:[%s13063_s2 + $0x5c0] sm:$0xff] }
 0x7e5   :  { %5227 = vmatprep.subr.mxu0 %v4962_v55  ;;  %5298 = vmatprep.subr.mxu1 %v4964_v16  ;;  %v5131_v55 = vld [vmem:[%s13063_s2 + $0x5d0] sm:$0xff]  ;;  %v5122_v16 = vld [vmem:[%s13063_s2 + $0x588] sm:$0xff] }
 0x7e6   :  { %5228 = vmatpush1.msra.mxu0 %v4961_v43  ;;  %5299 = vmatpush1.msra.mxu1 %v4963_v23  ;;  %v5124_v43 = vld [vmem:[%s13063_s2 + $0x598] sm:$0xff]  ;;  %v5121_v23 = vld [vmem:[%s13063_s2 + $0x580] sm:$0xff] }
 0x7e7   :  { %5229 = vmatprep.subr.mxu0 %v4954_v24  ;;  %5300 = vmatprep.subr.mxu1 %v4956_v51  ;;  %v5123_v24 = vld [vmem:[%s13063_s2 + $0x590] sm:$0xff]  ;;  %v5114_v51 = vld [vmem:[%s13063_s2 + $0x548] sm:$0xff] }
 0x7e8   :  { %5230 = vmatpush1.msra.mxu0 %v4953_v57  ;;  %5301 = vmatpush1.msra.mxu1 %v4955_v49  ;;  %v5116_v57 = vld [vmem:[%s13063_s2 + $0x558] sm:$0xff]  ;;  %v5113_v49 = vld [vmem:[%s13063_s2 + $0x540] sm:$0xff] }
 0x7e9   :  { %5231 = vmatprep.subr.mxu0 %v4946_v45  ;;  %5302 = vmatprep.subr.mxu1 %v4948_v63  ;;  %v5115_v45 = vld [vmem:[%s13063_s2 + $0x550] sm:$0xff]  ;;  %v5106_v63 = vld [vmem:[%s13063_s2 + $0x508] sm:$0xff] }
 0x7ea   :  { %5232 = vmatpush1.msra.mxu0 %v4945_v32  ;;  %5303 = vmatpush1.msra.mxu1 %v4947_v18  ;;  %v5108_v32 = vld [vmem:[%s13063_s2 + $0x518] sm:$0xff]  ;;  %v5105_v18 = vld [vmem:[%s13063_s2 + $0x500] sm:$0xff] }
 0x7eb   :  { %5233 = vmatprep.subr.mxu0 %v5194_v2  ;;  %5304 = vmatprep.subr.mxu1 %v5196_v37  ;;  %v5107_v2 = vld [vmem:[%s13063_s2 + $0x510] sm:$0xff]  ;;  %v5098_v37 = vld [vmem:[%s13063_s2 + $0x4c8] sm:$0xff] }
 0x7ec   :  { %5234 = vmatpush2.msra.mxu0 %v5193_v22  ;;  %5305 = vmatpush2.msra.mxu1 %v5195_v6  ;;  %v5100_v22 = vld [vmem:[%s13063_s2 + $0x4d8] sm:$0xff]  ;;  %v5097_v6 = vld [vmem:[%s13063_s2 + $0x4c0] sm:$0xff] }
 0x7ed   :  { %5235 = vmatprep.subr.mxu0 %v5186_v60  ;;  %5306 = vmatprep.subr.mxu1 %v5188_v31  ;;  %v5099_v60 = vld [vmem:[%s13063_s2 + $0x4d0] sm:$0xff]  ;;  %v5090_v31 = vld [vmem:[%s13063_s2 + $0x488] sm:$0xff] }
 0x7ee   :  { %5236 = vmatpush2.msra.mxu0 %v5185_v9  ;;  %5307 = vmatpush2.msra.mxu1 %v5187_v12  ;;  %v5092_v9 = vld [vmem:[%s13063_s2 + $0x498] sm:$0xff]  ;;  %v5089_v12 = vld [vmem:[%s13063_s2 + $0x480] sm:$0xff] }
 0x7ef   :  { %5237 = vmatprep.subr.mxu0 %v5178_v19  ;;  %5308 = vmatprep.subr.mxu1 %v5180_v34  ;;  %v5091_v19 = vld [vmem:[%s13063_s2 + $0x490] sm:$0xff]  ;;  %v5082_v34 = vld [vmem:[%s13063_s2 + $0x448] sm:$0xff] }
 0x7f0   :  { %5238 = vmatpush2.msra.mxu0 %v5177_v47  ;;  %5309 = vmatpush2.msra.mxu1 %v5179_v15  ;;  %v5084_v47 = vld [vmem:[%s13063_s2 + $0x458] sm:$0xff]  ;;  %v5081_v15 = vld [vmem:[%s13063_s2 + $0x440] sm:$0xff] }
 0x7f1   :  { %5239 = vmatprep.subr.mxu0 %v5170_v48  ;;  %5310 = vmatprep.subr.mxu1 %v5172_v44  ;;  %v5083_v48 = vld [vmem:[%s13063_s2 + $0x450] sm:$0xff]  ;;  %v5074_v44 = vld [vmem:[%s13063_s2 + $0x408] sm:$0xff] }
 0x7f2   :  { %5240 = vmatpush2.msra.mxu0 %v5169_v29  ;;  %5311 = vmatpush2.msra.mxu1 %v5171_v42  ;;  %v5076_v29 = vld [vmem:[%s13063_s2 + $0x418] sm:$0xff]  ;;  %v5073_v42 = vld [vmem:[%s13063_s2 + $0x400] sm:$0xff] }
 0x7f3   :  { %5241 = vmatprep.subr.mxu0 %v5162_v40  ;;  %5312 = vmatprep.subr.mxu1 %v5164_v35  ;;  %v5075_v40 = vld [vmem:[%s13063_s2 + $0x410] sm:$0xff]  ;;  %v5070_v35 = vld [vmem:[%s13063_s2 + $0x3e8] sm:$0xff] }
 0x7f4   :  { %5242 = vmatpush2.msra.mxu0 %v5161_v38  ;;  %5313 = vmatpush2.msra.mxu1 %v5163_v30  ;;  %v5072_v38 = vld [vmem:[%s13063_s2 + $0x3f8] sm:$0xff] }
 0x7f5   :  { %5243 = vmatprep.subr.mxu0 %v5154_v8  ;;  %5314 = vmatprep.subr.mxu1 %v5156_v46 }
 0x7f6   :  { %5244 = vmatpush2.msra.mxu0 %v5153_v20  ;;  %5315 = vmatpush2.msra.mxu1 %v5155_v10  ;;  %v13093_v20 = vld [vmem:[#allocation7_spill] sm:$0xff] }
 0x7f7   :  { %5245 = vmatprep.subr.mxu0 %v5146_v28  ;;  %5316 = vmatprep.subr.mxu1 %v5148_v4  ;;  %v13094_v28 = vld [vmem:[#allocation18_spill] sm:$0xff] }
 0x7f8   :  { %5246 = vmatpush2.msra.mxu0 %v5145_v13  ;;  %5317 = vmatpush2.msra.mxu1 %v5147_v33  ;;  %v13095_v33 = vld [vmem:[#allocation8_spill] sm:$0xff] }
 0x7f9   :  { %5247 = vmatprep.subr.mxu0 %v5138_v7  ;;  %5318 = vmatprep.subr.mxu1 %v5140_v41 }
 0x7fa   :  { %5248 = vmatpush2.msra.mxu0 %v5137_v3  ;;  %5319 = vmatpush2.msra.mxu1 %v5139_v21  ;;  %v13096_v3 = vld [vmem:[#allocation19_spill] sm:$0xff] }
 0x7fb   :  { %5249 = vmatprep.subr.mxu0 %v5130_v27  ;;  %5320 = vmatprep.subr.mxu1 %v5132_v50 }
 0x7fc   :  { %5250 = vmatpush2.msra.mxu0 %v5129_v54  ;;  %5321 = vmatpush2.msra.mxu1 %v5131_v55 }
 0x7fd   :  { %5251 = vmatprep.subr.mxu0 %v5122_v16  ;;  %5322 = vmatprep.subr.mxu1 %v5124_v43 }
 0x7fe   :  { %5252 = vmatpush2.msra.mxu0 %v5121_v23  ;;  %5323 = vmatpush2.msra.mxu1 %v5123_v24 }
 0x7ff   :  { %5253 = vmatprep.subr.mxu0 %v5114_v51  ;;  %5324 = vmatprep.subr.mxu1 %v5116_v57 }
 0x800   :  { %5254 = vmatpush2.msra.mxu0 %v5113_v49  ;;  %5325 = vmatpush2.msra.mxu1 %v5115_v45  ;;  %v558_v49 = vadd.f32 %v7690_v59, %v7713_v36 }
 0x801   :  { %5255 = vmatprep.subr.mxu0 %v5106_v63  ;;  %5326 = vmatprep.subr.mxu1 %v5108_v32 }
 0x802   :  { %5256 = vmatpush2.msra.mxu0 %v5105_v18  ;;  %5327 = vmatpush2.msra.mxu1 %v5107_v2  ;;  %v13097_v18 = vld [vmem:[#allocation24_spill] sm:$0xff] }
 0x803   :  { %5257 = vmatprep.subr.mxu0 %v5098_v37  ;;  %5328 = vmatprep.subr.mxu1 %v5100_v22  ;;  %v560_v2 = vadd.f32 %v13097_v18, %v7716_v61  ;;  %v13098_v37 = vld [vmem:[#allocation13_spill] sm:$0xff]  ;;  %v5037_v18 = vld [vmem:[%s13063_s2 + $0x2e0] sm:$0xff] }
 0x804   :  { %5258 = vmatpush2.msra.mxu0 %v5097_v6  ;;  %5329 = vmatpush2.msra.mxu1 %v5099_v60 }
 0x805   :  { %5259 = vmatprep.subr.mxu0 %v5090_v31  ;;  %5330 = vmatprep.subr.mxu1 %v5092_v9 }
 0x806   :  { %5260 = vmatpush2.msra.mxu0 %v5089_v12  ;;  %5331 = vmatpush2.msra.mxu1 %v5091_v19  ;;  %v13099_v12 = vld [vmem:[#allocation14_spill] sm:$0xff] }
 0x807   :  { %5261 = vmatprep.subr.mxu0 %v5082_v34  ;;  %5332 = vmatprep.subr.mxu1 %v5084_v47 }
 0x808   :  { %5262 = vmatpush2.msra.mxu0 %v5081_v15  ;;  %5333 = vmatpush2.msra.mxu1 %v5083_v48 }
 0x809   :  { %5263 = vmatprep.subr.mxu0 %v5074_v44  ;;  %5334 = vmatprep.subr.mxu1 %v5076_v29 }
 0x80a   :  { %5264 = vmatpush2.msra.mxu0 %v5073_v42  ;;  %5335 = vmatpush2.msra.mxu1 %v5075_v40 }
 0x80b   :  { %5343 = vmatprep.subr.mxu0 %v5070_v35  ;;  %5414 = vmatprep.subr.mxu1 %v5072_v38 }
 0x849   :  { %v4653_v30 = vpop.f32.mrf.mxu0  ;;  %v4724_v8 = vpop.f32.mrf.mxu1 }
 0x84a   :  { %v4871_v10 = vadd.f32 %v4653_v30, %v13093_v20  ;;  %v4873_v4 = vadd.f32 %v4724_v8, %v13094_v28 }
 0x84b   :  { %v4655_v46 = vpop.f32.mrf.mxu0  ;;  %v4726_v13 = vpop.f32.mrf.mxu1 }
 0x84c   :  { %v4872_v7 = vadd.f32 %v4655_v46, %v13095_v33  ;;  %v5807_v41 = vmul.f32 -1.442695, %v4871_v10  ;;  %v4874_v21 = vadd.f32 %v4726_v13, %v13096_v3  ;;  %v5809_v27 = vmul.f32 -1.442695, %v4873_v4 }
 0x84e   :  { %v5808_v50 = vmul.f32 -1.442695, %v4872_v7  ;;  %6069 = vpow2.f32 %v5807_v41  ;;  %v5810_v54 = vmul.f32 -1.442695, %v4874_v21  ;;  %v5071_v21 = vld [vmem:[%s13063_s2 + $0x3f0] sm:$0xff] }
 0x84f   :  { %6071 = vpow2.f32 %v5809_v27  ;;  %v5062_v27 = vld [vmem:[%s13063_s2 + $0x3a8] sm:$0xff] }
 0x850   :  { %6073 = vpow2.f32 %v5808_v50  ;;  %v5064_v50 = vld [vmem:[%s13063_s2 + $0x3b8] sm:$0xff] }
 0x851   :  { %6075 = vpow2.f32 %v5810_v54  ;;  %v5061_v54 = vld [vmem:[%s13063_s2 + $0x3a0] sm:$0xff] }
 0x85b   :  { %v6070_v55 = vpop.eup %6069 }
 0x85c   :  { %v6072_v16 = vpop.eup %6071  ;;  %v4885_v23 = vadd.f32 1.0, %v6070_v55  ;;  %v5063_v55 = vld [vmem:[%s13063_s2 + $0x3b0] sm:$0xff] }
 0x85d   :  { %v6074_v43 = vpop.eup %6073  ;;  %v4897_v51 = vadd.f32 1.0, %v6072_v16  ;;  %v5054_v16 = vld [vmem:[%s13063_s2 + $0x368] sm:$0xff] }
 0x85e   :  { %v6076_v24 = vpop.eup %6075  ;;  %v4886_v57 = vadd.f32 1.0, %v6074_v43  ;;  %6077 = vrcp.f32 %v4885_v23  ;;  %v5056_v43 = vld [vmem:[%s13063_s2 + $0x378] sm:$0xff]  ;;  %v5053_v23 = vld [vmem:[%s13063_s2 + $0x360] sm:$0xff] }
 0x85f   :  { %v4898_v45 = vadd.f32 1.0, %v6076_v24  ;;  %6079 = vrcp.f32 %v4897_v51  ;;  %v5055_v24 = vld [vmem:[%s13063_s2 + $0x370] sm:$0xff]  ;;  %v5046_v51 = vld [vmem:[%s13063_s2 + $0x328] sm:$0xff] }
 0x860   :  { %6081 = vrcp.f32 %v4886_v57  ;;  %v5048_v57 = vld [vmem:[%s13063_s2 + $0x338] sm:$0xff] }
 0x86b   :  { %v6078_v47 = vpop.eup %6077 }
 0x86c   :  { %v6080_v15 = vpop.eup %6079 }
 0x86d   :  { %v6082_v48 = vpop.eup %6081  ;;  %v4917_v42 = vmul.f32 %v6080_v15, %v11709_v0  ;;  %v5015_v15 = vld [vmem:[%s13063_s2 + $0x230] sm:$0xff] }
 0x88a   :  { %v4795_v63 = vpop.f32.mrf.mxu0  ;;  %v4866_v32 = vpop.f32.mrf.mxu1 }
 0x88b   :  { %v4875_v22 = vadd.f32 %v4795_v63, %v13098_v37  ;;  %v4877_v6 = vadd.f32 %v4866_v32, %v558_v49  ;;  %v5045_v49 = vld [vmem:[%s13063_s2 + $0x320] sm:$0xff]  ;;  %v5038_v63 = vld [vmem:[%s13063_s2 + $0x2e8] sm:$0xff]  ;;  %v5040_v32 = vld [vmem:[%s13063_s2 + $0x2f8] sm:$0xff] }
 0x88c   :  { %v4797_v60 = vpop.f32.mrf.mxu0  ;;  %v4868_v31 = vpop.f32.mrf.mxu1  ;;  %v5030_v37 = vld [vmem:[%s13063_s2 + $0x2a8] sm:$0xff] }
 0x88d   :  { %6083 = vtanh.f32 %v4875_v22  ;;  %v5811_v9 = vmul.f32 -1.442695, %v4877_v6  ;;  %v4876_v19 = vadd.f32 %v4797_v60, %v13099_v12  ;;  %v4878_v34 = vadd.f32 %v4868_v31, %v560_v2  ;;  %v5039_v2 = vld [vmem:[%s13063_s2 + $0x2f0] sm:$0xff]  ;;  %v5032_v22 = vld [vmem:[%s13063_s2 + $0x2b8] sm:$0xff]  ;;  %v5029_v6 = vld [vmem:[%s13063_s2 + $0x2a0] sm:$0xff] }
 0x88e   :  { %6085 = vrcp.f32 %v4898_v45  ;;  %v5047_v45 = vld [vmem:[%s13063_s2 + $0x330] sm:$0xff]  ;;  %v5022_v31 = vld [vmem:[%s13063_s2 + $0x268] sm:$0xff]  ;;  %v5021_v12 = vld [vmem:[%s13063_s2 + $0x260] sm:$0xff] }
 0x88f   :  { %6087 = vpow2.f32 %v5811_v9  ;;  %v5812_v59 = vmul.f32 -1.442695, %v4878_v34  ;;  %v5031_v60 = vld [vmem:[%s13063_s2 + $0x2b0] sm:$0xff]  ;;  %v5024_v9 = vld [vmem:[%s13063_s2 + $0x278] sm:$0xff]  ;;  %v5014_v34 = vld [vmem:[%s13063_s2 + $0x228] sm:$0xff] }
 0x890   :  { %6089 = vtanh.f32 %v4876_v19  ;;  %v5023_v19 = vld [vmem:[%s13063_s2 + $0x270] sm:$0xff] }
 0x891   :  { %6091 = vpow2.f32 %v5812_v59  ;;  %v5016_v59 = vld [vmem:[%s13063_s2 + $0x238] sm:$0xff] }
 0x89a   :  { %v6084_v44 = vpop.eup %6083 }
 0x89b   :  { %v6086_v29 = vpop.eup %6085  ;;  %v4919_v40 = vmul.f32 %v6084_v44, %v6078_v47  ;;  %v5013_v47 = vld [vmem:[%s13063_s2 + $0x220] sm:$0xff]  ;;  %v5008_v44 = vld [vmem:[%s13063_s2 + $0x1f8] sm:$0xff] }
 0x89c   :  { %v6088_v35 = vpop.eup %6087  ;;  %v4918_v20 = vmul.f32 %v6086_v29, %v11713_v26  ;;  %v5069_v26 = vld [vmem:[%s13063_s2 + $0x3e0] sm:$0xff] }
 0x89d   :  { %v6090_v38 = vpop.eup %6089  ;;  %v12507_v30 = vadd.f32 %v4919_v40, %v4917_v42  ;;  %v4911_v8 = vadd.f32 1.0, %v6088_v35  ;;  %v5005_v29 = vld [vmem:[%s13063_s2 + $0x1e0] sm:$0xff]  ;;  %v5007_v42 = vld [vmem:[%s13063_s2 + $0x1f0] sm:$0xff]  ;;  %v4998_v40 = vld [vmem:[%s13063_s2 + $0x1a8] sm:$0xff] }
 0x89e   :  { %v6092_v46 = vpop.eup %6091  ;;  %v4920_v10 = vmul.f32 %v6090_v38, %v6082_v48  ;;  %v5006_v48 = vld [vmem:[%s13063_s2 + $0x1e8] sm:$0xff]  ;;  %v5000_v35 = vld [vmem:[%s13063_s2 + $0x1b8] sm:$0xff]  ;;  %v4997_v38 = vld [vmem:[%s13063_s2 + $0x1a0] sm:$0xff] }
 0x89f   :  { %6093 = vtanh.f32 %v12507_v30  ;;  %v4912_v28 = vadd.f32 1.0, %v6092_v46  ;;  %v4990_v46 = vld [vmem:[%s13063_s2 + $0x168] sm:$0xff] }
 0x8a0   :  { %6095 = vrcp.f32 %v4911_v8  ;;  %v12511_v4 = vadd.f32 %v4920_v10, %v4918_v20  ;;  %v4999_v8 = vld [vmem:[%s13063_s2 + $0x1b0] sm:$0xff]  ;;  %v4992_v20 = vld [vmem:[%s13063_s2 + $0x178] sm:$0xff]  ;;  %v4989_v10 = vld [vmem:[%s13063_s2 + $0x160] sm:$0xff] }
 0x8a1   :  { %6097 = vrcp.f32 %v4912_v28  ;;  %v4991_v28 = vld [vmem:[%s13063_s2 + $0x170] sm:$0xff] }
 0x8a2   :  { %6099 = vtanh.f32 %v12511_v4 }
 0x8ac   :  { %v6094_v0 = vpop.eup %6093 }
 0x8ad   :  { %v6096_v13 = vpop.eup %6095 }
 0x8ae   :  { %v6098_v33 = vpop.eup %6097  ;;  %v12516_v3 = vmul.f32 %v6096_v13, %v6094_v0  ;;  %v4982_v0 = vld [vmem:[%s13063_s2 + $0x128] sm:$0xff]  ;;  %v4984_v13 = vld [vmem:[%s13063_s2 + $0x138] sm:$0xff] }
 0x8af   :  { %v6100_v7 = vpop.eup %6099 }
 0x8b0   :  { %v12514_v41 = vmul.f32 %v6100_v7, %v6098_v33  ;;  %v4981_v33 = vld [vmem:[%s13063_s2 + $0x120] sm:$0xff]  ;;  %v4983_v7 = vld [vmem:[%s13063_s2 + $0x130] sm:$0xff] }
 0x8b2   :  { %5265 = vmatprep.mubr.f32.mxu0 %v12514_v41  ;;  %5336 = vmatprep.mubr.f32.mxu1 %v12514_v41 }
 0x8b3   :  { %5266 = vmatmul.mubr.f32.vlgmr.msra.gmra.mxu0 %v12516_v3  ;;  %5337 = vmatmul.mubr.f32.vlgmr.msra.gmra.mxu1 %v12516_v3 }
 0x8b4   :  { %5344 = vmatpush1.msra.mxu0 %v5069_v26  ;;  %5415 = vmatpush1.msra.mxu1 %v5071_v21  ;;  %v4974_v26 = vld [vmem:[%s13063_s2 + $0xe8] sm:$0xff]  ;;  %v4976_v21 = vld [vmem:[%s13063_s2 + $0xf8] sm:$0xff] }
 0x8b5   :  { %5345 = vmatprep.subr.mxu0 %v5062_v27  ;;  %5407 = vmatprep.mubr.f32.mxu0 %v12514_v41  ;;  %v4973_v27 = vld [vmem:[%s13063_s2 + $0xe0] sm:$0xff] }
 0x8b6   :  { %5416 = vmatprep.subr.mxu1 %v5064_v50  ;;  %5478 = vmatprep.mubr.f32.mxu1 %v12514_v41  ;;  %v4975_v50 = vld [vmem:[%s13063_s2 + $0xf0] sm:$0xff] }
 0x8b7   :  { %5346 = vmatpush1.msra.mxu0 %v5061_v54  ;;  %5417 = vmatpush1.msra.mxu1 %v5063_v55  ;;  %v4966_v54 = vld [vmem:[%s13063_s2 + $0xa8] sm:$0xff]  ;;  %v4968_v55 = vld [vmem:[%s13063_s2 + $0xb8] sm:$0xff] }
 0x8b8   :  { %5347 = vmatprep.subr.mxu0 %v5054_v16  ;;  %5418 = vmatprep.subr.mxu1 %v5056_v43  ;;  %v4965_v16 = vld [vmem:[%s13063_s2 + $0xa0] sm:$0xff]  ;;  %v4967_v43 = vld [vmem:[%s13063_s2 + $0xb0] sm:$0xff] }
 0x8b9   :  { %5348 = vmatpush1.msra.mxu0 %v5053_v23  ;;  %5419 = vmatpush1.msra.mxu1 %v5055_v24  ;;  %v4958_v23 = vld [vmem:[%s13063_s2 + $0x68] sm:$0xff]  ;;  %v4960_v24 = vld [vmem:[%s13063_s2 + $0x78] sm:$0xff] }
 0x8ba   :  { %5349 = vmatprep.subr.mxu0 %v5046_v51  ;;  %5420 = vmatprep.subr.mxu1 %v5048_v57  ;;  %v4957_v51 = vld [vmem:[%s13063_s2 + $0x60] sm:$0xff]  ;;  %v4959_v57 = vld [vmem:[%s13063_s2 + $0x70] sm:$0xff] }
 0x8bb   :  { %5350 = vmatpush1.msra.mxu0 %v5045_v49  ;;  %5421 = vmatpush1.msra.mxu1 %v5047_v45  ;;  %v4950_v49 = vld [vmem:[%s13063_s2 + $0x28] sm:$0xff]  ;;  %v4952_v45 = vld [vmem:[%s13063_s2 + $0x38] sm:$0xff] }
 0x8bc   :  { %5351 = vmatprep.subr.mxu0 %v5038_v63  ;;  %5422 = vmatprep.subr.mxu1 %v5040_v32  ;;  %v4949_v63 = vld [vmem:[%s13063_s2 + $0x20] sm:$0xff]  ;;  %v4951_v32 = vld [vmem:[%s13063_s2 + $0x30] sm:$0xff] }
 0x8bd   :  { %5352 = vmatpush1.msra.mxu0 %v5037_v18  ;;  %5423 = vmatpush1.msra.mxu1 %v5039_v2  ;;  %v5198_v18 = vld [vmem:[%s13063_s2 + $0x7e8] sm:$0xff]  ;;  %v5200_v2 = vld [vmem:[%s13063_s2 + $0x7f8] sm:$0xff] }
 0x8be   :  { %5353 = vmatprep.subr.mxu0 %v5030_v37  ;;  %5424 = vmatprep.subr.mxu1 %v5032_v22  ;;  %v5197_v37 = vld [vmem:[%s13063_s2 + $0x7e0] sm:$0xff]  ;;  %v5199_v22 = vld [vmem:[%s13063_s2 + $0x7f0] sm:$0xff] }
 0x8bf   :  { %5354 = vmatpush1.msra.mxu0 %v5029_v6  ;;  %5425 = vmatpush1.msra.mxu1 %v5031_v60  ;;  %v5190_v6 = vld [vmem:[%s13063_s2 + $0x7a8] sm:$0xff]  ;;  %v5192_v60 = vld [vmem:[%s13063_s2 + $0x7b8] sm:$0xff] }
 0x8c0   :  { %5355 = vmatprep.subr.mxu0 %v5022_v31  ;;  %5426 = vmatprep.subr.mxu1 %v5024_v9  ;;  %v5189_v31 = vld [vmem:[%s13063_s2 + $0x7a0] sm:$0xff]  ;;  %v5191_v9 = vld [vmem:[%s13063_s2 + $0x7b0] sm:$0xff] }
 0x8c1   :  { %5356 = vmatpush1.msra.mxu0 %v5021_v12  ;;  %5427 = vmatpush1.msra.mxu1 %v5023_v19  ;;  %v5182_v12 = vld [vmem:[%s13063_s2 + $0x768] sm:$0xff]  ;;  %v5184_v19 = vld [vmem:[%s13063_s2 + $0x778] sm:$0xff] }
 0x8c2   :  { %5357 = vmatprep.subr.mxu0 %v5014_v34  ;;  %5428 = vmatprep.subr.mxu1 %v5016_v59  ;;  %v5181_v34 = vld [vmem:[%s13063_s2 + $0x760] sm:$0xff]  ;;  %v5183_v59 = vld [vmem:[%s13063_s2 + $0x770] sm:$0xff] }
 0x8c3   :  { %5358 = vmatpush1.msra.mxu0 %v5013_v47  ;;  %5429 = vmatpush1.msra.mxu1 %v5015_v15  ;;  %v5174_v47 = vld [vmem:[%s13063_s2 + $0x728] sm:$0xff]  ;;  %v5176_v15 = vld [vmem:[%s13063_s2 + $0x738] sm:$0xff] }
 0x8c4   :  { %5359 = vmatprep.subr.mxu0 %v5006_v48  ;;  %5430 = vmatprep.subr.mxu1 %v5008_v44  ;;  %v5173_v48 = vld [vmem:[%s13063_s2 + $0x720] sm:$0xff]  ;;  %v5175_v44 = vld [vmem:[%s13063_s2 + $0x730] sm:$0xff] }
 0x8c5   :  { %5360 = vmatpush1.msra.mxu0 %v5005_v29  ;;  %5431 = vmatpush1.msra.mxu1 %v5007_v42  ;;  %v5166_v29 = vld [vmem:[%s13063_s2 + $0x6e8] sm:$0xff]  ;;  %v5168_v42 = vld [vmem:[%s13063_s2 + $0x6f8] sm:$0xff] }
 0x8c6   :  { %5361 = vmatprep.subr.mxu0 %v4998_v40  ;;  %5432 = vmatprep.subr.mxu1 %v5000_v35  ;;  %v5165_v40 = vld [vmem:[%s13063_s2 + $0x6e0] sm:$0xff]  ;;  %v5167_v35 = vld [vmem:[%s13063_s2 + $0x6f0] sm:$0xff] }
 0x8c7   :  { %5362 = vmatpush1.msra.mxu0 %v4997_v38  ;;  %5433 = vmatpush1.msra.mxu1 %v4999_v8  ;;  %v5158_v38 = vld [vmem:[%s13063_s2 + $0x6a8] sm:$0xff]  ;;  %v5160_v8 = vld [vmem:[%s13063_s2 + $0x6b8] sm:$0xff] }
 0x8c8   :  { %5363 = vmatprep.subr.mxu0 %v4990_v46  ;;  %5434 = vmatprep.subr.mxu1 %v4992_v20  ;;  %v5157_v46 = vld [vmem:[%s13063_s2 + $0x6a0] sm:$0xff]  ;;  %v5159_v20 = vld [vmem:[%s13063_s2 + $0x6b0] sm:$0xff] }
 0x8c9   :  { %5364 = vmatpush1.msra.mxu0 %v4989_v10  ;;  %5435 = vmatpush1.msra.mxu1 %v4991_v28  ;;  %v5150_v10 = vld [vmem:[%s13063_s2 + $0x668] sm:$0xff]  ;;  %v5152_v28 = vld [vmem:[%s13063_s2 + $0x678] sm:$0xff] }
 0x8ca   :  { %5365 = vmatprep.subr.mxu0 %v4982_v0  ;;  %5436 = vmatprep.subr.mxu1 %v4984_v13  ;;  %v5149_v0 = vld [vmem:[%s13063_s2 + $0x660] sm:$0xff]  ;;  %v5151_v13 = vld [vmem:[%s13063_s2 + $0x670] sm:$0xff] }
 0x8cb   :  { %5366 = vmatpush1.msra.mxu0 %v4981_v33  ;;  %5437 = vmatpush1.msra.mxu1 %v4983_v7  ;;  %v5142_v33 = vld [vmem:[%s13063_s2 + $0x628] sm:$0xff]  ;;  %v5144_v7 = vld [vmem:[%s13063_s2 + $0x638] sm:$0xff] }
 0x8cc   :  { %5367 = vmatprep.subr.mxu0 %v4974_v26  ;;  %5438 = vmatprep.subr.mxu1 %v4976_v21  ;;  %v5141_v26 = vld [vmem:[%s13063_s2 + $0x620] sm:$0xff]  ;;  %v5143_v21 = vld [vmem:[%s13063_s2 + $0x630] sm:$0xff] }
 0x8cd   :  { %5368 = vmatpush1.msra.mxu0 %v4973_v27  ;;  %5439 = vmatpush1.msra.mxu1 %v4975_v50  ;;  %v5134_v27 = vld [vmem:[%s13063_s2 + $0x5e8] sm:$0xff]  ;;  %v5136_v50 = vld [vmem:[%s13063_s2 + $0x5f8] sm:$0xff] }
 0x8ce   :  { %5369 = vmatprep.subr.mxu0 %v4966_v54  ;;  %5440 = vmatprep.subr.mxu1 %v4968_v55  ;;  %v5133_v54 = vld [vmem:[%s13063_s2 + $0x5e0] sm:$0xff]  ;;  %v5135_v55 = vld [vmem:[%s13063_s2 + $0x5f0] sm:$0xff] }
 0x8cf   :  { %5370 = vmatpush1.msra.mxu0 %v4965_v16  ;;  %5441 = vmatpush1.msra.mxu1 %v4967_v43  ;;  %v5126_v16 = vld [vmem:[%s13063_s2 + $0x5a8] sm:$0xff]  ;;  %v5128_v43 = vld [vmem:[%s13063_s2 + $0x5b8] sm:$0xff] }
 0x8d0   :  { %5371 = vmatprep.subr.mxu0 %v4958_v23  ;;  %5442 = vmatprep.subr.mxu1 %v4960_v24  ;;  %v5125_v23 = vld [vmem:[%s13063_s2 + $0x5a0] sm:$0xff]  ;;  %v5127_v24 = vld [vmem:[%s13063_s2 + $0x5b0] sm:$0xff] }
 0x8d1   :  { %5372 = vmatpush1.msra.mxu0 %v4957_v51  ;;  %5443 = vmatpush1.msra.mxu1 %v4959_v57  ;;  %v5118_v51 = vld [vmem:[%s13063_s2 + $0x568] sm:$0xff]  ;;  %v5120_v57 = vld [vmem:[%s13063_s2 + $0x578] sm:$0xff] }
 0x8d2   :  { %5373 = vmatprep.subr.mxu0 %v4950_v49  ;;  %5444 = vmatprep.subr.mxu1 %v4952_v45  ;;  %v5117_v49 = vld [vmem:[%s13063_s2 + $0x560] sm:$0xff]  ;;  %v5119_v45 = vld [vmem:[%s13063_s2 + $0x570] sm:$0xff] }
 0x8d3   :  { %5374 = vmatpush1.msra.mxu0 %v4949_v63  ;;  %5445 = vmatpush1.msra.mxu1 %v4951_v32  ;;  %v5110_v63 = vld [vmem:[%s13063_s2 + $0x528] sm:$0xff]  ;;  %v5112_v32 = vld [vmem:[%s13063_s2 + $0x538] sm:$0xff] }
 0x8d4   :  { %5375 = vmatprep.subr.mxu0 %v5198_v18  ;;  %5446 = vmatprep.subr.mxu1 %v5200_v2  ;;  %v5109_v18 = vld [vmem:[%s13063_s2 + $0x520] sm:$0xff]  ;;  %v5111_v2 = vld [vmem:[%s13063_s2 + $0x530] sm:$0xff] }
 0x8d5   :  { %5376 = vmatpush2.msra.mxu0 %v5197_v37  ;;  %5447 = vmatpush2.msra.mxu1 %v5199_v22  ;;  %v5102_v37 = vld [vmem:[%s13063_s2 + $0x4e8] sm:$0xff]  ;;  %v5104_v22 = vld [vmem:[%s13063_s2 + $0x4f8] sm:$0xff] }
 0x8d6   :  { %5377 = vmatprep.subr.mxu0 %v5190_v6  ;;  %5448 = vmatprep.subr.mxu1 %v5192_v60  ;;  %v5101_v6 = vld [vmem:[%s13063_s2 + $0x4e0] sm:$0xff]  ;;  %v5103_v60 = vld [vmem:[%s13063_s2 + $0x4f0] sm:$0xff] }
 0x8d7   :  { %5378 = vmatpush2.msra.mxu0 %v5189_v31  ;;  %5449 = vmatpush2.msra.mxu1 %v5191_v9  ;;  %v5094_v31 = vld [vmem:[%s13063_s2 + $0x4a8] sm:$0xff]  ;;  %v5096_v9 = vld [vmem:[%s13063_s2 + $0x4b8] sm:$0xff] }
 0x8d8   :  { %5379 = vmatprep.subr.mxu0 %v5182_v12  ;;  %5450 = vmatprep.subr.mxu1 %v5184_v19  ;;  %v5093_v12 = vld [vmem:[%s13063_s2 + $0x4a0] sm:$0xff]  ;;  %v5095_v19 = vld [vmem:[%s13063_s2 + $0x4b0] sm:$0xff] }
 0x8d9   :  { %5380 = vmatpush2.msra.mxu0 %v5181_v34  ;;  %5451 = vmatpush2.msra.mxu1 %v5183_v59  ;;  %v5086_v34 = vld [vmem:[%s13063_s2 + $0x468] sm:$0xff]  ;;  %v5088_v59 = vld [vmem:[%s13063_s2 + $0x478] sm:$0xff] }
 0x8da   :  { %5381 = vmatprep.subr.mxu0 %v5174_v47  ;;  %5452 = vmatprep.subr.mxu1 %v5176_v15  ;;  %v5085_v47 = vld [vmem:[%s13063_s2 + $0x460] sm:$0xff]  ;;  %v5087_v15 = vld [vmem:[%s13063_s2 + $0x470] sm:$0xff] }
 0x8db   :  { %5382 = vmatpush2.msra.mxu0 %v5173_v48  ;;  %5453 = vmatpush2.msra.mxu1 %v5175_v44  ;;  %v5078_v48 = vld [vmem:[%s13063_s2 + $0x428] sm:$0xff]  ;;  %v5080_v44 = vld [vmem:[%s13063_s2 + $0x438] sm:$0xff] }
 0x8dc   :  { %5383 = vmatprep.subr.mxu0 %v5166_v29  ;;  %5454 = vmatprep.subr.mxu1 %v5168_v42  ;;  %v5077_v29 = vld [vmem:[%s13063_s2 + $0x420] sm:$0xff]  ;;  %v5079_v42 = vld [vmem:[%s13063_s2 + $0x430] sm:$0xff] }
 0x8dd   :  { %5384 = vmatpush2.msra.mxu0 %v5165_v40  ;;  %5455 = vmatpush2.msra.mxu1 %v5167_v35  ;;  %v5599_v40 = vld [vmem:[%s13065_s4 + $0xf8] sm:$0xff] }
 0x8de   :  { %5385 = vmatprep.subr.mxu0 %v5158_v38  ;;  %5456 = vmatprep.subr.mxu1 %v5160_v8  ;;  %v5583_v35 = vld [vmem:[%s13065_s4 + $0x78] sm:$0xff]  ;;  %v1244_v38 = vmax.f32 %v7726_v25, 0.0  ;;  %v5598_v8 = vld [vmem:[%s13065_s4 + $0xf0] sm:$0xff]  ;;  %v5581_v25 = vld [vmem:[%s13065_s4 + $0x68] sm:$0xff] }
 0x8df   :  { %5386 = vmatpush2.msra.mxu0 %v5157_v46  ;;  %5457 = vmatpush2.msra.mxu1 %v5159_v20  ;;  %v5582_v46 = vld [vmem:[%s13065_s4 + $0x70] sm:$0xff]  ;;  %v5597_v20 = vld [vmem:[%s13065_s4 + $0xe8] sm:$0xff] }
 0x8e0   :  { %5387 = vmatprep.subr.mxu0 %v5150_v10  ;;  %5458 = vmatprep.subr.mxu1 %v5152_v28  ;;  %v5596_v10 = vld [vmem:[%s13065_s4 + $0xe0] sm:$0xff] }
 0x8e1   :  { %5388 = vmatpush2.msra.mxu0 %v5149_v0  ;;  %5459 = vmatpush2.msra.mxu1 %v5151_v13  ;;  %v5580_v28 = vld [vmem:[%s13065_s4 + $0x60] sm:$0xff]  ;;  %v5595_v0 = vld [vmem:[%s13065_s4 + $0xd8] sm:$0xff] }
 0x8e2   :  { %5389 = vmatprep.subr.mxu0 %v5142_v33  ;;  %5460 = vmatprep.subr.mxu1 %v5144_v7  ;;  %v5579_v13 = vld [vmem:[%s13065_s4 + $0x58] sm:$0xff]  ;;  %v5594_v33 = vld [vmem:[%s13065_s4 + $0xd0] sm:$0xff] }
 0x8e3   :  { %5390 = vmatpush2.msra.mxu0 %v5141_v26  ;;  %5461 = vmatpush2.msra.mxu1 %v5143_v21  ;;  %v5578_v7 = vld [vmem:[%s13065_s4 + $0x50] sm:$0xff]  ;;  %v5593_v26 = vld [vmem:[%s13065_s4 + $0xc8] sm:$0xff] }
 0x8e4   :  { %5391 = vmatprep.subr.mxu0 %v5134_v27  ;;  %5462 = vmatprep.subr.mxu1 %v5136_v50  ;;  %v5577_v21 = vld [vmem:[%s13065_s4 + $0x48] sm:$0xff]  ;;  %v5592_v27 = vld [vmem:[%s13065_s4 + $0xc0] sm:$0xff] }
 0x8e5   :  { %5392 = vmatpush2.msra.mxu0 %v5133_v54  ;;  %5463 = vmatpush2.msra.mxu1 %v5135_v55  ;;  %v5576_v50 = vld [vmem:[%s13065_s4 + $0x40] sm:$0xff]  ;;  %v5591_v54 = vld [vmem:[%s13065_s4 + $0xb8] sm:$0xff] }
 0x8e6   :  { %5393 = vmatprep.subr.mxu0 %v5126_v16  ;;  %5464 = vmatprep.subr.mxu1 %v5128_v43  ;;  %v5575_v55 = vld [vmem:[%s13065_s4 + $0x38] sm:$0xff]  ;;  %v5590_v16 = vld [vmem:[%s13065_s4 + $0xb0] sm:$0xff] }
 0x8e7   :  { %5394 = vmatpush2.msra.mxu0 %v5125_v23  ;;  %5465 = vmatpush2.msra.mxu1 %v5127_v24  ;;  %v5574_v43 = vld [vmem:[%s13065_s4 + $0x30] sm:$0xff]  ;;  %v5589_v23 = vld [vmem:[%s13065_s4 + $0xa8] sm:$0xff] }
 0x8e8   :  { %5395 = vmatprep.subr.mxu0 %v5118_v51  ;;  %5466 = vmatprep.subr.mxu1 %v5120_v57  ;;  %v5573_v24 = vld [vmem:[%s13065_s4 + $0x28] sm:$0xff]  ;;  %v5588_v51 = vld [vmem:[%s13065_s4 + $0xa0] sm:$0xff] }
 0x8e9   :  { %5396 = vmatpush2.msra.mxu0 %v5117_v49  ;;  %5467 = vmatpush2.msra.mxu1 %v5119_v45  ;;  %v5572_v57 = vld [vmem:[%s13065_s4 + $0x20] sm:$0xff]  ;;  %v5587_v49 = vld [vmem:[%s13065_s4 + $0x98] sm:$0xff] }
 0x8ea   :  { %5397 = vmatprep.subr.mxu0 %v5110_v63  ;;  %5468 = vmatprep.subr.mxu1 %v5112_v32  ;;  %v5571_v45 = vld [vmem:[%s13065_s4 + $0x18] sm:$0xff]  ;;  %v5586_v63 = vld [vmem:[%s13065_s4 + $0x90] sm:$0xff] }
 0x8eb   :  { %5398 = vmatpush2.msra.mxu0 %v5109_v18  ;;  %5469 = vmatpush2.msra.mxu1 %v5111_v2  ;;  %v5570_v32 = vld [vmem:[%s13065_s4 + $0x10] sm:$0xff]  ;;  %v5585_v18 = vld [vmem:[%s13065_s4 + $0x88] sm:$0xff] }
 0x8ec   :  { %5399 = vmatprep.subr.mxu0 %v5102_v37  ;;  %5470 = vmatprep.subr.mxu1 %v5104_v22  ;;  %v5569_v2 = vld [vmem:[%s13065_s4 + $0x8] sm:$0xff]  ;;  %v5584_v37 = vld [vmem:[%s13065_s4 + $0x80] sm:$0xff] }
 0x8ed   :  { %5400 = vmatpush2.msra.mxu0 %v5101_v6  ;;  %5471 = vmatpush2.msra.mxu1 %v5103_v60  ;;  %v5568_v22 = vld [vmem:[%s13065_s4] sm:$0xff]  ;;  %v1243_v6 = vmax.f32 %v7728_v11, 0.0  ;;  %v1858_v60 = vmax.f32 %v8524_v62, 0.0  ;;  %v3700_v11 = vmax.f32 %v10918_v58, 0.0  ;;  %v3699_v62 = vmax.f32 %v10920_v52, 0.0 }
 0x8ee   :  { %5401 = vmatprep.subr.mxu0 %v5094_v31  ;;  %5472 = vmatprep.subr.mxu1 %v5096_v9  ;;  %v1857_v31 = vmax.f32 %v8526_v1, 0.0  ;;  %v2472_v9 = vmax.f32 %v9322_v53, 0.0  ;;  %v4314_v1 = vmax.f32 %v11716_v17, 0.0  ;;  %v4313_v53 = vmax.f32 %v11718_v5, 0.0  ;;  %v13100_v17 = vld [vmem:[#allocation10_spill] sm:$0xff] }
 0x8ef   :  { %5402 = vmatpush2.msra.mxu0 %v5093_v12  ;;  %5473 = vmatpush2.msra.mxu1 %v5095_v19  ;;  %v2471_v12 = vmax.f32 %v9324_v56, 0.0  ;;  %v3086_v19 = vmax.f32 %v10120_v39, 0.0  ;;  %v4928_v56 = vmax.f32 %v12514_v41, 0.0  ;;  %v4927_v39 = vmax.f32 %v12516_v3, 0.0 }
 0x8f0   :  { %5403 = vmatprep.subr.mxu0 %v5086_v34  ;;  %5474 = vmatprep.subr.mxu1 %v5088_v59  ;;  %v3085_v34 = vmax.f32 %v10122_v14, 0.0  ;;  %v11_v14 = vstv %s13066_s5 }
 0x8f1   :  { %5404 = vmatpush2.msra.mxu0 %v5085_v47  ;;  %5475 = vmatpush2.msra.mxu1 %v5087_v15  ;;  %12 = vst [vmem:[#allocation6] sm:$0x1] %v11_v14  ;;  %v13101_v15 = vld [vmem:[#allocation20_spill] sm:$0xff] }
 0x8f2   :  { %5405 = vmatprep.subr.mxu0 %v5078_v48  ;;  %5476 = vmatprep.subr.mxu1 %v5080_v44  ;;  %v13102_v44 = vld [vmem:[#allocation12_spill] sm:$0xff] }
 0x8f3   :  { %5406 = vmatpush2.msra.mxu0 %v5077_v29  ;;  %5477 = vmatpush2.msra.mxu1 %v5079_v42  ;;  %v13103_v42 = vld [vmem:[#allocation21_spill] sm:$0xff] }
 0x8f4   :  { %5408 = vmatmul.mubr.f32.vlgmr.msra.gmra.mxu0 %v12516_v3  ;;  %5479 = vmatmul.mubr.f32.vlgmr.msra.gmra.mxu1 %v12516_v3 }
 0x8f5   :  { %5820 = vmatprep.subr.mxu0 %v5599_v40  ;;  %5671 = vmatprep.mubr.f32.mxu0 %v1244_v38 }
 0x8f6   :  { %5821 = vmatpush3.msra.mxu0 %v5583_v35 }
 0x8f7   :  { %5822 = vmatprep.subr.mxu0 %v5598_v8 }
 0x8f8   :  { %5823 = vmatpush3.msra.mxu0 %v5582_v46 }
 0x8f9   :  { %5824 = vmatprep.subr.mxu0 %v5597_v20 }
 0x8fa   :  { %5825 = vmatpush3.msra.mxu0 %v5581_v25 }
 0x8fb   :  { %5826 = vmatprep.subr.mxu0 %v5596_v10 }
 0x8fc   :  { %5827 = vmatpush3.msra.mxu0 %v5580_v28 }
 0x8fd   :  { %5828 = vmatprep.subr.mxu0 %v5595_v0 }
 0x8fe   :  { %5829 = vmatpush3.msra.mxu0 %v5579_v13  ;;  %v13104_v13 = vld [vmem:[#allocation25_spill] sm:$0xff] }
 0x8ff   :  { %5830 = vmatprep.subr.mxu0 %v5594_v33  ;;  %v564_v33 = vadd.f32 %v13104_v13, %v7713_v36 }
 0x900   :  { %5831 = vmatpush3.msra.mxu0 %v5578_v7 }
 0x901   :  { %5832 = vmatprep.subr.mxu0 %v5593_v26 }
 0x902   :  { %5833 = vmatpush3.msra.mxu0 %v5577_v21 }
 0x903   :  { %5834 = vmatprep.subr.mxu0 %v5592_v27  ;;  %v13105_v27 = vld [vmem:[#allocation26_spill] sm:$0xff] }
 0x904   :  { %5835 = vmatpush3.msra.mxu0 %v5576_v50  ;;  %v566_v50 = vadd.f32 %v13105_v27, %v7716_v61 }
 0x905   :  { %5836 = vmatprep.subr.mxu0 %v5591_v54  ;;  %v13106_v54 = vld [vmem:[#allocation15_spill] sm:$0xff] }
 0x906   :  { %5837 = vmatpush3.msra.mxu0 %v5575_v55 }
 0x907   :  { %5838 = vmatprep.subr.mxu0 %v5590_v16 }
 0x908   :  { %5839 = vmatpush3.msra.mxu0 %v5574_v43 }
 0x909   :  { %5840 = vmatprep.subr.mxu0 %v5589_v23 }
 0x90a   :  { %5841 = vmatpush3.msra.mxu0 %v5573_v24 }
 0x90b   :  { %5842 = vmatprep.subr.mxu0 %v5588_v51  ;;  %v13107_v51 = vld [vmem:[#allocation16_spill] sm:$0xff] }
 0x90c   :  { %5843 = vmatpush3.msra.mxu0 %v5572_v57 }
 0x90d   :  { %5844 = vmatprep.subr.mxu0 %v5587_v49 }
 0x90e   :  { %5845 = vmatpush3.msra.mxu0 %v5571_v45 }
 0x90f   :  { %5846 = vmatprep.subr.mxu0 %v5586_v63 }
 0x910   :  { %5847 = vmatpush3.msra.mxu0 %v5570_v32 }
 0x911   :  { %5848 = vmatprep.subr.mxu0 %v5585_v18 }
 0x912   :  { %5849 = vmatpush3.msra.mxu0 %v5569_v2 }
 0x913   :  { %5850 = vmatprep.subr.mxu0 %v5584_v37 }
 0x914   :  { %5851 = vmatpush3.msra.mxu0 %v5568_v22 }
 0x915   :  { %5672 = vmatmul.mubr.f32.vlgmr.msra.gmra.mxu0 %v1243_v6 }
 0x916   :  { %5676 = vmatprep.mubr.f32.mxu0 %v1858_v60 }
 0x919   :  { %5677 = vmatmul.mubr.f32.gmra.mxu0 %v1857_v31 }
 0x91a   :  { %5681 = vmatprep.mubr.f32.mxu0 %v2472_v9 }
 0x91d   :  { %5682 = vmatmul.mubr.f32.gmra.mxu0 %v2471_v12 }
 0x91e   :  { %5686 = vmatprep.mubr.f32.mxu0 %v3086_v19 }
 0x921   :  { %5687 = vmatmul.mubr.f32.gmra.mxu0 %v3085_v34 }
 0x922   :  { %5691 = vmatprep.mubr.f32.mxu0 %v3700_v11 }
 0x925   :  { %5692 = vmatmul.mubr.f32.gmra.mxu0 %v3699_v62 }
 0x926   :  { %5696 = vmatprep.mubr.f32.mxu0 %v4314_v1 }
 0x929   :  { %5697 = vmatmul.mubr.f32.gmra.mxu0 %v4313_v53 }
 0x92a   :  { %5701 = vmatprep.mubr.f32.mxu0 %v4928_v56  ;;  %v5819_v56 = vld [vmem:[#allocation6] ss:$0 sm:$0xff] }
 0x92d   :  { %5702 = vmatmul.mubr.f32.gmra.mxu0 %v4927_v39 }
 0x973   :  { %v5267_v58 = vpop.f32.mrf.mxu0  ;;  %v5338_v52 = vpop.f32.mrf.mxu1 }
 0x974   :  { %v5485_v47 = vadd.f32 %v5267_v58, %v13100_v17  ;;  %v5487_v48 = vadd.f32 %v5338_v52, %v13101_v15 }
 0x975   :  { %v5269_v59 = vpop.f32.mrf.mxu0  ;;  %v5340_v5 = vpop.f32.mrf.mxu1 }
 0x976   :  { %v5486_v41 = vadd.f32 %v5269_v59, %v13102_v44  ;;  %v5813_v29 = vmul.f32 -1.442695, %v5485_v47  ;;  %v5488_v40 = vadd.f32 %v5340_v5, %v13103_v42  ;;  %v5815_v3 = vmul.f32 -1.442695, %v5487_v48 }
 0x978   :  { %v5814_v35 = vmul.f32 -1.442695, %v5486_v41  ;;  %6101 = vpow2.f32 %v5813_v29  ;;  %v5816_v38 = vmul.f32 -1.442695, %v5488_v40 }
 0x979   :  { %6103 = vpow2.f32 %v5815_v3 }
 0x97a   :  { %6105 = vpow2.f32 %v5814_v35 }
 0x97b   :  { %6107 = vpow2.f32 %v5816_v38 }
 0x985   :  { %v6102_v8 = vpop.eup %6101 }
 0x986   :  { %v6104_v46 = vpop.eup %6103  ;;  %v5499_v25 = vadd.f32 1.0, %v6102_v8 }
 0x987   :  { %v6106_v20 = vpop.eup %6105  ;;  %v5511_v28 = vadd.f32 1.0, %v6104_v46 }
 0x988   :  { %v6108_v10 = vpop.eup %6107  ;;  %v5500_v0 = vadd.f32 1.0, %v6106_v20  ;;  %6109 = vrcp.f32 %v5499_v25 }
 0x989   :  { %v5512_v7 = vadd.f32 1.0, %v6108_v10  ;;  %6111 = vrcp.f32 %v5511_v28 }
 0x98a   :  { %6113 = vrcp.f32 %v5500_v0 }
 0x995   :  { %v6110_v45 = vpop.eup %6109 }
 0x996   :  { %v6112_v63 = vpop.eup %6111 }
 0x997   :  { %v6114_v61 = vpop.eup %6113  ;;  %v5531_v2 = vmul.f32 %v6112_v63, %v12507_v30 }
 0x9b4   :  { %v5409_v26 = vpop.f32.mrf.mxu0  ;;  %v5480_v21 = vpop.f32.mrf.mxu1 }
 0x9b5   :  { %v5489_v55 = vadd.f32 %v5409_v26, %v13106_v54  ;;  %v5491_v16 = vadd.f32 %v5480_v21, %v564_v33 }
 0x9b6   :  { %v5411_v43 = vpop.f32.mrf.mxu0  ;;  %v5482_v23 = vpop.f32.mrf.mxu1 }
 0x9b7   :  { %6115 = vtanh.f32 %v5489_v55  ;;  %v5817_v24 = vmul.f32 -1.442695, %v5491_v16  ;;  %v5490_v57 = vadd.f32 %v5411_v43, %v13107_v51  ;;  %v5492_v49 = vadd.f32 %v5482_v23, %v566_v50 }
 0x9b8   :  { %6117 = vrcp.f32 %v5512_v7 }
 0x9b9   :  { %6119 = vpow2.f32 %v5817_v24  ;;  %v5818_v36 = vmul.f32 -1.442695, %v5492_v49 }
 0x9ba   :  { %6121 = vtanh.f32 %v5490_v57 }
 0x9bb   :  { %6123 = vpow2.f32 %v5818_v36 }
 0x9c4   :  { %v6116_v32 = vpop.eup %6115 }
 0x9c5   :  { %v6118_v18 = vpop.eup %6117  ;;  %v5533_v37 = vmul.f32 %v6116_v32, %v6110_v45 }
 0x9c6   :  { %v6120_v22 = vpop.eup %6119  ;;  %v5532_v12 = vmul.f32 %v6118_v18, %v12511_v4 }
 0x9c7   :  { %v6122_v6 = vpop.eup %6121  ;;  %v5535_v60 = vadd.f32 %v5533_v37, %v5531_v2  ;;  %v5525_v31 = vadd.f32 1.0, %v6120_v22 }
 0x9c8   :  { %v6124_v9 = vpop.eup %6123  ;;  %v5534_v19 = vmul.f32 %v6122_v6, %v6114_v61 }
 0x9c9   :  { %6125 = vtanh.f32 %v5535_v60  ;;  %v5526_v34 = vadd.f32 1.0, %v6124_v9 }
 0x9ca   :  { %6127 = vrcp.f32 %v5525_v31  ;;  %v5536_v11 = vadd.f32 %v5534_v19, %v5532_v12 }
 0x9cb   :  { %6129 = vrcp.f32 %v5526_v34 }
 0x9cc   :  { %6131 = vtanh.f32 %v5536_v11 }
 0x9d5   :  { %v5852_v62 = vpop.f32.mrf.mxu0 }
 0x9d6   :  { %v6126_v1 = vpop.eup %6125 }
 0x9d7   :  { %v6128_v53 = vpop.eup %6127  ;;  %v5853_v30 = vpop.f32.mrf.mxu0 }
 0x9d8   :  { %v6130_v39 = vpop.eup %6129  ;;  %v5854_v14 = vadd.f32 %v5853_v30, %v5852_v62  ;;  %v5539_v58 = vmul.f32 %v6128_v53, %v6126_v1 }
 0x9d9   :  { %v6132_v52 = vpop.eup %6131  ;;  %v5855_v59 = vpop.f32.mrf.mxu0 }
 0x9da   :  { %v5674_v17 = vadd.f32 %v5854_v14, %v5819_v56  ;;  %v5540_v4 = vmul.f32 %v6132_v52, %v6130_v39  ;;  %v5541_v44 = vmax.f32 %v5539_v58, 0.0 }
 0x9db   :  { %v5856_v47 = vpop.f32.mrf.mxu0 }
 0x9dc   :  { %5713 = vst.msk [vmem:[%s13067_s6] sm:$0xff] %vm5712_vm1, %v5674_v17  ;;  %v5857_v15 = vadd.f32 %v5856_v47, %v5855_v59  ;;  %v5542_v48 = vmax.f32 %v5540_v4, 0.0 }
 0x9dd   :  { %v5858_v5 = vpop.f32.mrf.mxu0 }
 0x9de   :  { %v5679_v41 = vadd.f32 %v5857_v15, %v5819_v56  ;;  %5706 = vmatprep.mubr.f32.mxu0 %v5542_v48 }
 0x9df   :  { %v5859_v29 = vpop.f32.mrf.mxu0  ;;  %5707 = vmatmul.mubr.f32.gmra.mxu0 %v5541_v44 }
 0x9e0   :  { %5714 = vst.msk [vmem:[%s13067_s6 + $0x8] sm:$0xff] %vm5712_vm1, %v5679_v41  ;;  %v5860_v42 = vadd.f32 %v5859_v29, %v5858_v5 }
 0x9e1   :  { %v5861_v40 = vpop.f32.mrf.mxu0 }
 0x9e2   :  { %v5684_v3 = vadd.f32 %v5860_v42, %v5819_v56 }
 0x9e3   :  { %v5862_v35 = vpop.f32.mrf.mxu0 }
 0x9e4   :  { %5715 = vst.msk [vmem:[%s13067_s6 + $0x10] sm:$0xff] %vm5712_vm1, %v5684_v3  ;;  %v5863_v38 = vadd.f32 %v5862_v35, %v5861_v40 }
 0x9e5   :  { %v5864_v8 = vpop.f32.mrf.mxu0 }
 0x9e6   :  { %v5689_v46 = vadd.f32 %v5863_v38, %v5819_v56 }
 0x9e7   :  { %v5865_v20 = vpop.f32.mrf.mxu0 }
 0x9e8   :  { %5716 = vst.msk [vmem:[%s13067_s6 + $0x18] sm:$0xff] %vm5712_vm1, %v5689_v46  ;;  %v5866_v25 = vadd.f32 %v5865_v20, %v5864_v8 }
 0x9e9   :  { %v5867_v10 = vpop.f32.mrf.mxu0 }
 0x9ea   :  { %v5694_v28 = vadd.f32 %v5866_v25, %v5819_v56 }
 0x9eb   :  { %v5868_v0 = vpop.f32.mrf.mxu0 }
 0x9ec   :  { %5717 = vst.msk [vmem:[%s13067_s6 + $0x20] sm:$0xff] %vm5712_vm1, %v5694_v28  ;;  %v5869_v13 = vadd.f32 %v5868_v0, %v5867_v10 }
 0x9ed   :  { %v5870_v33 = vpop.f32.mrf.mxu0 }
 0x9ee   :  { %v5699_v7 = vadd.f32 %v5869_v13, %v5819_v56 }
 0x9ef   :  { %v5871_v26 = vpop.f32.mrf.mxu0 }
 0x9f0   :  { %5718 = vst.msk [vmem:[%s13067_s6 + $0x28] sm:$0xff] %vm5712_vm1, %v5699_v7  ;;  %v5872_v21 = vadd.f32 %v5871_v26, %v5870_v33 }
 0x9f2   :  { %v5704_v27 = vadd.f32 %v5872_v21, %v5819_v56 }
 0x9f4   :  { %5719 = vst.msk [vmem:[%s13067_s6 + $0x30] sm:$0xff] %vm5712_vm1, %v5704_v27 }
 0xa9f   :  { %v5873_v50 = vpop.f32.mrf.mxu0 }
 0xaa1   :  { %v5874_v54 = vpop.f32.mrf.mxu0 }
 0xaa2   :  { %v5875_v55 = vadd.f32 %v5874_v54, %v5873_v50 }
 0xaa4   :  { %v5709_v16 = vadd.f32 %v5875_v55, %v5819_v56 }
 0xaa6   :  { %5720 = vst.msk [vmem:[%s13067_s6 + $0x38] sm:$0xff] %vm5712_vm1, %v5709_v16 }

</bundles_post_ra>
